<compile_context>
chip_gen: v7x
topology: tpu7x:2x2x1
jax: 0.10.0
libtpu: 0.0.40
codegen_flags: <defaults>
</compile_context>

<pallas_src>
import functools
import math

import jax
import jax.numpy as jnp
from jax import lax
from jax.experimental import pallas as pl
from jax.experimental.pallas import tpu as pltpu


# ---------------------------------------------------------------------------
# Kernel 1: per-image matmul + bias + ReLU (conv1 after glue im2col).
# ---------------------------------------------------------------------------
def _mm_bias_relu_kernel(a_ref, w_ref, b_ref, o_ref):
    acc = jnp.dot(a_ref[0], w_ref[...], preferred_element_type=jnp.float32)
    acc = jnp.maximum(acc + b_ref[...], 0.0)
    o_ref[0] = acc.astype(o_ref.dtype)


def mm_bias_relu(a, w, b, out_dtype=jnp.bfloat16):
    """a: (S, M, K) bf16, w: (K, N) bf16, b: (1, N) f32 -> (S, M, N) out_dtype."""
    S, M, K = a.shape
    N = w.shape[-1]
    flops = 2 * S * M * K * N
    bytes_accessed = int(a.size) * 2 + int(w.size) * 2 + S * M * N * 2 + int(b.size) * 4
    return pl.pallas_call(
        _mm_bias_relu_kernel,
        out_shape=jax.ShapeDtypeStruct((S, M, N), out_dtype),
        grid_spec=pltpu.PrefetchScalarGridSpec(
            num_scalar_prefetch=0,
            grid=(S,),
            in_specs=[
                pl.BlockSpec((1, M, K), lambda s: (s, 0, 0)),
                pl.BlockSpec((K, N), lambda s: (0, 0)),
                pl.BlockSpec((1, N), lambda s: (0, 0)),
            ],
            out_specs=pl.BlockSpec((1, M, N), lambda s: (s, 0, 0)),
        ),
        compiler_params=pltpu.CompilerParams(dimension_semantics=("parallel",)),
        cost_estimate=pl.CostEstimate(flops=flops, transcendentals=0,
                                      bytes_accessed=bytes_accessed),
    )(a, w, b)


def conv1_layer(x, w, b, *, k=11, stride=4, pad=2):
    """AlexNet conv1 (11x11, stride 4, pad 2), NHWC bf16."""
    S, H, W, C = x.shape
    xp = jnp.pad(x, ((0, 0), (pad, pad), (pad, pad), (0, 0)))
    Ho = (H + 2 * pad - k) // stride + 1
    Wo = (W + 2 * pad - k) // stride + 1
    # TODO(synk): stride-4 11x11 im2col stays in XLA glue (strided gather); the
    # expanded matrix is tiny (<1 MB) and one dense K=363 matmul beats 121 K=3
    # MXU passes.
    taps = []
    for i in range(k):
        for j in range(k):
            taps.append(xp[:, i:i + stride * Ho:stride, j:j + stride * Wo:stride, :])
    col = jnp.stack(taps, axis=3).reshape(S, Ho * Wo, k * k * C)
    out = mm_bias_relu(col, w, b)                       # (S, Ho*Wo, 64) bf16
    return out.reshape(S, Ho, Wo, -1)


# ---------------------------------------------------------------------------
# Kernel 2: fused stride-1 'same' conv + bias + ReLU with in-VMEM im2col.
# The padded image is flattened to (Lp, Cin); tap (i, j) is the contiguous row
# window [i*Wp + j, i*Wp + j + Ho*Wp) matmul'd against its (Cin, Cout) weight
# slice and accumulated in f32. Overhang columns are never stored.
# ---------------------------------------------------------------------------
def _conv_s1_kernel(x_ref, w_ref, b_ref, o_ref, *, k, Ho, Wo, Wp):
    cout = b_ref.shape[-1]
    m = Ho * Wp
    acc = jnp.zeros((m, cout), jnp.float32)
    for i in range(k):
        for j in range(k):
            start = i * Wp + j
            a = x_ref[0, start:start + m, :]                  # (Ho*Wp, Cin) bf16
            acc = acc + jnp.dot(a, w_ref[i * k + j],
                                preferred_element_type=jnp.float32)
    acc = jnp.maximum(acc + b_ref[...], 0.0).astype(o_ref.dtype)
    for oh in range(Ho):                                      # drop overhang cols
        o_ref[0, oh, :, :] = acc[oh * Wp:oh * Wp + Wo, :]


def conv_s1_same(x, w, b, *, k):
    """x: (S, H, W, Cin) bf16; w: (k*k, Cin, Cout) bf16; b: (1, Cout) f32."""
    S, H, W, Cin = x.shape
    pad = (k - 1) // 2
    Ho, Wo = H, W
    Hp, Wp = H + 2 * pad, W + 2 * pad
    # one extra zero row at the bottom keeps the last tap's flat window in-bounds
    xp = jnp.pad(x, ((0, 0), (pad, pad + 1), (pad, pad), (0, 0)))
    Lp = (Hp + 1) * Wp
    xf = xp.reshape(S, Lp, Cin)
    Cout = w.shape[-1]
    kernel = functools.partial(_conv_s1_kernel, k=k, Ho=Ho, Wo=Wo, Wp=Wp)
    flops = 2 * S * Ho * Wp * k * k * Cin * Cout
    bytes_accessed = int(xf.size) * 2 + int(w.size) * 2 + S * Ho * Wo * Cout * 2 + int(b.size) * 4
    return pl.pallas_call(
        kernel,
        out_shape=jax.ShapeDtypeStruct((S, Ho, Wo, Cout), jnp.bfloat16),
        grid_spec=pltpu.PrefetchScalarGridSpec(
            num_scalar_prefetch=0,
            grid=(S,),
            in_specs=[
                pl.BlockSpec((1, Lp, Cin), lambda s: (s, 0, 0)),
                pl.BlockSpec((k * k, Cin, Cout), lambda s: (0, 0, 0)),
                pl.BlockSpec((1, Cout), lambda s: (0, 0)),
            ],
            out_specs=pl.BlockSpec((1, Ho, Wo, Cout), lambda s: (s, 0, 0, 0)),
        ),
        compiler_params=pltpu.CompilerParams(dimension_semantics=("parallel",)),
        cost_estimate=pl.CostEstimate(flops=flops, transcendentals=0,
                                      bytes_accessed=bytes_accessed),
    )(xf, w, b)


# ---------------------------------------------------------------------------
# MaxPool2d(3, 2) (ceil_mode=False) — cheap single pass, kept as XLA glue.
# ---------------------------------------------------------------------------
def maxpool_3x3_s2(x):
    # TODO(synk): MaxPool2d(3,2) stays as lax.reduce_window glue (NHWC, VALID).
    neg_inf = jnp.array(-jnp.inf, dtype=x.dtype)
    return lax.reduce_window(
        x, neg_inf, lax.max,
        window_dimensions=(1, 3, 3, 1),
        window_strides=(1, 2, 2, 1),
        padding=((0, 0), (0, 0), (0, 0), (0, 0)))


# ---------------------------------------------------------------------------
# Kernel 3: fused head. GAP over HW -> max over slices -> Linear(256, 1).
# C = 256 sits on lanes (lane-dense), reductions are sublane/XLU ops.
# ---------------------------------------------------------------------------
def _head_kernel(f_ref, w_ref, b_ref, o_ref):
    f = f_ref[...].astype(jnp.float32)                # (S, HW, C)
    gap = jnp.mean(f, axis=1)                         # (S, C)  AdaptiveAvgPool2d(1)
    m = jnp.max(gap, axis=0, keepdims=True)           # (1, C)  torch.max(x, 0)[0]
    o_ref[...] = jnp.sum(m * w_ref[...], axis=-1, keepdims=True) + b_ref[...]


def head(f, w, b):
    S, HW, C = f.shape
    return pl.pallas_call(
        _head_kernel,
        out_shape=jax.ShapeDtypeStruct((1, 1), jnp.float32),
        grid_spec=pltpu.PrefetchScalarGridSpec(
            num_scalar_prefetch=0,
            grid=(1,),
            in_specs=[
                pl.BlockSpec((S, HW, C), lambda i: (0, 0, 0)),
                pl.BlockSpec((1, C), lambda i: (0, 0)),
                pl.BlockSpec((1, 1), lambda i: (0, 0)),
            ],
            out_specs=pl.BlockSpec((1, 1), lambda i: (0, 0)),
        ),
    )(f, w, b)


# ---------------------------------------------------------------------------
# AlexNet .features config + parameter init (kernel-ready layout, prepared once).
# ---------------------------------------------------------------------------
ALEXNET_FEATURES = [
    # (k, stride, pad, cin, cout)
    (11, 4, 2, 3, 64),
    (5, 1, 2, 64, 192),
    (3, 1, 1, 192, 384),
    (3, 1, 1, 384, 256),
    (3, 1, 1, 256, 256),
]


def init_params(key):
    # TODO(synk): pretrained torchvision AlexNet weights are unavailable here;
    # weights are randomly initialized (forward semantics unchanged).
    def conv_init(kk, k, cin, cout):
        k1, k2 = jax.random.split(kk)
        fan_in = cin * k * k
        w = jax.random.normal(k1, (k, k, cin, cout), jnp.float32) / math.sqrt(fan_in)
        b = 0.01 * jax.random.normal(k2, (1, cout), jnp.float32)
        return w, b

    keys = jax.random.split(key, len(ALEXNET_FEATURES) + 1)
    params = {}
    k, s, p, cin, cout = ALEXNET_FEATURES[0]
    w, b = conv_init(keys[0], k, cin, cout)
    params['conv1'] = (w.reshape(k * k * cin, cout).astype(jnp.bfloat16), b)
    for idx in range(1, len(ALEXNET_FEATURES)):
        k, s, p, cin, cout = ALEXNET_FEATURES[idx]
        w, b = conv_init(keys[idx], k, cin, cout)
        params[f'conv{idx + 1}'] = (w.reshape(k * k, cin, cout).astype(jnp.bfloat16), b)
    kc1, kc2 = jax.random.split(keys[-1])
    params['cls_w'] = jax.random.normal(kc1, (1, 256), jnp.float32) / math.sqrt(256.0)
    params['cls_b'] = 0.01 * jax.random.normal(kc2, (1, 1), jnp.float32)
    return params


# ---------------------------------------------------------------------------
# MRNet forward: squeeze(0) -> AlexNet features -> GAP -> max over slices -> FC.
# ---------------------------------------------------------------------------
def mrnet_forward(x, params):
    x = jnp.squeeze(x, axis=0)                              # (S, 3, H, W)
    # single NCHW -> NHWC transpose at the input; everything stays NHWC after.
    x = x.transpose(0, 2, 3, 1).astype(jnp.bfloat16)        # (S, H, W, 3)
    x = conv1_layer(x, *params['conv1'])                    # (S, 15, 15, 64)
    x = maxpool_3x3_s2(x)                                   # (S, 7, 7, 64)
    x = conv_s1_same(x, *params['conv2'], k=5)              # (S, 7, 7, 192)
    x = maxpool_3x3_s2(x)                                   # (S, 3, 3, 192)
    x = conv_s1_same(x, *params['conv3'], k=3)              # (S, 3, 3, 384)
    x = conv_s1_same(x, *params['conv4'], k=3)              # (S, 3, 3, 256)
    x = conv_s1_same(x, *params['conv5'], k=3)              # (S, 3, 3, 256)
    x = maxpool_3x3_s2(x)                                   # (S, 1, 1, 256)
    S = x.shape[0]
    f = x.reshape(S, -1, 256)                               # (S, HW, 256), C on lanes
    return head(f, params['cls_w'], params['cls_b'])        # (1, 1)


if __name__ == "__main__":
    key = jax.random.PRNGKey(0)
    kx, kp = jax.random.split(key)
    # (batch=1, slices=4, channels=3, 64x64): smallest MRNet-style slice stack
    # that keeps AlexNet's feature pyramid valid (64 -> 15 -> 7 -> 3 -> 1).
    x = jax.random.normal(kx, (1, 4, 3, 64, 64), jnp.float32)
    params = init_params(kp)

    fwd = jax.jit(mrnet_forward)
    out = jax.block_until_ready(fwd(x, params))

    assert out.shape == (1, 1), out.shape
    assert bool(jnp.all(jnp.isfinite(out)))
    print("KERNEL_OK")
</pallas_src>

<mosaic_0001>
module attributes {stable_mosaic.version = 11 : i64} {
  func.func @_mm_bias_relu_kernel(%arg0: i32, %arg1: memref<1x225x363xbf16, #tpu.memory_space<vmem>>, %arg2: memref<363x64xbf16, #tpu.memory_space<vmem>>, %arg3: memref<1x64xf32, #tpu.memory_space<vmem>>, %arg4: memref<1x225x64xbf16, #tpu.memory_space<vmem>>) attributes {dimension_semantics = [#tpu.dimension_semantics<parallel>], iteration_bounds = array<i64: 4>, scalar_prefetch = 0 : i64, scratch_operands = 0 : i64, tpu.core_type = #tpu.core_type<tc>, window_params = [{transform_indices = @transform_0, window_bounds = array<i64: 1, 225, 363>}, {pipeline_mode = #tpu.pipeline_mode<synchronous>, transform_indices = @transform_1, window_bounds = array<i64: 363, 64>}, {pipeline_mode = #tpu.pipeline_mode<synchronous>, transform_indices = @transform_2, window_bounds = array<i64: 1, 64>}, {transform_indices = @transform_3, window_bounds = array<i64: 1, 225, 64>}]} {
    %c0 = arith.constant 0 : index
    %c0_0 = arith.constant 0 : index
    %c0_1 = arith.constant 0 : index
    %0 = vector.load %arg1[%c0, %c0_0, %c0_1] : memref<1x225x363xbf16, #tpu.memory_space<vmem>>, vector<1x225x363xbf16>
    %1 = vector.shape_cast %0 : vector<1x225x363xbf16> to vector<225x363xbf16>
    %c0_2 = arith.constant 0 : index
    %c0_3 = arith.constant 0 : index
    %2 = vector.load %arg2[%c0_2, %c0_3] : memref<363x64xbf16, #tpu.memory_space<vmem>>, vector<363x64xbf16>
    %cst = arith.constant dense<0.000000e+00> : vector<225x64xf32>
    %3 = tpu.matmul %1, %2, %cst {dimension_numbers = #tpu.dot_dimension_numbers<[1], [0], [0], [1], [0, 0, 1, 1], [], []>} : vector<225x363xbf16>, vector<363x64xbf16>, vector<225x64xf32> -> vector<225x64xf32>
    %c0_4 = arith.constant 0 : index
    %c0_5 = arith.constant 0 : index
    %4 = vector.load %arg3[%c0_4, %c0_5] : memref<1x64xf32, #tpu.memory_space<vmem>>, vector<1x64xf32>
    %5 = vector.broadcast %4 : vector<1x64xf32> to vector<225x64xf32>
    %6 = arith.addf %3, %5 : vector<225x64xf32>
    %cst_6 = arith.constant 0.000000e+00 : f32
    %7 = vector.broadcast %cst_6 : f32 to vector<225x64xf32>
    %8 = arith.maximumf %6, %7 : vector<225x64xf32>
    %9 = arith.truncf %8 : vector<225x64xf32> to vector<225x64xbf16>
    %c0_7 = arith.constant 0 : index
    %c0_8 = arith.constant 0 : index
    %c0_9 = arith.constant 0 : index
    %10 = vector.load %arg4[%c0_7, %c0_8, %c0_9] : memref<1x225x64xbf16, #tpu.memory_space<vmem>>, vector<1x225x64xbf16>
    %11 = vector.shape_cast %10 : vector<1x225x64xbf16> to vector<225x64xbf16>
    %12 = vector.shape_cast %9 : vector<225x64xbf16> to vector<1x225x64xbf16>
    tpu.vector_store %arg4[%c0_7, %c0_8, %c0_9], %12 {strides = array<i32>} : memref<1x225x64xbf16, #tpu.memory_space<vmem>>, vector<1x225x64xbf16>,
    return
  }
  func.func @transform_0(%arg0: i32) -> (i32, i32, i32) {
    %c0_i32 = arith.constant 0 : i32
    %c0_i32_0 = arith.constant 0 : i32
    %c0_i32_1 = arith.constant 0 : i32
    return %arg0, %c0_i32, %c0_i32_0 : i32, i32, i32
  }
  func.func @transform_1(%arg0: i32) -> (i32, i32) {
    %c0_i32 = arith.constant 0 : i32
    %c0_i32_0 = arith.constant 0 : i32
    %c0_i32_1 = arith.constant 0 : i32
    return %c0_i32, %c0_i32_0 : i32, i32
  }
  func.func @transform_2(%arg0: i32) -> (i32, i32) {
    %c0_i32 = arith.constant 0 : i32
    %c0_i32_0 = arith.constant 0 : i32
    %c0_i32_1 = arith.constant 0 : i32
    return %c0_i32, %c0_i32_0 : i32, i32
  }
  func.func @transform_3(%arg0: i32) -> (i32, i32, i32) {
    %c0_i32 = arith.constant 0 : i32
    %c0_i32_0 = arith.constant 0 : i32
    %c0_i32_1 = arith.constant 0 : i32
    return %arg0, %c0_i32, %c0_i32_0 : i32, i32, i32
  }
}

module attributes {stable_mosaic.version = 11 : i64} {
  func.func @_conv_s1_kernel(%arg0: i32, %arg1: memref<1x132x64xbf16, #tpu.memory_space<vmem>>, %arg2: memref<25x64x192xbf16, #tpu.memory_space<vmem>>, %arg3: memref<1x192xf32, #tpu.memory_space<vmem>>, %arg4: memref<1x7x7x192xbf16, #tpu.memory_space<vmem>>) attributes {dimension_semantics = [#tpu.dimension_semantics<parallel>], iteration_bounds = array<i64: 4>, scalar_prefetch = 0 : i64, scratch_operands = 0 : i64, tpu.core_type = #tpu.core_type<tc>, window_params = [{transform_indices = @transform_0, window_bounds = array<i64: 1, 132, 64>}, {pipeline_mode = #tpu.pipeline_mode<synchronous>, transform_indices = @transform_1, window_bounds = array<i64: 25, 64, 192>}, {pipeline_mode = #tpu.pipeline_mode<synchronous>, transform_indices = @transform_2, window_bounds = array<i64: 1, 192>}, {transform_indices = @transform_3, window_bounds = array<i64: 1, 7, 7, 192>}]} {
    %cst = arith.constant 0.000000e+00 : f32
    %0 = vector.broadcast %cst : f32 to vector<77x192xf32>
    %c0 = arith.constant 0 : index
    %c0_0 = arith.constant 0 : index
    %c0_1 = arith.constant 0 : index
    %1 = vector.load %arg1[%c0, %c0_0, %c0_1] : memref<1x132x64xbf16, #tpu.memory_space<vmem>>, vector<1x77x64xbf16>
    %2 = vector.shape_cast %1 : vector<1x77x64xbf16> to vector<77x64xbf16>
    %c0_2 = arith.constant 0 : index
    %c0_3 = arith.constant 0 : index
    %c0_4 = arith.constant 0 : index
    %3 = vector.load %arg2[%c0_2, %c0_3, %c0_4] : memref<25x64x192xbf16, #tpu.memory_space<vmem>>, vector<1x64x192xbf16>
    %4 = vector.shape_cast %3 : vector<1x64x192xbf16> to vector<64x192xbf16>
    %cst_5 = arith.constant dense<0.000000e+00> : vector<77x192xf32>
    %5 = tpu.matmul %2, %4, %cst_5 {dimension_numbers = #tpu.dot_dimension_numbers<[1], [0], [0], [1], [0, 0, 1, 1], [], []>} : vector<77x64xbf16>, vector<64x192xbf16>, vector<77x192xf32> -> vector<77x192xf32>
    %6 = arith.addf %0, %5 : vector<77x192xf32>
    %c0_6 = arith.constant 0 : index
    %c1 = arith.constant 1 : index
    %c0_7 = arith.constant 0 : index
    %7 = vector.load %arg1[%c0_6, %c1, %c0_7] : memref<1x132x64xbf16, #tpu.memory_space<vmem>>, vector<1x77x64xbf16>
    %8 = vector.shape_cast %7 : vector<1x77x64xbf16> to vector<77x64xbf16>
    %c1_8 = arith.constant 1 : index
    %c0_9 = arith.constant 0 : index
    %c0_10 = arith.constant 0 : index
    %9 = vector.load %arg2[%c1_8, %c0_9, %c0_10] : memref<25x64x192xbf16, #tpu.memory_space<vmem>>, vector<1x64x192xbf16>
    %10 = vector.shape_cast %9 : vector<1x64x192xbf16> to vector<64x192xbf16>
    %cst_11 = arith.constant dense<0.000000e+00> : vector<77x192xf32>
    %11 = tpu.matmul %8, %10, %cst_11 {dimension_numbers = #tpu.dot_dimension_numbers<[1], [0], [0], [1], [0, 0, 1, 1], [], []>} : vector<77x64xbf16>, vector<64x192xbf16>, vector<77x192xf32> -> vector<77x192xf32>
    %12 = arith.addf %6, %11 : vector<77x192xf32>
    %c0_12 = arith.constant 0 : index
    %c2 = arith.constant 2 : index
    %c0_13 = arith.constant 0 : index
    %13 = vector.load %arg1[%c0_12, %c2, %c0_13] : memref<1x132x64xbf16, #tpu.memory_space<vmem>>, vector<1x77x64xbf16>
    %14 = vector.shape_cast %13 : vector<1x77x64xbf16> to vector<77x64xbf16>
    %c2_14 = arith.constant 2 : index
    %c0_15 = arith.constant 0 : index
    %c0_16 = arith.constant 0 : index
    %15 = vector.load %arg2[%c2_14, %c0_15, %c0_16] : memref<25x64x192xbf16, #tpu.memory_space<vmem>>, vector<1x64x192xbf16>
    %16 = vector.shape_cast %15 : vector<1x64x192xbf16> to vector<64x192xbf16>
    %cst_17 = arith.constant dense<0.000000e+00> : vector<77x192xf32>
    %17 = tpu.matmul %14, %16, %cst_17 {dimension_numbers = #tpu.dot_dimension_numbers<[1], [0], [0], [1], [0, 0, 1, 1], [], []>} : vector<77x64xbf16>, vector<64x192xbf16>, vector<77x192xf32> -> vector<77x192xf32>
    %18 = arith.addf %12, %17 : vector<77x192xf32>
    %c0_18 = arith.constant 0 : index
    %c3 = arith.constant 3 : index
    %c0_19 = arith.constant 0 : index
    %19 = vector.load %arg1[%c0_18, %c3, %c0_19] : memref<1x132x64xbf16, #tpu.memory_space<vmem>>, vector<1x77x64xbf16>
    %20 = vector.shape_cast %19 : vector<1x77x64xbf16> to vector<77x64xbf16>
    %c3_20 = arith.constant 3 : index
    %c0_21 = arith.constant 0 : index
    %c0_22 = arith.constant 0 : index
    %21 = vector.load %arg2[%c3_20, %c0_21, %c0_22] : memref<25x64x192xbf16, #tpu.memory_space<vmem>>, vector<1x64x192xbf16>
    %22 = vector.shape_cast %21 : vector<1x64x192xbf16> to vector<64x192xbf16>
    %cst_23 = arith.constant dense<0.000000e+00> : vector<77x192xf32>
    %23 = tpu.matmul %20, %22, %cst_23 {dimension_numbers = #tpu.dot_dimension_numbers<[1], [0], [0], [1], [0, 0, 1, 1], [], []>} : vector<77x64xbf16>, vector<64x192xbf16>, vector<77x192xf32> -> vector<77x192xf32>
    %24 = arith.addf %18, %23 : vector<77x192xf32>
    %c0_24 = arith.constant 0 : index
    %c4 = arith.constant 4 : index
    %c0_25 = arith.constant 0 : index
    %25 = vector.load %arg1[%c0_24, %c4, %c0_25] : memref<1x132x64xbf16, #tpu.memory_space<vmem>>, vector<1x77x64xbf16>
    %26 = vector.shape_cast %25 : vector<1x77x64xbf16> to vector<77x64xbf16>
    %c4_26 = arith.constant 4 : index
    %c0_27 = arith.constant 0 : index
    %c0_28 = arith.constant 0 : index
    %27 = vector.load %arg2[%c4_26, %c0_27, %c0_28] : memref<25x64x192xbf16, #tpu.memory_space<vmem>>, vector<1x64x192xbf16>
    %28 = vector.shape_cast %27 : vector<1x64x192xbf16> to vector<64x192xbf16>
    %cst_29 = arith.constant dense<0.000000e+00> : vector<77x192xf32>
    %29 = tpu.matmul %26, %28, %cst_29 {dimension_numbers = #tpu.dot_dimension_numbers<[1], [0], [0], [1], [0, 0, 1, 1], [], []>} : vector<77x64xbf16>, vector<64x192xbf16>, vector<77x192xf32> -> vector<77x192xf32>
    %30 = arith.addf %24, %29 : vector<77x192xf32>
    %c0_30 = arith.constant 0 : index
    %c11 = arith.constant 11 : index
    %c0_31 = arith.constant 0 : index
    %31 = vector.load %arg1[%c0_30, %c11, %c0_31] : memref<1x132x64xbf16, #tpu.memory_space<vmem>>, vector<1x77x64xbf16>
    %32 = vector.shape_cast %31 : vector<1x77x64xbf16> to vector<77x64xbf16>
    %c5 = arith.constant 5 : index
    %c0_32 = arith.constant 0 : index
    %c0_33 = arith.constant 0 : index
    %33 = vector.load %arg2[%c5, %c0_32, %c0_33] : memref<25x64x192xbf16, #tpu.memory_space<vmem>>, vector<1x64x192xbf16>
    %34 = vector.shape_cast %33 : vector<1x64x192xbf16> to vector<64x192xbf16>
    %cst_34 = arith.constant dense<0.000000e+00> : vector<77x192xf32>
    %35 = tpu.matmul %32, %34, %cst_34 {dimension_numbers = #tpu.dot_dimension_numbers<[1], [0], [0], [1], [0, 0, 1, 1], [], []>} : vector<77x64xbf16>, vector<64x192xbf16>, vector<77x192xf32> -> vector<77x192xf32>
    %36 = arith.addf %30, %35 : vector<77x192xf32>
    %c0_35 = arith.constant 0 : index
    %c12 = arith.constant 12 : index
    %c0_36 = arith.constant 0 : index
    %37 = vector.load %arg1[%c0_35, %c12, %c0_36] : memref<1x132x64xbf16, #tpu.memory_space<vmem>>, vector<1x77x64xbf16>
    %38 = vector.shape_cast %37 : vector<1x77x64xbf16> to vector<77x64xbf16>
    %c6 = arith.constant 6 : index
    %c0_37 = arith.constant 0 : index
    %c0_38 = arith.constant 0 : index
    %39 = vector.load %arg2[%c6, %c0_37, %c0_38] : memref<25x64x192xbf16, #tpu.memory_space<vmem>>, vector<1x64x192xbf16>
    %40 = vector.shape_cast %39 : vector<1x64x192xbf16> to vector<64x192xbf16>
    %cst_39 = arith.constant dense<0.000000e+00> : vector<77x192xf32>
    %41 = tpu.matmul %38, %40, %cst_39 {dimension_numbers = #tpu.dot_dimension_numbers<[1], [0], [0], [1], [0, 0, 1, 1], [], []>} : vector<77x64xbf16>, vector<64x192xbf16>, vector<77x192xf32> -> vector<77x192xf32>
    %42 = arith.addf %36, %41 : vector<77x192xf32>
    %c0_40 = arith.constant 0 : index
    %c13 = arith.constant 13 : index
    %c0_41 = arith.constant 0 : index
    %43 = vector.load %arg1[%c0_40, %c13, %c0_41] : memref<1x132x64xbf16, #tpu.memory_space<vmem>>, vector<1x77x64xbf16>
    %44 = vector.shape_cast %43 : vector<1x77x64xbf16> to vector<77x64xbf16>
    %c7 = arith.constant 7 : index
    %c0_42 = arith.constant 0 : index
    %c0_43 = arith.constant 0 : index
    %45 = vector.load %arg2[%c7, %c0_42, %c0_43] : memref<25x64x192xbf16, #tpu.memory_space<vmem>>, vector<1x64x192xbf16>
    %46 = vector.shape_cast %45 : vector<1x64x192xbf16> to vector<64x192xbf16>
    %cst_44 = arith.constant dense<0.000000e+00> : vector<77x192xf32>
    %47 = tpu.matmul %44, %46, %cst_44 {dimension_numbers = #tpu.dot_dimension_numbers<[1], [0], [0], [1], [0, 0, 1, 1], [], []>} : vector<77x64xbf16>, vector<64x192xbf16>, vector<77x192xf32> -> vector<77x192xf32>
    %48 = arith.addf %42, %47 : vector<77x192xf32>
    %c0_45 = arith.constant 0 : index
    %c14 = arith.constant 14 : index
    %c0_46 = arith.constant 0 : index
    %49 = vector.load %arg1[%c0_45, %c14, %c0_46] : memref<1x132x64xbf16, #tpu.memory_space<vmem>>, vector<1x77x64xbf16>
    %50 = vector.shape_cast %49 : vector<1x77x64xbf16> to vector<77x64xbf16>
    %c8 = arith.constant 8 : index
    %c0_47 = arith.constant 0 : index
    %c0_48 = arith.constant 0 : index
    %51 = vector.load %arg2[%c8, %c0_47, %c0_48] : memref<25x64x192xbf16, #tpu.memory_space<vmem>>, vector<1x64x192xbf16>
    %52 = vector.shape_cast %51 : vector<1x64x192xbf16> to vector<64x192xbf16>
    %cst_49 = arith.constant dense<0.000000e+00> : vector<77x192xf32>
    %53 = tpu.matmul %50, %52, %cst_49 {dimension_numbers = #tpu.dot_dimension_numbers<[1], [0], [0], [1], [0, 0, 1, 1], [], []>} : vector<77x64xbf16>, vector<64x192xbf16>, vector<77x192xf32> -> vector<77x192xf32>
    %54 = arith.addf %48, %53 : vector<77x192xf32>
    %c0_50 = arith.constant 0 : index
    %c15 = arith.constant 15 : index
    %c0_51 = arith.constant 0 : index
    %55 = vector.load %arg1[%c0_50, %c15, %c0_51] : memref<1x132x64xbf16, #tpu.memory_space<vmem>>, vector<1x77x64xbf16>
    %56 = vector.shape_cast %55 : vector<1x77x64xbf16> to vector<77x64xbf16>
    %c9 = arith.constant 9 : index
    %c0_52 = arith.constant 0 : index
    %c0_53 = arith.constant 0 : index
    %57 = vector.load %arg2[%c9, %c0_52, %c0_53] : memref<25x64x192xbf16, #tpu.memory_space<vmem>>, vector<1x64x192xbf16>
    %58 = vector.shape_cast %57 : vector<1x64x192xbf16> to vector<64x192xbf16>
    %cst_54 = arith.constant dense<0.000000e+00> : vector<77x192xf32>
    %59 = tpu.matmul %56, %58, %cst_54 {dimension_numbers = #tpu.dot_dimension_numbers<[1], [0], [0], [1], [0, 0, 1, 1], [], []>} : vector<77x64xbf16>, vector<64x192xbf16>, vector<77x192xf32> -> vector<77x192xf32>
    %60 = arith.addf %54, %59 : vector<77x192xf32>
    %c0_55 = arith.constant 0 : index
    %c22 = arith.constant 22 : index
    %c0_56 = arith.constant 0 : index
    %61 = vector.load %arg1[%c0_55, %c22, %c0_56] : memref<1x132x64xbf16, #tpu.memory_space<vmem>>, vector<1x77x64xbf16>
    %62 = vector.shape_cast %61 : vector<1x77x64xbf16> to vector<77x64xbf16>
    %c10 = arith.constant 10 : index
    %c0_57 = arith.constant 0 : index
    %c0_58 = arith.constant 0 : index
    %63 = vector.load %arg2[%c10, %c0_57, %c0_58] : memref<25x64x192xbf16, #tpu.memory_space<vmem>>, vector<1x64x192xbf16>
    %64 = vector.shape_cast %63 : vector<1x64x192xbf16> to vector<64x192xbf16>
    %cst_59 = arith.constant dense<0.000000e+00> : vector<77x192xf32>
    %65 = tpu.matmul %62, %64, %cst_59 {dimension_numbers = #tpu.dot_dimension_numbers<[1], [0], [0], [1], [0, 0, 1, 1], [], []>} : vector<77x64xbf16>, vector<64x192xbf16>, vector<77x192xf32> -> vector<77x192xf32>
    %66 = arith.addf %60, %65 : vector<77x192xf32>
    %c0_60 = arith.constant 0 : index
    %c23 = arith.constant 23 : index
    %c0_61 = arith.constant 0 : index
    %67 = vector.load %arg1[%c0_60, %c23, %c0_61] : memref<1x132x64xbf16, #tpu.memory_space<vmem>>, vector<1x77x64xbf16>
    %68 = vector.shape_cast %67 : vector<1x77x64xbf16> to vector<77x64xbf16>
    %c11_62 = arith.constant 11 : index
    %c0_63 = arith.constant 0 : index
    %c0_64 = arith.constant 0 : index
    %69 = vector.load %arg2[%c11_62, %c0_63, %c0_64] : memref<25x64x192xbf16, #tpu.memory_space<vmem>>, vector<1x64x192xbf16>
    %70 = vector.shape_cast %69 : vector<1x64x192xbf16> to vector<64x192xbf16>
    %cst_65 = arith.constant dense<0.000000e+00> : vector<77x192xf32>
    %71 = tpu.matmul %68, %70, %cst_65 {dimension_numbers = #tpu.dot_dimension_numbers<[1], [0], [0], [1], [0, 0, 1, 1], [], []>} : vector<77x64xbf16>, vector<64x192xbf16>, vector<77x192xf32> -> vector<77x192xf32>
    %72 = arith.addf %66, %71 : vector<77x192xf32>
    %c0_66 = arith.constant 0 : index
    %c24 = arith.constant 24 : index
    %c0_67 = arith.constant 0 : index
    %73 = vector.load %arg1[%c0_66, %c24, %c0_67] : memref<1x132x64xbf16, #tpu.memory_space<vmem>>, vector<1x77x64xbf16>
    %74 = vector.shape_cast %73 : vector<1x77x64xbf16> to vector<77x64xbf16>
    %c12_68 = arith.constant 12 : index
    %c0_69 = arith.constant 0 : index
    %c0_70 = arith.constant 0 : index
    %75 = vector.load %arg2[%c12_68, %c0_69, %c0_70] : memref<25x64x192xbf16, #tpu.memory_space<vmem>>, vector<1x64x192xbf16>
    %76 = vector.shape_cast %75 : vector<1x64x192xbf16> to vector<64x192xbf16>
    %cst_71 = arith.constant dense<0.000000e+00> : vector<77x192xf32>
    %77 = tpu.matmul %74, %76, %cst_71 {dimension_numbers = #tpu.dot_dimension_numbers<[1], [0], [0], [1], [0, 0, 1, 1], [], []>} : vector<77x64xbf16>, vector<64x192xbf16>, vector<77x192xf32> -> vector<77x192xf32>
    %78 = arith.addf %72, %77 : vector<77x192xf32>
    %c0_72 = arith.constant 0 : index
    %c25 = arith.constant 25 : index
    %c0_73 = arith.constant 0 : index
    %79 = vector.load %arg1[%c0_72, %c25, %c0_73] : memref<1x132x64xbf16, #tpu.memory_space<vmem>>, vector<1x77x64xbf16>
    %80 = vector.shape_cast %79 : vector<1x77x64xbf16> to vector<77x64xbf16>
    %c13_74 = arith.constant 13 : index
    %c0_75 = arith.constant 0 : index
    %c0_76 = arith.constant 0 : index
    %81 = vector.load %arg2[%c13_74, %c0_75, %c0_76] : memref<25x64x192xbf16, #tpu.memory_space<vmem>>, vector<1x64x192xbf16>
    %82 = vector.shape_cast %81 : vector<1x64x192xbf16> to vector<64x192xbf16>
    %cst_77 = arith.constant dense<0.000000e+00> : vector<77x192xf32>
    %83 = tpu.matmul %80, %82, %cst_77 {dimension_numbers = #tpu.dot_dimension_numbers<[1], [0], [0], [1], [0, 0, 1, 1], [], []>} : vector<77x64xbf16>, vector<64x192xbf16>, vector<77x192xf32> -> vector<77x192xf32>
    %84 = arith.addf %78, %83 : vector<77x192xf32>
    %c0_78 = arith.constant 0 : index
    %c26 = arith.constant 26 : index
    %c0_79 = arith.constant 0 : index
    %85 = vector.load %arg1[%c0_78, %c26, %c0_79] : memref<1x132x64xbf16, #tpu.memory_space<vmem>>, vector<1x77x64xbf16>
    %86 = vector.shape_cast %85 : vector<1x77x64xbf16> to vector<77x64xbf16>
    %c14_80 = arith.constant 14 : index
    %c0_81 = arith.constant 0 : index
    %c0_82 = arith.constant 0 : index
    %87 = vector.load %arg2[%c14_80, %c0_81, %c0_82] : memref<25x64x192xbf16, #tpu.memory_space<vmem>>, vector<1x64x192xbf16>
    %88 = vector.shape_cast %87 : vector<1x64x192xbf16> to vector<64x192xbf16>
    %cst_83 = arith.constant dense<0.000000e+00> : vector<77x192xf32>
    %89 = tpu.matmul %86, %88, %cst_83 {dimension_numbers = #tpu.dot_dimension_numbers<[1], [0], [0], [1], [0, 0, 1, 1], [], []>} : vector<77x64xbf16>, vector<64x192xbf16>, vector<77x192xf32> -> vector<77x192xf32>
    %90 = arith.addf %84, %89 : vector<77x192xf32>
    %c0_84 = arith.constant 0 : index
    %c33 = arith.constant 33 : index
    %c0_85 = arith.constant 0 : index
    %91 = vector.load %arg1[%c0_84, %c33, %c0_85] : memref<1x132x64xbf16, #tpu.memory_space<vmem>>, vector<1x77x64xbf16>
    %92 = vector.shape_cast %91 : vector<1x77x64xbf16> to vector<77x64xbf16>
    %c15_86 = arith.constant 15 : index
    %c0_87 = arith.constant 0 : index
    %c0_88 = arith.constant 0 : index
    %93 = vector.load %arg2[%c15_86, %c0_87, %c0_88] : memref<25x64x192xbf16, #tpu.memory_space<vmem>>, vector<1x64x192xbf16>
    %94 = vector.shape_cast %93 : vector<1x64x192xbf16> to vector<64x192xbf16>
    %cst_89 = arith.constant dense<0.000000e+00> : vector<77x192xf32>
    %95 = tpu.matmul %92, %94, %cst_89 {dimension_numbers = #tpu.dot_dimension_numbers<[1], [0], [0], [1], [0, 0, 1, 1], [], []>} : vector<77x64xbf16>, vector<64x192xbf16>, vector<77x192xf32> -> vector<77x192xf32>
    %96 = arith.addf %90, %95 : vector<77x192xf32>
    %c0_90 = arith.constant 0 : index
    %c34 = arith.constant 34 : index
    %c0_91 = arith.constant 0 : index
    %97 = vector.load %arg1[%c0_90, %c34, %c0_91] : memref<1x132x64xbf16, #tpu.memory_space<vmem>>, vector<1x77x64xbf16>
    %98 = vector.shape_cast %97 : vector<1x77x64xbf16> to vector<77x64xbf16>
    %c16 = arith.constant 16 : index
    %c0_92 = arith.constant 0 : index
    %c0_93 = arith.constant 0 : index
    %99 = vector.load %arg2[%c16, %c0_92, %c0_93] : memref<25x64x192xbf16, #tpu.memory_space<vmem>>, vector<1x64x192xbf16>
    %100 = vector.shape_cast %99 : vector<1x64x192xbf16> to vector<64x192xbf16>
    %cst_94 = arith.constant dense<0.000000e+00> : vector<77x192xf32>
    %101 = tpu.matmul %98, %100, %cst_94 {dimension_numbers = #tpu.dot_dimension_numbers<[1], [0], [0], [1], [0, 0, 1, 1], [], []>} : vector<77x64xbf16>, vector<64x192xbf16>, vector<77x192xf32> -> vector<77x192xf32>
    %102 = arith.addf %96, %101 : vector<77x192xf32>
    %c0_95 = arith.constant 0 : index
    %c35 = arith.constant 35 : index
    %c0_96 = arith.constant 0 : index
    %103 = vector.load %arg1[%c0_95, %c35, %c0_96] : memref<1x132x64xbf16, #tpu.memory_space<vmem>>, vector<1x77x64xbf16>
    %104 = vector.shape_cast %103 : vector<1x77x64xbf16> to vector<77x64xbf16>
    %c17 = arith.constant 17 : index
    %c0_97 = arith.constant 0 : index
    %c0_98 = arith.constant 0 : index
    %105 = vector.load %arg2[%c17, %c0_97, %c0_98] : memref<25x64x192xbf16, #tpu.memory_space<vmem>>, vector<1x64x192xbf16>
    %106 = vector.shape_cast %105 : vector<1x64x192xbf16> to vector<64x192xbf16>
    %cst_99 = arith.constant dense<0.000000e+00> : vector<77x192xf32>
    %107 = tpu.matmul %104, %106, %cst_99 {dimension_numbers = #tpu.dot_dimension_numbers<[1], [0], [0], [1], [0, 0, 1, 1], [], []>} : vector<77x64xbf16>, vector<64x192xbf16>, vector<77x192xf32> -> vector<77x192xf32>
    %108 = arith.addf %102, %107 : vector<77x192xf32>
    %c0_100 = arith.constant 0 : index
    %c36 = arith.constant 36 : index
    %c0_101 = arith.constant 0 : index
    %109 = vector.load %arg1[%c0_100, %c36, %c0_101] : memref<1x132x64xbf16, #tpu.memory_space<vmem>>, vector<1x77x64xbf16>
    %110 = vector.shape_cast %109 : vector<1x77x64xbf16> to vector<77x64xbf16>
    %c18 = arith.constant 18 : index
    %c0_102 = arith.constant 0 : index
    %c0_103 = arith.constant 0 : index
    %111 = vector.load %arg2[%c18, %c0_102, %c0_103] : memref<25x64x192xbf16, #tpu.memory_space<vmem>>, vector<1x64x192xbf16>
    %112 = vector.shape_cast %111 : vector<1x64x192xbf16> to vector<64x192xbf16>
    %cst_104 = arith.constant dense<0.000000e+00> : vector<77x192xf32>
    %113 = tpu.matmul %110, %112, %cst_104 {dimension_numbers = #tpu.dot_dimension_numbers<[1], [0], [0], [1], [0, 0, 1, 1], [], []>} : vector<77x64xbf16>, vector<64x192xbf16>, vector<77x192xf32> -> vector<77x192xf32>
    %114 = arith.addf %108, %113 : vector<77x192xf32>
    %c0_105 = arith.constant 0 : index
    %c37 = arith.constant 37 : index
    %c0_106 = arith.constant 0 : index
    %115 = vector.load %arg1[%c0_105, %c37, %c0_106] : memref<1x132x64xbf16, #tpu.memory_space<vmem>>, vector<1x77x64xbf16>
    %116 = vector.shape_cast %115 : vector<1x77x64xbf16> to vector<77x64xbf16>
    %c19 = arith.constant 19 : index
    %c0_107 = arith.constant 0 : index
    %c0_108 = arith.constant 0 : index
    %117 = vector.load %arg2[%c19, %c0_107, %c0_108] : memref<25x64x192xbf16, #tpu.memory_space<vmem>>, vector<1x64x192xbf16>
    %118 = vector.shape_cast %117 : vector<1x64x192xbf16> to vector<64x192xbf16>
    %cst_109 = arith.constant dense<0.000000e+00> : vector<77x192xf32>
    %119 = tpu.matmul %116, %118, %cst_109 {dimension_numbers = #tpu.dot_dimension_numbers<[1], [0], [0], [1], [0, 0, 1, 1], [], []>} : vector<77x64xbf16>, vector<64x192xbf16>, vector<77x192xf32> -> vector<77x192xf32>
    %120 = arith.addf %114, %119 : vector<77x192xf32>
    %c0_110 = arith.constant 0 : index
    %c44 = arith.constant 44 : index
    %c0_111 = arith.constant 0 : index
    %121 = vector.load %arg1[%c0_110, %c44, %c0_111] : memref<1x132x64xbf16, #tpu.memory_space<vmem>>, vector<1x77x64xbf16>
    %122 = vector.shape_cast %121 : vector<1x77x64xbf16> to vector<77x64xbf16>
    %c20 = arith.constant 20 : index
    %c0_112 = arith.constant 0 : index
    %c0_113 = arith.constant 0 : index
    %123 = vector.load %arg2[%c20, %c0_112, %c0_113] : memref<25x64x192xbf16, #tpu.memory_space<vmem>>, vector<1x64x192xbf16>
    %124 = vector.shape_cast %123 : vector<1x64x192xbf16> to vector<64x192xbf16>
    %cst_114 = arith.constant dense<0.000000e+00> : vector<77x192xf32>
    %125 = tpu.matmul %122, %124, %cst_114 {dimension_numbers = #tpu.dot_dimension_numbers<[1], [0], [0], [1], [0, 0, 1, 1], [], []>} : vector<77x64xbf16>, vector<64x192xbf16>, vector<77x192xf32> -> vector<77x192xf32>
    %126 = arith.addf %120, %125 : vector<77x192xf32>
    %c0_115 = arith.constant 0 : index
    %c45 = arith.constant 45 : index
    %c0_116 = arith.constant 0 : index
    %127 = vector.load %arg1[%c0_115, %c45, %c0_116] : memref<1x132x64xbf16, #tpu.memory_space<vmem>>, vector<1x77x64xbf16>
    %128 = vector.shape_cast %127 : vector<1x77x64xbf16> to vector<77x64xbf16>
    %c21 = arith.constant 21 : index
    %c0_117 = arith.constant 0 : index
    %c0_118 = arith.constant 0 : index
    %129 = vector.load %arg2[%c21, %c0_117, %c0_118] : memref<25x64x192xbf16, #tpu.memory_space<vmem>>, vector<1x64x192xbf16>
    %130 = vector.shape_cast %129 : vector<1x64x192xbf16> to vector<64x192xbf16>
    %cst_119 = arith.constant dense<0.000000e+00> : vector<77x192xf32>
    %131 = tpu.matmul %128, %130, %cst_119 {dimension_numbers = #tpu.dot_dimension_numbers<[1], [0], [0], [1], [0, 0, 1, 1], [], []>} : vector<77x64xbf16>, vector<64x192xbf16>, vector<77x192xf32> -> vector<77x192xf32>
    %132 = arith.addf %126, %131 : vector<77x192xf32>
    %c0_120 = arith.constant 0 : index
    %c46 = arith.constant 46 : index
    %c0_121 = arith.constant 0 : index
    %133 = vector.load %arg1[%c0_120, %c46, %c0_121] : memref<1x132x64xbf16, #tpu.memory_space<vmem>>, vector<1x77x64xbf16>
    %134 = vector.shape_cast %133 : vector<1x77x64xbf16> to vector<77x64xbf16>
    %c22_122 = arith.constant 22 : index
    %c0_123 = arith.constant 0 : index
    %c0_124 = arith.constant 0 : index
    %135 = vector.load %arg2[%c22_122, %c0_123, %c0_124] : memref<25x64x192xbf16, #tpu.memory_space<vmem>>, vector<1x64x192xbf16>
    %136 = vector.shape_cast %135 : vector<1x64x192xbf16> to vector<64x192xbf16>
    %cst_125 = arith.constant dense<0.000000e+00> : vector<77x192xf32>
    %137 = tpu.matmul %134, %136, %cst_125 {dimension_numbers = #tpu.dot_dimension_numbers<[1], [0], [0], [1], [0, 0, 1, 1], [], []>} : vector<77x64xbf16>, vector<64x192xbf16>, vector<77x192xf32> -> vector<77x192xf32>
    %138 = arith.addf %132, %137 : vector<77x192xf32>
    %c0_126 = arith.constant 0 : index
    %c47 = arith.constant 47 : index
    %c0_127 = arith.constant 0 : index
    %139 = vector.load %arg1[%c0_126, %c47, %c0_127] : memref<1x132x64xbf16, #tpu.memory_space<vmem>>, vector<1x77x64xbf16>
    %140 = vector.shape_cast %139 : vector<1x77x64xbf16> to vector<77x64xbf16>
    %c23_128 = arith.constant 23 : index
    %c0_129 = arith.constant 0 : index
    %c0_130 = arith.constant 0 : index
    %141 = vector.load %arg2[%c23_128, %c0_129, %c0_130] : memref<25x64x192xbf16, #tpu.memory_space<vmem>>, vector<1x64x192xbf16>
    %142 = vector.shape_cast %141 : vector<1x64x192xbf16> to vector<64x192xbf16>
    %cst_131 = arith.constant dense<0.000000e+00> : vector<77x192xf32>
    %143 = tpu.matmul %140, %142, %cst_131 {dimension_numbers = #tpu.dot_dimension_numbers<[1], [0], [0], [1], [0, 0, 1, 1], [], []>} : vector<77x64xbf16>, vector<64x192xbf16>, vector<77x192xf32> -> vector<77x192xf32>
    %144 = arith.addf %138, %143 : vector<77x192xf32>
    %c0_132 = arith.constant 0 : index
    %c48 = arith.constant 48 : index
    %c0_133 = arith.constant 0 : index
    %145 = vector.load %arg1[%c0_132, %c48, %c0_133] : memref<1x132x64xbf16, #tpu.memory_space<vmem>>, vector<1x77x64xbf16>
    %146 = vector.shape_cast %145 : vector<1x77x64xbf16> to vector<77x64xbf16>
    %c24_134 = arith.constant 24 : index
    %c0_135 = arith.constant 0 : index
    %c0_136 = arith.constant 0 : index
    %147 = vector.load %arg2[%c24_134, %c0_135, %c0_136] : memref<25x64x192xbf16, #tpu.memory_space<vmem>>, vector<1x64x192xbf16>
    %148 = vector.shape_cast %147 : vector<1x64x192xbf16> to vector<64x192xbf16>
    %cst_137 = arith.constant dense<0.000000e+00> : vector<77x192xf32>
    %149 = tpu.matmul %146, %148, %cst_137 {dimension_numbers = #tpu.dot_dimension_numbers<[1], [0], [0], [1], [0, 0, 1, 1], [], []>} : vector<77x64xbf16>, vector<64x192xbf16>, vector<77x192xf32> -> vector<77x192xf32>
    %150 = arith.addf %144, %149 : vector<77x192xf32>
    %c0_138 = arith.constant 0 : index
    %c0_139 = arith.constant 0 : index
    %151 = vector.load %arg3[%c0_138, %c0_139] : memref<1x192xf32, #tpu.memory_space<vmem>>, vector<1x192xf32>
    %152 = vector.broadcast %151 : vector<1x192xf32> to vector<77x192xf32>
    %153 = arith.addf %150, %152 : vector<77x192xf32>
    %cst_140 = arith.constant 0.000000e+00 : f32
    %154 = vector.broadcast %cst_140 : f32 to vector<77x192xf32>
    %155 = arith.maximumf %153, %154 : vector<77x192xf32>
    %156 = arith.truncf %155 : vector<77x192xf32> to vector<77x192xbf16>
    %157 = vector.extract_strided_slice %156 {offsets = [0, 0], sizes = [7, 192], strides = [1, 1]} : vector<77x192xbf16> to vector<7x192xbf16>
    %c0_141 = arith.constant 0 : index
    %c0_142 = arith.constant 0 : index
    %c0_143 = arith.constant 0 : index
    %c0_144 = arith.constant 0 : index
    %158 = vector.load %arg4[%c0_141, %c0_142, %c0_143, %c0_144] : memref<1x7x7x192xbf16, #tpu.memory_space<vmem>>, vector<1x1x7x192xbf16>
    %159 = vector.shape_cast %158 : vector<1x1x7x192xbf16> to vector<7x192xbf16>
    %160 = vector.shape_cast %157 : vector<7x192xbf16> to vector<1x1x7x192xbf16>
    tpu.vector_store %arg4[%c0_141, %c0_142, %c0_143, %c0_144], %160 {strides = array<i32>} : memref<1x7x7x192xbf16, #tpu.memory_space<vmem>>, vector<1x1x7x192xbf16>,
    %161 = vector.extract_strided_slice %156 {offsets = [11, 0], sizes = [7, 192], strides = [1, 1]} : vector<77x192xbf16> to vector<7x192xbf16>
    %c0_145 = arith.constant 0 : index
    %c1_146 = arith.constant 1 : index
    %c0_147 = arith.constant 0 : index
    %c0_148 = arith.constant 0 : index
    %162 = vector.load %arg4[%c0_145, %c1_146, %c0_147, %c0_148] : memref<1x7x7x192xbf16, #tpu.memory_space<vmem>>, vector<1x1x7x192xbf16>
    %163 = vector.shape_cast %162 : vector<1x1x7x192xbf16> to vector<7x192xbf16>
    %164 = vector.shape_cast %161 : vector<7x192xbf16> to vector<1x1x7x192xbf16>
    tpu.vector_store %arg4[%c0_145, %c1_146, %c0_147, %c0_148], %164 {strides = array<i32>} : memref<1x7x7x192xbf16, #tpu.memory_space<vmem>>, vector<1x1x7x192xbf16>,
    %165 = vector.extract_strided_slice %156 {offsets = [22, 0], sizes = [7, 192], strides = [1, 1]} : vector<77x192xbf16> to vector<7x192xbf16>
    %c0_149 = arith.constant 0 : index
    %c2_150 = arith.constant 2 : index
    %c0_151 = arith.constant 0 : index
    %c0_152 = arith.constant 0 : index
    %166 = vector.load %arg4[%c0_149, %c2_150, %c0_151, %c0_152] : memref<1x7x7x192xbf16, #tpu.memory_space<vmem>>, vector<1x1x7x192xbf16>
    %167 = vector.shape_cast %166 : vector<1x1x7x192xbf16> to vector<7x192xbf16>
    %168 = vector.shape_cast %165 : vector<7x192xbf16> to vector<1x1x7x192xbf16>
    tpu.vector_store %arg4[%c0_149, %c2_150, %c0_151, %c0_152], %168 {strides = array<i32>} : memref<1x7x7x192xbf16, #tpu.memory_space<vmem>>, vector<1x1x7x192xbf16>,
    %169 = vector.extract_strided_slice %156 {offsets = [33, 0], sizes = [7, 192], strides = [1, 1]} : vector<77x192xbf16> to vector<7x192xbf16>
    %c0_153 = arith.constant 0 : index
    %c3_154 = arith.constant 3 : index
    %c0_155 = arith.constant 0 : index
    %c0_156 = arith.constant 0 : index
    %170 = vector.load %arg4[%c0_153, %c3_154, %c0_155, %c0_156] : memref<1x7x7x192xbf16, #tpu.memory_space<vmem>>, vector<1x1x7x192xbf16>
    %171 = vector.shape_cast %170 : vector<1x1x7x192xbf16> to vector<7x192xbf16>
    %172 = vector.shape_cast %169 : vector<7x192xbf16> to vector<1x1x7x192xbf16>
    tpu.vector_store %arg4[%c0_153, %c3_154, %c0_155, %c0_156], %172 {strides = array<i32>} : memref<1x7x7x192xbf16, #tpu.memory_space<vmem>>, vector<1x1x7x192xbf16>,
    %173 = vector.extract_strided_slice %156 {offsets = [44, 0], sizes = [7, 192], strides = [1, 1]} : vector<77x192xbf16> to vector<7x192xbf16>
    %c0_157 = arith.constant 0 : index
    %c4_158 = arith.constant 4 : index
    %c0_159 = arith.constant 0 : index
    %c0_160 = arith.constant 0 : index
    %174 = vector.load %arg4[%c0_157, %c4_158, %c0_159, %c0_160] : memref<1x7x7x192xbf16, #tpu.memory_space<vmem>>, vector<1x1x7x192xbf16>
    %175 = vector.shape_cast %174 : vector<1x1x7x192xbf16> to vector<7x192xbf16>
    %176 = vector.shape_cast %173 : vector<7x192xbf16> to vector<1x1x7x192xbf16>
    tpu.vector_store %arg4[%c0_157, %c4_158, %c0_159, %c0_160], %176 {strides = array<i32>} : memref<1x7x7x192xbf16, #tpu.memory_space<vmem>>, vector<1x1x7x192xbf16>,
    %177 = vector.extract_strided_slice %156 {offsets = [55, 0], sizes = [7, 192], strides = [1, 1]} : vector<77x192xbf16> to vector<7x192xbf16>
    %c0_161 = arith.constant 0 : index
    %c5_162 = arith.constant 5 : index
    %c0_163 = arith.constant 0 : index
    %c0_164 = arith.constant 0 : index
    %178 = vector.load %arg4[%c0_161, %c5_162, %c0_163, %c0_164] : memref<1x7x7x192xbf16, #tpu.memory_space<vmem>>, vector<1x1x7x192xbf16>
    %179 = vector.shape_cast %178 : vector<1x1x7x192xbf16> to vector<7x192xbf16>
    %180 = vector.shape_cast %177 : vector<7x192xbf16> to vector<1x1x7x192xbf16>
    tpu.vector_store %arg4[%c0_161, %c5_162, %c0_163, %c0_164], %180 {strides = array<i32>} : memref<1x7x7x192xbf16, #tpu.memory_space<vmem>>, vector<1x1x7x192xbf16>,
    %181 = vector.extract_strided_slice %156 {offsets = [66, 0], sizes = [7, 192], strides = [1, 1]} : vector<77x192xbf16> to vector<7x192xbf16>
    %c0_165 = arith.constant 0 : index
    %c6_166 = arith.constant 6 : index
    %c0_167 = arith.constant 0 : index
    %c0_168 = arith.constant 0 : index
    %182 = vector.load %arg4[%c0_165, %c6_166, %c0_167, %c0_168] : memref<1x7x7x192xbf16, #tpu.memory_space<vmem>>, vector<1x1x7x192xbf16>
    %183 = vector.shape_cast %182 : vector<1x1x7x192xbf16> to vector<7x192xbf16>
    %184 = vector.shape_cast %181 : vector<7x192xbf16> to vector<1x1x7x192xbf16>
    tpu.vector_store %arg4[%c0_165, %c6_166, %c0_167, %c0_168], %184 {strides = array<i32>} : memref<1x7x7x192xbf16, #tpu.memory_space<vmem>>, vector<1x1x7x192xbf16>,
    return
  }
  func.func @transform_0(%arg0: i32) -> (i32, i32, i32) {
    %c0_i32 = arith.constant 0 : i32
    %c0_i32_0 = arith.constant 0 : i32
    %c0_i32_1 = arith.constant 0 : i32
    return %arg0, %c0_i32, %c0_i32_0 : i32, i32, i32
  }
  func.func @transform_1(%arg0: i32) -> (i32, i32, i32) {
    %c0_i32 = arith.constant 0 : i32
    %c0_i32_0 = arith.constant 0 : i32
    %c0_i32_1 = arith.constant 0 : i32
    %c0_i32_2 = arith.constant 0 : i32
    return %c0_i32, %c0_i32_0, %c0_i32_1 : i32, i32, i32
  }
  func.func @transform_2(%arg0: i32) -> (i32, i32) {
    %c0_i32 = arith.constant 0 : i32
    %c0_i32_0 = arith.constant 0 : i32
    %c0_i32_1 = arith.constant 0 : i32
    return %c0_i32, %c0_i32_0 : i32, i32
  }
  func.func @transform_3(%arg0: i32) -> (i32, i32, i32, i32) {
    %c0_i32 = arith.constant 0 : i32
    %c0_i32_0 = arith.constant 0 : i32
    %c0_i32_1 = arith.constant 0 : i32
    %c0_i32_2 = arith.constant 0 : i32
    return %arg0, %c0_i32, %c0_i32_0, %c0_i32_1 : i32, i32, i32, i32
  }
}

module attributes {stable_mosaic.version = 11 : i64} {
  func.func @_conv_s1_kernel(%arg0: i32, %arg1: memref<1x30x192xbf16, #tpu.memory_space<vmem>>, %arg2: memref<9x192x384xbf16, #tpu.memory_space<vmem>>, %arg3: memref<1x384xf32, #tpu.memory_space<vmem>>, %arg4: memref<1x3x3x384xbf16, #tpu.memory_space<vmem>>) attributes {dimension_semantics = [#tpu.dimension_semantics<parallel>], iteration_bounds = array<i64: 4>, scalar_prefetch = 0 : i64, scratch_operands = 0 : i64, tpu.core_type = #tpu.core_type<tc>, window_params = [{transform_indices = @transform_0, window_bounds = array<i64: 1, 30, 192>}, {pipeline_mode = #tpu.pipeline_mode<synchronous>, transform_indices = @transform_1, window_bounds = array<i64: 9, 192, 384>}, {pipeline_mode = #tpu.pipeline_mode<synchronous>, transform_indices = @transform_2, window_bounds = array<i64: 1, 384>}, {transform_indices = @transform_3, window_bounds = array<i64: 1, 3, 3, 384>}]} {
    %cst = arith.constant 0.000000e+00 : f32
    %0 = vector.broadcast %cst : f32 to vector<15x384xf32>
    %c0 = arith.constant 0 : index
    %c0_0 = arith.constant 0 : index
    %c0_1 = arith.constant 0 : index
    %1 = vector.load %arg1[%c0, %c0_0, %c0_1] : memref<1x30x192xbf16, #tpu.memory_space<vmem>>, vector<1x15x192xbf16>
    %2 = vector.shape_cast %1 : vector<1x15x192xbf16> to vector<15x192xbf16>
    %c0_2 = arith.constant 0 : index
    %c0_3 = arith.constant 0 : index
    %c0_4 = arith.constant 0 : index
    %3 = vector.load %arg2[%c0_2, %c0_3, %c0_4] : memref<9x192x384xbf16, #tpu.memory_space<vmem>>, vector<1x192x384xbf16>
    %4 = vector.shape_cast %3 : vector<1x192x384xbf16> to vector<192x384xbf16>
    %cst_5 = arith.constant dense<0.000000e+00> : vector<15x384xf32>
    %5 = tpu.matmul %2, %4, %cst_5 {dimension_numbers = #tpu.dot_dimension_numbers<[1], [0], [0], [1], [0, 0, 1, 1], [], []>} : vector<15x192xbf16>, vector<192x384xbf16>, vector<15x384xf32> -> vector<15x384xf32>
    %6 = arith.addf %0, %5 : vector<15x384xf32>
    %c0_6 = arith.constant 0 : index
    %c1 = arith.constant 1 : index
    %c0_7 = arith.constant 0 : index
    %7 = vector.load %arg1[%c0_6, %c1, %c0_7] : memref<1x30x192xbf16, #tpu.memory_space<vmem>>, vector<1x15x192xbf16>
    %8 = vector.shape_cast %7 : vector<1x15x192xbf16> to vector<15x192xbf16>
    %c1_8 = arith.constant 1 : index
    %c0_9 = arith.constant 0 : index
    %c0_10 = arith.constant 0 : index
    %9 = vector.load %arg2[%c1_8, %c0_9, %c0_10] : memref<9x192x384xbf16, #tpu.memory_space<vmem>>, vector<1x192x384xbf16>
    %10 = vector.shape_cast %9 : vector<1x192x384xbf16> to vector<192x384xbf16>
    %cst_11 = arith.constant dense<0.000000e+00> : vector<15x384xf32>
    %11 = tpu.matmul %8, %10, %cst_11 {dimension_numbers = #tpu.dot_dimension_numbers<[1], [0], [0], [1], [0, 0, 1, 1], [], []>} : vector<15x192xbf16>, vector<192x384xbf16>, vector<15x384xf32> -> vector<15x384xf32>
    %12 = arith.addf %6, %11 : vector<15x384xf32>
    %c0_12 = arith.constant 0 : index
    %c2 = arith.constant 2 : index
    %c0_13 = arith.constant 0 : index
    %13 = vector.load %arg1[%c0_12, %c2, %c0_13] : memref<1x30x192xbf16, #tpu.memory_space<vmem>>, vector<1x15x192xbf16>
    %14 = vector.shape_cast %13 : vector<1x15x192xbf16> to vector<15x192xbf16>
    %c2_14 = arith.constant 2 : index
    %c0_15 = arith.constant 0 : index
    %c0_16 = arith.constant 0 : index
    %15 = vector.load %arg2[%c2_14, %c0_15, %c0_16] : memref<9x192x384xbf16, #tpu.memory_space<vmem>>, vector<1x192x384xbf16>
    %16 = vector.shape_cast %15 : vector<1x192x384xbf16> to vector<192x384xbf16>
    %cst_17 = arith.constant dense<0.000000e+00> : vector<15x384xf32>
    %17 = tpu.matmul %14, %16, %cst_17 {dimension_numbers = #tpu.dot_dimension_numbers<[1], [0], [0], [1], [0, 0, 1, 1], [], []>} : vector<15x192xbf16>, vector<192x384xbf16>, vector<15x384xf32> -> vector<15x384xf32>
    %18 = arith.addf %12, %17 : vector<15x384xf32>
    %c0_18 = arith.constant 0 : index
    %c5 = arith.constant 5 : index
    %c0_19 = arith.constant 0 : index
    %19 = vector.load %arg1[%c0_18, %c5, %c0_19] : memref<1x30x192xbf16, #tpu.memory_space<vmem>>, vector<1x15x192xbf16>
    %20 = vector.shape_cast %19 : vector<1x15x192xbf16> to vector<15x192xbf16>
    %c3 = arith.constant 3 : index
    %c0_20 = arith.constant 0 : index
    %c0_21 = arith.constant 0 : index
    %21 = vector.load %arg2[%c3, %c0_20, %c0_21] : memref<9x192x384xbf16, #tpu.memory_space<vmem>>, vector<1x192x384xbf16>
    %22 = vector.shape_cast %21 : vector<1x192x384xbf16> to vector<192x384xbf16>
    %cst_22 = arith.constant dense<0.000000e+00> : vector<15x384xf32>
    %23 = tpu.matmul %20, %22, %cst_22 {dimension_numbers = #tpu.dot_dimension_numbers<[1], [0], [0], [1], [0, 0, 1, 1], [], []>} : vector<15x192xbf16>, vector<192x384xbf16>, vector<15x384xf32> -> vector<15x384xf32>
    %24 = arith.addf %18, %23 : vector<15x384xf32>
    %c0_23 = arith.constant 0 : index
    %c6 = arith.constant 6 : index
    %c0_24 = arith.constant 0 : index
    %25 = vector.load %arg1[%c0_23, %c6, %c0_24] : memref<1x30x192xbf16, #tpu.memory_space<vmem>>, vector<1x15x192xbf16>
    %26 = vector.shape_cast %25 : vector<1x15x192xbf16> to vector<15x192xbf16>
    %c4 = arith.constant 4 : index
    %c0_25 = arith.constant 0 : index
    %c0_26 = arith.constant 0 : index
    %27 = vector.load %arg2[%c4, %c0_25, %c0_26] : memref<9x192x384xbf16, #tpu.memory_space<vmem>>, vector<1x192x384xbf16>
    %28 = vector.shape_cast %27 : vector<1x192x384xbf16> to vector<192x384xbf16>
    %cst_27 = arith.constant dense<0.000000e+00> : vector<15x384xf32>
    %29 = tpu.matmul %26, %28, %cst_27 {dimension_numbers = #tpu.dot_dimension_numbers<[1], [0], [0], [1], [0, 0, 1, 1], [], []>} : vector<15x192xbf16>, vector<192x384xbf16>, vector<15x384xf32> -> vector<15x384xf32>
    %30 = arith.addf %24, %29 : vector<15x384xf32>
    %c0_28 = arith.constant 0 : index
    %c7 = arith.constant 7 : index
    %c0_29 = arith.constant 0 : index
    %31 = vector.load %arg1[%c0_28, %c7, %c0_29] : memref<1x30x192xbf16, #tpu.memory_space<vmem>>, vector<1x15x192xbf16>
    %32 = vector.shape_cast %31 : vector<1x15x192xbf16> to vector<15x192xbf16>
    %c5_30 = arith.constant 5 : index
    %c0_31 = arith.constant 0 : index
    %c0_32 = arith.constant 0 : index
    %33 = vector.load %arg2[%c5_30, %c0_31, %c0_32] : memref<9x192x384xbf16, #tpu.memory_space<vmem>>, vector<1x192x384xbf16>
    %34 = vector.shape_cast %33 : vector<1x192x384xbf16> to vector<192x384xbf16>
    %cst_33 = arith.constant dense<0.000000e+00> : vector<15x384xf32>
    %35 = tpu.matmul %32, %34, %cst_33 {dimension_numbers = #tpu.dot_dimension_numbers<[1], [0], [0], [1], [0, 0, 1, 1], [], []>} : vector<15x192xbf16>, vector<192x384xbf16>, vector<15x384xf32> -> vector<15x384xf32>
    %36 = arith.addf %30, %35 : vector<15x384xf32>
    %c0_34 = arith.constant 0 : index
    %c10 = arith.constant 10 : index
    %c0_35 = arith.constant 0 : index
    %37 = vector.load %arg1[%c0_34, %c10, %c0_35] : memref<1x30x192xbf16, #tpu.memory_space<vmem>>, vector<1x15x192xbf16>
    %38 = vector.shape_cast %37 : vector<1x15x192xbf16> to vector<15x192xbf16>
    %c6_36 = arith.constant 6 : index
    %c0_37 = arith.constant 0 : index
    %c0_38 = arith.constant 0 : index
    %39 = vector.load %arg2[%c6_36, %c0_37, %c0_38] : memref<9x192x384xbf16, #tpu.memory_space<vmem>>, vector<1x192x384xbf16>
    %40 = vector.shape_cast %39 : vector<1x192x384xbf16> to vector<192x384xbf16>
    %cst_39 = arith.constant dense<0.000000e+00> : vector<15x384xf32>
    %41 = tpu.matmul %38, %40, %cst_39 {dimension_numbers = #tpu.dot_dimension_numbers<[1], [0], [0], [1], [0, 0, 1, 1], [], []>} : vector<15x192xbf16>, vector<192x384xbf16>, vector<15x384xf32> -> vector<15x384xf32>
    %42 = arith.addf %36, %41 : vector<15x384xf32>
    %c0_40 = arith.constant 0 : index
    %c11 = arith.constant 11 : index
    %c0_41 = arith.constant 0 : index
    %43 = vector.load %arg1[%c0_40, %c11, %c0_41] : memref<1x30x192xbf16, #tpu.memory_space<vmem>>, vector<1x15x192xbf16>
    %44 = vector.shape_cast %43 : vector<1x15x192xbf16> to vector<15x192xbf16>
    %c7_42 = arith.constant 7 : index
    %c0_43 = arith.constant 0 : index
    %c0_44 = arith.constant 0 : index
    %45 = vector.load %arg2[%c7_42, %c0_43, %c0_44] : memref<9x192x384xbf16, #tpu.memory_space<vmem>>, vector<1x192x384xbf16>
    %46 = vector.shape_cast %45 : vector<1x192x384xbf16> to vector<192x384xbf16>
    %cst_45 = arith.constant dense<0.000000e+00> : vector<15x384xf32>
    %47 = tpu.matmul %44, %46, %cst_45 {dimension_numbers = #tpu.dot_dimension_numbers<[1], [0], [0], [1], [0, 0, 1, 1], [], []>} : vector<15x192xbf16>, vector<192x384xbf16>, vector<15x384xf32> -> vector<15x384xf32>
    %48 = arith.addf %42, %47 : vector<15x384xf32>
    %c0_46 = arith.constant 0 : index
    %c12 = arith.constant 12 : index
    %c0_47 = arith.constant 0 : index
    %49 = vector.load %arg1[%c0_46, %c12, %c0_47] : memref<1x30x192xbf16, #tpu.memory_space<vmem>>, vector<1x15x192xbf16>
    %50 = vector.shape_cast %49 : vector<1x15x192xbf16> to vector<15x192xbf16>
    %c8 = arith.constant 8 : index
    %c0_48 = arith.constant 0 : index
    %c0_49 = arith.constant 0 : index
    %51 = vector.load %arg2[%c8, %c0_48, %c0_49] : memref<9x192x384xbf16, #tpu.memory_space<vmem>>, vector<1x192x384xbf16>
    %52 = vector.shape_cast %51 : vector<1x192x384xbf16> to vector<192x384xbf16>
    %cst_50 = arith.constant dense<0.000000e+00> : vector<15x384xf32>
    %53 = tpu.matmul %50, %52, %cst_50 {dimension_numbers = #tpu.dot_dimension_numbers<[1], [0], [0], [1], [0, 0, 1, 1], [], []>} : vector<15x192xbf16>, vector<192x384xbf16>, vector<15x384xf32> -> vector<15x384xf32>
    %54 = arith.addf %48, %53 : vector<15x384xf32>
    %c0_51 = arith.constant 0 : index
    %c0_52 = arith.constant 0 : index
    %55 = vector.load %arg3[%c0_51, %c0_52] : memref<1x384xf32, #tpu.memory_space<vmem>>, vector<1x384xf32>
    %56 = vector.broadcast %55 : vector<1x384xf32> to vector<15x384xf32>
    %57 = arith.addf %54, %56 : vector<15x384xf32>
    %cst_53 = arith.constant 0.000000e+00 : f32
    %58 = vector.broadcast %cst_53 : f32 to vector<15x384xf32>
    %59 = arith.maximumf %57, %58 : vector<15x384xf32>
    %60 = arith.truncf %59 : vector<15x384xf32> to vector<15x384xbf16>
    %61 = vector.extract_strided_slice %60 {offsets = [0, 0], sizes = [3, 384], strides = [1, 1]} : vector<15x384xbf16> to vector<3x384xbf16>
    %c0_54 = arith.constant 0 : index
    %c0_55 = arith.constant 0 : index
    %c0_56 = arith.constant 0 : index
    %c0_57 = arith.constant 0 : index
    %62 = vector.load %arg4[%c0_54, %c0_55, %c0_56, %c0_57] : memref<1x3x3x384xbf16, #tpu.memory_space<vmem>>, vector<1x1x3x384xbf16>
    %63 = vector.shape_cast %62 : vector<1x1x3x384xbf16> to vector<3x384xbf16>
    %64 = vector.shape_cast %61 : vector<3x384xbf16> to vector<1x1x3x384xbf16>
    tpu.vector_store %arg4[%c0_54, %c0_55, %c0_56, %c0_57], %64 {strides = array<i32>} : memref<1x3x3x384xbf16, #tpu.memory_space<vmem>>, vector<1x1x3x384xbf16>,
    %65 = vector.extract_strided_slice %60 {offsets = [5, 0], sizes = [3, 384], strides = [1, 1]} : vector<15x384xbf16> to vector<3x384xbf16>
    %c0_58 = arith.constant 0 : index
    %c1_59 = arith.constant 1 : index
    %c0_60 = arith.constant 0 : index
    %c0_61 = arith.constant 0 : index
    %66 = vector.load %arg4[%c0_58, %c1_59, %c0_60, %c0_61] : memref<1x3x3x384xbf16, #tpu.memory_space<vmem>>, vector<1x1x3x384xbf16>
    %67 = vector.shape_cast %66 : vector<1x1x3x384xbf16> to vector<3x384xbf16>
    %68 = vector.shape_cast %65 : vector<3x384xbf16> to vector<1x1x3x384xbf16>
    tpu.vector_store %arg4[%c0_58, %c1_59, %c0_60, %c0_61], %68 {strides = array<i32>} : memref<1x3x3x384xbf16, #tpu.memory_space<vmem>>, vector<1x1x3x384xbf16>,
    %69 = vector.extract_strided_slice %60 {offsets = [10, 0], sizes = [3, 384], strides = [1, 1]} : vector<15x384xbf16> to vector<3x384xbf16>
    %c0_62 = arith.constant 0 : index
    %c2_63 = arith.constant 2 : index
    %c0_64 = arith.constant 0 : index
    %c0_65 = arith.constant 0 : index
    %70 = vector.load %arg4[%c0_62, %c2_63, %c0_64, %c0_65] : memref<1x3x3x384xbf16, #tpu.memory_space<vmem>>, vector<1x1x3x384xbf16>
    %71 = vector.shape_cast %70 : vector<1x1x3x384xbf16> to vector<3x384xbf16>
    %72 = vector.shape_cast %69 : vector<3x384xbf16> to vector<1x1x3x384xbf16>
    tpu.vector_store %arg4[%c0_62, %c2_63, %c0_64, %c0_65], %72 {strides = array<i32>} : memref<1x3x3x384xbf16, #tpu.memory_space<vmem>>, vector<1x1x3x384xbf16>,
    return
  }
  func.func @transform_0(%arg0: i32) -> (i32, i32, i32) {
    %c0_i32 = arith.constant 0 : i32
    %c0_i32_0 = arith.constant 0 : i32
    %c0_i32_1 = arith.constant 0 : i32
    return %arg0, %c0_i32, %c0_i32_0 : i32, i32, i32
  }
  func.func @transform_1(%arg0: i32) -> (i32, i32, i32) {
    %c0_i32 = arith.constant 0 : i32
    %c0_i32_0 = arith.constant 0 : i32
    %c0_i32_1 = arith.constant 0 : i32
    %c0_i32_2 = arith.constant 0 : i32
    return %c0_i32, %c0_i32_0, %c0_i32_1 : i32, i32, i32
  }
  func.func @transform_2(%arg0: i32) -> (i32, i32) {
    %c0_i32 = arith.constant 0 : i32
    %c0_i32_0 = arith.constant 0 : i32
    %c0_i32_1 = arith.constant 0 : i32
    return %c0_i32, %c0_i32_0 : i32, i32
  }
  func.func @transform_3(%arg0: i32) -> (i32, i32, i32, i32) {
    %c0_i32 = arith.constant 0 : i32
    %c0_i32_0 = arith.constant 0 : i32
    %c0_i32_1 = arith.constant 0 : i32
    %c0_i32_2 = arith.constant 0 : i32
    return %arg0, %c0_i32, %c0_i32_0, %c0_i32_1 : i32, i32, i32, i32
  }
}

module attributes {stable_mosaic.version = 11 : i64} {
  func.func @_conv_s1_kernel(%arg0: i32, %arg1: memref<1x30x384xbf16, #tpu.memory_space<vmem>>, %arg2: memref<9x384x256xbf16, #tpu.memory_space<vmem>>, %arg3: memref<1x256xf32, #tpu.memory_space<vmem>>, %arg4: memref<1x3x3x256xbf16, #tpu.memory_space<vmem>>) attributes {dimension_semantics = [#tpu.dimension_semantics<parallel>], iteration_bounds = array<i64: 4>, scalar_prefetch = 0 : i64, scratch_operands = 0 : i64, tpu.core_type = #tpu.core_type<tc>, window_params = [{transform_indices = @transform_0, window_bounds = array<i64: 1, 30, 384>}, {pipeline_mode = #tpu.pipeline_mode<synchronous>, transform_indices = @transform_1, window_bounds = array<i64: 9, 384, 256>}, {pipeline_mode = #tpu.pipeline_mode<synchronous>, transform_indices = @transform_2, window_bounds = array<i64: 1, 256>}, {transform_indices = @transform_3, window_bounds = array<i64: 1, 3, 3, 256>}]} {
    %cst = arith.constant 0.000000e+00 : f32
    %0 = vector.broadcast %cst : f32 to vector<15x256xf32>
    %c0 = arith.constant 0 : index
    %c0_0 = arith.constant 0 : index
    %c0_1 = arith.constant 0 : index
    %1 = vector.load %arg1[%c0, %c0_0, %c0_1] : memref<1x30x384xbf16, #tpu.memory_space<vmem>>, vector<1x15x384xbf16>
    %2 = vector.shape_cast %1 : vector<1x15x384xbf16> to vector<15x384xbf16>
    %c0_2 = arith.constant 0 : index
    %c0_3 = arith.constant 0 : index
    %c0_4 = arith.constant 0 : index
    %3 = vector.load %arg2[%c0_2, %c0_3, %c0_4] : memref<9x384x256xbf16, #tpu.memory_space<vmem>>, vector<1x384x256xbf16>
    %4 = vector.shape_cast %3 : vector<1x384x256xbf16> to vector<384x256xbf16>
    %cst_5 = arith.constant dense<0.000000e+00> : vector<15x256xf32>
    %5 = tpu.matmul %2, %4, %cst_5 {dimension_numbers = #tpu.dot_dimension_numbers<[1], [0], [0], [1], [0, 0, 1, 1], [], []>} : vector<15x384xbf16>, vector<384x256xbf16>, vector<15x256xf32> -> vector<15x256xf32>
    %6 = arith.addf %0, %5 : vector<15x256xf32>
    %c0_6 = arith.constant 0 : index
    %c1 = arith.constant 1 : index
    %c0_7 = arith.constant 0 : index
    %7 = vector.load %arg1[%c0_6, %c1, %c0_7] : memref<1x30x384xbf16, #tpu.memory_space<vmem>>, vector<1x15x384xbf16>
    %8 = vector.shape_cast %7 : vector<1x15x384xbf16> to vector<15x384xbf16>
    %c1_8 = arith.constant 1 : index
    %c0_9 = arith.constant 0 : index
    %c0_10 = arith.constant 0 : index
    %9 = vector.load %arg2[%c1_8, %c0_9, %c0_10] : memref<9x384x256xbf16, #tpu.memory_space<vmem>>, vector<1x384x256xbf16>
    %10 = vector.shape_cast %9 : vector<1x384x256xbf16> to vector<384x256xbf16>
    %cst_11 = arith.constant dense<0.000000e+00> : vector<15x256xf32>
    %11 = tpu.matmul %8, %10, %cst_11 {dimension_numbers = #tpu.dot_dimension_numbers<[1], [0], [0], [1], [0, 0, 1, 1], [], []>} : vector<15x384xbf16>, vector<384x256xbf16>, vector<15x256xf32> -> vector<15x256xf32>
    %12 = arith.addf %6, %11 : vector<15x256xf32>
    %c0_12 = arith.constant 0 : index
    %c2 = arith.constant 2 : index
    %c0_13 = arith.constant 0 : index
    %13 = vector.load %arg1[%c0_12, %c2, %c0_13] : memref<1x30x384xbf16, #tpu.memory_space<vmem>>, vector<1x15x384xbf16>
    %14 = vector.shape_cast %13 : vector<1x15x384xbf16> to vector<15x384xbf16>
    %c2_14 = arith.constant 2 : index
    %c0_15 = arith.constant 0 : index
    %c0_16 = arith.constant 0 : index
    %15 = vector.load %arg2[%c2_14, %c0_15, %c0_16] : memref<9x384x256xbf16, #tpu.memory_space<vmem>>, vector<1x384x256xbf16>
    %16 = vector.shape_cast %15 : vector<1x384x256xbf16> to vector<384x256xbf16>
    %cst_17 = arith.constant dense<0.000000e+00> : vector<15x256xf32>
    %17 = tpu.matmul %14, %16, %cst_17 {dimension_numbers = #tpu.dot_dimension_numbers<[1], [0], [0], [1], [0, 0, 1, 1], [], []>} : vector<15x384xbf16>, vector<384x256xbf16>, vector<15x256xf32> -> vector<15x256xf32>
    %18 = arith.addf %12, %17 : vector<15x256xf32>
    %c0_18 = arith.constant 0 : index
    %c5 = arith.constant 5 : index
    %c0_19 = arith.constant 0 : index
    %19 = vector.load %arg1[%c0_18, %c5, %c0_19] : memref<1x30x384xbf16, #tpu.memory_space<vmem>>, vector<1x15x384xbf16>
    %20 = vector.shape_cast %19 : vector<1x15x384xbf16> to vector<15x384xbf16>
    %c3 = arith.constant 3 : index
    %c0_20 = arith.constant 0 : index
    %c0_21 = arith.constant 0 : index
    %21 = vector.load %arg2[%c3, %c0_20, %c0_21] : memref<9x384x256xbf16, #tpu.memory_space<vmem>>, vector<1x384x256xbf16>
    %22 = vector.shape_cast %21 : vector<1x384x256xbf16> to vector<384x256xbf16>
    %cst_22 = arith.constant dense<0.000000e+00> : vector<15x256xf32>
    %23 = tpu.matmul %20, %22, %cst_22 {dimension_numbers = #tpu.dot_dimension_numbers<[1], [0], [0], [1], [0, 0, 1, 1], [], []>} : vector<15x384xbf16>, vector<384x256xbf16>, vector<15x256xf32> -> vector<15x256xf32>
    %24 = arith.addf %18, %23 : vector<15x256xf32>
    %c0_23 = arith.constant 0 : index
    %c6 = arith.constant 6 : index
    %c0_24 = arith.constant 0 : index
    %25 = vector.load %arg1[%c0_23, %c6, %c0_24] : memref<1x30x384xbf16, #tpu.memory_space<vmem>>, vector<1x15x384xbf16>
    %26 = vector.shape_cast %25 : vector<1x15x384xbf16> to vector<15x384xbf16>
    %c4 = arith.constant 4 : index
    %c0_25 = arith.constant 0 : index
    %c0_26 = arith.constant 0 : index
    %27 = vector.load %arg2[%c4, %c0_25, %c0_26] : memref<9x384x256xbf16, #tpu.memory_space<vmem>>, vector<1x384x256xbf16>
    %28 = vector.shape_cast %27 : vector<1x384x256xbf16> to vector<384x256xbf16>
    %cst_27 = arith.constant dense<0.000000e+00> : vector<15x256xf32>
    %29 = tpu.matmul %26, %28, %cst_27 {dimension_numbers = #tpu.dot_dimension_numbers<[1], [0], [0], [1], [0, 0, 1, 1], [], []>} : vector<15x384xbf16>, vector<384x256xbf16>, vector<15x256xf32> -> vector<15x256xf32>
    %30 = arith.addf %24, %29 : vector<15x256xf32>
    %c0_28 = arith.constant 0 : index
    %c7 = arith.constant 7 : index
    %c0_29 = arith.constant 0 : index
    %31 = vector.load %arg1[%c0_28, %c7, %c0_29] : memref<1x30x384xbf16, #tpu.memory_space<vmem>>, vector<1x15x384xbf16>
    %32 = vector.shape_cast %31 : vector<1x15x384xbf16> to vector<15x384xbf16>
    %c5_30 = arith.constant 5 : index
    %c0_31 = arith.constant 0 : index
    %c0_32 = arith.constant 0 : index
    %33 = vector.load %arg2[%c5_30, %c0_31, %c0_32] : memref<9x384x256xbf16, #tpu.memory_space<vmem>>, vector<1x384x256xbf16>
    %34 = vector.shape_cast %33 : vector<1x384x256xbf16> to vector<384x256xbf16>
    %cst_33 = arith.constant dense<0.000000e+00> : vector<15x256xf32>
    %35 = tpu.matmul %32, %34, %cst_33 {dimension_numbers = #tpu.dot_dimension_numbers<[1], [0], [0], [1], [0, 0, 1, 1], [], []>} : vector<15x384xbf16>, vector<384x256xbf16>, vector<15x256xf32> -> vector<15x256xf32>
    %36 = arith.addf %30, %35 : vector<15x256xf32>
    %c0_34 = arith.constant 0 : index
    %c10 = arith.constant 10 : index
    %c0_35 = arith.constant 0 : index
    %37 = vector.load %arg1[%c0_34, %c10, %c0_35] : memref<1x30x384xbf16, #tpu.memory_space<vmem>>, vector<1x15x384xbf16>
    %38 = vector.shape_cast %37 : vector<1x15x384xbf16> to vector<15x384xbf16>
    %c6_36 = arith.constant 6 : index
    %c0_37 = arith.constant 0 : index
    %c0_38 = arith.constant 0 : index
    %39 = vector.load %arg2[%c6_36, %c0_37, %c0_38] : memref<9x384x256xbf16, #tpu.memory_space<vmem>>, vector<1x384x256xbf16>
    %40 = vector.shape_cast %39 : vector<1x384x256xbf16> to vector<384x256xbf16>
    %cst_39 = arith.constant dense<0.000000e+00> : vector<15x256xf32>
    %41 = tpu.matmul %38, %40, %cst_39 {dimension_numbers = #tpu.dot_dimension_numbers<[1], [0], [0], [1], [0, 0, 1, 1], [], []>} : vector<15x384xbf16>, vector<384x256xbf16>, vector<15x256xf32> -> vector<15x256xf32>
    %42 = arith.addf %36, %41 : vector<15x256xf32>
    %c0_40 = arith.constant 0 : index
    %c11 = arith.constant 11 : index
    %c0_41 = arith.constant 0 : index
    %43 = vector.load %arg1[%c0_40, %c11, %c0_41] : memref<1x30x384xbf16, #tpu.memory_space<vmem>>, vector<1x15x384xbf16>
    %44 = vector.shape_cast %43 : vector<1x15x384xbf16> to vector<15x384xbf16>
    %c7_42 = arith.constant 7 : index
    %c0_43 = arith.constant 0 : index
    %c0_44 = arith.constant 0 : index
    %45 = vector.load %arg2[%c7_42, %c0_43, %c0_44] : memref<9x384x256xbf16, #tpu.memory_space<vmem>>, vector<1x384x256xbf16>
    %46 = vector.shape_cast %45 : vector<1x384x256xbf16> to vector<384x256xbf16>
    %cst_45 = arith.constant dense<0.000000e+00> : vector<15x256xf32>
    %47 = tpu.matmul %44, %46, %cst_45 {dimension_numbers = #tpu.dot_dimension_numbers<[1], [0], [0], [1], [0, 0, 1, 1], [], []>} : vector<15x384xbf16>, vector<384x256xbf16>, vector<15x256xf32> -> vector<15x256xf32>
    %48 = arith.addf %42, %47 : vector<15x256xf32>
    %c0_46 = arith.constant 0 : index
    %c12 = arith.constant 12 : index
    %c0_47 = arith.constant 0 : index
    %49 = vector.load %arg1[%c0_46, %c12, %c0_47] : memref<1x30x384xbf16, #tpu.memory_space<vmem>>, vector<1x15x384xbf16>
    %50 = vector.shape_cast %49 : vector<1x15x384xbf16> to vector<15x384xbf16>
    %c8 = arith.constant 8 : index
    %c0_48 = arith.constant 0 : index
    %c0_49 = arith.constant 0 : index
    %51 = vector.load %arg2[%c8, %c0_48, %c0_49] : memref<9x384x256xbf16, #tpu.memory_space<vmem>>, vector<1x384x256xbf16>
    %52 = vector.shape_cast %51 : vector<1x384x256xbf16> to vector<384x256xbf16>
    %cst_50 = arith.constant dense<0.000000e+00> : vector<15x256xf32>
    %53 = tpu.matmul %50, %52, %cst_50 {dimension_numbers = #tpu.dot_dimension_numbers<[1], [0], [0], [1], [0, 0, 1, 1], [], []>} : vector<15x384xbf16>, vector<384x256xbf16>, vector<15x256xf32> -> vector<15x256xf32>
    %54 = arith.addf %48, %53 : vector<15x256xf32>
    %c0_51 = arith.constant 0 : index
    %c0_52 = arith.constant 0 : index
    %55 = vector.load %arg3[%c0_51, %c0_52] : memref<1x256xf32, #tpu.memory_space<vmem>>, vector<1x256xf32>
    %56 = vector.broadcast %55 : vector<1x256xf32> to vector<15x256xf32>
    %57 = arith.addf %54, %56 : vector<15x256xf32>
    %cst_53 = arith.constant 0.000000e+00 : f32
    %58 = vector.broadcast %cst_53 : f32 to vector<15x256xf32>
    %59 = arith.maximumf %57, %58 : vector<15x256xf32>
    %60 = arith.truncf %59 : vector<15x256xf32> to vector<15x256xbf16>
    %61 = vector.extract_strided_slice %60 {offsets = [0, 0], sizes = [3, 256], strides = [1, 1]} : vector<15x256xbf16> to vector<3x256xbf16>
    %c0_54 = arith.constant 0 : index
    %c0_55 = arith.constant 0 : index
    %c0_56 = arith.constant 0 : index
    %c0_57 = arith.constant 0 : index
    %62 = vector.load %arg4[%c0_54, %c0_55, %c0_56, %c0_57] : memref<1x3x3x256xbf16, #tpu.memory_space<vmem>>, vector<1x1x3x256xbf16>
    %63 = vector.shape_cast %62 : vector<1x1x3x256xbf16> to vector<3x256xbf16>
    %64 = vector.shape_cast %61 : vector<3x256xbf16> to vector<1x1x3x256xbf16>
    tpu.vector_store %arg4[%c0_54, %c0_55, %c0_56, %c0_57], %64 {strides = array<i32>} : memref<1x3x3x256xbf16, #tpu.memory_space<vmem>>, vector<1x1x3x256xbf16>,
    %65 = vector.extract_strided_slice %60 {offsets = [5, 0], sizes = [3, 256], strides = [1, 1]} : vector<15x256xbf16> to vector<3x256xbf16>
    %c0_58 = arith.constant 0 : index
    %c1_59 = arith.constant 1 : index
    %c0_60 = arith.constant 0 : index
    %c0_61 = arith.constant 0 : index
    %66 = vector.load %arg4[%c0_58, %c1_59, %c0_60, %c0_61] : memref<1x3x3x256xbf16, #tpu.memory_space<vmem>>, vector<1x1x3x256xbf16>
    %67 = vector.shape_cast %66 : vector<1x1x3x256xbf16> to vector<3x256xbf16>
    %68 = vector.shape_cast %65 : vector<3x256xbf16> to vector<1x1x3x256xbf16>
    tpu.vector_store %arg4[%c0_58, %c1_59, %c0_60, %c0_61], %68 {strides = array<i32>} : memref<1x3x3x256xbf16, #tpu.memory_space<vmem>>, vector<1x1x3x256xbf16>,
    %69 = vector.extract_strided_slice %60 {offsets = [10, 0], sizes = [3, 256], strides = [1, 1]} : vector<15x256xbf16> to vector<3x256xbf16>
    %c0_62 = arith.constant 0 : index
    %c2_63 = arith.constant 2 : index
    %c0_64 = arith.constant 0 : index
    %c0_65 = arith.constant 0 : index
    %70 = vector.load %arg4[%c0_62, %c2_63, %c0_64, %c0_65] : memref<1x3x3x256xbf16, #tpu.memory_space<vmem>>, vector<1x1x3x256xbf16>
    %71 = vector.shape_cast %70 : vector<1x1x3x256xbf16> to vector<3x256xbf16>
    %72 = vector.shape_cast %69 : vector<3x256xbf16> to vector<1x1x3x256xbf16>
    tpu.vector_store %arg4[%c0_62, %c2_63, %c0_64, %c0_65], %72 {strides = array<i32>} : memref<1x3x3x256xbf16, #tpu.memory_space<vmem>>, vector<1x1x3x256xbf16>,
    return
  }
  func.func @transform_0(%arg0: i32) -> (i32, i32, i32) {
    %c0_i32 = arith.constant 0 : i32
    %c0_i32_0 = arith.constant 0 : i32
    %c0_i32_1 = arith.constant 0 : i32
    return %arg0, %c0_i32, %c0_i32_0 : i32, i32, i32
  }
  func.func @transform_1(%arg0: i32) -> (i32, i32, i32) {
    %c0_i32 = arith.constant 0 : i32
    %c0_i32_0 = arith.constant 0 : i32
    %c0_i32_1 = arith.constant 0 : i32
    %c0_i32_2 = arith.constant 0 : i32
    return %c0_i32, %c0_i32_0, %c0_i32_1 : i32, i32, i32
  }
  func.func @transform_2(%arg0: i32) -> (i32, i32) {
    %c0_i32 = arith.constant 0 : i32
    %c0_i32_0 = arith.constant 0 : i32
    %c0_i32_1 = arith.constant 0 : i32
    return %c0_i32, %c0_i32_0 : i32, i32
  }
  func.func @transform_3(%arg0: i32) -> (i32, i32, i32, i32) {
    %c0_i32 = arith.constant 0 : i32
    %c0_i32_0 = arith.constant 0 : i32
    %c0_i32_1 = arith.constant 0 : i32
    %c0_i32_2 = arith.constant 0 : i32
    return %arg0, %c0_i32, %c0_i32_0, %c0_i32_1 : i32, i32, i32, i32
  }
}

module attributes {stable_mosaic.version = 11 : i64} {
  func.func @_conv_s1_kernel(%arg0: i32, %arg1: memref<1x30x256xbf16, #tpu.memory_space<vmem>>, %arg2: memref<9x256x256xbf16, #tpu.memory_space<vmem>>, %arg3: memref<1x256xf32, #tpu.memory_space<vmem>>, %arg4: memref<1x3x3x256xbf16, #tpu.memory_space<vmem>>) attributes {dimension_semantics = [#tpu.dimension_semantics<parallel>], iteration_bounds = array<i64: 4>, scalar_prefetch = 0 : i64, scratch_operands = 0 : i64, tpu.core_type = #tpu.core_type<tc>, window_params = [{transform_indices = @transform_0, window_bounds = array<i64: 1, 30, 256>}, {pipeline_mode = #tpu.pipeline_mode<synchronous>, transform_indices = @transform_1, window_bounds = array<i64: 9, 256, 256>}, {pipeline_mode = #tpu.pipeline_mode<synchronous>, transform_indices = @transform_2, window_bounds = array<i64: 1, 256>}, {transform_indices = @transform_3, window_bounds = array<i64: 1, 3, 3, 256>}]} {
    %cst = arith.constant 0.000000e+00 : f32
    %0 = vector.broadcast %cst : f32 to vector<15x256xf32>
    %c0 = arith.constant 0 : index
    %c0_0 = arith.constant 0 : index
    %c0_1 = arith.constant 0 : index
    %1 = vector.load %arg1[%c0, %c0_0, %c0_1] : memref<1x30x256xbf16, #tpu.memory_space<vmem>>, vector<1x15x256xbf16>
    %2 = vector.shape_cast %1 : vector<1x15x256xbf16> to vector<15x256xbf16>
    %c0_2 = arith.constant 0 : index
    %c0_3 = arith.constant 0 : index
    %c0_4 = arith.constant 0 : index
    %3 = vector.load %arg2[%c0_2, %c0_3, %c0_4] : memref<9x256x256xbf16, #tpu.memory_space<vmem>>, vector<1x256x256xbf16>
    %4 = vector.shape_cast %3 : vector<1x256x256xbf16> to vector<256x256xbf16>
    %cst_5 = arith.constant dense<0.000000e+00> : vector<15x256xf32>
    %5 = tpu.matmul %2, %4, %cst_5 {dimension_numbers = #tpu.dot_dimension_numbers<[1], [0], [0], [1], [0, 0, 1, 1], [], []>} : vector<15x256xbf16>, vector<256x256xbf16>, vector<15x256xf32> -> vector<15x256xf32>
    %6 = arith.addf %0, %5 : vector<15x256xf32>
    %c0_6 = arith.constant 0 : index
    %c1 = arith.constant 1 : index
    %c0_7 = arith.constant 0 : index
    %7 = vector.load %arg1[%c0_6, %c1, %c0_7] : memref<1x30x256xbf16, #tpu.memory_space<vmem>>, vector<1x15x256xbf16>
    %8 = vector.shape_cast %7 : vector<1x15x256xbf16> to vector<15x256xbf16>
    %c1_8 = arith.constant 1 : index
    %c0_9 = arith.constant 0 : index
    %c0_10 = arith.constant 0 : index
    %9 = vector.load %arg2[%c1_8, %c0_9, %c0_10] : memref<9x256x256xbf16, #tpu.memory_space<vmem>>, vector<1x256x256xbf16>
    %10 = vector.shape_cast %9 : vector<1x256x256xbf16> to vector<256x256xbf16>
    %cst_11 = arith.constant dense<0.000000e+00> : vector<15x256xf32>
    %11 = tpu.matmul %8, %10, %cst_11 {dimension_numbers = #tpu.dot_dimension_numbers<[1], [0], [0], [1], [0, 0, 1, 1], [], []>} : vector<15x256xbf16>, vector<256x256xbf16>, vector<15x256xf32> -> vector<15x256xf32>
    %12 = arith.addf %6, %11 : vector<15x256xf32>
    %c0_12 = arith.constant 0 : index
    %c2 = arith.constant 2 : index
    %c0_13 = arith.constant 0 : index
    %13 = vector.load %arg1[%c0_12, %c2, %c0_13] : memref<1x30x256xbf16, #tpu.memory_space<vmem>>, vector<1x15x256xbf16>
    %14 = vector.shape_cast %13 : vector<1x15x256xbf16> to vector<15x256xbf16>
    %c2_14 = arith.constant 2 : index
    %c0_15 = arith.constant 0 : index
    %c0_16 = arith.constant 0 : index
    %15 = vector.load %arg2[%c2_14, %c0_15, %c0_16] : memref<9x256x256xbf16, #tpu.memory_space<vmem>>, vector<1x256x256xbf16>
    %16 = vector.shape_cast %15 : vector<1x256x256xbf16> to vector<256x256xbf16>
    %cst_17 = arith.constant dense<0.000000e+00> : vector<15x256xf32>
    %17 = tpu.matmul %14, %16, %cst_17 {dimension_numbers = #tpu.dot_dimension_numbers<[1], [0], [0], [1], [0, 0, 1, 1], [], []>} : vector<15x256xbf16>, vector<256x256xbf16>, vector<15x256xf32> -> vector<15x256xf32>
    %18 = arith.addf %12, %17 : vector<15x256xf32>
    %c0_18 = arith.constant 0 : index
    %c5 = arith.constant 5 : index
    %c0_19 = arith.constant 0 : index
    %19 = vector.load %arg1[%c0_18, %c5, %c0_19] : memref<1x30x256xbf16, #tpu.memory_space<vmem>>, vector<1x15x256xbf16>
    %20 = vector.shape_cast %19 : vector<1x15x256xbf16> to vector<15x256xbf16>
    %c3 = arith.constant 3 : index
    %c0_20 = arith.constant 0 : index
    %c0_21 = arith.constant 0 : index
    %21 = vector.load %arg2[%c3, %c0_20, %c0_21] : memref<9x256x256xbf16, #tpu.memory_space<vmem>>, vector<1x256x256xbf16>
    %22 = vector.shape_cast %21 : vector<1x256x256xbf16> to vector<256x256xbf16>
    %cst_22 = arith.constant dense<0.000000e+00> : vector<15x256xf32>
    %23 = tpu.matmul %20, %22, %cst_22 {dimension_numbers = #tpu.dot_dimension_numbers<[1], [0], [0], [1], [0, 0, 1, 1], [], []>} : vector<15x256xbf16>, vector<256x256xbf16>, vector<15x256xf32> -> vector<15x256xf32>
    %24 = arith.addf %18, %23 : vector<15x256xf32>
    %c0_23 = arith.constant 0 : index
    %c6 = arith.constant 6 : index
    %c0_24 = arith.constant 0 : index
    %25 = vector.load %arg1[%c0_23, %c6, %c0_24] : memref<1x30x256xbf16, #tpu.memory_space<vmem>>, vector<1x15x256xbf16>
    %26 = vector.shape_cast %25 : vector<1x15x256xbf16> to vector<15x256xbf16>
    %c4 = arith.constant 4 : index
    %c0_25 = arith.constant 0 : index
    %c0_26 = arith.constant 0 : index
    %27 = vector.load %arg2[%c4, %c0_25, %c0_26] : memref<9x256x256xbf16, #tpu.memory_space<vmem>>, vector<1x256x256xbf16>
    %28 = vector.shape_cast %27 : vector<1x256x256xbf16> to vector<256x256xbf16>
    %cst_27 = arith.constant dense<0.000000e+00> : vector<15x256xf32>
    %29 = tpu.matmul %26, %28, %cst_27 {dimension_numbers = #tpu.dot_dimension_numbers<[1], [0], [0], [1], [0, 0, 1, 1], [], []>} : vector<15x256xbf16>, vector<256x256xbf16>, vector<15x256xf32> -> vector<15x256xf32>
    %30 = arith.addf %24, %29 : vector<15x256xf32>
    %c0_28 = arith.constant 0 : index
    %c7 = arith.constant 7 : index
    %c0_29 = arith.constant 0 : index
    %31 = vector.load %arg1[%c0_28, %c7, %c0_29] : memref<1x30x256xbf16, #tpu.memory_space<vmem>>, vector<1x15x256xbf16>
    %32 = vector.shape_cast %31 : vector<1x15x256xbf16> to vector<15x256xbf16>
    %c5_30 = arith.constant 5 : index
    %c0_31 = arith.constant 0 : index
    %c0_32 = arith.constant 0 : index
    %33 = vector.load %arg2[%c5_30, %c0_31, %c0_32] : memref<9x256x256xbf16, #tpu.memory_space<vmem>>, vector<1x256x256xbf16>
    %34 = vector.shape_cast %33 : vector<1x256x256xbf16> to vector<256x256xbf16>
    %cst_33 = arith.constant dense<0.000000e+00> : vector<15x256xf32>
    %35 = tpu.matmul %32, %34, %cst_33 {dimension_numbers = #tpu.dot_dimension_numbers<[1], [0], [0], [1], [0, 0, 1, 1], [], []>} : vector<15x256xbf16>, vector<256x256xbf16>, vector<15x256xf32> -> vector<15x256xf32>
    %36 = arith.addf %30, %35 : vector<15x256xf32>
    %c0_34 = arith.constant 0 : index
    %c10 = arith.constant 10 : index
    %c0_35 = arith.constant 0 : index
    %37 = vector.load %arg1[%c0_34, %c10, %c0_35] : memref<1x30x256xbf16, #tpu.memory_space<vmem>>, vector<1x15x256xbf16>
    %38 = vector.shape_cast %37 : vector<1x15x256xbf16> to vector<15x256xbf16>
    %c6_36 = arith.constant 6 : index
    %c0_37 = arith.constant 0 : index
    %c0_38 = arith.constant 0 : index
    %39 = vector.load %arg2[%c6_36, %c0_37, %c0_38] : memref<9x256x256xbf16, #tpu.memory_space<vmem>>, vector<1x256x256xbf16>
    %40 = vector.shape_cast %39 : vector<1x256x256xbf16> to vector<256x256xbf16>
    %cst_39 = arith.constant dense<0.000000e+00> : vector<15x256xf32>
    %41 = tpu.matmul %38, %40, %cst_39 {dimension_numbers = #tpu.dot_dimension_numbers<[1], [0], [0], [1], [0, 0, 1, 1], [], []>} : vector<15x256xbf16>, vector<256x256xbf16>, vector<15x256xf32> -> vector<15x256xf32>
    %42 = arith.addf %36, %41 : vector<15x256xf32>
    %c0_40 = arith.constant 0 : index
    %c11 = arith.constant 11 : index
    %c0_41 = arith.constant 0 : index
    %43 = vector.load %arg1[%c0_40, %c11, %c0_41] : memref<1x30x256xbf16, #tpu.memory_space<vmem>>, vector<1x15x256xbf16>
    %44 = vector.shape_cast %43 : vector<1x15x256xbf16> to vector<15x256xbf16>
    %c7_42 = arith.constant 7 : index
    %c0_43 = arith.constant 0 : index
    %c0_44 = arith.constant 0 : index
    %45 = vector.load %arg2[%c7_42, %c0_43, %c0_44] : memref<9x256x256xbf16, #tpu.memory_space<vmem>>, vector<1x256x256xbf16>
    %46 = vector.shape_cast %45 : vector<1x256x256xbf16> to vector<256x256xbf16>
    %cst_45 = arith.constant dense<0.000000e+00> : vector<15x256xf32>
    %47 = tpu.matmul %44, %46, %cst_45 {dimension_numbers = #tpu.dot_dimension_numbers<[1], [0], [0], [1], [0, 0, 1, 1], [], []>} : vector<15x256xbf16>, vector<256x256xbf16>, vector<15x256xf32> -> vector<15x256xf32>
    %48 = arith.addf %42, %47 : vector<15x256xf32>
    %c0_46 = arith.constant 0 : index
    %c12 = arith.constant 12 : index
    %c0_47 = arith.constant 0 : index
    %49 = vector.load %arg1[%c0_46, %c12, %c0_47] : memref<1x30x256xbf16, #tpu.memory_space<vmem>>, vector<1x15x256xbf16>
    %50 = vector.shape_cast %49 : vector<1x15x256xbf16> to vector<15x256xbf16>
    %c8 = arith.constant 8 : index
    %c0_48 = arith.constant 0 : index
    %c0_49 = arith.constant 0 : index
    %51 = vector.load %arg2[%c8, %c0_48, %c0_49] : memref<9x256x256xbf16, #tpu.memory_space<vmem>>, vector<1x256x256xbf16>
    %52 = vector.shape_cast %51 : vector<1x256x256xbf16> to vector<256x256xbf16>
    %cst_50 = arith.constant dense<0.000000e+00> : vector<15x256xf32>
    %53 = tpu.matmul %50, %52, %cst_50 {dimension_numbers = #tpu.dot_dimension_numbers<[1], [0], [0], [1], [0, 0, 1, 1], [], []>} : vector<15x256xbf16>, vector<256x256xbf16>, vector<15x256xf32> -> vector<15x256xf32>
    %54 = arith.addf %48, %53 : vector<15x256xf32>
    %c0_51 = arith.constant 0 : index
    %c0_52 = arith.constant 0 : index
    %55 = vector.load %arg3[%c0_51, %c0_52] : memref<1x256xf32, #tpu.memory_space<vmem>>, vector<1x256xf32>
    %56 = vector.broadcast %55 : vector<1x256xf32> to vector<15x256xf32>
    %57 = arith.addf %54, %56 : vector<15x256xf32>
    %cst_53 = arith.constant 0.000000e+00 : f32
    %58 = vector.broadcast %cst_53 : f32 to vector<15x256xf32>
    %59 = arith.maximumf %57, %58 : vector<15x256xf32>
    %60 = arith.truncf %59 : vector<15x256xf32> to vector<15x256xbf16>
    %61 = vector.extract_strided_slice %60 {offsets = [0, 0], sizes = [3, 256], strides = [1, 1]} : vector<15x256xbf16> to vector<3x256xbf16>
    %c0_54 = arith.constant 0 : index
    %c0_55 = arith.constant 0 : index
    %c0_56 = arith.constant 0 : index
    %c0_57 = arith.constant 0 : index
    %62 = vector.load %arg4[%c0_54, %c0_55, %c0_56, %c0_57] : memref<1x3x3x256xbf16, #tpu.memory_space<vmem>>, vector<1x1x3x256xbf16>
    %63 = vector.shape_cast %62 : vector<1x1x3x256xbf16> to vector<3x256xbf16>
    %64 = vector.shape_cast %61 : vector<3x256xbf16> to vector<1x1x3x256xbf16>
    tpu.vector_store %arg4[%c0_54, %c0_55, %c0_56, %c0_57], %64 {strides = array<i32>} : memref<1x3x3x256xbf16, #tpu.memory_space<vmem>>, vector<1x1x3x256xbf16>,
    %65 = vector.extract_strided_slice %60 {offsets = [5, 0], sizes = [3, 256], strides = [1, 1]} : vector<15x256xbf16> to vector<3x256xbf16>
    %c0_58 = arith.constant 0 : index
    %c1_59 = arith.constant 1 : index
    %c0_60 = arith.constant 0 : index
    %c0_61 = arith.constant 0 : index
    %66 = vector.load %arg4[%c0_58, %c1_59, %c0_60, %c0_61] : memref<1x3x3x256xbf16, #tpu.memory_space<vmem>>, vector<1x1x3x256xbf16>
    %67 = vector.shape_cast %66 : vector<1x1x3x256xbf16> to vector<3x256xbf16>
    %68 = vector.shape_cast %65 : vector<3x256xbf16> to vector<1x1x3x256xbf16>
    tpu.vector_store %arg4[%c0_58, %c1_59, %c0_60, %c0_61], %68 {strides = array<i32>} : memref<1x3x3x256xbf16, #tpu.memory_space<vmem>>, vector<1x1x3x256xbf16>,
    %69 = vector.extract_strided_slice %60 {offsets = [10, 0], sizes = [3, 256], strides = [1, 1]} : vector<15x256xbf16> to vector<3x256xbf16>
    %c0_62 = arith.constant 0 : index
    %c2_63 = arith.constant 2 : index
    %c0_64 = arith.constant 0 : index
    %c0_65 = arith.constant 0 : index
    %70 = vector.load %arg4[%c0_62, %c2_63, %c0_64, %c0_65] : memref<1x3x3x256xbf16, #tpu.memory_space<vmem>>, vector<1x1x3x256xbf16>
    %71 = vector.shape_cast %70 : vector<1x1x3x256xbf16> to vector<3x256xbf16>
    %72 = vector.shape_cast %69 : vector<3x256xbf16> to vector<1x1x3x256xbf16>
    tpu.vector_store %arg4[%c0_62, %c2_63, %c0_64, %c0_65], %72 {strides = array<i32>} : memref<1x3x3x256xbf16, #tpu.memory_space<vmem>>, vector<1x1x3x256xbf16>,
    return
  }
  func.func @transform_0(%arg0: i32) -> (i32, i32, i32) {
    %c0_i32 = arith.constant 0 : i32
    %c0_i32_0 = arith.constant 0 : i32
    %c0_i32_1 = arith.constant 0 : i32
    return %arg0, %c0_i32, %c0_i32_0 : i32, i32, i32
  }
  func.func @transform_1(%arg0: i32) -> (i32, i32, i32) {
    %c0_i32 = arith.constant 0 : i32
    %c0_i32_0 = arith.constant 0 : i32
    %c0_i32_1 = arith.constant 0 : i32
    %c0_i32_2 = arith.constant 0 : i32
    return %c0_i32, %c0_i32_0, %c0_i32_1 : i32, i32, i32
  }
  func.func @transform_2(%arg0: i32) -> (i32, i32) {
    %c0_i32 = arith.constant 0 : i32
    %c0_i32_0 = arith.constant 0 : i32
    %c0_i32_1 = arith.constant 0 : i32
    return %c0_i32, %c0_i32_0 : i32, i32
  }
  func.func @transform_3(%arg0: i32) -> (i32, i32, i32, i32) {
    %c0_i32 = arith.constant 0 : i32
    %c0_i32_0 = arith.constant 0 : i32
    %c0_i32_1 = arith.constant 0 : i32
    %c0_i32_2 = arith.constant 0 : i32
    return %arg0, %c0_i32, %c0_i32_0, %c0_i32_1 : i32, i32, i32, i32
  }
}

module attributes {stable_mosaic.version = 11 : i64} {
  func.func @_head_kernel(%arg0: i32, %arg1: memref<4x1x256xbf16, #tpu.memory_space<vmem>>, %arg2: memref<1x256xf32, #tpu.memory_space<vmem>>, %arg3: memref<1x1xf32, #tpu.memory_space<vmem>>, %arg4: memref<1x1xf32, #tpu.memory_space<vmem>>) attributes {dimension_semantics = [#tpu.dimension_semantics<arbitrary>], iteration_bounds = array<i64: 1>, scalar_prefetch = 0 : i64, scratch_operands = 0 : i64, tpu.core_type = #tpu.core_type<tc>, window_params = [{pipeline_mode = #tpu.pipeline_mode<synchronous>, transform_indices = @transform_0, window_bounds = array<i64: 4, 1, 256>}, {pipeline_mode = #tpu.pipeline_mode<synchronous>, transform_indices = @transform_1, window_bounds = array<i64: 1, 256>}, {pipeline_mode = #tpu.pipeline_mode<synchronous>, transform_indices = @transform_2, window_bounds = array<i64: 1, 1>}, {pipeline_mode = #tpu.pipeline_mode<synchronous>, transform_indices = @transform_3, window_bounds = array<i64: 1, 1>}]} {
    %c0 = arith.constant 0 : index
    %c0_0 = arith.constant 0 : index
    %c0_1 = arith.constant 0 : index
    %0 = vector.load %arg1[%c0, %c0_0, %c0_1] : memref<4x1x256xbf16, #tpu.memory_space<vmem>>, vector<4x1x256xbf16>
    %1 = arith.extf %0 : vector<4x1x256xbf16> to vector<4x1x256xf32>
    %cst = arith.constant dense<0.000000e+00> : vector<4x256xf32>
    %2 = vector.multi_reduction <add>, %1, %cst [1] : vector<4x1x256xf32> to vector<4x256xf32>
    %cst_2 = arith.constant 1.000000e+00 : f32
    %3 = vector.broadcast %cst_2 : f32 to vector<4x256xf32>
    %4 = arith.divf %2, %3 : vector<4x256xf32>
    %cst_3 = arith.constant dense<0xFF800000> : vector<256xf32>
    %5 = vector.multi_reduction <maximumf>, %4, %cst_3 [0] : vector<4x256xf32> to vector<256xf32>
    %6 = vector.shape_cast %5 : vector<256xf32> to vector<1x256xf32>
    %c0_4 = arith.constant 0 : index
    %c0_5 = arith.constant 0 : index
    %7 = vector.load %arg2[%c0_4, %c0_5] : memref<1x256xf32, #tpu.memory_space<vmem>>, vector<1x256xf32>
    %8 = arith.mulf %6, %7 : vector<1x256xf32>
    %cst_6 = arith.constant dense<0.000000e+00> : vector<1xf32>
    %9 = vector.multi_reduction <add>, %8, %cst_6 [1] : vector<1x256xf32> to vector<1xf32>
    %10 = vector.shape_cast %9 : vector<1xf32> to vector<1x1xf32>
    %c0_7 = arith.constant 0 : index
    %c0_8 = arith.constant 0 : index
    %11 = vector.load %arg3[%c0_7, %c0_8] : memref<1x1xf32, #tpu.memory_space<vmem>>, vector<1x1xf32>
    %12 = arith.addf %10, %11 : vector<1x1xf32>
    %c0_9 = arith.constant 0 : index
    %c0_10 = arith.constant 0 : index
    %13 = vector.load %arg4[%c0_9, %c0_10] : memref<1x1xf32, #tpu.memory_space<vmem>>, vector<1x1xf32>
    tpu.vector_store %arg4[%c0_9, %c0_10], %12 {strides = array<i32>} : memref<1x1xf32, #tpu.memory_space<vmem>>, vector<1x1xf32>,
    return
  }
  func.func @transform_0(%arg0: i32) -> (i32, i32, i32) {
    %c0_i32 = arith.constant 0 : i32
    %c0_i32_0 = arith.constant 0 : i32
    %c0_i32_1 = arith.constant 0 : i32
    %c0_i32_2 = arith.constant 0 : i32
    return %c0_i32, %c0_i32_0, %c0_i32_1 : i32, i32, i32
  }
  func.func @transform_1(%arg0: i32) -> (i32, i32) {
    %c0_i32 = arith.constant 0 : i32
    %c0_i32_0 = arith.constant 0 : i32
    %c0_i32_1 = arith.constant 0 : i32
    return %c0_i32, %c0_i32_0 : i32, i32
  }
  func.func @transform_2(%arg0: i32) -> (i32, i32) {
    %c0_i32 = arith.constant 0 : i32
    %c0_i32_0 = arith.constant 0 : i32
    %c0_i32_1 = arith.constant 0 : i32
    return %c0_i32, %c0_i32_0 : i32, i32
  }
  func.func @transform_3(%arg0: i32) -> (i32, i32) {
    %c0_i32 = arith.constant 0 : i32
    %c0_i32_0 = arith.constant 0 : i32
    %c0_i32_1 = arith.constant 0 : i32
    return %c0_i32, %c0_i32_0 : i32, i32
  }
}

</mosaic_0001>

<bundles_post_ra>
// kernel: mrnet_forward.6
= control target key start
LH: loop header
LB: loop body
LE: loop exit
PB: predicated region body
PF: predicated region fallthrough
CT: control target
= control target key end

     0   :  { %s1712_s12 = smov 0   ;;  %s1998_s0 = inlined_call_operand.vmem [shape: bf16[4,225,363], index: 0, kind: input, shape index: {}]   ;;  %s1999_s1 = inlined_call_operand.vmem [shape: bf16[363,64], index: 1, kind: input, shape index: {}]   ;;  %s2000_s2 = inlined_call_operand.vmem [shape: f32[1,64], index: 2, kind: input, shape index: {}]   ;;  %s2001_s3 = inlined_call_operand.vmem [shape: bf16[4,225,64], index: 3, kind: output, shape index: {}]  }
   0x1 LB: > { %s1233_s13 = sadd.s32 4294967295, %s1687_s12   ;;  %p1237_p0 = scmp.ge.s32.totalorder %s1687_s12, 1  ;;  %s1687_s12 = sphi %s1712_s12, %s13_s12  }
   0x2   : > { %p137_p1 = scmp.lt.s32.totalorder %s1687_s12, 5 }
   0x4   : > { %p138_p2 = pnand %p1237_p0, %p137_p1 }
   0x5   : > { %v1599_v0 = vld [vmem:[%s1999_s1 + $0x40] sm:$0xff] (!%p138_p2)   ;;  %v1689_v2 = vmov (!%p138_p2), 0.0   ;;  %v1601_v3 = vld [vmem:[%s1999_s1 + $0x48] sm:$0xff] (!%p138_p2)   ;;  %v1604_v6 = vld [vmem:[%s1999_s1 + $0x50] sm:$0xff] (!%p138_p2)   ;;  %p161_p3 = scmp.lt.s32.totalorder (!%p138_p2), %s1233_s13, 3  ;;  %vm1690_vm0 = vmmov (!%p138_p2), 0  }
   0x6   : > { %141 = sbr.rel (%p138_p2) target bundleno = 375 (0x177), region = 32  ;;  %v1600_v1 = vld [vmem:[%s1999_s1] sm:$0xff] (!%p138_p2)   ;;  %1512 = vmatprep.subr.bf16.mxu1 (!%p138_p2), %v1689_v2  ;;  %1384 = vmatprep.subr.bf16.mxu0 (!%p138_p2), %v1599_v0  ;;  %v1602_v4 = vld [vmem:[%s1999_s1 + $0x8] sm:$0xff] (!%p138_p2)   ;;  %v1605_v7 = vld [vmem:[%s1999_s1 + $0x10] sm:$0xff] (!%p138_p2)   ;;  %vm686_vm1 = vcmask (!%p138_p2), 1044480   ;;  %vm687_vm2 = vcmask (!%p138_p2), 1045504  }
   0x7   : > { %1385 = vmatpush3.bf16.msra.mxu0 (!%p138_p2), %v1600_v1  ;;  %v1603_v5 = vld [vmem:[%s1999_s1 + $0x80] sm:$0xff] (!%p138_p2)   ;;  %v1606_v8 = vld [vmem:[%s1999_s1 + $0x88] sm:$0xff] (!%p138_p2)   ;;  %v1607_v9 = vld [vmem:[%s1999_s1 + $0x58] sm:$0xff] (!%p138_p2)   ;;  %1526 = vmatprep.mubr.msk.bf16.mxu1 (!%p138_p2), %vm1690_vm0, %v1689_v2  ;;  %v1691_v18 = vmov (!%p138_p2), 65535   ;;  %vm640_vm3 = vcmask (!%p138_p2), 875520   ;;  %vm1143_vm4 = vcmask (!%p138_p2), 519168  }
   0x8   : > { %1386 = vmatprep.subr.bf16.mxu0 (!%p138_p2), %v1601_v3  ;;  %1513 = vmatpush3.bf16.msra.mxu1 (!%p138_p2), %v1603_v5  ;;  %v1609_v10 = vld [vmem:[%s1999_s1 + $0x90] sm:$0xff] (!%p138_p2)   ;;  %v1608_v11 = vld [vmem:[%s1999_s1 + $0x18] sm:$0xff] (!%p138_p2)   ;;  %v1610_v12 = vld [vmem:[%s1999_s1 + $0x60] sm:$0xff] (!%p138_p2)   ;;  %v688_v19 = vsel (!%p138_p2), %vm686_vm1, 4294967295, %v1691_v18  ;;  %vm1172_vm5 = vcmask (!%p138_p2), 516096  }
   0x9   : > { %1514 = vmatprep.subr.bf16.mxu1 (!%p138_p2), %v1689_v2  ;;  %v1612_v13 = vld [vmem:[%s1999_s1 + $0x98] sm:$0xff] (!%p138_p2)   ;;  %v1611_v14 = vld [vmem:[%s1999_s1 + $0x20] sm:$0xff] (!%p138_p2)   ;;  %v1613_v15 = vld [vmem:[%s1999_s1 + $0x68] sm:$0xff] (!%p138_p2)   ;;  %v689_v24 = vsel (!%p138_p2), %vm687_vm2, %v688_v19, 0  ;;  %vm1173_vm6 = vsmask.f32 (!%p138_p2), 256 }
   0xa   : > { %v1615_v16 = vld [vmem:[%s1999_s1 + $0xa0] sm:$0xff] (!%p138_p2)   ;;  %v1614_v17 = vld [vmem:[%s1999_s1 + $0x28] sm:$0xff] (!%p138_p2)   ;;  %v1616_v20 = vld [vmem:[%s1999_s1 + $0x70] sm:$0xff] (!%p138_p2)  }
   0xb   : > { %1387 = vmatpush3.bf16.msra.mxu0 (!%p138_p2), %v1602_v4  ;;  %v1617_v21 = vld [vmem:[%s1999_s1 + $0x30] sm:$0xff] (!%p138_p2)   ;;  %v1618_v22 = vld [vmem:[%s1999_s1 + $0xa8] sm:$0xff] (!%p138_p2)   ;;  %v1619_v23 = vld [vmem:[%s1999_s1 + $0x78] sm:$0xff] (!%p138_p2)  }
   0xc   : > { %1388 = vmatprep.subr.bf16.mxu0 (!%p138_p2), %v1604_v6  ;;  %1515 = vmatpush3.bf16.msra.mxu1 (!%p138_p2), %v1606_v8  ;;  %v1624_v26 = vld [vmem:[%s1999_s1 + $0xb0] sm:$0x3f] (!%p138_p2)   ;;  %v1620_v28 = vld [vmem:[%s1999_s1 + $0x38] sm:$0xff] (!%p138_p2)   ;;  %vm1174_vm7 = vmand (!%p138_p2), %vm1172_vm5, %vm1173_vm6 }
   0xd   : > { %1516 = vmatprep.subr.bf16.mxu1 %v1689_v2  ;;  %s2003_s13 = smov (!%p161_p3, %s1233_s13), 3  ;;  %v691_v27 = vand.u32 %v1624_v26, %v689_v24 }
   0xe   : > { %s1586_s17 = smul.u32 348, %s2003_s13 }
   0xf   : > { %1389 = vmatpush3.bf16.msra.mxu0 %v1605_v7  ;;  %s1587_s16 = smul.u32 116, %s2003_s13 }
  0x10   : > { %1390 = vmatprep.subr.bf16.mxu0 %v1607_v9  ;;  %1517 = vmatpush3.bf16.msra.mxu1 %v1609_v10  ;;  %s1791_s28 = scalar_lea.vmem %s1998_s0, %s1586_s17 }
  0x11   : > { %1518 = vmatprep.subr.bf16.mxu1 %v1689_v2  ;;  %v1623_v25 = vld [vmem:[%s1791_s28 + $0x4] ss:$12 sps:$4 sm:$0xff]   ;;  %v1625_v29 = vld [vmem:[%s1791_s28 + $0x8] ss:$12 sps:$4 sm:$0xff]   ;;  %v1621_v30 = vld [vmem:[%s1791_s28] ss:$12 sps:$4 sm:$0xff]   ;;  %s1908_s19 = scalar_lea.vmem %s2001_s3, %s1587_s16 }
  0x12   : > { %725 = vmatprep.mubr.bf16.mxu0 %v1623_v25  ;;  %v1626_v31 = vld [vmem:[%s1791_s28 + $0x1c] ss:$12 sps:$4 sm:$0xff]   ;;  %v1629_v32 = vld [vmem:[%s1791_s28 + $0x20] ss:$12 sps:$4 sm:$0xff]   ;;  %v1628_v33 = vld [vmem:[%s1791_s28 + $0x18] ss:$12 sps:$4 sm:$0xff]  }
  0x13   : > { %1391 = vmatpush3.bf16.msra.mxu0 %v1608_v11  ;;  %v1630_v34 = vld [vmem:[%s1791_s28 + $0x34] ss:$12 sps:$4 sm:$0xff]   ;;  %v1633_v35 = vld [vmem:[%s1791_s28 + $0x38] ss:$12 sps:$4 sm:$0xff]   ;;  %v1632_v36 = vld [vmem:[%s1791_s28 + $0x30] ss:$12 sps:$4 sm:$0xff]  }
  0x14   : > { %1392 = vmatprep.subr.bf16.mxu0 %v1610_v12  ;;  %1519 = vmatpush3.bf16.msra.mxu1 %v1612_v13  ;;  %v1634_v37 = vld [vmem:[%s1791_s28 + $0x4c] ss:$12 sps:$4 sm:$0xff]   ;;  %v1637_v38 = vld [vmem:[%s1791_s28 + $0x50] ss:$12 sps:$4 sm:$0xff]   ;;  %v1636_v39 = vld [vmem:[%s1791_s28 + $0x48] ss:$12 sps:$4 sm:$0xff]  }
  0x15   : > { %1520 = vmatprep.subr.bf16.mxu1 %v1689_v2  ;;  %v1638_v40 = vld [vmem:[%s1791_s28 + $0x64] ss:$12 sps:$4 sm:$0xff]   ;;  %v1641_v41 = vld [vmem:[%s1791_s28 + $0x68] ss:$12 sps:$4 sm:$0xff]   ;;  %v1640_v42 = vld [vmem:[%s1791_s28 + $0x60] ss:$12 sps:$4 sm:$0xff]  }
  0x16   : > { %v1642_v43 = vld [vmem:[%s1791_s28 + $0x7c] ss:$12 sps:$4 sm:$0xff]   ;;  %v1645_v44 = vld [vmem:[%s1791_s28 + $0x80] ss:$12 sps:$4 sm:$0xff]   ;;  %v1644_v45 = vld [vmem:[%s1791_s28 + $0x78] ss:$12 sps:$4 sm:$0xff]  }
  0x17   : > { %1393 = vmatpush3.bf16.msra.mxu0 %v1611_v14  ;;  %v1646_v46 = vld [vmem:[%s1791_s28 + $0x94] ss:$12 sps:$4 sm:$0xff]   ;;  %v1649_v47 = vld [vmem:[%s1791_s28 + $0x98] ss:$12 sps:$4 sm:$0xff]   ;;  %v1648_v48 = vld [vmem:[%s1791_s28 + $0x90] ss:$12 sps:$4 sm:$0xff]  }
  0x18   : > { %1394 = vmatprep.subr.bf16.mxu0 %v1613_v15  ;;  %1521 = vmatpush3.bf16.msra.mxu1 %v1615_v16  ;;  %v1650_v49 = vld [vmem:[%s1791_s28 + $0xac] ss:$12 sps:$4 sm:$0xff]   ;;  %v1653_v50 = vld [vmem:[%s1791_s28 + $0xb0] ss:$12 sps:$4 sm:$0xff]   ;;  %v1652_v51 = vld [vmem:[%s1791_s28 + $0xa8] ss:$12 sps:$4 sm:$0xff]  }
  0x19   : > { %1522 = vmatprep.subr.bf16.mxu1 %v1689_v2  ;;  %v1654_v52 = vld [vmem:[%s1791_s28 + $0xc4] ss:$12 sps:$4 sm:$0xff]   ;;  %v1657_v53 = vld [vmem:[%s1791_s28 + $0xc8] ss:$12 sps:$4 sm:$0xff]   ;;  %v1656_v54 = vld [vmem:[%s1791_s28 + $0xc0] ss:$12 sps:$4 sm:$0xff]  }
  0x1a   : > { %v1658_v55 = vld [vmem:[%s1791_s28 + $0xdc] ss:$12 sps:$4 sm:$0xff]   ;;  %v1661_v56 = vld [vmem:[%s1791_s28 + $0xe0] ss:$12 sps:$4 sm:$0xff]   ;;  %v1660_v57 = vld [vmem:[%s1791_s28 + $0xd8] ss:$12 sps:$4 sm:$0xff]  }
  0x1b   : > { %1395 = vmatpush3.bf16.msra.mxu0 %v1614_v17  ;;  %v1662_v58 = vld [vmem:[%s1791_s28 + $0xf4] ss:$12 sps:$4 sm:$0xff]   ;;  %v1665_v59 = vld [vmem:[%s1791_s28 + $0xf8] ss:$12 sps:$4 sm:$0xff]   ;;  %v1664_v60 = vld [vmem:[%s1791_s28 + $0xf0] ss:$12 sps:$4 sm:$0xff]  }
  0x1c   : > { %1396 = vmatprep.subr.bf16.mxu0 %v1616_v20  ;;  %1523 = vmatpush3.bf16.msra.mxu1 %v1618_v22  ;;  %v1666_v61 = vld [vmem:[%s1791_s28 + $0x10c] ss:$12 sps:$4 sm:$0xff]   ;;  %v1669_v62 = vld [vmem:[%s1791_s28 + $0x110] ss:$12 sps:$4 sm:$0xff]   ;;  %v1668_v63 = vld [vmem:[%s1791_s28 + $0x108] ss:$12 sps:$4 sm:$0xff]  }
  0x1d   : > { %1524 = vmatprep.subr.bf16.mxu1 %v1689_v2  ;;  %v1670_v0 = vld [vmem:[%s1791_s28 + $0x124] ss:$12 sps:$4 sm:$0xff]   ;;  %v1673_v1 = vld [vmem:[%s1791_s28 + $0x128] ss:$12 sps:$4 sm:$0xff]   ;;  %v1672_v3 = vld [vmem:[%s1791_s28 + $0x120] ss:$12 sps:$4 sm:$0xff]  }
  0x1e   : > { %v1674_v4 = vld [vmem:[%s1791_s28 + $0x13c] ss:$12 sps:$4 sm:$0xff]   ;;  %v228_v5 = vld [vmem:[%s1791_s28 + $0x150] sm:$0x11]  ;;  %v1677_v6 = vld [vmem:[%s1791_s28 + $0x140] ss:$12 sps:$4 sm:$0xff]  }
  0x1f   : > { %1397 = vmatpush3.bf16.msra.mxu0 %v1617_v21  ;;  %v1676_v7 = vld [vmem:[%s1791_s28 + $0x138] ss:$12 sps:$4 sm:$0xff]   ;;  %v1284_v8 = vcombine.high %v228_v5, %v228_v5  ;;  %v1283_v10 = vcombine.low %v228_v5, %v228_v5  ;;  %v1900_v15 = vld [vmem:[%s2000_s2] ss:$0 sm:$0xff] }
  0x20   : > { %1398 = vmatprep.subr.bf16.mxu0 %v1619_v23  ;;  %1525 = vmatpush3.bf16.msra.mxu1 %v691_v27  ;;  %v1680_v9 = vld [vmem:[%s1791_s28 + $0x158] ss:$0 sps:$4 sm:$0x11]  }
  0x23   : > { %1399 = vmatpush3.bf16.msra.mxu0 %v1620_v28  ;;  %1527 = vmatmul.mubr.msk.bf16.vlgmr.msra.gmra.mrb[0].mxu1 %vm640_vm3, %v1625_v29 }
  0x24   : > { %1530 = vmatprep.mubr.msk.bf16.mxu1 %vm1690_vm0, %v1689_v2 }
  0x26   : > { %726 = vmatmul.mubr.bf16.vlgmr.msra.gmra.mrb[0].mxu0 %v1621_v30 }
  0x27   : > { %733 = vmatprep.mubr.bf16.mxu0 %v1626_v31 }
  0x2b   : > { %1531 = vmatmul.mubr.msk.bf16.gmra.mrb[4].mxu1 %vm640_vm3, %v1629_v32 }
  0x2c   : > { %1534 = vmatprep.mubr.msk.bf16.mxu1 %vm1690_vm0, %v1689_v2 }
  0x2e   : > { %734 = vmatmul.mubr.bf16.gmra.mrb[4].mxu0 %v1628_v33 }
  0x2f   : > { %741 = vmatprep.mubr.bf16.mxu0 %v1630_v34 }
  0x33   : > { %1535 = vmatmul.mubr.msk.bf16.gmra.mrb[8].mxu1 %vm640_vm3, %v1633_v35 }
  0x34   : > { %1538 = vmatprep.mubr.msk.bf16.mxu1 %vm1690_vm0, %v1689_v2 }
  0x36   : > { %742 = vmatmul.mubr.bf16.gmra.mrb[8].mxu0 %v1632_v36 }
  0x37   : > { %749 = vmatprep.mubr.bf16.mxu0 %v1634_v37 }
  0x3b   : > { %1539 = vmatmul.mubr.msk.bf16.gmra.mrb[12].mxu1 %vm640_vm3, %v1637_v38 }
  0x3c   : > { %1542 = vmatprep.mubr.msk.bf16.mxu1 %vm1690_vm0, %v1689_v2 }
  0x3e   : > { %750 = vmatmul.mubr.bf16.gmra.mrb[12].mxu0 %v1636_v39 }
  0x3f   : > { %757 = vmatprep.mubr.bf16.mxu0 %v1638_v40 }
  0x43   : > { %1543 = vmatmul.mubr.msk.bf16.gmra.mrb[16].mxu1 %vm640_vm3, %v1641_v41 }
  0x44   : > { %1546 = vmatprep.mubr.msk.bf16.mxu1 %vm1690_vm0, %v1689_v2 }
  0x46   : > { %758 = vmatmul.mubr.bf16.gmra.mrb[16].mxu0 %v1640_v42 }
  0x47   : > { %765 = vmatprep.mubr.bf16.mxu0 %v1642_v43 }
  0x4b   : > { %1547 = vmatmul.mubr.msk.bf16.gmra.mrb[20].mxu1 %vm640_vm3, %v1645_v44 }
  0x4c   : > { %1550 = vmatprep.mubr.msk.bf16.mxu1 %vm1690_vm0, %v1689_v2 }
  0x4e   : > { %766 = vmatmul.mubr.bf16.gmra.mrb[20].mxu0 %v1644_v45 }
  0x4f   : > { %773 = vmatprep.mubr.bf16.mxu0 %v1646_v46 }
  0x53   : > { %1551 = vmatmul.mubr.msk.bf16.gmra.mrb[24].mxu1 %vm640_vm3, %v1649_v47 }
  0x54   : > { %1554 = vmatprep.mubr.msk.bf16.mxu1 %vm1690_vm0, %v1689_v2 }
  0x56   : > { %774 = vmatmul.mubr.bf16.gmra.mrb[24].mxu0 %v1648_v48 }
  0x57   : > { %781 = vmatprep.mubr.bf16.mxu0 %v1650_v49 }
  0x5b   : > { %1555 = vmatmul.mubr.msk.bf16.gmra.mrb[28].mxu1 %vm640_vm3, %v1653_v50 }
  0x5c   : > { %1558 = vmatprep.mubr.msk.bf16.mxu1 %vm1690_vm0, %v1689_v2 }
  0x5e   : > { %782 = vmatmul.mubr.bf16.gmra.mrb[28].mxu0 %v1652_v51 }
  0x5f   : > { %789 = vmatprep.mubr.bf16.mxu0 %v1654_v52 }
  0x63   : > { %1559 = vmatmul.mubr.msk.bf16.gmra.mrb[32].mxu1 %vm640_vm3, %v1657_v53 }
  0x64   : > { %1562 = vmatprep.mubr.msk.bf16.mxu1 %vm1690_vm0, %v1689_v2 }
  0x66   : > { %790 = vmatmul.mubr.bf16.gmra.mrb[32].mxu0 %v1656_v54 }
  0x67   : > { %797 = vmatprep.mubr.bf16.mxu0 %v1658_v55 }
  0x6b   : > { %1563 = vmatmul.mubr.msk.bf16.gmra.mrb[36].mxu1 %vm640_vm3, %v1661_v56 }
  0x6c   : > { %1566 = vmatprep.mubr.msk.bf16.mxu1 %vm1690_vm0, %v1689_v2 }
  0x6e   : > { %798 = vmatmul.mubr.bf16.gmra.mrb[36].mxu0 %v1660_v57 }
  0x6f   : > { %805 = vmatprep.mubr.bf16.mxu0 %v1662_v58 }
  0x73   : > { %1567 = vmatmul.mubr.msk.bf16.gmra.mrb[40].mxu1 %vm640_vm3, %v1665_v59 }
  0x74   : > { %1570 = vmatprep.mubr.msk.bf16.mxu1 %vm1690_vm0, %v1689_v2 }
  0x76   : > { %806 = vmatmul.mubr.bf16.gmra.mrb[40].mxu0 %v1664_v60 }
  0x77   : > { %813 = vmatprep.mubr.bf16.mxu0 %v1666_v61 }
  0x7b   : > { %1571 = vmatmul.mubr.msk.bf16.gmra.mrb[44].mxu1 %vm640_vm3, %v1669_v62 }
  0x7c   : > { %1574 = vmatprep.mubr.msk.bf16.mxu1 %vm1690_vm0, %v1689_v2 }
  0x7e   : > { %814 = vmatmul.mubr.bf16.gmra.mrb[44].mxu0 %v1668_v63 }
  0x7f   : > { %821 = vmatprep.mubr.bf16.mxu0 %v1670_v0 }
  0x83   : > { %1575 = vmatmul.mubr.msk.bf16.gmra.mrb[48].mxu1 %vm640_vm3, %v1673_v1 }
  0x84   : > { %1578 = vmatprep.mubr.msk.bf16.mxu1 %vm1690_vm0, %v1689_v2 }
  0x86   : > { %822 = vmatmul.mubr.bf16.gmra.mrb[48].mxu0 %v1672_v3 }
  0x87   : > { %829 = vmatprep.mubr.bf16.mxu0 %v1674_v4 }
  0x8b   : > { %1579 = vmatmul.mubr.msk.bf16.gmra.mrb[52].mxu1 %vm640_vm3, %v1677_v6 }
  0x8c   : > { %1582 = vmatprep.mubr.msk.bf16.mxu1 %vm1690_vm0, %v1689_v2 }
  0x8e   : > { %830 = vmatmul.mubr.bf16.gmra.mrb[52].mxu0 %v1676_v7 }
  0x8f   : > { %837 = vmatprep.mubr.bf16.mxu0 %v1284_v8 }
  0x93   : > { %1583 = vmatmul.mubr.msk.bf16.gmra.mrb[56].mxu1 %vm640_vm3, %v1680_v9 }
  0x96   : > { %838 = vmatmul.mubr.bf16.gmra.mrb[56].mxu0 %v1283_v10 }
  0xf6   : > { %v879_v11 = vpop.f32.mrb[0].mxu1 }
  0xf7   : > { %v1528_v13 = vpop.f32.mrb[1].mxu1 }
  0xf8   : > { %v882_v16 = vpop.f32.mrb[2].mxu1 }
  0xf9   : > { %v1400_v12 = vpop.f32.mrb[0].mxu0  ;;  %v1529_v2 = vpop.f32.mrb[3].mxu1 }
  0xfa   : > { %v1401_v14 = vpop.f32.mrb[1].mxu0 }
  0xfb   : > { %v1402_v17 = vadd.f32 %v1401_v14, %v1400_v12  ;;  %v1403_v18 = vpop.f32.mrb[2].mxu0 }
  0xfc   : > { %v1404_v19 = vpop.f32.mrb[3].mxu0 }
  0xfd   : > { %v728_v20 = vadd.f32 %v1402_v17, %v1900_v15  ;;  %v1405_v21 = vadd.f32 %v1404_v19, %v1403_v18 }
  0xfe   : > { %v887_v24 = vpop.f32.mrb[4].mxu1 }
  0xff   : > { %v880_v22 = vadd.f32 %v879_v11, %v728_v20  ;;  %v731_v23 = vadd.f32 %v1405_v21, %v1900_v15  ;;  %v1532_v28 = vpop.f32.mrb[5].mxu1 }
 0x100   : > { %v890_v30 = vpop.f32.mrb[6].mxu1 }
 0x101   : > { %v997_v25 = vmax.f32 %v880_v22, 0.0  ;;  %v883_v26 = vadd.f32 %v882_v16, %v731_v23  ;;  %v1406_v27 = vpop.f32.mrb[4].mxu0  ;;  %v1533_v35 = vpop.f32.mrb[7].mxu1 }
 0x102   : > { %v1407_v29 = vpop.f32.mrb[5].mxu0 }
 0x103   : > { %v1355_v31 = vpack.c.bf16 %v997_v25, %v997_v25  ;;  %v998_v32 = vmax.f32 %v883_v26, 0.0  ;;  %v1408_v33 = vadd.f32 %v1407_v29, %v1406_v27  ;;  %v1409_v34 = vpop.f32.mrb[6].mxu0 }
 0x104   : > { %v1410_v36 = vpop.f32.mrb[7].mxu0 }
 0x105   : > { %1144 = vst.msk [vmem:[%s1908_s19] sm:$0xf] %vm1143_vm4, %v1355_v31  ;;  %v1356_v37 = vpack.c.bf16 %v998_v32, %v998_v32  ;;  %v736_v38 = vadd.f32 %v1408_v33, %v1900_v15  ;;  %v1411_v39 = vadd.f32 %v1410_v36, %v1409_v34 }
 0x106   : > { %v895_v42 = vpop.f32.mrb[8].mxu1 }
 0x107   : > { %1145 = vst.msk [vmem:[%s1908_s19 + $0x4] sm:$0xf] %vm1143_vm4, %v1356_v37  ;;  %v888_v40 = vadd.f32 %v887_v24, %v736_v38  ;;  %v739_v41 = vadd.f32 %v1411_v39, %v1900_v15  ;;  %v1536_v46 = vpop.f32.mrb[9].mxu1 }
 0x108   : > { %v898_v48 = vpop.f32.mrb[10].mxu1 }
 0x109   : > { %v999_v43 = vmax.f32 %v888_v40, 0.0  ;;  %v891_v44 = vadd.f32 %v890_v30, %v739_v41  ;;  %v1412_v45 = vpop.f32.mrb[8].mxu0  ;;  %v1537_v53 = vpop.f32.mrb[11].mxu1 }
 0x10a   : > { %v1413_v47 = vpop.f32.mrb[9].mxu0 }
 0x10b   : > { %v1357_v49 = vpack.c.bf16 %v999_v43, %v999_v43  ;;  %v1000_v50 = vmax.f32 %v891_v44, 0.0  ;;  %v1414_v51 = vadd.f32 %v1413_v47, %v1412_v45  ;;  %v1415_v52 = vpop.f32.mrb[10].mxu0 }
 0x10c   : > { %v1416_v54 = vpop.f32.mrb[11].mxu0 }
 0x10d   : > { %1146 = vst.msk [vmem:[%s1908_s19 + $0x8] sm:$0xf] %vm1143_vm4, %v1357_v49  ;;  %v1358_v55 = vpack.c.bf16 %v1000_v50, %v1000_v50  ;;  %v744_v56 = vadd.f32 %v1414_v51, %v1900_v15  ;;  %v1417_v57 = vadd.f32 %v1416_v54, %v1415_v52 }
 0x10e   : > { %v903_v60 = vpop.f32.mrb[12].mxu1 }
 0x10f   : > { %1147 = vst.msk [vmem:[%s1908_s19 + $0xc] sm:$0xf] %vm1143_vm4, %v1358_v55  ;;  %v896_v58 = vadd.f32 %v895_v42, %v744_v56  ;;  %v747_v59 = vadd.f32 %v1417_v57, %v1900_v15  ;;  %v1540_v0 = vpop.f32.mrb[13].mxu1 }
 0x110   : > { %v906_v3 = vpop.f32.mrb[14].mxu1 }
 0x111   : > { %v1001_v61 = vmax.f32 %v896_v58, 0.0  ;;  %v899_v62 = vadd.f32 %v898_v48, %v747_v59  ;;  %v1418_v63 = vpop.f32.mrb[12].mxu0  ;;  %v1541_v8 = vpop.f32.mrb[15].mxu1 }
 0x112   : > { %v1419_v1 = vpop.f32.mrb[13].mxu0 }
 0x113   : > { %v1359_v4 = vpack.c.bf16 %v1001_v61, %v1001_v61  ;;  %v1002_v5 = vmax.f32 %v899_v62, 0.0  ;;  %v1420_v6 = vadd.f32 %v1419_v1, %v1418_v63  ;;  %v1421_v7 = vpop.f32.mrb[14].mxu0 }
 0x114   : > { %v1422_v9 = vpop.f32.mrb[15].mxu0 }
 0x115   : > { %1148 = vst.msk [vmem:[%s1908_s19 + $0x10] sm:$0xf] %vm1143_vm4, %v1359_v4  ;;  %v1360_v10 = vpack.c.bf16 %v1002_v5, %v1002_v5  ;;  %v752_v11 = vadd.f32 %v1420_v6, %v1900_v15  ;;  %v1423_v12 = vadd.f32 %v1422_v9, %v1421_v7 }
 0x116   : > { %v911_v16 = vpop.f32.mrb[16].mxu1 }
 0x117   : > { %1149 = vst.msk [vmem:[%s1908_s19 + $0x14] sm:$0xf] %vm1143_vm4, %v1360_v10  ;;  %v904_v13 = vadd.f32 %v903_v60, %v752_v11  ;;  %v755_v14 = vadd.f32 %v1423_v12, %v1900_v15  ;;  %v1544_v19 = vpop.f32.mrb[17].mxu1 }
 0x118   : > { %v914_v21 = vpop.f32.mrb[18].mxu1 }
 0x119   : > { %v1003_v17 = vmax.f32 %v904_v13, 0.0  ;;  %v907_v18 = vadd.f32 %v906_v3, %v755_v14  ;;  %v1424_v2 = vpop.f32.mrb[16].mxu0  ;;  %v1545_v26 = vpop.f32.mrb[19].mxu1 }
 0x11a   : > { %v1425_v20 = vpop.f32.mrb[17].mxu0 }
 0x11b   : > { %v1361_v22 = vpack.c.bf16 %v1003_v17, %v1003_v17  ;;  %v1004_v23 = vmax.f32 %v907_v18, 0.0  ;;  %v1426_v24 = vadd.f32 %v1425_v20, %v1424_v2  ;;  %v1427_v25 = vpop.f32.mrb[18].mxu0 }
 0x11c   : > { %v1428_v27 = vpop.f32.mrb[19].mxu0 }
 0x11d   : > { %1150 = vst.msk [vmem:[%s1908_s19 + $0x18] sm:$0xf] %vm1143_vm4, %v1361_v22  ;;  %v1362_v28 = vpack.c.bf16 %v1004_v23, %v1004_v23  ;;  %v760_v29 = vadd.f32 %v1426_v24, %v1900_v15  ;;  %v1429_v30 = vadd.f32 %v1428_v27, %v1427_v25 }
 0x11e   : > { %v919_v33 = vpop.f32.mrb[20].mxu1 }
 0x11f   : > { %1151 = vst.msk [vmem:[%s1908_s19 + $0x1c] sm:$0xf] %vm1143_vm4, %v1362_v28  ;;  %v912_v31 = vadd.f32 %v911_v16, %v760_v29  ;;  %v763_v32 = vadd.f32 %v1429_v30, %v1900_v15  ;;  %v1548_v37 = vpop.f32.mrb[21].mxu1 }
 0x120   : > { %v922_v39 = vpop.f32.mrb[22].mxu1 }
 0x121   : > { %v1005_v34 = vmax.f32 %v912_v31, 0.0  ;;  %v915_v35 = vadd.f32 %v914_v21, %v763_v32  ;;  %v1430_v36 = vpop.f32.mrb[20].mxu0  ;;  %v1549_v44 = vpop.f32.mrb[23].mxu1 }
 0x122   : > { %v1431_v38 = vpop.f32.mrb[21].mxu0 }
 0x123   : > { %v1363_v40 = vpack.c.bf16 %v1005_v34, %v1005_v34  ;;  %v1006_v41 = vmax.f32 %v915_v35, 0.0  ;;  %v1432_v42 = vadd.f32 %v1431_v38, %v1430_v36  ;;  %v1433_v43 = vpop.f32.mrb[22].mxu0 }
 0x124   : > { %v1434_v45 = vpop.f32.mrb[23].mxu0 }
 0x125   : > { %1152 = vst.msk [vmem:[%s1908_s19 + $0x20] sm:$0xf] %vm1143_vm4, %v1363_v40  ;;  %v1364_v46 = vpack.c.bf16 %v1006_v41, %v1006_v41  ;;  %v768_v47 = vadd.f32 %v1432_v42, %v1900_v15  ;;  %v1435_v48 = vadd.f32 %v1434_v45, %v1433_v43 }
 0x126   : > { %v927_v51 = vpop.f32.mrb[24].mxu1 }
 0x127   : > { %1153 = vst.msk [vmem:[%s1908_s19 + $0x24] sm:$0xf] %vm1143_vm4, %v1364_v46  ;;  %v920_v49 = vadd.f32 %v919_v33, %v768_v47  ;;  %v771_v50 = vadd.f32 %v1435_v48, %v1900_v15  ;;  %v1552_v55 = vpop.f32.mrb[25].mxu1 }
 0x128   : > { %v930_v57 = vpop.f32.mrb[26].mxu1 }
 0x129   : > { %v1007_v52 = vmax.f32 %v920_v49, 0.0  ;;  %v923_v53 = vadd.f32 %v922_v39, %v771_v50  ;;  %v1436_v54 = vpop.f32.mrb[24].mxu0  ;;  %v1553_v62 = vpop.f32.mrb[27].mxu1 }
 0x12a   : > { %v1437_v56 = vpop.f32.mrb[25].mxu0 }
 0x12b   : > { %v1365_v58 = vpack.c.bf16 %v1007_v52, %v1007_v52  ;;  %v1008_v59 = vmax.f32 %v923_v53, 0.0  ;;  %v1438_v60 = vadd.f32 %v1437_v56, %v1436_v54  ;;  %v1439_v61 = vpop.f32.mrb[26].mxu0 }
 0x12c   : > { %v1440_v63 = vpop.f32.mrb[27].mxu0 }
 0x12d   : > { %1154 = vst.msk [vmem:[%s1908_s19 + $0x28] sm:$0xf] %vm1143_vm4, %v1365_v58  ;;  %v1366_v0 = vpack.c.bf16 %v1008_v59, %v1008_v59  ;;  %v776_v1 = vadd.f32 %v1438_v60, %v1900_v15  ;;  %v1441_v3 = vadd.f32 %v1440_v63, %v1439_v61 }
 0x12e   : > { %v935_v6 = vpop.f32.mrb[28].mxu1 }
 0x12f   : > { %1155 = vst.msk [vmem:[%s1908_s19 + $0x2c] sm:$0xf] %vm1143_vm4, %v1366_v0  ;;  %v928_v4 = vadd.f32 %v927_v51, %v776_v1  ;;  %v779_v5 = vadd.f32 %v1441_v3, %v1900_v15  ;;  %v1556_v10 = vpop.f32.mrb[29].mxu1 }
 0x130   : > { %v938_v12 = vpop.f32.mrb[30].mxu1 }
 0x131   : > { %v1009_v7 = vmax.f32 %v928_v4, 0.0  ;;  %v931_v8 = vadd.f32 %v930_v57, %v779_v5  ;;  %v1442_v9 = vpop.f32.mrb[28].mxu0  ;;  %v1557_v18 = vpop.f32.mrb[31].mxu1 }
 0x132   : > { %v1443_v11 = vpop.f32.mrb[29].mxu0 }
 0x133   : > { %v1367_v13 = vpack.c.bf16 %v1009_v7, %v1009_v7  ;;  %v1010_v14 = vmax.f32 %v931_v8, 0.0  ;;  %v1444_v16 = vadd.f32 %v1443_v11, %v1442_v9  ;;  %v1445_v17 = vpop.f32.mrb[30].mxu0 }
 0x134   : > { %v1446_v2 = vpop.f32.mrb[31].mxu0 }
 0x135   : > { %1156 = vst.msk [vmem:[%s1908_s19 + $0x30] sm:$0xf] %vm1143_vm4, %v1367_v13  ;;  %v1368_v19 = vpack.c.bf16 %v1010_v14, %v1010_v14  ;;  %v784_v20 = vadd.f32 %v1444_v16, %v1900_v15  ;;  %v1447_v21 = vadd.f32 %v1446_v2, %v1445_v17 }
 0x136   : > { %v943_v24 = vpop.f32.mrb[32].mxu1 }
 0x137   : > { %1157 = vst.msk [vmem:[%s1908_s19 + $0x34] sm:$0xf] %vm1143_vm4, %v1368_v19  ;;  %v936_v22 = vadd.f32 %v935_v6, %v784_v20  ;;  %v787_v23 = vadd.f32 %v1447_v21, %v1900_v15  ;;  %v1560_v28 = vpop.f32.mrb[33].mxu1 }
 0x138   : > { %v946_v30 = vpop.f32.mrb[34].mxu1 }
 0x139   : > { %v1011_v25 = vmax.f32 %v936_v22, 0.0  ;;  %v939_v26 = vadd.f32 %v938_v12, %v787_v23  ;;  %v1448_v27 = vpop.f32.mrb[32].mxu0  ;;  %v1561_v35 = vpop.f32.mrb[35].mxu1 }
 0x13a   : > { %v1449_v29 = vpop.f32.mrb[33].mxu0 }
 0x13b   : > { %v1369_v31 = vpack.c.bf16 %v1011_v25, %v1011_v25  ;;  %v1012_v32 = vmax.f32 %v939_v26, 0.0  ;;  %v1450_v33 = vadd.f32 %v1449_v29, %v1448_v27  ;;  %v1451_v34 = vpop.f32.mrb[34].mxu0 }
 0x13c   : > { %v1452_v36 = vpop.f32.mrb[35].mxu0 }
 0x13d   : > { %1158 = vst.msk [vmem:[%s1908_s19 + $0x38] sm:$0xf] %vm1143_vm4, %v1369_v31  ;;  %v1370_v37 = vpack.c.bf16 %v1012_v32, %v1012_v32  ;;  %v792_v38 = vadd.f32 %v1450_v33, %v1900_v15  ;;  %v1453_v39 = vadd.f32 %v1452_v36, %v1451_v34 }
 0x13e   : > { %v951_v42 = vpop.f32.mrb[36].mxu1 }
 0x13f   : > { %1159 = vst.msk [vmem:[%s1908_s19 + $0x3c] sm:$0xf] %vm1143_vm4, %v1370_v37  ;;  %v944_v40 = vadd.f32 %v943_v24, %v792_v38  ;;  %v795_v41 = vadd.f32 %v1453_v39, %v1900_v15  ;;  %v1564_v46 = vpop.f32.mrb[37].mxu1 }
 0x140   : > { %v954_v48 = vpop.f32.mrb[38].mxu1 }
 0x141   : > { %v1013_v43 = vmax.f32 %v944_v40, 0.0  ;;  %v947_v44 = vadd.f32 %v946_v30, %v795_v41  ;;  %v1454_v45 = vpop.f32.mrb[36].mxu0  ;;  %v1565_v53 = vpop.f32.mrb[39].mxu1 }
 0x142   : > { %v1455_v47 = vpop.f32.mrb[37].mxu0 }
 0x143   : > { %v1371_v49 = vpack.c.bf16 %v1013_v43, %v1013_v43  ;;  %v1014_v50 = vmax.f32 %v947_v44, 0.0  ;;  %v1456_v51 = vadd.f32 %v1455_v47, %v1454_v45  ;;  %v1457_v52 = vpop.f32.mrb[38].mxu0 }
 0x144   : > { %v1458_v54 = vpop.f32.mrb[39].mxu0 }
 0x145   : > { %1160 = vst.msk [vmem:[%s1908_s19 + $0x40] sm:$0xf] %vm1143_vm4, %v1371_v49  ;;  %v1372_v55 = vpack.c.bf16 %v1014_v50, %v1014_v50  ;;  %v800_v56 = vadd.f32 %v1456_v51, %v1900_v15  ;;  %v1459_v57 = vadd.f32 %v1458_v54, %v1457_v52 }
 0x146   : > { %v959_v60 = vpop.f32.mrb[40].mxu1 }
 0x147   : > { %1161 = vst.msk [vmem:[%s1908_s19 + $0x44] sm:$0xf] %vm1143_vm4, %v1372_v55  ;;  %v952_v58 = vadd.f32 %v951_v42, %v800_v56  ;;  %v803_v59 = vadd.f32 %v1459_v57, %v1900_v15  ;;  %v1568_v0 = vpop.f32.mrb[41].mxu1 }
 0x148   : > { %v962_v3 = vpop.f32.mrb[42].mxu1 }
 0x149   : > { %v1015_v61 = vmax.f32 %v952_v58, 0.0  ;;  %v955_v62 = vadd.f32 %v954_v48, %v803_v59  ;;  %v1460_v63 = vpop.f32.mrb[40].mxu0  ;;  %v1569_v8 = vpop.f32.mrb[43].mxu1 }
 0x14a   : > { %v1461_v1 = vpop.f32.mrb[41].mxu0 }
 0x14b   : > { %v1373_v4 = vpack.c.bf16 %v1015_v61, %v1015_v61  ;;  %v1016_v5 = vmax.f32 %v955_v62, 0.0  ;;  %v1462_v6 = vadd.f32 %v1461_v1, %v1460_v63  ;;  %v1463_v7 = vpop.f32.mrb[42].mxu0 }
 0x14c   : > { %v1464_v9 = vpop.f32.mrb[43].mxu0 }
 0x14d   : > { %1162 = vst.msk [vmem:[%s1908_s19 + $0x48] sm:$0xf] %vm1143_vm4, %v1373_v4  ;;  %v1374_v10 = vpack.c.bf16 %v1016_v5, %v1016_v5  ;;  %v808_v11 = vadd.f32 %v1462_v6, %v1900_v15  ;;  %v1465_v12 = vadd.f32 %v1464_v9, %v1463_v7 }
 0x14e   : > { %v967_v16 = vpop.f32.mrb[44].mxu1 }
 0x14f   : > { %1163 = vst.msk [vmem:[%s1908_s19 + $0x4c] sm:$0xf] %vm1143_vm4, %v1374_v10  ;;  %v960_v13 = vadd.f32 %v959_v60, %v808_v11  ;;  %v811_v14 = vadd.f32 %v1465_v12, %v1900_v15  ;;  %v1572_v19 = vpop.f32.mrb[45].mxu1 }
 0x150   : > { %v970_v21 = vpop.f32.mrb[46].mxu1 }
 0x151   : > { %v1017_v17 = vmax.f32 %v960_v13, 0.0  ;;  %v963_v18 = vadd.f32 %v962_v3, %v811_v14  ;;  %v1466_v2 = vpop.f32.mrb[44].mxu0  ;;  %v1573_v26 = vpop.f32.mrb[47].mxu1 }
 0x152   : > { %v1467_v20 = vpop.f32.mrb[45].mxu0 }
 0x153   : > { %v1375_v22 = vpack.c.bf16 %v1017_v17, %v1017_v17  ;;  %v1018_v23 = vmax.f32 %v963_v18, 0.0  ;;  %v1468_v24 = vadd.f32 %v1467_v20, %v1466_v2  ;;  %v1469_v25 = vpop.f32.mrb[46].mxu0 }
 0x154   : > { %v1470_v27 = vpop.f32.mrb[47].mxu0 }
 0x155   : > { %1164 = vst.msk [vmem:[%s1908_s19 + $0x50] sm:$0xf] %vm1143_vm4, %v1375_v22  ;;  %v1376_v28 = vpack.c.bf16 %v1018_v23, %v1018_v23  ;;  %v816_v29 = vadd.f32 %v1468_v24, %v1900_v15  ;;  %v1471_v30 = vadd.f32 %v1470_v27, %v1469_v25  ;;  %v1175_v23 = vld [vmem:[%s1908_s19 + $0x70] sm:$0x1] }
 0x156   : > { %v975_v33 = vpop.f32.mrb[48].mxu1 }
 0x157   : > { %1165 = vst.msk [vmem:[%s1908_s19 + $0x54] sm:$0xf] %vm1143_vm4, %v1376_v28  ;;  %v968_v31 = vadd.f32 %v967_v16, %v816_v29  ;;  %v819_v32 = vadd.f32 %v1471_v30, %v1900_v15  ;;  %v1576_v37 = vpop.f32.mrb[49].mxu1 }
 0x158   : > { %v978_v39 = vpop.f32.mrb[50].mxu1 }
 0x159   : > { %v1019_v34 = vmax.f32 %v968_v31, 0.0  ;;  %v971_v35 = vadd.f32 %v970_v21, %v819_v32  ;;  %v1472_v36 = vpop.f32.mrb[48].mxu0  ;;  %v1577_v44 = vpop.f32.mrb[51].mxu1 }
 0x15a   : > { %v1473_v38 = vpop.f32.mrb[49].mxu0 }
 0x15b   : > { %v1377_v40 = vpack.c.bf16 %v1019_v34, %v1019_v34  ;;  %v1020_v41 = vmax.f32 %v971_v35, 0.0  ;;  %v1474_v42 = vadd.f32 %v1473_v38, %v1472_v36  ;;  %v1475_v43 = vpop.f32.mrb[50].mxu0 }
 0x15c   : > { %v1476_v45 = vpop.f32.mrb[51].mxu0 }
 0x15d   : > { %1166 = vst.msk [vmem:[%s1908_s19 + $0x58] sm:$0xf] %vm1143_vm4, %v1377_v40  ;;  %v1378_v46 = vpack.c.bf16 %v1020_v41, %v1020_v41  ;;  %v824_v47 = vadd.f32 %v1474_v42, %v1900_v15  ;;  %v1477_v48 = vadd.f32 %v1476_v45, %v1475_v43 }
 0x15e   : > { %v983_v51 = vpop.f32.mrb[52].mxu1 }
 0x15f   : > { %1167 = vst.msk [vmem:[%s1908_s19 + $0x5c] sm:$0xf] %vm1143_vm4, %v1378_v46  ;;  %v976_v49 = vadd.f32 %v975_v33, %v824_v47  ;;  %v827_v50 = vadd.f32 %v1477_v48, %v1900_v15  ;;  %v1580_v55 = vpop.f32.mrb[53].mxu1 }
 0x160   : > { %v986_v57 = vpop.f32.mrb[54].mxu1 }
 0x161   : > { %v1021_v52 = vmax.f32 %v976_v49, 0.0  ;;  %v979_v53 = vadd.f32 %v978_v39, %v827_v50  ;;  %v1478_v54 = vpop.f32.mrb[52].mxu0  ;;  %v1581_v62 = vpop.f32.mrb[55].mxu1 }
 0x162   : > { %v1479_v56 = vpop.f32.mrb[53].mxu0 }
 0x163   : > { %v1379_v58 = vpack.c.bf16 %v1021_v52, %v1021_v52  ;;  %v1022_v59 = vmax.f32 %v979_v53, 0.0  ;;  %v1480_v60 = vadd.f32 %v1479_v56, %v1478_v54  ;;  %v1481_v61 = vpop.f32.mrb[54].mxu0 }
 0x164   : > { %v1482_v63 = vpop.f32.mrb[55].mxu0 }
 0x165   : > { %1168 = vst.msk [vmem:[%s1908_s19 + $0x60] sm:$0xf] %vm1143_vm4, %v1379_v58  ;;  %v1380_v0 = vpack.c.bf16 %v1022_v59, %v1022_v59  ;;  %v832_v1 = vadd.f32 %v1480_v60, %v1900_v15  ;;  %v1483_v3 = vadd.f32 %v1482_v63, %v1481_v61 }
 0x166   : > { %v991_v6 = vpop.f32.mrb[56].mxu1 }
 0x167   : > { %1169 = vst.msk [vmem:[%s1908_s19 + $0x64] sm:$0xf] %vm1143_vm4, %v1380_v0  ;;  %v984_v4 = vadd.f32 %v983_v51, %v832_v1  ;;  %v835_v5 = vadd.f32 %v1483_v3, %v1900_v15  ;;  %v1584_v10 = vpop.f32.mrb[57].mxu1 }
 0x168   : > { %v994_v12 = vpop.f32.mrb[58].mxu1 }
 0x169   : > { %v1023_v7 = vmax.f32 %v984_v4, 0.0  ;;  %v987_v8 = vadd.f32 %v986_v57, %v835_v5  ;;  %v1484_v9 = vpop.f32.mrb[56].mxu0  ;;  %v1585_v18 = vpop.f32.mrb[59].mxu1 }
 0x16a   : > { %v1485_v11 = vpop.f32.mrb[57].mxu0 }
 0x16b   : > { %v1381_v13 = vpack.c.bf16 %v1023_v7, %v1023_v7  ;;  %v1024_v14 = vmax.f32 %v987_v8, 0.0  ;;  %v1486_v16 = vadd.f32 %v1485_v11, %v1484_v9  ;;  %v1487_v17 = vpop.f32.mrb[58].mxu0 }
 0x16c   : > { %v1488_v2 = vpop.f32.mrb[59].mxu0 }
 0x16d   : > { %1170 = vst.msk [vmem:[%s1908_s19 + $0x68] sm:$0xf] %vm1143_vm4, %v1381_v13  ;;  %v1382_v19 = vpack.c.bf16 %v1024_v14, %v1024_v14  ;;  %v840_v20 = vadd.f32 %v1486_v16, %v1900_v15 }
 0x16f   : > { %1171 = vst.msk [vmem:[%s1908_s19 + $0x6c] sm:$0xf] %vm1143_vm4, %v1382_v19  ;;  %v992_v21 = vadd.f32 %v991_v6, %v840_v20 }
 0x171   : > { %v1025_v22 = vmax.f32 %v992_v21, 0.0 }
 0x173   : > { %v1383_v24 = vpack.c.bf16 %v1025_v22, %v1025_v22 }
 0x175   : > { %v1176_v25 = vsel %vm1174_vm7, %v1383_v24, %v1175_v23 }
 0x176   : > { %1177 = vst [vmem:[%s1908_s19 + $0x70] sm:$0x1] %v1176_v25 }
 0x177 PF: > { %s13_s12 = sadd.s32 1, %s1687_s12  }
 0x178   : > { %p10_p4 = scmp.ge.s32.totalorder %s13_s12, 6  }
 0x17a   :  { %12 = sbr.rel (!%p10_p4) target bundleno = 1 (0x1), region = 62 }

// kernel: mrnet_forward.7
= control target key start
LH: loop header
LB: loop body
LE: loop exit
PB: predicated region body
PF: predicated region fallthrough
CT: control target
= control target key end

     0   :  { %s7034_s12 = smov 0   ;;  %s8681_s0 = inlined_call_operand.vmem [shape: bf16[4,132,64], index: 0, kind: input, shape index: {}]   ;;  %s8682_s1 = inlined_call_operand.vmem [shape: bf16[25,64,192], index: 1, kind: input, shape index: {}]   ;;  %s8683_s2 = inlined_call_operand.vmem [shape: f32[1,192], index: 2, kind: input, shape index: {}]   ;;  %s8684_s3 = inlined_call_operand.vmem [shape: bf16[4,7,7,192], index: 3, kind: output, shape index: {}]  }
   0x1 LB: > { %s5501_s13 = sadd.s32 4294967295, %s7011_s12   ;;  %p5505_p0 = scmp.ge.s32.totalorder %s7011_s12, 1  ;;  %s7011_s12 = sphi %s7034_s12, %s13_s12  }
   0x2   : > { %p137_p1 = scmp.lt.s32.totalorder %s7011_s12, 5 }
   0x4   : > { %p138_p2 = pnand %p5505_p0, %p137_p1 }
   0x5   : > { %v6627_v0 = vld [vmem:[%s8682_s1 + $0x44] ss:$8 sps:$4 sm:$0xff] (!%p138_p2)   ;;  %p161_p3 = scmp.lt.s32.totalorder (!%p138_p2), %s5501_s13, 3  ;;  %v7013_v2 = vmov (!%p138_p2), 0   ;;  %v6631_v3 = vld [vmem:[%s8682_s1 + $0x40] ss:$8 sps:$4 sm:$0xff] (!%p138_p2)  }
   0x6   : > { %141 = sbr.rel (%p138_p2) target bundleno = 751 (0x2ef), region = 32  ;;  %v6629_v1 = vld [vmem:[%s8682_s1 + $0x304] ss:$8 sps:$4 sm:$0xff] (!%p138_p2)   ;;  %352 = vmatprep.mubr.bf16.mxu1 (!%p138_p2), %v7013_v2  ;;  %2725 = vmatprep.mubr.bf16.mxu0 (!%p138_p2), %v7013_v2  ;;  %v6632_v4 = vld [vmem:[%s8682_s1 + $0x300] ss:$8 sps:$4 sm:$0xff] (!%p138_p2)   ;;  %vm304_vm0 = vcmask (!%p138_p2), 523264  }
   0x7   : > { %320 = vmatprep.subr.bf16.mxu1 (!%p138_p2), %v6627_v0  ;;  %2693 = vmatprep.subr.bf16.mxu0 (!%p138_p2), %v6629_v1  ;;  %v6633_v5 = vld [vmem:[%s8682_s1 + $0x54] ss:$8 sps:$4 sm:$0xff] (!%p138_p2)   ;;  %v6637_v7 = vld [vmem:[%s8682_s1 + $0x50] ss:$8 sps:$4 sm:$0xff] (!%p138_p2)   ;;  %v6639_v9 = vld [vmem:[%s8682_s1 + $0x64] ss:$8 sps:$4 sm:$0xff] (!%p138_p2)  }
   0x8   : > { %321 = vmatpush1.bf16.msra.mxu1 (!%p138_p2), %v6631_v3  ;;  %2694 = vmatpush1.bf16.msra.mxu0 (!%p138_p2), %v6632_v4  ;;  %v6635_v6 = vld [vmem:[%s8682_s1 + $0x314] ss:$8 sps:$4 sm:$0xff] (!%p138_p2)   ;;  %v6638_v8 = vld [vmem:[%s8682_s1 + $0x310] ss:$8 sps:$4 sm:$0xff] (!%p138_p2)   ;;  %v6641_v10 = vld [vmem:[%s8682_s1 + $0x324] ss:$8 sps:$4 sm:$0xff] (!%p138_p2)  }
   0x9   : > { %322 = vmatprep.subr.bf16.mxu1 (!%p138_p2), %v6633_v5  ;;  %2695 = vmatprep.subr.bf16.mxu0 (!%p138_p2), %v6635_v6  ;;  %v6643_v11 = vld [vmem:[%s8682_s1 + $0x60] ss:$8 sps:$4 sm:$0xff] (!%p138_p2)   ;;  %v6645_v13 = vld [vmem:[%s8682_s1 + $0x74] ss:$8 sps:$4 sm:$0xff] (!%p138_p2)   ;;  %v6649_v15 = vld [vmem:[%s8682_s1 + $0x70] ss:$8 sps:$4 sm:$0xff] (!%p138_p2)  }
   0xa   : > { %v6644_v12 = vld [vmem:[%s8682_s1 + $0x320] ss:$8 sps:$4 sm:$0xff] (!%p138_p2)   ;;  %v6647_v14 = vld [vmem:[%s8682_s1 + $0x334] ss:$8 sps:$4 sm:$0xff] (!%p138_p2)   ;;  %v6650_v18 = vld [vmem:[%s8682_s1 + $0x330] ss:$8 sps:$4 sm:$0xff] (!%p138_p2)  }
   0xb   : > { %v6656_v21 = vld [vmem:[%s8682_s1 + $0x4] ss:$8 sps:$4 sm:$0xff] (!%p138_p2)   ;;  %v6660_v29 = vld [vmem:[%s8682_s1 + $0x340] ss:$8 sps:$4 sm:$0xff] (!%p138_p2)   ;;  %vm224_vm1 = vsmask.f32 (!%p138_p2), 7424 }
   0xc   : > { %323 = vmatpush1.bf16.msra.mxu1 (!%p138_p2), %v6637_v7  ;;  %2696 = vmatpush1.bf16.msra.mxu0 (!%p138_p2), %v6638_v8  ;;  %v6662_v31 = vld [vmem:[%s8682_s1 + $0x344] ss:$8 sps:$4 sm:$0xff] (!%p138_p2)   ;;  %v6654_v34 = vld [vmem:[%s8682_s1] ss:$8 sps:$4 sm:$0xff] (!%p138_p2)   ;;  %v6665_v35 = vld [vmem:[%s8682_s1 + $0x354] ss:$8 sps:$4 sm:$0xff] (!%p138_p2)  }
   0xd   : > { %s8690_s13 = smov (!%p161_p3, %s5501_s13), 3  ;;  %324 = vmatprep.subr.bf16.mxu1 %v6639_v9  ;;  %2697 = vmatprep.subr.bf16.mxu0 %v6641_v10  ;;  %v6663_v37 = vld [vmem:[%s8682_s1 + $0x350] ss:$8 sps:$4 sm:$0xff]   ;;  %v6671_v54 = vld [vmem:[%s8682_s1 + $0x360] ss:$8 sps:$4 sm:$0xff]   ;;  %vm553_vm2 = vcmask 1046528  }
   0xe   : > { %s6616_s28 = smul.u32 68, %s8690_s13  ;;  %v6673_v55 = vld [vmem:[%s8682_s1 + $0x364] ss:$8 sps:$4 sm:$0xff]   ;;  %v6674_v58 = vld [vmem:[%s8682_s1 + $0x10] ss:$8 sps:$4 sm:$0xff]   ;;  %vm966_vm4 = vcmask 1045504  }
   0xf   : > { %v6676_v59 = vld [vmem:[%s8682_s1 + $0x14] ss:$8 sps:$4 sm:$0xff]   ;;  %v6677_v63 = vld [vmem:[%s8682_s1 + $0x370] ss:$8 sps:$4 sm:$0xff]   ;;  %v6681_v7 = vld [vmem:[%s8682_s1 + $0x20] ss:$8 sps:$4 sm:$0xff]  }
  0x10   : > { %s7086_s16 = scalar_lea.vmem %s8681_s0, %s6616_s28  ;;  %325 = vmatpush1.bf16.msra.mxu1 %v6643_v11  ;;  %2698 = vmatpush1.bf16.msra.mxu0 %v6644_v12  ;;  %v6679_v0 = vld [vmem:[%s8682_s1 + $0x374] ss:$8 sps:$4 sm:$0xff]   ;;  %v6683_v8 = vld [vmem:[%s8682_s1 + $0x24] ss:$8 sps:$4 sm:$0xff]   ;;  %vm730_vm3 = vsmask.f32 6400 }
  0x11   : > { %v172_v16 = vld [vmem:[%s7086_s16] sm:$0xf]  ;;  %v7099_v17 = vld [vmem:[%s7086_s16 + $0x4] sm:$0xf]  ;;  %v7108_v20 = vld [vmem:[%s7086_s16 + $0x8] sm:$0xff]   ;;  %326 = vmatprep.subr.bf16.mxu1 %v6645_v13  ;;  %2699 = vmatprep.subr.bf16.mxu0 %v6647_v14  ;;  %vm1813_vm6 = vcmask 1044480  }
  0x12   : > { %v7105_v19 = vcombine.low %v172_v16, %v7099_v17  ;;  %v233_v24 = vshll.u32 %v7108_v20, 16  ;;  %v2185_v25 = vld [vmem:[%s7086_s16 + $0xc] sm:$0xf]  ;;  %v7118_v26 = vld [vmem:[%s7086_s16 + $0x10] sm:$0xf]  ;;  %v237_v36 = vshrl.u32 %v7108_v20, 16 }
  0x13   : > { %v5792_v30 = vcombine.low %v2185_v25, %v7118_v26  ;;  %v7139_v38 = vld [vmem:[%s7086_s16 + $0x10] sm:$0xff]   ;;  %v2188_v44 = vld [vmem:[%s7086_s16 + $0x18] sm:$0xf]  ;;  %v536_v45 = vld [vmem:[%s7086_s16] sm:$0xe]  ;;  %s6617_s26 = smul.u32 56, %s8690_s13 }
  0x14   : > { %v226_v22 = vshrl.u32 %v7105_v19, 16  ;;  %v228_v23 = vshll.u32 %v7105_v19, 16  ;;  %327 = vmatpush1.bf16.msra.mxu1 %v6649_v15  ;;  %2700 = vmatpush1.bf16.msra.mxu0 %v6650_v18  ;;  %v235_v28 = vrot.slane %v233_v24, 1  ;;  %v740_v33 = vrot.slane %v233_v24, 2  ;;  %v2187_v43 = vld [vmem:[%s7086_s16 + $0x14] sm:$0xf] }
  0x15   : > { %453 = vmatprep.subr.bf16.mxu1 %v6656_v21  ;;  %2894 = vmatprep.subr.bf16.mxu0 %v6662_v31  ;;  %v2807_v40 = vshll.u32 %v5792_v30, 16  ;;  %v739_v41 = vrot.slane %v237_v36, 1  ;;  %v241_v42 = vshll.u32 %v7139_v38, 16  ;;  %v2189_v47 = vld [vmem:[%s7086_s16 + $0x1c] sm:$0xf]  ;;  %v7151_v48 = vcombine.low %v7118_v26, %v2187_v43  ;;  %s8617_s29 = scalar_lea.vmem %s8684_s3, %s6617_s26 }
  0x16   : > { %v230_v27 = vrot.slane %v228_v23, 1  ;;  %v239_v46 = vor.u32 %v237_v36, %v235_v28  ;;  %v2190_v51 = vld [vmem:[%s7086_s16 + $0x20] sm:$0xf]  ;;  %v7158_v52 = vcombine.low %v2188_v44, %v2189_v47  ;;  %v7160_v53 = vcombine.low %v2187_v43, %v2188_v44  ;;  %v7189_v3 = vld [vmem:[%s7086_s16 + $0x18] sm:$0xff]   ;;  %v181_v11 = vld [vmem:[%s7086_s16 + $0x24] sm:$0x7] }
  0x17   : > { %5805 = vmatmul.mubr.msk.bf16.vlgmr.msra.gmra.mrb[0].mxu0 %vm304_vm0, %v5792_v30  ;;  %v7153_v49 = vor.u32 %v740_v33, %v739_v41  ;;  %v243_v50 = vrot.slane %v241_v42, 1  ;;  %v2805_v56 = vshrl.u32 %v5792_v30, 16  ;;  %v2809_v57 = vrot.slane %v2807_v40, 1  ;;  %v7202_v10 = vld [vmem:[%s7086_s16 + $0x20] sm:$0xf] }
  0x18   : > { %v231_v32 = vor.u32 %v230_v27, %v226_v22  ;;  %2895 = vmatpush1.bf16.msra.mxu0 %v6660_v29  ;;  %2735 = vmatprep.mubr.bf16.mxu0 %v7013_v2  ;;  %v245_v60 = vshrl.u32 %v7139_v38, 16  ;;  %v2811_v61 = vshll.u32 %v7160_v53, 16  ;;  %v7184_v1 = vcombine.low %v536_v45, %v7099_v17  ;;  %v6687_v15 = vld [vmem:[%s8682_s1 + $0x384] ss:$8 sps:$4 sm:$0xff]   ;;  %v6685_v22 = vld [vmem:[%s8682_s1 + $0x380] ss:$8 sps:$4 sm:$0xff]  }
  0x19   : > { %2896 = vmatprep.subr.bf16.mxu0 %v6665_v35  ;;  %v244_v62 = vsel %vm224_vm1, %v239_v46, %v243_v50  ;;  %v7191_v4 = vcombine.low %v2189_v47, %v2190_v51  ;;  %v2810_v5 = vor.u32 %v2809_v57, %v2805_v56  ;;  %v249_v9 = vshll.u32 %v7189_v3, 16  ;;  %v6690_v23 = vld [vmem:[%s8682_s1 + $0x34] ss:$8 sps:$4 sm:$0xff]   ;;  %v2191_v25 = vld [vmem:[%s7086_s16 + $0x24] sm:$0xf] }
  0x1a   : > { %v236_v39 = vsel %vm224_vm1, %v231_v32, %v235_v28  ;;  %v2813_v6 = vrot.slane %v2811_v61, 1  ;;  %v247_v12 = vor.u32 %v245_v60, %v243_v50  ;;  %v7210_v13 = vcombine.low %v7202_v10, %v181_v11  ;;  %v2192_v27 = vld [vmem:[%s7086_s16 + $0x28] sm:$0xf]  ;;  %v6688_v30 = vld [vmem:[%s8682_s1 + $0x30] ss:$8 sps:$4 sm:$0xff]  }
  0x1b   : > { %5529 = vmatmul.mubr.msk.bf16.vlgmr.msra.gmra.mrb[0].mxu1 %vm304_vm0, %v236_v39  ;;  %v251_v14 = vrot.slane %v249_v9, 1  ;;  %v554_v16 = vrot.slane %v7184_v1, 1  ;;  %v2815_v18 = vshrl.u32 %v7160_v53, 16  ;;  %v2818_v21 = vshll.u32 %v7191_v4, 16  ;;  %v6694_v32 = vld [vmem:[%s8682_s1 + $0x394] ss:$8 sps:$4 sm:$0xff]  }
  0x1c   : > { %454 = vmatpush1.bf16.msra.mxu1 %v6654_v34  ;;  %362 = vmatprep.mubr.bf16.mxu1 %v7013_v2  ;;  %v2814_v17 = vsel %vm224_vm1, %v2810_v5, %v2813_v6  ;;  %v253_v24 = vshrl.u32 %v7189_v3, 16  ;;  %v257_v29 = vshll.u32 %v7210_v13, 16  ;;  %v7235_v31 = vcombine.low %v2191_v25, %v2192_v27  ;;  %v6697_v39 = vld [vmem:[%s8682_s1 + $0x84] ss:$8 sps:$4 sm:$0xff]   ;;  %v2621_v51 = vld [vmem:[%s7086_s16 + $0x30] sm:$0x7] }
  0x1d   : > { %2897 = vmatpush1.bf16.msra.mxu0 %v6663_v37  ;;  %455 = vmatprep.subr.bf16.mxu1 %v6676_v59  ;;  %v252_v28 = vsel %vm224_vm1, %v247_v12, %v251_v14  ;;  %v555_v33 = vrot.slane %v7108_v20, 1  ;;  %v557_v34 = vrot.slane %v7139_v38, 1  ;;  %v2817_v35 = vor.u32 %v2815_v18, %v2813_v6  ;;  %v6692_v37 = vld [vmem:[%s8682_s1 + $0x390] ss:$8 sps:$4 sm:$0xff]   ;;  %v6701_v47 = vld [vmem:[%s8682_s1 + $0x3a4] ss:$8 sps:$4 sm:$0xff]  }
  0x1e   : > { %2898 = vmatprep.subr.bf16.mxu0 %v6673_v55  ;;  %v2820_v36 = vrot.slane %v2818_v21, 1  ;;  %v559_v43 = vrot.slane %v7189_v3, 1  ;;  %v255_v44 = vor.u32 %v253_v24, %v251_v14  ;;  %v259_v45 = vrot.slane %v257_v29, 1  ;;  %v7264_v50 = vld [vmem:[%s7086_s16 + $0x2c] sm:$0xf] }
  0x1f   : > { %5806 = vmatmul.mubr.msk.bf16.gmra.mrb[4].mxu0 %vm304_vm0, %v7160_v53  ;;  %v7252_v40 = vsel %vm553_vm2, %v554_v16, %v555_v33  ;;  %v7255_v41 = vsel %vm553_vm2, %v555_v33, %v557_v34  ;;  %v2825_v46 = vshll.u32 %v7235_v31, 16  ;;  %v732_v55 = vshrl.u32 %v7184_v1, 16  ;;  %v6707_v59 = vld [vmem:[%s8682_s1 + $0x3b4] ss:$8 sps:$4 sm:$0xff]   ;;  %v6713_v14 = vld [vmem:[%s8682_s1 + $0x3c4] ss:$8 sps:$4 sm:$0xff]  }
  0x20   : > { %456 = vmatpush1.bf16.msra.mxu1 %v6674_v58  ;;  %2926 = vmatprep.mubr.bf16.mxu0 %v7013_v2  ;;  %v2821_v56 = vsel %vm224_vm1, %v2817_v35, %v2820_v36  ;;  %v2822_v57 = vshrl.u32 %v7191_v4, 16  ;;  %v6699_v58 = vld [vmem:[%s8682_s1 + $0x3a0] ss:$8 sps:$4 sm:$0xff]   ;;  %v743_v11 = vrot.slane %v245_v60, 1  ;;  %v744_v12 = vrot.slane %v241_v42, 2 }
  0x21   : > { %2899 = vmatpush1.bf16.msra.mxu0 %v6671_v54  ;;  %457 = vmatprep.subr.bf16.mxu1 %v6683_v8  ;;  %v7270_v54 = vsel %vm553_vm2, %v557_v34, %v559_v43  ;;  %v734_v61 = vrot.slane %v732_v55, 1  ;;  %v2827_v5 = vrot.slane %v2825_v46, 1  ;;  %v7287_v8 = vcombine.low %v7264_v50, %v2621_v51  ;;  %v6704_v34 = vld [vmem:[%s8682_s1 + $0x94] ss:$8 sps:$4 sm:$0xff]   ;;  %v6708_v46 = vld [vmem:[%s8682_s1 + $0xa0] ss:$8 sps:$4 sm:$0xff]  }
  0x22   : > { %2900 = vmatprep.subr.bf16.mxu0 %v6679_v0  ;;  %v261_v0 = vshrl.u32 %v7210_v13, 16  ;;  %v747_v16 = vrot.slane %v253_v24, 1  ;;  %v745_v18 = vor.u32 %v744_v12, %v743_v11  ;;  %v6716_v51 = vld [vmem:[%s8682_s1 + $0xb4] ss:$8 sps:$4 sm:$0xff]   ;;  %v6717_v11 = vld [vmem:[%s8682_s1 + $0x3d0] ss:$8 sps:$4 sm:$0xff]  }
  0x23   : > { %5530 = vmatmul.mubr.msk.bf16.gmra.mrb[4].mxu1 %vm304_vm0, %v244_v62  ;;  %v735_v62 = vshll.u32 %v7184_v1, 16  ;;  %v6705_v1 = vld [vmem:[%s8682_s1 + $0x3b0] ss:$8 sps:$4 sm:$0xff]   ;;  %v2836_v33 = vshrl.u32 %v7287_v8, 16  ;;  %vm1584_vm5 = vsmask.f32 5376 }
  0x24   : > { %372 = vmatprep.mubr.bf16.mxu1 %v7013_v2  ;;  %458 = vmatpush1.bf16.msra.mxu1 %v6681_v7  ;;  %v2824_v7 = vor.u32 %v2822_v57, %v2820_v36  ;;  %v7312_v24 = vsel %vm730_vm3, %v7153_v49, %v745_v18  ;;  %v2997_v36 = vld [vmem:[%s7086_s16 + $0xc] sm:$0xe]  ;;  %v6714_v57 = vld [vmem:[%s8682_s1 + $0xb0] ss:$8 sps:$4 sm:$0xff]   ;;  %vm1992_vm7 = vsmask.f32 4352 }
  0x25   : > { %2901 = vmatpush1.bf16.msra.mxu0 %v6677_v63  ;;  %459 = vmatprep.subr.bf16.mxu1 %v6690_v23  ;;  %v260_v63 = vsel %vm224_vm1, %v255_v44, %v259_v45  ;;  %v737_v6 = vrot.slane %v735_v62, 2  ;;  %v2832_v23 = vshll.u32 %v7287_v8, 16  ;;  %v5839_v44 = vcombine.low %v2997_v36, %v7118_v26  ;;  %v6742_v36 = vld [vmem:[%s8682_s1 + $0x404] ss:$8 sps:$4 sm:$0xff]  }
  0x26   : > { %3078 = vmatprep.subr.bf16.mxu0 %v6687_v15  ;;  %v2828_v21 = vsel %vm224_vm1, %v2824_v7, %v2827_v5  ;;  %v3015_v26 = vrot.slane %v7160_v53, 1  ;;  %v6722_v53 = vld [vmem:[%s8682_s1 + $0xc4] ss:$8 sps:$4 sm:$0xff]   ;;  %vm5305_vm8 = vcmask 1043456   ;;  %vm5306_vm9 = vsmask.f32 3328 }
  0x27   : > { %v738_v15 = vor.u32 %v737_v6, %v734_v61  ;;  %v3014_v55 = vrot.slane %v5839_v44, 1  ;;  %v7396_v7 = vld [vmem:[%s7086_s16 + $0x20] sm:$0xff]   ;;  %vm5308_vm10 = vcmask 523268   ;;  %vm5307_vm11 = vmand %vm5305_vm8, %vm5306_vm9  ;;  %vm5322_vm14 = vsmask.f32 2304 }
  0x28   : > { %5826 = vmatmul.mubr.msk.bf16.vlgmr.msra.gmra.mrb[0].mxu0 %vm304_vm0, %v2814_v17  ;;  %460 = vmatpush1.bf16.msra.mxu1 %v6688_v30  ;;  %v748_v17 = vrot.slane %v249_v9, 2  ;;  %v263_v9 = vor.u32 %v261_v0, %v259_v45  ;;  %v6719_v0 = vld [vmem:[%s8682_s1 + $0x3d4] ss:$8 sps:$4 sm:$0xff]   ;;  %vm5309_vm12 = vmand %vm5308_vm10, %vm224_vm1  ;;  %vm5351_vm15 = vcmask 1040384   ;;  %vm5406_vm8 = vsmask.f32 4368 }
  0x29   : > { %2936 = vmatprep.mubr.bf16.mxu0 %v7013_v2  ;;  %3079 = vmatpush1.bf16.msra.mxu0 %v6685_v22  ;;  %v7305_v60 = vsel %vm730_vm3, %v738_v15, %v7153_v49  ;;  %v2829_v22 = vshrl.u32 %v7235_v31, 16  ;;  %v537_v49 = vld [vmem:[%s7086_s16 + $0x24] sm:$0xf]  ;;  %v3016_v61 = vsel %vm553_vm2, %v3014_v55, %v3015_v26  ;;  %v7411_v15 = vld [vmem:[%s7086_s16 + $0x28] sm:$0xff]   ;;  %v6729_v55 = vld [vmem:[%s8682_s1 + $0xd4] ss:$8 sps:$4 sm:$0xff]  }
  0x2a   : > { %3080 = vmatprep.subr.bf16.mxu0 %v6694_v32  ;;  %618 = vmatprep.subr.bf16.mxu1 %v6697_v39  ;;  %v749_v42 = vor.u32 %v748_v17, %v747_v16  ;;  %v7324_v30 = vcombine.low %v7202_v10, %v537_v49  ;;  %v6695_v32 = vld [vmem:[%s8682_s1 + $0x80] ss:$8 sps:$4 sm:$0xff]   ;;  %v3245_v16 = vshrl.u32 %v7396_v7, 16  ;;  %vm8623_vm13 = vmor %vm5309_vm12, %vm5307_vm11  ;;  %vm5434_vm9 = vcmask 1042432  }
  0x2b   : > { %5531 = vmatmul.mubr.msk.bf16.gmra.mrb[8].mxu1 %vm304_vm0, %v252_v28  ;;  %v2831_v27 = vor.u32 %v2829_v22, %v2827_v5  ;;  %v2834_v28 = vrot.slane %v2832_v23, 1  ;;  %v6724_v22 = vld [vmem:[%s8682_s1 + $0x3e0] ss:$8 sps:$4 sm:$0xff]   ;;  %v6732_v23 = vld [vmem:[%s8682_s1 + $0x3f4] ss:$8 sps:$4 sm:$0xff]   ;;  %vm5435_vm11 = vcmask 1046532  }
  0x2c   : > { %382 = vmatprep.mubr.bf16.mxu1 %v7013_v2  ;;  %v7315_v25 = vsel %vm730_vm3, %v745_v18, %v749_v42  ;;  %v561_v35 = vrot.slane %v7324_v30, 1  ;;  %v752_v45 = vshrl.u32 %v7324_v30, 16  ;;  %v3241_v18 = vshll.u32 %v7396_v7, 16  ;;  %vm5436_vm12 = vmor %vm5434_vm9, %vm5435_vm11 }
  0x2d   : > { %3081 = vmatpush1.bf16.msra.mxu0 %v6692_v37  ;;  %v2835_v29 = vsel %vm224_vm1, %v2831_v27, %v2834_v28  ;;  %v6702_v37 = vld [vmem:[%s8682_s1 + $0x90] ss:$8 sps:$4 sm:$0xff]   ;;  %v2838_v39 = vor.u32 %v2836_v33, %v2834_v28 }
  0x2e   : > { %3082 = vmatprep.subr.bf16.mxu0 %v6701_v47  ;;  %v7344_v10 = vsel %vm553_vm2, %v559_v43, %v561_v35  ;;  %v755_v43 = vshll.u32 %v7324_v30, 16  ;;  %v754_v47 = vrot.slane %v752_v45, 1  ;;  %v3628_v27 = vrot.slane %v3241_v18, 2  ;;  %v6730_v33 = vld [vmem:[%s8682_s1 + $0x3f0] ss:$8 sps:$4 sm:$0xff]  }
  0x2f   : > { %v3422_v30 = vld [vmem:[%s7086_s16 + $0x10] sm:$0xe] }
  0x30   : > { %5827 = vmatmul.mubr.msk.bf16.gmra.mrb[4].mxu0 %vm304_vm0, %v2821_v56  ;;  %v757_v56 = vrot.slane %v755_v43, 2  ;;  %v3181_v43 = vld [vmem:[%s7086_s16 + $0x10] sm:$0xf] }
  0x31   : > { %2946 = vmatprep.mubr.bf16.mxu0 %v7013_v2  ;;  %3083 = vmatpush1.bf16.msra.mxu0 %v6699_v58  ;;  %v7372_v58 = vld [vmem:[%s7086_s16 + $0x18] sm:$0xff]  }
  0x32   : > { %3084 = vmatprep.subr.bf16.mxu0 %v6707_v59  ;;  %v7374_v59 = vor.u32 %v757_v56, %v754_v47  ;;  %v3237_v62 = vshrl.u32 %v7372_v58, 16  ;;  %v3233_v5 = vshll.u32 %v7372_v58, 16  ;;  %v6720_v47 = vld [vmem:[%s8682_s1 + $0xc0] ss:$8 sps:$4 sm:$0xff]   ;;  %v6737_v56 = vld [vmem:[%s8682_s1 + $0xe4] ss:$8 sps:$4 sm:$0xff]  }
  0x33   : > { %5532 = vmatmul.mubr.msk.bf16.gmra.mrb[12].mxu1 %vm304_vm0, %v260_v63 }
  0x34   : > { %392 = vmatprep.mubr.bf16.mxu1 %v7013_v2  ;;  %v7386_v63 = vsel %vm730_vm3, %v749_v42, %v7374_v59  ;;  %v3623_v6 = vrot.slane %v3237_v62, 1  ;;  %v3624_v12 = vrot.slane %v3233_v5, 2  ;;  %v3253_v42 = vshrl.u32 %v7411_v15, 16 }
  0x35   : > { %3085 = vmatpush1.bf16.msra.mxu0 %v6705_v1  ;;  %v3017_v1 = vrot.slane %v7191_v4, 1 }
  0x36   : > { %3319 = vmatprep.subr.bf16.mxu0 %v6713_v14  ;;  %v6726_v14 = vld [vmem:[%s8682_s1 + $0x3e4] ss:$8 sps:$4 sm:$0xff]   ;;  %v7415_v17 = vor.u32 %v3624_v12, %v3623_v6  ;;  %v3631_v28 = vrot.slane %v3253_v42, 1  ;;  %v6743_v6 = vld [vmem:[%s8682_s1 + $0xf0] ss:$8 sps:$4 sm:$0xff]  }
  0x37   : > { %v6747_v12 = vld [vmem:[%s8682_s1 + $0x410] ss:$8 sps:$4 sm:$0xff]  }
  0x38   : > { %5828 = vmatmul.mubr.msk.bf16.gmra.mrb[8].mxu0 %vm304_vm0, %v2828_v21  ;;  %v3018_v21 = vsel %vm553_vm2, %v3015_v26, %v3017_v1  ;;  %v6727_v26 = vld [vmem:[%s8682_s1 + $0xd0] ss:$8 sps:$4 sm:$0xff]  }
  0x39   : > { %2956 = vmatprep.mubr.bf16.mxu0 %v7013_v2 }
  0x3b   : > { %5533 = vmatmul.mubr.msk.bf16.gmra.mrb[16].mxu1 %vm304_vm0, %v263_v9  ;;  %v3249_v9 = vshll.u32 %v7411_v15, 16 }
  0x3c   : > { %485 = vmatprep.mubr.bf16.mxu1 %v7013_v2 }
  0x3d   : > { %v3632_v49 = vrot.slane %v3249_v9, 2 }
  0x40   : > { %5829 = vmatmul.mubr.msk.bf16.gmra.mrb[12].mxu0 %vm304_vm0, %v2835_v29 }
  0x41   : > { %2966 = vmatprep.mubr.bf16.mxu0 %v7013_v2 }
  0x43   : > { %5542 = vmatmul.mubr.msk.bf16.vlgmr.msra.gmra.mrb[0].mxu1 %vm304_vm0, %v7105_v19  ;;  %v6710_v19 = vld [vmem:[%s8682_s1 + $0xa4] ss:$8 sps:$4 sm:$0xff]  }
  0x44   : > { %619 = vmatpush1.bf16.msra.mxu1 %v6695_v32  ;;  %495 = vmatprep.mubr.bf16.mxu1 %v7013_v2  ;;  %v3019_v32 = vrot.slane %v7235_v31, 1 }
  0x45   : > { %620 = vmatprep.subr.bf16.mxu1 %v6704_v34  ;;  %v2998_v34 = vld [vmem:[%s7086_s16 + $0x30] sm:$0xf] }
  0x46   : > { %v5840_v44 = vcombine.low %v7264_v50, %v2998_v34 }
  0x48   : > { %621 = vmatpush1.bf16.msra.mxu1 %v6702_v37  ;;  %5830 = vmatmul.mubr.msk.bf16.gmra.mrb[16].mxu0 %vm304_vm0, %v2838_v39  ;;  %v7451_v39 = vor.u32 %v3632_v49, %v3631_v28  ;;  %v3021_v45 = vrot.slane %v5840_v44, 1  ;;  %v6766_v44 = vld [vmem:[%s8682_s1 + $0x124] ss:$8 sps:$4 sm:$0xff]  }
  0x49   : > { %622 = vmatprep.subr.bf16.mxu1 %v6710_v19  ;;  %3110 = vmatprep.mubr.bf16.mxu0 %v7013_v2 }
  0x4a   : > { %v3022_v50 = vsel %vm553_vm2, %v3019_v32, %v3021_v45 }
  0x4b   : > { %5543 = vmatmul.mubr.msk.bf16.gmra.mrb[4].mxu1 %vm304_vm0, %v7108_v20  ;;  %v6711_v20 = vld [vmem:[%s8682_s1 + $0x3c0] ss:$8 sps:$4 sm:$0xff]  }
  0x4c   : > { %505 = vmatprep.mubr.bf16.mxu1 %v7013_v2  ;;  %623 = vmatpush1.bf16.msra.mxu1 %v6708_v46  ;;  %v7466_v46 = vld [vmem:[%s7086_s16 + $0x14] sm:$0xf] }
  0x4d   : > { %624 = vmatprep.subr.bf16.mxu1 %v6716_v51  ;;  %v5862_v51 = vcombine.low %v3181_v43, %v7466_v46  ;;  %v7585_v43 = vcombine.low %v3422_v30, %v7466_v46  ;;  %v6770_v46 = vld [vmem:[%s8682_s1 + $0x130] ss:$8 sps:$4 sm:$0xff]  }
  0x50   : > { %625 = vmatpush1.bf16.msra.mxu1 %v6714_v57  ;;  %5849 = vmatmul.mubr.msk.bf16.vlgmr.msra.gmra.mrb[0].mxu0 %vm304_vm0, %v3016_v61  ;;  %v3226_v57 = vshrl.u32 %v5862_v51, 16  ;;  %v6735_v61 = vld [vmem:[%s8682_s1 + $0xe0] ss:$8 sps:$4 sm:$0xff]  }
  0x51   : > { %815 = vmatprep.subr.bf16.mxu1 %v6722_v53  ;;  %3120 = vmatprep.mubr.bf16.mxu0 %v7013_v2 }
  0x52   : > { %3320 = vmatpush1.bf16.msra.mxu0 %v6711_v20 }
  0x53   : > { %5544 = vmatmul.mubr.msk.bf16.gmra.mrb[8].mxu1 %vm304_vm0, %v7139_v38  ;;  %3321 = vmatprep.subr.bf16.mxu0 %v6719_v0  ;;  %v3627_v38 = vrot.slane %v3245_v16, 1  ;;  %v3235_v0 = vrot.slane %v3233_v5, 1 }
  0x54   : > { %515 = vmatprep.mubr.bf16.mxu1 %v7013_v2 }
  0x55   : > { %v3629_v29 = vor.u32 %v3628_v27, %v3627_v38  ;;  %v3243_v38 = vrot.slane %v3241_v18, 1  ;;  %v6760_v27 = vld [vmem:[%s8682_s1 + $0x430] ss:$8 sps:$4 sm:$0xff]  }
  0x56   : > { %3322 = vmatpush1.bf16.msra.mxu0 %v6717_v11  ;;  %v6740_v11 = vld [vmem:[%s8682_s1 + $0x400] ss:$8 sps:$4 sm:$0xff]  }
  0x57   : > { %3323 = vmatprep.subr.bf16.mxu0 %v6726_v14  ;;  %v7449_v37 = vsel %vm730_vm3, %v7415_v17, %v3629_v29  ;;  %v7456_v19 = vsel %vm730_vm3, %v3629_v29, %v7451_v39  ;;  %v3239_v14 = vor.u32 %v3237_v62, %v3235_v0  ;;  %v3190_v62 = vld [vmem:[%s7086_s16 + $0x34] sm:$0x7]  ;;  %v3247_v28 = vor.u32 %v3245_v16, %v3243_v38 }
  0x58   : > { %5850 = vmatmul.mubr.msk.bf16.gmra.mrb[4].mxu0 %vm304_vm0, %v3018_v21  ;;  %v6756_v21 = vld [vmem:[%s8682_s1 + $0x424] ss:$8 sps:$4 sm:$0xff]   ;;  %v3251_v29 = vrot.slane %v3249_v9, 1  ;;  %v6750_v9 = vld [vmem:[%s8682_s1 + $0x100] ss:$8 sps:$4 sm:$0xff]  }
  0x59   : > { %3130 = vmatprep.mubr.bf16.mxu0 %v7013_v2  ;;  %v3244_v18 = vsel %vm224_vm1, %v3239_v14, %v3243_v38  ;;  %v922_v38 = vld [vmem:[%s7086_s16 + $0x10] sm:$0xf] }
  0x5a   : > { %3324 = vmatpush1.bf16.msra.mxu0 %v6724_v22  ;;  %v6754_v22 = vld [vmem:[%s8682_s1 + $0x420] ss:$8 sps:$4 sm:$0xff]  }
  0x5b   : > { %5545 = vmatmul.mubr.msk.bf16.gmra.mrb[12].mxu1 %vm304_vm0, %v7189_v3  ;;  %3325 = vmatprep.subr.bf16.mxu0 %v6732_v23  ;;  %v3020_v3 = vsel %vm553_vm2, %v3017_v1, %v3019_v32  ;;  %v6752_v1 = vld [vmem:[%s8682_s1 + $0x104] ss:$8 sps:$4 sm:$0xff]   ;;  %v7533_v23 = vld [vmem:[%s7086_s16 + $0x30] sm:$0xf] }
  0x5c   : > { %525 = vmatprep.mubr.bf16.mxu1 %v7013_v2  ;;  %v5866_v49 = vcombine.low %v7533_v23, %v3190_v62  ;;  %v6769_v32 = vld [vmem:[%s8682_s1 + $0x444] ss:$8 sps:$4 sm:$0xff]   ;;  %v6779_v62 = vld [vmem:[%s8682_s1 + $0x140] ss:$8 sps:$4 sm:$0xff]  }
  0x5e   : > { %3326 = vmatpush1.bf16.msra.mxu0 %v6730_v33  ;;  %v3252_v33 = vsel %vm224_vm1, %v3247_v28, %v3251_v29  ;;  %v3257_v34 = vshll.u32 %v5866_v49, 16 }
  0x5f   : > { %3503 = vmatprep.subr.bf16.mxu0 %v6742_v36 }
  0x60   : > { %5851 = vmatmul.mubr.msk.bf16.gmra.mrb[8].mxu0 %vm304_vm0, %v3020_v3  ;;  %v3259_v16 = vrot.slane %v3257_v34, 1  ;;  %v6759_v3 = vld [vmem:[%s8682_s1 + $0x114] ss:$8 sps:$4 sm:$0xff]  }
  0x61   : > { %3140 = vmatprep.mubr.bf16.mxu0 %v7013_v2 }
  0x63   : > { %5546 = vmatmul.mubr.msk.bf16.gmra.mrb[16].mxu1 %vm304_vm0, %v7210_v13  ;;  %v3228_v13 = vshll.u32 %v5862_v51, 16  ;;  %v3440_v51 = vrot.slane %v7372_v58, 1  ;;  %v6767_v58 = vld [vmem:[%s8682_s1 + $0x440] ss:$8 sps:$4 sm:$0xff]  }
  0x64   : > { %650 = vmatprep.mubr.bf16.mxu1 %v7013_v2 }
  0x65   : > { %v3230_v53 = vrot.slane %v3228_v13, 1 }
  0x67   : > { %v3231_v20 = vor.u32 %v3230_v53, %v3226_v57  ;;  %v6785_v57 = vld [vmem:[%s8682_s1 + $0x464] ss:$8 sps:$4 sm:$0xff]  }
  0x68   : > { %5852 = vmatmul.mubr.msk.bf16.gmra.mrb[12].mxu0 %vm304_vm0, %v3022_v50  ;;  %v3439_v50 = vrot.slane %v7585_v43, 1 }
  0x69   : > { %3150 = vmatprep.mubr.bf16.mxu0 %v7013_v2  ;;  %v3236_v5 = vsel %vm224_vm1, %v3231_v20, %v3235_v0  ;;  %v3423_v20 = vld [vmem:[%s7086_s16 + $0x34] sm:$0xf]  ;;  %v6804_v0 = vld [vmem:[%s8682_s1 + $0x484] ss:$8 sps:$4 sm:$0xff]  }
  0x6a   : > { %v3441_v13 = vsel %vm553_vm2, %v3439_v50, %v3440_v51  ;;  %v6811_v50 = vld [vmem:[%s8682_s1 + $0x494] ss:$8 sps:$4 sm:$0xff]  }
  0x6b   : > { %5565 = vmatmul.mubr.msk.bf16.vlgmr.msra.gmra.mrb[0].mxu1 %vm304_vm0, %v7252_v40  ;;  %v6745_v40 = vld [vmem:[%s8682_s1 + $0xf4] ss:$8 sps:$4 sm:$0xff]  }
  0x6c   : > { %816 = vmatpush1.bf16.msra.mxu1 %v6720_v47  ;;  %660 = vmatprep.mubr.bf16.mxu1 %v7013_v2  ;;  %v6772_v47 = vld [vmem:[%s8682_s1 + $0x134] ss:$8 sps:$4 sm:$0xff]  }
  0x6d   : > { %817 = vmatprep.subr.bf16.mxu1 %v6729_v55  ;;  %v6781_v55 = vld [vmem:[%s8682_s1 + $0x144] ss:$8 sps:$4 sm:$0xff]  }
  0x70   : > { %818 = vmatpush1.bf16.msra.mxu1 %v6727_v26  ;;  %5853 = vmatmul.mubr.msk.bf16.gmra.mrb[16].mxu0 %vm304_vm0, %v3021_v45  ;;  %v3442_v26 = vrot.slane %v7396_v7, 1  ;;  %v6783_v7 = vld [vmem:[%s8682_s1 + $0x460] ss:$8 sps:$4 sm:$0xff]  }
  0x71   : > { %819 = vmatprep.subr.bf16.mxu1 %v6737_v56  ;;  %3351 = vmatprep.mubr.bf16.mxu0 %v7013_v2  ;;  %v6773_v56 = vld [vmem:[%s8682_s1 + $0x450] ss:$8 sps:$4 sm:$0xff]  }
  0x72   : > { %v3443_v53 = vsel %vm553_vm2, %v3440_v51, %v3442_v26 }
  0x73   : > { %5566 = vmatmul.mubr.msk.bf16.gmra.mrb[4].mxu1 %vm304_vm0, %v7255_v41  ;;  %v6749_v41 = vld [vmem:[%s8682_s1 + $0x414] ss:$8 sps:$4 sm:$0xff]  }
  0x74   : > { %670 = vmatprep.mubr.bf16.mxu1 %v7013_v2  ;;  %820 = vmatpush1.bf16.msra.mxu1 %v6735_v61  ;;  %v3444_v61 = vrot.slane %v7411_v15, 1  ;;  %v7649_v15 = vld [vmem:[%s7086_s16 + $0xc] sm:$0xf] }
  0x75   : > { %821 = vmatprep.subr.bf16.mxu1 %v6745_v40  ;;  %v6791_v40 = vld [vmem:[%s8682_s1 + $0x470] ss:$8 sps:$4 sm:$0xff]  }
  0x78   : > { %822 = vmatpush1.bf16.msra.mxu1 %v6743_v6  ;;  %5875 = vmatmul.mubr.msk.bf16.vlgmr.msra.gmra.mrb[0].mxu0 %vm304_vm0, %v3236_v5  ;;  %v7646_v6 = vld [vmem:[%s7086_s16 + $0x8] sm:$0xf] }
  0x79   : > { %1033 = vmatprep.subr.bf16.mxu1 %v6752_v1  ;;  %3361 = vmatprep.mubr.bf16.mxu0 %v7013_v2  ;;  %v3445_v1 = vsel %vm553_vm2, %v3442_v26, %v3444_v61  ;;  %v5600_v5 = vcombine.low %v7646_v6, %v7649_v15  ;;  %v5627_v26 = vcombine.low %v7649_v15, %v922_v38 }
  0x7a   : > { %3504 = vmatpush1.bf16.msra.mxu0 %v6740_v11  ;;  %v7653_v11 = vcombine.low %v7533_v23, %v3423_v20 }
  0x7b   : > { %5567 = vmatmul.mubr.msk.bf16.gmra.mrb[8].mxu1 %vm304_vm0, %v7270_v54  ;;  %3505 = vmatprep.subr.bf16.mxu0 %v6749_v41  ;;  %v6762_v54 = vld [vmem:[%s8682_s1 + $0x434] ss:$8 sps:$4 sm:$0xff]   ;;  %v968_v14 = vrot.slane %v5600_v5, 2  ;;  %v1165_v20 = vshrl.u32 %v5627_v26, 16 }
  0x7c   : > { %680 = vmatprep.mubr.bf16.mxu1 %v7013_v2  ;;  %v3446_v41 = vrot.slane %v7653_v11, 1 }
  0x7d   : > { %v1167_v5 = vrot.slane %v1165_v20, 1 }
  0x7e   : > { %3506 = vmatpush1.bf16.msra.mxu0 %v6747_v12 }
  0x7f   : > { %3507 = vmatprep.subr.bf16.mxu0 %v6756_v21  ;;  %v7666_v21 = vld [vmem:[%s7086_s16 + $0x14] sm:$0xf] }
  0x80   : > { %5876 = vmatmul.mubr.msk.bf16.gmra.mrb[4].mxu0 %vm304_vm0, %v3244_v18  ;;  %v6790_v18 = vld [vmem:[%s8682_s1 + $0x154] ss:$8 sps:$4 sm:$0xff]  }
  0x81   : > { %3371 = vmatprep.mubr.bf16.mxu0 %v7013_v2 }
  0x82   : > { %3508 = vmatpush1.bf16.msra.mxu0 %v6754_v22  ;;  %v3447_v22 = vsel %vm553_vm2, %v3444_v61, %v3446_v41  ;;  %v3639_v61 = vshll.u32 %v7653_v11, 16 }
  0x83   : > { %5568 = vmatmul.mubr.msk.bf16.gmra.mrb[12].mxu1 %vm304_vm0, %v7344_v10  ;;  %3509 = vmatprep.subr.bf16.mxu0 %v6762_v54  ;;  %v3255_v10 = vor.u32 %v3253_v42, %v3251_v29  ;;  %v3261_v42 = vshrl.u32 %v5866_v49, 16  ;;  %v3616_v54 = vshrl.u32 %v7585_v43, 16  ;;  %v6788_v29 = vld [vmem:[%s8682_s1 + $0x150] ss:$8 sps:$4 sm:$0xff]  }
  0x84   : > { %690 = vmatprep.mubr.bf16.mxu1 %v7013_v2  ;;  %v7687_v49 = vld [vmem:[%s7086_s16 + $0x18] sm:$0xf] }
  0x85   : > { %v3260_v36 = vsel %vm224_vm1, %v3255_v10, %v3259_v16  ;;  %v3263_v45 = vor.u32 %v3261_v42, %v3259_v16  ;;  %v3618_v34 = vrot.slane %v3616_v54, 1  ;;  %vm5323_vm1 = vsmask.f32 6416 }
  0x86   : > { %3510 = vmatpush1.bf16.msra.mxu0 %v6760_v27  ;;  %v3619_v27 = vshll.u32 %v7585_v43, 16  ;;  %v6814_v43 = vld [vmem:[%s8682_s1 + $0x184] ss:$8 sps:$4 sm:$0xff]  }
  0x87   : > { %3699 = vmatprep.subr.bf16.mxu0 %v6769_v32  ;;  %v7690_v32 = vld [vmem:[%s7086_s16 + $0x1c] sm:$0xf] }
  0x88   : > { %5877 = vmatmul.mubr.msk.bf16.gmra.mrb[8].mxu0 %vm304_vm0, %v3252_v33  ;;  %v6798_v33 = vld [vmem:[%s8682_s1 + $0x164] ss:$8 sps:$4 sm:$0xff]   ;;  %v3621_v10 = vrot.slane %v3619_v27, 2 }
  0x89   : > { %3381 = vmatprep.mubr.bf16.mxu0 %v7013_v2 }
  0x8a   : > { %v3622_v42 = vor.u32 %v3621_v10, %v3618_v34 }
  0x8b   : > { %5569 = vmatmul.mubr.msk.bf16.gmra.mrb[16].mxu1 %vm304_vm0, %v561_v35  ;;  %v6757_v35 = vld [vmem:[%s8682_s1 + $0x110] ss:$8 sps:$4 sm:$0xff]  }
  0x8c   : > { %847 = vmatprep.mubr.bf16.mxu1 %v7013_v2 }
  0x90   : > { %5878 = vmatmul.mubr.msk.bf16.gmra.mrb[12].mxu0 %vm304_vm0, %v3260_v36  ;;  %v6796_v36 = vld [vmem:[%s8682_s1 + $0x160] ss:$8 sps:$4 sm:$0xff]  }
  0x91   : > { %3391 = vmatprep.mubr.bf16.mxu0 %v7013_v2 }
  0x93   : > { %5586 = vmatmul.mubr.msk.bf16.vlgmr.msra.gmra.mrb[0].mxu1 %vm304_vm0, %v7305_v60  ;;  %v6764_v60 = vld [vmem:[%s8682_s1 + $0x120] ss:$8 sps:$4 sm:$0xff]  }
  0x94   : > { %1034 = vmatpush1.bf16.msra.mxu1 %v6750_v9  ;;  %857 = vmatprep.mubr.bf16.mxu1 %v7013_v2  ;;  %v5602_v9 = vcombine.low %v7687_v49, %v7690_v32 }
  0x95   : > { %1035 = vmatprep.subr.bf16.mxu1 %v6759_v3  ;;  %v6807_v3 = vld [vmem:[%s8682_s1 + $0x174] ss:$8 sps:$4 sm:$0xff]  }
  0x96   : > { %v972_v30 = vrot.slane %v5602_v9, 2  ;;  %v6828_v9 = vld [vmem:[%s8682_s1 + $0x1a4] ss:$8 sps:$4 sm:$0xff]  }
  0x98   : > { %1036 = vmatpush1.bf16.msra.mxu1 %v6757_v35  ;;  %5879 = vmatmul.mubr.msk.bf16.gmra.mrb[16].mxu0 %vm304_vm0, %v3263_v45  ;;  %v6805_v35 = vld [vmem:[%s8682_s1 + $0x170] ss:$8 sps:$4 sm:$0xff]   ;;  %v7715_v45 = vld [vmem:[%s7086_s16 + $0x24] sm:$0xf] }
  0x99   : > { %1037 = vmatprep.subr.bf16.mxu1 %v6766_v44  ;;  %3535 = vmatprep.mubr.bf16.mxu0 %v7013_v2  ;;  %v7712_v44 = vld [vmem:[%s7086_s16 + $0x20] sm:$0xf] }
  0x9a   : > { %v5629_v27 = vcombine.low %v7690_v32, %v7712_v44 }
  0x9b   : > { %5587 = vmatmul.mubr.msk.bf16.gmra.mrb[4].mxu1 %vm304_vm0, %v7312_v24  ;;  %v6775_v24 = vld [vmem:[%s8682_s1 + $0x454] ss:$8 sps:$4 sm:$0xff]  }
  0x9c   : > { %867 = vmatprep.mubr.bf16.mxu1 %v7013_v2  ;;  %1038 = vmatpush1.bf16.msra.mxu1 %v6764_v60  ;;  %v3626_v60 = vsel %vm730_vm3, %v3622_v42, %v7415_v17  ;;  %v6809_v17 = vld [vmem:[%s8682_s1 + $0x490] ss:$8 sps:$4 sm:$0xff]   ;;  %v1183_v34 = vshrl.u32 %v5629_v27, 16  ;;  %v1186_v10 = vshll.u32 %v5629_v27, 16  ;;  %v6842_v27 = vld [vmem:[%s8682_s1 + $0x1c0] ss:$8 sps:$4 sm:$0xff]  }
  0x9d   : > { %1039 = vmatprep.subr.bf16.mxu1 %v6772_v47  ;;  %v6802_v47 = vld [vmem:[%s8682_s1 + $0x480] ss:$8 sps:$4 sm:$0xff]  }
  0xa0   : > { %1040 = vmatpush1.bf16.msra.mxu1 %v6770_v46  ;;  %5898 = vmatmul.mubr.msk.bf16.vlgmr.msra.gmra.mrb[0].mxu0 %vm304_vm0, %v3441_v13  ;;  %v5603_v46 = vcombine.low %v7712_v44, %v7715_v45  ;;  %v1188_v44 = vrot.slane %v1186_v10, 2  ;;  %v6851_v10 = vld [vmem:[%s8682_s1 + $0x1d0] ss:$8 sps:$4 sm:$0xff]  }
  0xa1   : > { %1255 = vmatprep.subr.bf16.mxu1 %v6781_v55  ;;  %3545 = vmatprep.mubr.bf16.mxu0 %v7013_v2  ;;  %v6817_v55 = vld [vmem:[%s8682_s1 + $0x4a4] ss:$8 sps:$4 sm:$0xff]  }
  0xa2   : > { %3700 = vmatpush1.bf16.msra.mxu0 %v6767_v58  ;;  %v974_v13 = vrot.slane %v5603_v46, 2  ;;  %v1136_v58 = vld [vmem:[%s7086_s16 + $0x4] sm:$0xe] }
  0xa3   : > { %5588 = vmatmul.mubr.msk.bf16.gmra.mrb[8].mxu1 %vm304_vm0, %v7315_v25  ;;  %3701 = vmatprep.subr.bf16.mxu0 %v6775_v24  ;;  %v6793_v25 = vld [vmem:[%s8682_s1 + $0x474] ss:$8 sps:$4 sm:$0xff]   ;;  %v6815_v24 = vld [vmem:[%s8682_s1 + $0x4a0] ss:$8 sps:$4 sm:$0xff]  }
  0xa4   : > { %877 = vmatprep.mubr.bf16.mxu1 %v7013_v2 }
  0xa6   : > { %3702 = vmatpush1.bf16.msra.mxu0 %v6773_v56  ;;  %v6823_v56 = vld [vmem:[%s8682_s1 + $0x4b4] ss:$8 sps:$4 sm:$0xff]  }
  0xa7   : > { %3703 = vmatprep.subr.bf16.mxu0 %v6785_v57  ;;  %v5626_v57 = vcombine.low %v1136_v58, %v7646_v6  ;;  %v7823_v58 = vld [vmem:[%s7086_s16 + $0x20] sm:$0xff]  }
  0xa8   : > { %5899 = vmatmul.mubr.msk.bf16.gmra.mrb[4].mxu0 %vm304_vm0, %v3443_v53  ;;  %v975_v53 = vsel %vm966_vm4, %v972_v30, %v974_v13 }
  0xa9   : > { %3555 = vmatprep.mubr.bf16.mxu0 %v7013_v2  ;;  %v1157_v15 = vshrl.u32 %v5626_v57, 16 }
  0xaa   : > { %3704 = vmatpush1.bf16.msra.mxu0 %v6783_v7  ;;  %v6808_v7 = vld [vmem:[%s7086_s16 + $0x28] ss:$0 sps:$4 sm:$0x11]  }
  0xab   : > { %5589 = vmatmul.mubr.msk.bf16.gmra.mrb[12].mxu1 %vm304_vm0, %v7386_v63  ;;  %3705 = vmatprep.subr.bf16.mxu0 %v6793_v25  ;;  %v6776_v63 = vld [vmem:[%s7086_s16] sm:$0xfc]   ;;  %v3636_v25 = vshrl.u32 %v7653_v11, 16  ;;  %v976_v6 = vrot.slane %v6808_v7, 2  ;;  %v3853_v7 = vrot.slane %v7823_v58, 2 }
  0xac   : > { %887 = vmatprep.mubr.bf16.mxu1 %v7013_v2  ;;  %v967_v12 = vrot.slane %v6776_v63, 2  ;;  %v3641_v63 = vrot.slane %v3639_v61, 2  ;;  %v6848_v61 = vld [vmem:[%s8682_s1 + $0x4e4] ss:$8 sps:$4 sm:$0xff]  }
  0xad   : > { %v3638_v11 = vrot.slane %v3636_v25, 1  ;;  %v6837_v25 = vld [vmem:[%s8682_s1 + $0x4d0] ss:$8 sps:$4 sm:$0xff]  }
  0xae   : > { %3706 = vmatpush1.bf16.msra.mxu0 %v6791_v40  ;;  %v969_v23 = vsel %vm966_vm4, %v967_v12, %v968_v14  ;;  %v6821_v40 = vld [vmem:[%s8682_s1 + $0x4b0] ss:$8 sps:$4 sm:$0xff]   ;;  %v5628_v12 = vcombine.low %v7666_v21, %v7687_v49 }
  0xaf   : > { %3916 = vmatprep.subr.bf16.mxu0 %v6804_v0  ;;  %v1168_v0 = vshll.u32 %v5627_v26, 16  ;;  %v6839_v26 = vld [vmem:[%s8682_s1 + $0x4d4] ss:$8 sps:$4 sm:$0xff]  }
  0xb0   : > { %5900 = vmatmul.mubr.msk.bf16.gmra.mrb[8].mxu0 %vm304_vm0, %v3445_v1  ;;  %v1160_v1 = vshll.u32 %v5626_v57, 16  ;;  %v1177_v54 = vshll.u32 %v5628_v12, 16 }
  0xb1   : > { %3565 = vmatprep.mubr.bf16.mxu0 %v7013_v2 }
  0xb2   : > { %v1179_v49 = vrot.slane %v1177_v54, 2 }
  0xb3   : > { %5590 = vmatmul.mubr.msk.bf16.gmra.mrb[16].mxu1 %vm304_vm0, %v7374_v59  ;;  %v5601_v59 = vcombine.low %v922_v38, %v7666_v21  ;;  %v1159_v38 = vrot.slane %v1157_v15, 1 }
  0xb4   : > { %1065 = vmatprep.mubr.bf16.mxu1 %v7013_v2 }
  0xb5   : > { %v970_v28 = vrot.slane %v5601_v59, 2 }
  0xb7   : > { %v971_v16 = vsel %vm966_vm4, %v968_v14, %v970_v28  ;;  %v973_v51 = vsel %vm966_vm4, %v970_v28, %v972_v30  ;;  %v977_v14 = vsel %vm966_vm4, %v974_v13, %v976_v6  ;;  %v6812_v28 = vld [vmem:[%s8682_s1 + $0x180] ss:$8 sps:$4 sm:$0xff]   ;;  %v6856_v6 = vld [vmem:[%s8682_s1 + $0x4f4] ss:$8 sps:$4 sm:$0xff]  }
  0xb8   : > { %5901 = vmatmul.mubr.msk.bf16.gmra.mrb[12].mxu0 %vm304_vm0, %v3447_v22  ;;  %v1162_v22 = vrot.slane %v1160_v1, 2 }
  0xb9   : > { %3575 = vmatprep.mubr.bf16.mxu0 %v7013_v2 }
  0xbb   : > { %5613 = vmatmul.mubr.msk.bf16.vlgmr.msra.gmra.mrb[0].mxu1 %vm304_vm0, %v969_v23  ;;  %v3642_v23 = vor.u32 %v3641_v63, %v3638_v11  ;;  %v6854_v11 = vld [vmem:[%s8682_s1 + $0x4f0] ss:$8 sps:$4 sm:$0xff]   ;;  %v6864_v63 = vld [vmem:[%s8682_s1 + $0x504] ss:$8 sps:$4 sm:$0xff]  }
  0xbc   : > { %1256 = vmatpush1.bf16.msra.mxu1 %v6779_v62  ;;  %1075 = vmatprep.mubr.bf16.mxu1 %v7013_v2  ;;  %v1163_v62 = vor.u32 %v1162_v22, %v1159_v38  ;;  %v7877_v22 = vld [vmem:[%s7086_s16 + $0xc] sm:$0xff]  }
  0xbd   : > { %1257 = vmatprep.subr.bf16.mxu1 %v6790_v18  ;;  %v1174_v18 = vshrl.u32 %v5628_v12, 16  ;;  %v3643_v21 = vsel %vm730_vm3, %v7451_v39, %v3642_v23  ;;  %v6820_v39 = vld [vmem:[%s8682_s1 + $0x194] ss:$8 sps:$4 sm:$0xff]  }
  0xc0   : > { %1258 = vmatpush1.bf16.msra.mxu1 %v6788_v29  ;;  %5902 = vmatmul.mubr.msk.bf16.gmra.mrb[16].mxu0 %vm304_vm0, %v3446_v41  ;;  %v1170_v41 = vrot.slane %v1168_v0, 2  ;;  %v1176_v29 = vrot.slane %v1174_v18, 1  ;;  %v7845_v0 = vld [vmem:[%s7086_s16 + $0x28] sm:$0xff]   ;;  %v7887_v18 = vld [vmem:[%s7086_s16 + $0x38] ss:$0 sps:$4 sm:$0x11]  }
  0xc1   : > { %1259 = vmatprep.subr.bf16.mxu1 %v6798_v33  ;;  %3731 = vmatprep.mubr.bf16.mxu0 %v7013_v2  ;;  %v6818_v33 = vld [vmem:[%s8682_s1 + $0x190] ss:$8 sps:$4 sm:$0xff]   ;;  %v3855_v1 = vrot.slane %v7845_v0, 2 }
  0xc2   : > { %v1171_v59 = vor.u32 %v1170_v41, %v1167_v5  ;;  %v1180_v32 = vor.u32 %v1179_v49, %v1176_v29  ;;  %v1358_v5 = vld [vmem:[%s7086_s16 + $0x4] sm:$0xc]  ;;  %v7867_v41 = vld [vmem:[%s7086_s16 + $0x8] sm:$0xf]  ;;  %v6853_v29 = vld [vmem:[%s8682_s1 + $0x1d4] ss:$8 sps:$4 sm:$0xff]  }
  0xc3   : > { %5614 = vmatmul.mubr.msk.bf16.gmra.mrb[4].mxu1 %vm304_vm0, %v971_v16  ;;  %v1137_v16 = vld [vmem:[%s7086_s16 + $0x28] sm:$0xf]  ;;  %v3856_v12 = vsel %vm966_vm4, %v3853_v7, %v3855_v1  ;;  %v7874_v38 = vcombine.low %v1358_v5, %v7867_v41  ;;  %v6883_v5 = vld [vmem:[%s8682_s1 + $0x534] ss:$8 sps:$4 sm:$0xff]  }
  0xc4   : > { %1085 = vmatprep.mubr.bf16.mxu1 %v7013_v2  ;;  %1260 = vmatpush1.bf16.msra.mxu1 %v6796_v36  ;;  %v7796_v36 = vld [vmem:[%s7086_s16 + $0x10] sm:$0xfc]   ;;  %v5630_v42 = vcombine.low %v7715_v45, %v1137_v16  ;;  %v1181_v30 = vsel %vm730_vm3, %v1171_v59, %v1180_v32 }
  0xc5   : > { %1261 = vmatprep.subr.bf16.mxu1 %v6807_v3  ;;  %v7799_v3 = vld [vmem:[%s7086_s16 + $0x18] sm:$0xff]   ;;  %v3850_v45 = vrot.slane %v7796_v36, 2  ;;  %v4029_v49 = vshrl.u32 %v7796_v36, 16 }
  0xc6   : > { %v1195_v46 = vshll.u32 %v5630_v42, 16 }
  0xc8   : > { %1262 = vmatpush1.bf16.msra.mxu1 %v6805_v35  ;;  %5919 = vmatmul.mubr.msk.bf16.vlgmr.msra.gmra.mrb[0].mxu0 %vm304_vm0, %v3626_v60  ;;  %v1185_v35 = vrot.slane %v1183_v34, 1  ;;  %v6835_v60 = vld [vmem:[%s8682_s1 + $0x1b4] ss:$8 sps:$4 sm:$0xff]  }
  0xc9   : > { %1472 = vmatprep.subr.bf16.mxu1 %v6814_v43  ;;  %3741 = vmatprep.mubr.bf16.mxu0 %v7013_v2  ;;  %v6826_v43 = vld [vmem:[%s8682_s1 + $0x1a0] ss:$8 sps:$4 sm:$0xff]  }
  0xca   : > { %3917 = vmatpush1.bf16.msra.mxu0 %v6802_v47  ;;  %v3851_v47 = vrot.slane %v7799_v3, 2 }
  0xcb   : > { %5615 = vmatmul.mubr.msk.bf16.gmra.mrb[8].mxu1 %vm304_vm0, %v973_v51  ;;  %3918 = vmatprep.subr.bf16.mxu0 %v6811_v50  ;;  %v1189_v50 = vor.u32 %v1188_v44, %v1185_v35  ;;  %v1192_v51 = vshrl.u32 %v5630_v42, 16  ;;  %v7919_v44 = vld [vmem:[%s7086_s16 + $0x1c] sm:$0xff]  }
  0xcc   : > { %1095 = vmatprep.mubr.bf16.mxu1 %v7013_v2  ;;  %v3852_v13 = vsel %vm966_vm4, %v3850_v45, %v3851_v47  ;;  %v3854_v20 = vsel %vm966_vm4, %v3851_v47, %v3853_v7 }
  0xcd   : > { %v1194_v57 = vrot.slane %v1192_v51, 1  ;;  %v4049_v51 = vshll.u32 %v7823_v58, 16 }
  0xce   : > { %3919 = vmatpush1.bf16.msra.mxu0 %v6809_v17  ;;  %v6833_v17 = vld [vmem:[%s8682_s1 + $0x1b0] ss:$8 sps:$4 sm:$0xff]  }
  0xcf   : > { %3920 = vmatprep.subr.bf16.mxu0 %v6817_v55  ;;  %v6844_v55 = vld [vmem:[%s8682_s1 + $0x1c4] ss:$8 sps:$4 sm:$0xff]  }
  0xd0   : > { %5920 = vmatmul.mubr.msk.bf16.gmra.mrb[4].mxu0 %vm304_vm0, %v7449_v37  ;;  %v6832_v37 = vld [vmem:[%s8682_s1 + $0x4c4] ss:$8 sps:$4 sm:$0xff]  }
  0xd1   : > { %3751 = vmatprep.mubr.bf16.mxu0 %v7013_v2 }
  0xd2   : > { %3921 = vmatpush1.bf16.msra.mxu0 %v6815_v24  ;;  %v6830_v24 = vld [vmem:[%s8682_s1 + $0x4c0] ss:$8 sps:$4 sm:$0xff]  }
  0xd3   : > { %5616 = vmatmul.mubr.msk.bf16.gmra.mrb[12].mxu1 %vm304_vm0, %v975_v53  ;;  %3922 = vmatprep.subr.bf16.mxu0 %v6823_v56  ;;  %v1190_v56 = vsel %vm730_vm3, %v1180_v32, %v1189_v50  ;;  %v1197_v53 = vrot.slane %v1195_v46, 2  ;;  %v4037_v32 = vshrl.u32 %v7799_v3, 16  ;;  %v1411_v46 = vrot.slane %v7919_v44, 2 }
  0xd4   : > { %1105 = vmatprep.mubr.bf16.mxu1 %v7013_v2 }
  0xd5   : > { %v4039_v42 = vrot.slane %v4037_v32, 2  ;;  %v1597_v32 = vshll.u32 %v7877_v22, 16 }
  0xd6   : > { %3923 = vmatpush1.bf16.msra.mxu0 %v6821_v40  ;;  %v1198_v40 = vor.u32 %v1197_v53, %v1194_v57  ;;  %v7949_v53 = vld [vmem:[%s7086_s16 + $0x24] sm:$0xff]  }
  0xd7   : > { %4136 = vmatprep.subr.bf16.mxu0 %v6832_v37  ;;  %v6846_v37 = vld [vmem:[%s8682_s1 + $0x4e0] ss:$8 sps:$4 sm:$0xff]  }
  0xd8   : > { %5921 = vmatmul.mubr.msk.bf16.gmra.mrb[8].mxu0 %vm304_vm0, %v7456_v19  ;;  %v1172_v19 = vsel %vm730_vm3, %v1163_v62, %v1171_v59  ;;  %v1199_v15 = vsel %vm730_vm3, %v1189_v50, %v1198_v40  ;;  %v1406_v62 = vrot.slane %v7874_v38, 2  ;;  %v1407_v59 = vrot.slane %v7877_v22, 2  ;;  %vm5324_vm3 = vmor %vm5322_vm14, %vm5323_vm1 }
  0xd9   : > { %3761 = vmatprep.mubr.bf16.mxu0 %v7013_v2  ;;  %v4046_v50 = vshrl.u32 %v7823_v58, 16 }
  0xdb   : > { %5617 = vmatmul.mubr.msk.bf16.gmra.mrb[16].mxu1 %vm304_vm0, %v977_v14  ;;  %v7871_v14 = vld [vmem:[%s7086_s16 + $0x30] sm:$0xff]   ;;  %v4048_v58 = vrot.slane %v4046_v50, 2 }
  0xdc   : > { %1287 = vmatprep.mubr.bf16.mxu1 %v7013_v2 }
  0xe0   : > { %5922 = vmatmul.mubr.msk.bf16.gmra.mrb[12].mxu0 %vm304_vm0, %v3643_v21  ;;  %v1408_v21 = vsel %vm966_vm4, %v1406_v62, %v1407_v59 }
  0xe1   : > { %3771 = vmatprep.mubr.bf16.mxu0 %v7013_v2 }
  0xe3   : > { %5639 = vmatmul.mubr.msk.bf16.vlgmr.msra.gmra.mrb[0].mxu1 %vm304_vm0, %v1172_v19  ;;  %v7895_v19 = vld [vmem:[%s7086_s16 + $0x14] sm:$0xff]  }
  0xe4   : > { %1473 = vmatpush1.bf16.msra.mxu1 %v6812_v28  ;;  %1297 = vmatprep.mubr.bf16.mxu1 %v7013_v2  ;;  %v3859_v28 = vrot.slane %v7887_v18, 2  ;;  %v1409_v34 = vrot.slane %v7895_v19, 2 }
  0xe5   : > { %1474 = vmatprep.subr.bf16.mxu1 %v6820_v39  ;;  %v4032_v39 = vshll.u32 %v7796_v36, 16  ;;  %v4031_v36 = vrot.slane %v4029_v49, 2  ;;  %v1589_v49 = vshll.u32 %v7874_v38, 16 }
  0xe6   : > { %v1410_v35 = vsel %vm966_vm4, %v1407_v59, %v1409_v34  ;;  %v1412_v57 = vsel %vm966_vm4, %v1409_v34, %v1411_v46  ;;  %v2233_v34 = vrot.slane %v7151_v48, 3 }
  0xe8   : > { %1475 = vmatpush1.bf16.msra.mxu1 %v6818_v33  ;;  %5923 = vmatmul.mubr.msk.bf16.gmra.mrb[16].mxu0 %vm304_vm0, %v3642_v23  ;;  %v3857_v23 = vrot.slane %v7871_v14, 2  ;;  %v4040_v33 = vshll.u32 %v7799_v3, 16  ;;  %v4034_v3 = vrot.slane %v4032_v39, 3  ;;  %v6892_v39 = vld [vmem:[%s8682_s1 + $0x544] ss:$8 sps:$4 sm:$0xff]  }
  0xe9   : > { %1476 = vmatprep.subr.bf16.mxu1 %v6828_v9  ;;  %3948 = vmatprep.mubr.bf16.mxu0 %v7013_v2  ;;  %v6860_v9 = vld [vmem:[%s8682_s1 + $0x1e4] ss:$8 sps:$4 sm:$0xff]  }
  0xea   : > { %v3858_v54 = vsel %vm966_vm4, %v3855_v1, %v3857_v23  ;;  %v3860_v16 = vsel %vm966_vm4, %v3857_v23, %v3859_v28  ;;  %v4035_v45 = vor.u32 %v4034_v3, %v4031_v36  ;;  %v1591_v3 = vrot.slane %v1589_v49, 3 }
  0xeb   : > { %5640 = vmatmul.mubr.msk.bf16.gmra.mrb[4].mxu1 %vm304_vm0, %v1181_v30  ;;  %v4042_v30 = vrot.slane %v4040_v33, 3 }
  0xec   : > { %1307 = vmatprep.mubr.bf16.mxu1 %v7013_v2  ;;  %1477 = vmatpush1.bf16.msra.mxu1 %v6826_v43  ;;  %v6858_v43 = vld [vmem:[%s8682_s1 + $0x1e0] ss:$8 sps:$4 sm:$0xff]  }
  0xed   : > { %1478 = vmatprep.subr.bf16.mxu1 %v6835_v60  ;;  %v6867_v60 = vld [vmem:[%s8682_s1 + $0x1f4] ss:$8 sps:$4 sm:$0xff]   ;;  %v4043_v47 = vor.u32 %v4042_v30, %v4039_v42 }
  0xf0   : > { %1479 = vmatpush1.bf16.msra.mxu1 %v6833_v17  ;;  %5946 = vmatmul.mubr.msk.bf16.vlgmr.msra.gmra.mrb[0].mxu0 %vm304_vm0, %v3852_v13  ;;  %v6865_v17 = vld [vmem:[%s8682_s1 + $0x1f0] ss:$8 sps:$4 sm:$0xff]   ;;  %v4044_v13 = vsel %vm1584_vm5, %v4035_v45, %v4043_v47  ;;  %v4076_v45 = vshll.u32 %v7887_v18, 16 }
  0xf1   : > { %1693 = vmatprep.subr.bf16.mxu1 %v6844_v55  ;;  %3958 = vmatprep.mubr.bf16.mxu0 %v7013_v2  ;;  %v6874_v55 = vld [vmem:[%s8682_s1 + $0x204] ss:$8 sps:$4 sm:$0xff]  }
  0xf2   : > { %4137 = vmatpush1.bf16.msra.mxu0 %v6830_v24  ;;  %v4051_v24 = vrot.slane %v4049_v51, 3  ;;  %v1603_v51 = vshrl.u32 %v7895_v19, 16 }
  0xf3   : > { %5641 = vmatmul.mubr.msk.bf16.gmra.mrb[8].mxu1 %vm304_vm0, %v1190_v56  ;;  %4138 = vmatprep.subr.bf16.mxu0 %v6839_v26  ;;  %v6862_v26 = vld [vmem:[%s8682_s1 + $0x500] ss:$8 sps:$4 sm:$0xff]   ;;  %v6871_v56 = vld [vmem:[%s8682_s1 + $0x514] ss:$8 sps:$4 sm:$0xff]  }
  0xf4   : > { %1317 = vmatprep.mubr.bf16.mxu1 %v7013_v2  ;;  %v4052_v7 = vor.u32 %v4051_v24, %v4048_v58 }
  0xf6   : > { %4139 = vmatpush1.bf16.msra.mxu0 %v6837_v25  ;;  %v4055_v25 = vshrl.u32 %v7845_v0, 16 }
  0xf7   : > { %4140 = vmatprep.subr.bf16.mxu0 %v6848_v61  ;;  %v4058_v61 = vshll.u32 %v7845_v0, 16 }
  0xf8   : > { %5947 = vmatmul.mubr.msk.bf16.gmra.mrb[4].mxu0 %vm304_vm0, %v3854_v20  ;;  %v6877_v20 = vld [vmem:[%s8682_s1 + $0x524] ss:$8 sps:$4 sm:$0xff]   ;;  %v4057_v0 = vrot.slane %v4055_v25, 2 }
  0xf9   : > { %3968 = vmatprep.mubr.bf16.mxu0 %v7013_v2  ;;  %v4060_v1 = vrot.slane %v4058_v61, 3  ;;  %v4239_v61 = vld [vmem:[%s7086_s16 + $0x14] sm:$0xc] }
  0xfa   : > { %4141 = vmatpush1.bf16.msra.mxu0 %v6846_v37  ;;  %v1413_v37 = vrot.slane %v7949_v53, 2 }
  0xfb   : > { %5642 = vmatmul.mubr.msk.bf16.gmra.mrb[12].mxu1 %vm304_vm0, %v1199_v15  ;;  %4142 = vmatprep.subr.bf16.mxu0 %v6856_v6  ;;  %v2184_v6 = vld [vmem:[%s7086_s16 + $0x8] sm:$0x8]  ;;  %v4053_v15 = vsel %vm1584_vm5, %v4043_v47, %v4052_v7  ;;  %v4061_v59 = vor.u32 %v4060_v1, %v4057_v0  ;;  %v1612_v0 = vshrl.u32 %v7919_v44, 16  ;;  %v1615_v1 = vshll.u32 %v7919_v44, 16 }
  0xfc   : > { %1327 = vmatprep.mubr.bf16.mxu1 %v7013_v2  ;;  %v1414_v62 = vsel %vm966_vm4, %v1411_v46, %v1413_v37  ;;  %v1606_v46 = vshll.u32 %v7895_v19, 16 }
  0xfe   : > { %4143 = vmatpush1.bf16.msra.mxu0 %v6854_v11  ;;  %v6875_v11 = vld [vmem:[%s8682_s1 + $0x520] ss:$8 sps:$4 sm:$0xff]  }
  0xff   : > { %4353 = vmatprep.subr.bf16.mxu0 %v6864_v63  ;;  %v7970_v63 = vld [vmem:[%s7086_s16 + $0x2c] ss:$0 sps:$4 sm:$0x11]  }
 0x100   : > { %5948 = vmatmul.mubr.msk.bf16.gmra.mrb[8].mxu0 %vm304_vm0, %v3856_v12  ;;  %v6992_v12 = vld [vmem:[%s7086_s16 + $0xc] sm:$0xf]  ;;  %v1415_v28 = vrot.slane %v7970_v63, 2 }
 0x101   : > { %3978 = vmatprep.mubr.bf16.mxu0 %v7013_v2  ;;  %v7976_v23 = vcombine.low %v2184_v6, %v6992_v12 }
 0x102   : > { %v1416_v42 = vsel %vm966_vm4, %v1413_v37, %v1415_v28  ;;  %v8044_v37 = vld [vmem:[%s7086_s16 + $0x20] sm:$0xf]  ;;  %v6895_v28 = vld [vmem:[%s8682_s1 + $0x234] ss:$8 sps:$4 sm:$0xff]  }
 0x103   : > { %5643 = vmatmul.mubr.msk.bf16.gmra.mrb[16].mxu1 %vm304_vm0, %v1198_v40  ;;  %v6869_v40 = vld [vmem:[%s8682_s1 + $0x510] ss:$8 sps:$4 sm:$0xff]   ;;  %v2232_v33 = vrot.slane %v7976_v23, 3 }
 0x104   : > { %1504 = vmatprep.mubr.bf16.mxu1 %v7013_v2 }
 0x108   : > { %5949 = vmatmul.mubr.msk.bf16.gmra.mrb[12].mxu0 %vm304_vm0, %v3858_v54  ;;  %v4064_v54 = vshrl.u32 %v7871_v14, 16 }
 0x109   : > { %3988 = vmatprep.mubr.bf16.mxu0 %v7013_v2 }
 0x10b   : > { %5666 = vmatmul.mubr.msk.bf16.vlgmr.msra.gmra.mrb[0].mxu1 %vm304_vm0, %v1408_v21  ;;  %v4067_v21 = vshll.u32 %v7871_v14, 16  ;;  %v1594_v14 = vshrl.u32 %v7877_v22, 16 }
 0x10c   : > { %1694 = vmatpush1.bf16.msra.mxu1 %v6842_v27  ;;  %1514 = vmatprep.mubr.bf16.mxu1 %v7013_v2  ;;  %v6881_v27 = vld [vmem:[%s8682_s1 + $0x530] ss:$8 sps:$4 sm:$0xff]  }
 0x10d   : > { %1695 = vmatprep.subr.bf16.mxu1 %v6853_v29  ;;  %v1586_v29 = vshrl.u32 %v7874_v38, 16  ;;  %v4069_v38 = vrot.slane %v4067_v21, 3  ;;  %v1596_v30 = vrot.slane %v1594_v14, 2  ;;  %v1617_v21 = vrot.slane %v1615_v1, 3 }
 0x10f   : > { %v1588_v36 = vrot.slane %v1586_v29, 2 }
 0x110   : > { %1696 = vmatpush1.bf16.msra.mxu1 %v6851_v10  ;;  %5950 = vmatmul.mubr.msk.bf16.gmra.mrb[16].mxu0 %vm304_vm0, %v3860_v16  ;;  %v4062_v10 = vsel %vm1584_vm5, %v4052_v7, %v4061_v59  ;;  %v4066_v16 = vrot.slane %v4064_v54, 2  ;;  %v6880_v7 = vld [vmem:[%s8682_s1 + $0x214] ss:$8 sps:$4 sm:$0xff]   ;;  %v1614_v54 = vrot.slane %v1612_v0, 2 }
 0x111   : > { %1697 = vmatprep.subr.bf16.mxu1 %v6860_v9  ;;  %4168 = vmatprep.mubr.bf16.mxu0 %v7013_v2  ;;  %v8000_v9 = vsel %vm1813_vm6, %v2232_v33, %v2233_v34  ;;  %v1592_v47 = vor.u32 %v1591_v3, %v1588_v36  ;;  %v8083_v33 = vld [vmem:[%s7086_s16 + $0x28] sm:$0xf]  ;;  %v6903_v36 = vld [vmem:[%s8682_s1 + $0x244] ss:$8 sps:$4 sm:$0xff]  }
 0x113   : > { %5667 = vmatmul.mubr.msk.bf16.gmra.mrb[4].mxu1 %vm304_vm0, %v1410_v35  ;;  %v1599_v35 = vrot.slane %v1597_v32, 3 }
 0x114   : > { %1524 = vmatprep.mubr.bf16.mxu1 %v7013_v2  ;;  %1698 = vmatpush1.bf16.msra.mxu1 %v6858_v43  ;;  %v4070_v43 = vor.u32 %v4069_v38, %v4066_v16  ;;  %v1624_v16 = vshll.u32 %v7949_v53, 16  ;;  %v6893_v38 = vld [vmem:[%s8682_s1 + $0x230] ss:$8 sps:$4 sm:$0xff]  }
 0x115   : > { %1699 = vmatprep.subr.bf16.mxu1 %v6867_v60  ;;  %v4073_v60 = vshrl.u32 %v7887_v18, 16  ;;  %v1600_v50 = vor.u32 %v1599_v35, %v1596_v30  ;;  %v4078_v18 = vrot.slane %v4076_v45, 3  ;;  %v6890_v30 = vld [vmem:[%s8682_s1 + $0x540] ss:$8 sps:$4 sm:$0xff]   ;;  %v6899_v35 = vld [vmem:[%s8682_s1 + $0x554] ss:$8 sps:$4 sm:$0xff]  }
 0x116   : > { %v1626_v45 = vrot.slane %v1624_v16, 3 }
 0x117   : > { %v1601_v24 = vsel %vm1584_vm5, %v1592_v47, %v1600_v50  ;;  %v2411_v47 = vshrl.u32 %v7976_v23, 16 }
 0x118   : > { %1700 = vmatpush1.bf16.msra.mxu1 %v6865_v17  ;;  %5967 = vmatmul.mubr.msk.bf16.vlgmr.msra.gmra.mrb[0].mxu0 %vm304_vm0, %v4044_v13  ;;  %v2235_v17 = vrot.slane %v7158_v52, 3  ;;  %v4075_v13 = vrot.slane %v4073_v60, 2 }
 0x119   : > { %1880 = vmatprep.subr.bf16.mxu1 %v6874_v55  ;;  %4178 = vmatprep.mubr.bf16.mxu0 %v7013_v2  ;;  %v4071_v55 = vsel %vm1584_vm5, %v4061_v59, %v4070_v43 }
 0x11a   : > { %4354 = vmatpush1.bf16.msra.mxu0 %v6862_v26  ;;  %v8020_v58 = vsel %vm1813_vm6, %v2233_v34, %v2235_v17  ;;  %v6872_v26 = vld [vmem:[%s8682_s1 + $0x200] ss:$8 sps:$4 sm:$0xff]   ;;  %v4079_v25 = vor.u32 %v4078_v18, %v4075_v13  ;;  %v1618_v34 = vor.u32 %v1617_v21, %v1614_v54  ;;  %v6897_v18 = vld [vmem:[%s8682_s1 + $0x550] ss:$8 sps:$4 sm:$0xff]  }
 0x11b   : > { %5668 = vmatmul.mubr.msk.bf16.gmra.mrb[8].mxu1 %vm304_vm0, %v1412_v57  ;;  %4355 = vmatprep.subr.bf16.mxu0 %v6871_v56  ;;  %v1605_v56 = vrot.slane %v1603_v51, 2  ;;  %v1608_v57 = vrot.slane %v1606_v46, 3 }
 0x11c   : > { %1534 = vmatprep.mubr.bf16.mxu1 %v7013_v2 }
 0x11d   : > { %v1609_v6 = vor.u32 %v1608_v57, %v1605_v56  ;;  %v2422_v56 = vshll.u32 %v7151_v48, 16 }
 0x11e   : > { %4356 = vmatpush1.bf16.msra.mxu0 %v6869_v40  ;;  %v8038_v40 = vld [vmem:[%s7086_s16 + $0x18] sm:$0xf] }
 0x11f   : > { %4357 = vmatprep.subr.bf16.mxu0 %v6877_v20  ;;  %v8041_v20 = vld [vmem:[%s7086_s16 + $0x1c] sm:$0xf]  ;;  %v8057_v12 = vcombine.low %v4239_v61, %v8038_v40  ;;  %v1610_v59 = vsel %vm1584_vm5, %v1600_v50, %v1609_v6  ;;  %v2414_v50 = vshll.u32 %v7976_v23, 16  ;;  %v6907_v23 = vld [vmem:[%s8682_s1 + $0x564] ss:$8 sps:$4 sm:$0xff]  }
 0x120   : > { %5968 = vmatmul.mubr.msk.bf16.gmra.mrb[4].mxu0 %vm304_vm0, %v4053_v15  ;;  %v6878_v15 = vld [vmem:[%s8682_s1 + $0x210] ss:$8 sps:$4 sm:$0xff]  }
 0x121   : > { %4188 = vmatprep.mubr.bf16.mxu0 %v7013_v2  ;;  %v4287_v29 = vrot.slane %v8057_v12, 2 }
 0x122   : > { %4358 = vmatpush1.bf16.msra.mxu0 %v6875_v11  ;;  %v6888_v11 = vld [vmem:[%s8682_s1 + $0x224] ss:$8 sps:$4 sm:$0xff]  }
 0x123   : > { %5669 = vmatmul.mubr.msk.bf16.gmra.mrb[12].mxu1 %vm304_vm0, %v1414_v62  ;;  %4359 = vmatprep.subr.bf16.mxu0 %v6883_v5  ;;  %v4080_v5 = vsel %vm1584_vm5, %v4070_v43, %v4079_v25  ;;  %v8061_v62 = vcombine.low %v8041_v20, %v8044_v37  ;;  %v1619_v43 = vsel %vm1584_vm5, %v1609_v6, %v1618_v34  ;;  %v1633_v25 = vshll.u32 %v7970_v63, 16 }
 0x124   : > { %1544 = vmatprep.mubr.bf16.mxu1 %v7013_v2 }
 0x125   : > { %v4288_v49 = vrot.slane %v8061_v62, 2 }
 0x126   : > { %4360 = vmatpush1.bf16.msra.mxu0 %v6881_v27  ;;  %v6886_v27 = vld [vmem:[%s8682_s1 + $0x220] ss:$8 sps:$4 sm:$0xff]  }
 0x127   : > { %4573 = vmatprep.subr.bf16.mxu0 %v6892_v39  ;;  %v8080_v39 = vld [vmem:[%s7086_s16 + $0x24] sm:$0xf]  ;;  %v4289_v3 = vsel %vm966_vm4, %v4287_v29, %v4288_v49  ;;  %v6912_v29 = vld [vmem:[%s8682_s1 + $0x570] ss:$8 sps:$4 sm:$0xff]  }
 0x128   : > { %5969 = vmatmul.mubr.msk.bf16.gmra.mrb[8].mxu0 %vm304_vm0, %v4062_v10  ;;  %v1621_v10 = vshrl.u32 %v7949_v53, 16 }
 0x129   : > { %4198 = vmatprep.mubr.bf16.mxu0 %v7013_v2 }
 0x12a   : > { %v1623_v60 = vrot.slane %v1621_v10, 2 }
 0x12b   : > { %5670 = vmatmul.mubr.msk.bf16.gmra.mrb[16].mxu1 %vm304_vm0, %v1416_v42  ;;  %v8097_v42 = vcombine.low %v8080_v39, %v8083_v33 }
 0x12c   : > { %1725 = vmatprep.mubr.bf16.mxu1 %v7013_v2  ;;  %v1627_v57 = vor.u32 %v1626_v45, %v1623_v60 }
 0x12d   : > { %v4290_v13 = vrot.slane %v8097_v42, 2 }
 0x12e   : > { %v1628_v54 = vsel %vm1584_vm5, %v1618_v34, %v1627_v57  ;;  %v6920_v34 = vld [vmem:[%s8682_s1 + $0x584] ss:$8 sps:$4 sm:$0xff]  }
 0x12f   : > { %v4291_v61 = vsel %vm966_vm4, %v4288_v49, %v4290_v13  ;;  %v8153_v49 = vld [vmem:[%s7086_s16 + $0x34] sm:$0xf] }
 0x130   : > { %5970 = vmatmul.mubr.msk.bf16.gmra.mrb[12].mxu0 %vm304_vm0, %v4071_v55  ;;  %v2419_v55 = vshrl.u32 %v7151_v48, 16  ;;  %v2413_v48 = vrot.slane %v2411_v47, 3 }
 0x131   : > { %4208 = vmatprep.mubr.bf16.mxu0 %v7013_v2 }
 0x133   : > { %5687 = vmatmul.mubr.msk.bf16.vlgmr.msra.gmra.mrb[0].mxu1 %vm304_vm0, %v1601_v24  ;;  %v8121_v24 = vld [vmem:[%s7086_s16 + $0x2c] sm:$0xf] }
 0x134   : > { %1881 = vmatpush1.bf16.msra.mxu1 %v6872_v26  ;;  %1735 = vmatprep.mubr.bf16.mxu1 %v7013_v2  ;;  %v8124_v26 = vld [vmem:[%s7086_s16 + $0x30] sm:$0xf] }
 0x135   : > { %1882 = vmatprep.subr.bf16.mxu1 %v6880_v7  ;;  %v1630_v7 = vshrl.u32 %v7970_v63, 16  ;;  %v8136_v6 = vcombine.low %v8121_v24, %v8124_v26  ;;  %v6914_v63 = vld [vmem:[%s8682_s1 + $0x574] ss:$8 sps:$4 sm:$0xff]  }
 0x137   : > { %v1632_v21 = vrot.slane %v1630_v7, 2 }
 0x138   : > { %1883 = vmatpush1.bf16.msra.mxu1 %v6878_v15  ;;  %5971 = vmatmul.mubr.msk.bf16.gmra.mrb[16].mxu0 %vm304_vm0, %v4080_v5  ;;  %v6905_v15 = vld [vmem:[%s8682_s1 + $0x560] ss:$8 sps:$4 sm:$0xff]   ;;  %v2421_v5 = vrot.slane %v2419_v55, 3 }
 0x139   : > { %1884 = vmatprep.subr.bf16.mxu1 %v6888_v11  ;;  %4385 = vmatprep.mubr.bf16.mxu0 %v7013_v2  ;;  %v2416_v11 = vrot.slane %v2414_v50, 4 }
 0x13b   : > { %5688 = vmatmul.mubr.msk.bf16.gmra.mrb[4].mxu1 %vm304_vm0, %v1610_v59  ;;  %v2424_v59 = vrot.slane %v2422_v56, 4  ;;  %v2431_v56 = vshll.u32 %v7158_v52, 16 }
 0x13c   : > { %1745 = vmatprep.mubr.bf16.mxu1 %v7013_v2  ;;  %1885 = vmatpush1.bf16.msra.mxu1 %v6886_v27  ;;  %v1635_v27 = vrot.slane %v1633_v25, 3 }
 0x13d   : > { %1886 = vmatprep.subr.bf16.mxu1 %v6895_v28  ;;  %v4292_v28 = vrot.slane %v8136_v6, 2  ;;  %v2433_v25 = vrot.slane %v2431_v56, 4  ;;  %v4483_v56 = vshrl.u32 %v8097_v42, 16 }
 0x140   : > { %1887 = vmatpush1.bf16.msra.mxu1 %v6893_v38  ;;  %5994 = vmatmul.mubr.msk.bf16.vlgmr.msra.gmra.mrb[0].mxu0 %vm304_vm0, %v4289_v3  ;;  %v8156_v38 = vld [vmem:[%s7086_s16 + $0x38] sm:$0xf]  ;;  %v2417_v3 = vor.u32 %v2416_v11, %v2413_v48 }
 0x141   : > { %2081 = vmatprep.subr.bf16.mxu1 %v6903_v36  ;;  %4395 = vmatprep.mubr.bf16.mxu0 %v7013_v2  ;;  %v1636_v36 = vor.u32 %v1635_v27, %v1632_v21  ;;  %v8166_v60 = vcombine.low %v8153_v49, %v8156_v38  ;;  %v4477_v21 = vshll.u32 %v8061_v62, 16 }
 0x142   : > { %4574 = vmatpush1.bf16.msra.mxu0 %v6890_v30  ;;  %v2425_v30 = vor.u32 %v2424_v59, %v2421_v5  ;;  %v6911_v5 = vld [vmem:[%s8682_s1 + $0x254] ss:$8 sps:$4 sm:$0xff]   ;;  %v4469_v59 = vshll.u32 %v8057_v12, 16 }
 0x143   : > { %5689 = vmatmul.mubr.msk.bf16.gmra.mrb[8].mxu1 %vm304_vm0, %v1619_v43  ;;  %4575 = vmatprep.subr.bf16.mxu0 %v6899_v35  ;;  %v1796_v35 = vld [vmem:[%s7086_s16 + $0x4] sm:$0x8]  ;;  %v4293_v43 = vsel %vm966_vm4, %v4290_v13, %v4292_v28  ;;  %v1637_v47 = vsel %vm1584_vm5, %v1627_v57, %v1636_v36  ;;  %v4294_v55 = vrot.slane %v8166_v60, 2 }
 0x144   : > { %1755 = vmatprep.mubr.bf16.mxu1 %v7013_v2  ;;  %v8169_v45 = vsel %vm1992_vm7, %v2417_v3, %v2425_v30  ;;  %v8173_v50 = vcombine.low %v1796_v35, %v7867_v41  ;;  %v8185_v41 = vld [vmem:[%s7086_s16 + $0x3c] ss:$0 sps:$4 sm:$0x11]   ;;  %v4471_v3 = vrot.slane %v4469_v59, 3  ;;  %v4479_v35 = vrot.slane %v4477_v21, 3 }
 0x145   : > { %v4295_v57 = vsel %vm966_vm4, %v4292_v28, %v4294_v55  ;;  %v4296_v11 = vrot.slane %v8185_v41, 2  ;;  %v1817_v28 = vrot.slane %v7895_v19, 3  ;;  %v6934_v19 = vld [vmem:[%s8682_s1 + $0x290] ss:$8 sps:$4 sm:$0xff]  }
 0x146   : > { %4576 = vmatpush1.bf16.msra.mxu0 %v6897_v18  ;;  %v1814_v13 = vrot.slane %v8173_v50, 3  ;;  %v1815_v18 = vrot.slane %v7877_v22, 3 }
 0x147   : > { %4577 = vmatprep.subr.bf16.mxu0 %v6907_v23  ;;  %v2428_v23 = vshrl.u32 %v7158_v52, 16  ;;  %v6978_v52 = vld [vmem:[%s8682_s1 + $0x610] ss:$8 sps:$4 sm:$0xff]  }
 0x148   : > { %5995 = vmatmul.mubr.msk.bf16.gmra.mrb[4].mxu0 %vm304_vm0, %v4291_v61  ;;  %v1816_v61 = vsel %vm1813_vm6, %v1814_v13, %v1815_v18 }
 0x149   : > { %4405 = vmatprep.mubr.bf16.mxu0 %v7013_v2  ;;  %v2430_v7 = vrot.slane %v2428_v23, 3 }
 0x14a   : > { %4578 = vmatpush1.bf16.msra.mxu0 %v6905_v15  ;;  %v6901_v15 = vld [vmem:[%s8682_s1 + $0x240] ss:$8 sps:$4 sm:$0xff]  }
 0x14b   : > { %5690 = vmatmul.mubr.msk.bf16.gmra.mrb[12].mxu1 %vm304_vm0, %v1628_v54  ;;  %4579 = vmatprep.subr.bf16.mxu0 %v6914_v63  ;;  %v8192_v48 = vor.u32 %v2433_v25, %v2430_v7  ;;  %v4466_v63 = vshrl.u32 %v8057_v12, 16  ;;  %v4474_v54 = vshrl.u32 %v8061_v62, 16  ;;  %v4297_v12 = vsel %vm966_vm4, %v4294_v55, %v4296_v11  ;;  %v6923_v55 = vld [vmem:[%s8682_s1 + $0x274] ss:$8 sps:$4 sm:$0xff]   ;;  %v6921_v7 = vld [vmem:[%s8682_s1 + $0x270] ss:$8 sps:$4 sm:$0xff]  }
 0x14c   : > { %1765 = vmatprep.mubr.bf16.mxu1 %v7013_v2  ;;  %v6930_v25 = vld [vmem:[%s8682_s1 + $0x284] ss:$8 sps:$4 sm:$0xff]   ;;  %vm5390_vm4 = vcmask 1041408  }
 0x14d   : > { %v8206_v27 = vsel %vm1992_vm7, %v2425_v30, %v8192_v48  ;;  %v4468_v36 = vrot.slane %v4466_v63, 2  ;;  %v4476_v30 = vrot.slane %v4474_v54, 2  ;;  %v6927_v63 = vld [vmem:[%s8682_s1 + $0x594] ss:$8 sps:$4 sm:$0xff]  }
 0x14e   : > { %4580 = vmatpush1.bf16.msra.mxu0 %v6912_v29  ;;  %v6909_v29 = vld [vmem:[%s8682_s1 + $0x250] ss:$8 sps:$4 sm:$0xff]  }
 0x14f   : > { %4759 = vmatprep.subr.bf16.mxu0 %v6920_v34  ;;  %v6917_v34 = vld [vmem:[%s8682_s1 + $0x264] ss:$8 sps:$4 sm:$0xff]   ;;  %v4472_v13 = vor.u32 %v4471_v3, %v4468_v36  ;;  %v4480_v23 = vor.u32 %v4479_v35, %v4476_v30  ;;  %v6925_v36 = vld [vmem:[%s8682_s1 + $0x590] ss:$8 sps:$4 sm:$0xff]   ;;  %v1821_v3 = vrot.slane %v7949_v53, 3 }
 0x150   : > { %5996 = vmatmul.mubr.msk.bf16.gmra.mrb[8].mxu0 %vm304_vm0, %v4293_v43  ;;  %v1818_v43 = vsel %vm1813_vm6, %v1815_v18, %v1817_v28  ;;  %v4486_v18 = vshll.u32 %v8097_v42, 16  ;;  %v6958_v53 = vld [vmem:[%s8682_s1 + $0x5e4] ss:$8 sps:$4 sm:$0xff]  }
 0x151   : > { %4415 = vmatprep.mubr.bf16.mxu0 %v7013_v2 }
 0x152   : > { %v4488_v11 = vrot.slane %v4486_v18, 3 }
 0x153   : > { %5691 = vmatmul.mubr.msk.bf16.gmra.mrb[16].mxu1 %vm304_vm0, %v1637_v47  ;;  %v6915_v47 = vld [vmem:[%s8682_s1 + $0x260] ss:$8 sps:$4 sm:$0xff]  }
 0x154   : > { %1912 = vmatprep.mubr.bf16.mxu1 %v7013_v2 }
 0x158   : > { %5997 = vmatmul.mubr.msk.bf16.gmra.mrb[12].mxu0 %vm304_vm0, %v4295_v57  ;;  %v1819_v57 = vrot.slane %v7919_v44, 3 }
 0x159   : > { %4425 = vmatprep.mubr.bf16.mxu0 %v7013_v2 }
 0x15a   : > { %v1820_v59 = vsel %vm1813_vm6, %v1817_v28, %v1819_v57  ;;  %v6933_v28 = vld [vmem:[%s8682_s1 + $0x5a4] ss:$8 sps:$4 sm:$0xff]  }
 0x15b   : > { %5710 = vmatmul.mubr.msk.bf16.vlgmr.msra.gmra.mrb[0].mxu1 %vm304_vm0, %v1816_v61  ;;  %v4481_v61 = vsel %vm1584_vm5, %v4472_v13, %v4480_v23  ;;  %v6939_v13 = vld [vmem:[%s8682_s1 + $0x5b4] ss:$8 sps:$4 sm:$0xff]  }
 0x15c   : > { %2082 = vmatpush1.bf16.msra.mxu1 %v6901_v15  ;;  %1922 = vmatprep.mubr.bf16.mxu1 %v7013_v2  ;;  %v4485_v15 = vrot.slane %v4483_v56, 2 }
 0x15d   : > { %2083 = vmatprep.subr.bf16.mxu1 %v6911_v5  ;;  %v6918_v5 = vld [vmem:[%s8682_s1 + $0x580] ss:$8 sps:$4 sm:$0xff]  }
 0x160   : > { %2084 = vmatpush1.bf16.msra.mxu1 %v6909_v29  ;;  %5998 = vmatmul.mubr.msk.bf16.gmra.mrb[16].mxu0 %vm304_vm0, %v4297_v12  ;;  %v4489_v29 = vor.u32 %v4488_v11, %v4485_v15  ;;  %v4492_v12 = vshrl.u32 %v8136_v6, 16  ;;  %v6937_v15 = vld [vmem:[%s8682_s1 + $0x5b0] ss:$8 sps:$4 sm:$0xff]  }
 0x161   : > { %2085 = vmatprep.subr.bf16.mxu1 %v6917_v34  ;;  %4605 = vmatprep.mubr.bf16.mxu0 %v7013_v2  ;;  %v4495_v34 = vshll.u32 %v8136_v6, 16 }
 0x162   : > { %v4490_v30 = vsel %vm1584_vm5, %v4480_v23, %v4489_v29  ;;  %v4494_v35 = vrot.slane %v4492_v12, 2  ;;  %v1822_v23 = vsel %vm1813_vm6, %v1819_v57, %v1821_v3  ;;  %v6946_v57 = vld [vmem:[%s8682_s1 + $0x5c4] ss:$8 sps:$4 sm:$0xff]  }
 0x163   : > { %5711 = vmatmul.mubr.msk.bf16.gmra.mrb[4].mxu1 %vm304_vm0, %v1818_v43  ;;  %v4497_v43 = vrot.slane %v4495_v34, 3 }
 0x164   : > { %1932 = vmatprep.mubr.bf16.mxu1 %v7013_v2  ;;  %2086 = vmatpush1.bf16.msra.mxu1 %v6915_v47  ;;  %v6931_v47 = vld [vmem:[%s8682_s1 + $0x5a0] ss:$8 sps:$4 sm:$0xff]  }
 0x165   : > { %2087 = vmatprep.subr.bf16.mxu1 %v6923_v55  ;;  %v8276_v55 = vld [vmem:[%s7086_s16 + $0x2c] ss:$0 sps:$4 sm:$0x33]  }
 0x166   : > { %v1823_v11 = vrot.slane %v8276_v55, 3 }
 0x168   : > { %2088 = vmatpush1.bf16.msra.mxu1 %v6921_v7  ;;  %6015 = vmatmul.mubr.msk.bf16.vlgmr.msra.gmra.mrb[0].mxu0 %vm304_vm0, %v4481_v61  ;;  %v4498_v7 = vor.u32 %v4497_v43, %v4494_v35  ;;  %v4504_v61 = vshll.u32 %v8166_v60, 16 }
 0x169   : > { %2298 = vmatprep.subr.bf16.mxu1 %v6930_v25  ;;  %4615 = vmatprep.mubr.bf16.mxu0 %v7013_v2  ;;  %v4501_v25 = vshrl.u32 %v8166_v60, 16 }
 0x16a   : > { %4760 = vmatpush1.bf16.msra.mxu0 %v6918_v5  ;;  %v1994_v5 = vshrl.u32 %v8173_v50, 16 }
 0x16b   : > { %5712 = vmatmul.mubr.msk.bf16.gmra.mrb[8].mxu1 %vm304_vm0, %v1820_v59  ;;  %4761 = vmatprep.subr.bf16.mxu0 %v6927_v63  ;;  %v1997_v63 = vshll.u32 %v8173_v50, 16  ;;  %v4499_v59 = vsel %vm1584_vm5, %v4489_v29, %v4498_v7  ;;  %v2002_v50 = vrot.slane %v1597_v32, 4 }
 0x16c   : > { %1942 = vmatprep.mubr.bf16.mxu1 %v7013_v2  ;;  %v1996_v35 = vrot.slane %v1994_v5, 3  ;;  %v2006_v5 = vrot.slane %v1606_v46, 4 }
 0x16d   : > { %v1999_v43 = vrot.slane %v1997_v63, 4 }
 0x16e   : > { %4762 = vmatpush1.bf16.msra.mxu0 %v6925_v36  ;;  %v4503_v36 = vrot.slane %v4501_v25, 2 }
 0x16f   : > { %4763 = vmatprep.subr.bf16.mxu0 %v6933_v28  ;;  %v4506_v28 = vrot.slane %v4504_v61, 3 }
 0x170   : > { %6016 = vmatmul.mubr.msk.bf16.gmra.mrb[4].mxu0 %vm304_vm0, %v4490_v30  ;;  %v1824_v30 = vsel %vm1813_vm6, %v1821_v3, %v1823_v11  ;;  %v2000_v3 = vor.u32 %v1999_v43, %v1996_v35  ;;  %v2009_v35 = vrot.slane %v1612_v0, 3  ;;  %v2010_v43 = vrot.slane %v1615_v1, 4  ;;  %v6947_v1 = vld [vmem:[%s8682_s1 + $0x2b0] ss:$8 sps:$4 sm:$0xff]  }
 0x171   : > { %4625 = vmatprep.mubr.bf16.mxu0 %v7013_v2  ;;  %v4507_v29 = vor.u32 %v4506_v28, %v4503_v36  ;;  %v4694_v0 = vrot.slane %v8061_v62, 3 }
 0x172   : > { %4764 = vmatpush1.bf16.msra.mxu0 %v6931_v47  ;;  %v2001_v47 = vrot.slane %v1594_v14, 3  ;;  %v2011_v44 = vor.u32 %v2010_v43, %v2009_v35 }
 0x173   : > { %5713 = vmatmul.mubr.msk.bf16.gmra.mrb[12].mxu1 %vm304_vm0, %v1822_v23  ;;  %4765 = vmatprep.subr.bf16.mxu0 %v6939_v13  ;;  %v4510_v13 = vshrl.u32 %v8185_v41, 16  ;;  %v4513_v23 = vshll.u32 %v8185_v41, 16  ;;  %v4508_v14 = vsel %vm1584_vm5, %v4498_v7, %v4507_v29  ;;  %v2005_v41 = vrot.slane %v1603_v51, 3  ;;  %v6936_v7 = vld [vmem:[%s8682_s1 + $0x294] ss:$8 sps:$4 sm:$0xff]  }
 0x174   : > { %1952 = vmatprep.mubr.bf16.mxu1 %v7013_v2  ;;  %v6943_v51 = vld [vmem:[%s8682_s1 + $0x2a4] ss:$8 sps:$4 sm:$0xff]  }
 0x175   : > { %v4512_v22 = vrot.slane %v4510_v13, 2  ;;  %v4515_v32 = vrot.slane %v4513_v23, 3  ;;  %v2007_v36 = vor.u32 %v2006_v5, %v2005_v41  ;;  %v6955_v13 = vld [vmem:[%s8682_s1 + $0x2c4] ss:$8 sps:$4 sm:$0xff]   ;;  %v2021_v41 = vshll.u32 %v8276_v55, 16 }
 0x176   : > { %4766 = vmatpush1.bf16.msra.mxu0 %v6937_v15  ;;  %v2003_v15 = vor.u32 %v2002_v50, %v2001_v47  ;;  %v6941_v47 = vld [vmem:[%s8682_s1 + $0x2a0] ss:$8 sps:$4 sm:$0xff]   ;;  %v6949_v50 = vld [vmem:[%s8682_s1 + $0x2b4] ss:$8 sps:$4 sm:$0xff]  }
 0x177   : > { %4959 = vmatprep.subr.bf16.mxu0 %v6946_v57  ;;  %v6928_v57 = vld [vmem:[%s8682_s1 + $0x280] ss:$8 sps:$4 sm:$0xff]   ;;  %v4516_v63 = vor.u32 %v4515_v32, %v4512_v22  ;;  %v2013_v22 = vrot.slane %v1621_v10, 3  ;;  %v2014_v32 = vrot.slane %v1624_v16, 4  ;;  %v2018_v16 = vshrl.u32 %v8276_v55, 16 }
 0x178   : > { %6017 = vmatmul.mubr.msk.bf16.gmra.mrb[8].mxu0 %vm304_vm0, %v4499_v59  ;;  %v2004_v11 = vsel %vm1992_vm7, %v2000_v3, %v2003_v15  ;;  %v4676_v59 = vld [vmem:[%s7086_s16 + $0x14] sm:$0x8]  ;;  %v6944_v3 = vld [vmem:[%s8682_s1 + $0x5c0] ss:$8 sps:$4 sm:$0xff]   ;;  %v4698_v55 = vrot.slane %v8136_v6, 3 }
 0x179   : > { %4635 = vmatprep.mubr.bf16.mxu0 %v7013_v2  ;;  %v4517_v46 = vsel %vm1584_vm5, %v4507_v29, %v4516_v63  ;;  %v8338_v28 = vcombine.low %v4676_v59, %v8038_v40  ;;  %v2015_v10 = vor.u32 %v2014_v32, %v2013_v22  ;;  %v6965_v63 = vld [vmem:[%s8682_s1 + $0x5f4] ss:$8 sps:$4 sm:$0xff]   ;;  %vm5391_vm5 = vcmask 1045508  }
 0x17b   : > { %5714 = vmatmul.mubr.msk.bf16.gmra.mrb[16].mxu1 %vm304_vm0, %v1824_v30  ;;  %v2008_v30 = vsel %vm1992_vm7, %v2003_v15, %v2007_v36  ;;  %v4693_v29 = vrot.slane %v8338_v28, 3  ;;  %v6952_v15 = vld [vmem:[%s8682_s1 + $0x5d4] ss:$8 sps:$4 sm:$0xff]   ;;  %v2016_v59 = vsel %vm1992_vm7, %v2011_v44, %v2015_v10 }
 0x17c   : > { %2113 = vmatprep.mubr.bf16.mxu1 %v7013_v2 }
 0x17d   : > { %v4695_v23 = vsel %vm1813_vm6, %v4693_v29, %v4694_v0 }
 0x180   : > { %6018 = vmatmul.mubr.msk.bf16.gmra.mrb[12].mxu0 %vm304_vm0, %v4508_v14  ;;  %v2012_v14 = vsel %vm1992_vm7, %v2007_v36, %v2011_v44  ;;  %v2020_v36 = vrot.slane %v2018_v16, 3  ;;  %v6976_v16 = vld [vmem:[%s8682_s1 + $0x2f4] ss:$8 sps:$4 sm:$0xff]  }
 0x181   : > { %4645 = vmatprep.mubr.bf16.mxu0 %v7013_v2 }
 0x183   : > { %5731 = vmatmul.mubr.msk.bf16.vlgmr.msra.gmra.mrb[0].mxu1 %vm304_vm0, %v2004_v11  ;;  %v4696_v11 = vrot.slane %v8097_v42, 3  ;;  %v6997_v42 = vld [vmem:[%s8682_s1 + $0x304] ss:$8 sps:$4 sm:$0xff]  }
 0x184   : > { %2299 = vmatpush1.bf16.msra.mxu1 %v6928_v57  ;;  %2123 = vmatprep.mubr.bf16.mxu1 %v7013_v2  ;;  %v6950_v57 = vld [vmem:[%s8682_s1 + $0x5d0] ss:$8 sps:$4 sm:$0xff]  }
 0x185   : > { %2300 = vmatprep.subr.bf16.mxu1 %v6936_v7  ;;  %v4697_v5 = vsel %vm1813_vm6, %v4694_v0, %v4696_v11  ;;  %v6956_v7 = vld [vmem:[%s8682_s1 + $0x5e0] ss:$8 sps:$4 sm:$0xff]   ;;  %v4699_v35 = vsel %vm1813_vm6, %v4696_v11, %v4698_v55 }
 0x186   : > { %v6953_v0 = vld [vmem:[%s8682_s1 + $0x2c0] ss:$8 sps:$4 sm:$0xff]  }
 0x187   : > { %v6993_v11 = vld [vmem:[%s7086_s16 + $0x20] sm:$0xf] }
 0x188   : > { %2301 = vmatpush1.bf16.msra.mxu1 %v6934_v19  ;;  %6019 = vmatmul.mubr.msk.bf16.gmra.mrb[16].mxu0 %vm304_vm0, %v4517_v46  ;;  %v2023_v19 = vrot.slane %v2021_v41, 4  ;;  %v6973_v46 = vld [vmem:[%s8682_s1 + $0x604] ss:$8 sps:$4 sm:$0xff]   ;;  %v6974_v41 = vld [vmem:[%s8682_s1 + $0x2f0] ss:$8 sps:$4 sm:$0xff]  }
 0x189   : > { %2302 = vmatprep.subr.bf16.mxu1 %v6943_v51  ;;  %4791 = vmatprep.mubr.bf16.mxu0 %v7013_v2  ;;  %v6963_v51 = vld [vmem:[%s8682_s1 + $0x5f0] ss:$8 sps:$4 sm:$0xff]  }
 0x18b   : > { %5732 = vmatmul.mubr.msk.bf16.gmra.mrb[4].mxu1 %vm304_vm0, %v2008_v30  ;;  %v2024_v30 = vor.u32 %v2023_v19, %v2020_v36  ;;  %v6995_v19 = vld [vmem:[%s7086_s16 + $0x28] sm:$0xf] }
 0x18c   : > { %2133 = vmatprep.mubr.bf16.mxu1 %v7013_v2  ;;  %2303 = vmatpush1.bf16.msra.mxu1 %v6941_v47  ;;  %v4700_v47 = vrot.slane %v8166_v60, 3 }
 0x18d   : > { %2304 = vmatprep.subr.bf16.mxu1 %v6949_v50  ;;  %v2025_v43 = vsel %vm1992_vm7, %v2015_v10, %v2024_v30  ;;  %v8415_v50 = vld [vmem:[%s7086_s16 + $0x3c] ss:$0 sps:$4 sm:$0x33]   ;;  %v6967_v10 = vld [vmem:[%s8682_s1 + $0x2e0] ss:$8 sps:$4 sm:$0xff]   ;;  %v4887_v30 = vrot.slane %v4492_v12, 3 }
 0x18e   : > { %v4701_v29 = vsel %vm1813_vm6, %v4698_v55, %v4700_v47  ;;  %v4702_v44 = vrot.slane %v8415_v50, 3  ;;  %v6996_v55 = vld [vmem:[%s7086_s16 + $0x2c] sm:$0xf]  ;;  %v6984_v12 = vld [vmem:[%s8682_s1 + $0x630] ss:$8 sps:$4 sm:$0xff]  }
 0x190   : > { %2305 = vmatpush1.bf16.msra.mxu1 %v6947_v1  ;;  %6038 = vmatmul.mubr.msk.bf16.vlgmr.msra.gmra.mrb[0].mxu0 %vm304_vm0, %v4695_v23  ;;  %v6962_v1 = vld [vmem:[%s8682_s1 + $0x2d4] ss:$8 sps:$4 sm:$0xff]   ;;  %v4875_v23 = vshll.u32 %v8338_v28, 16 }
 0x191   : > { %2518 = vmatprep.subr.bf16.mxu1 %v6955_v13  ;;  %4801 = vmatprep.mubr.bf16.mxu0 %v7013_v2  ;;  %v4872_v13 = vshrl.u32 %v8338_v28, 16  ;;  %v4879_v28 = vrot.slane %v4474_v54, 3 }
 0x192   : > { %4960 = vmatpush1.bf16.msra.mxu0 %v6944_v3  ;;  %v6960_v3 = vld [vmem:[%s8682_s1 + $0x2d0] ss:$8 sps:$4 sm:$0xff]   ;;  %v4877_v32 = vrot.slane %v4875_v23, 4 }
 0x193   : > { %5733 = vmatmul.mubr.msk.bf16.gmra.mrb[8].mxu1 %vm304_vm0, %v2012_v14  ;;  %4961 = vmatprep.subr.bf16.mxu0 %v6952_v15  ;;  %v4703_v15 = vsel %vm1813_vm6, %v4700_v47, %v4702_v44  ;;  %v6969_v14 = vld [vmem:[%s8682_s1 + $0x2e4] ss:$8 sps:$4 sm:$0xff]   ;;  %v4874_v22 = vrot.slane %v4872_v13, 3  ;;  %v6986_v47 = vld [vmem:[%s8682_s1 + $0x634] ss:$8 sps:$4 sm:$0xff]   ;;  %v4892_v13 = vrot.slane %v4504_v61, 4 }
 0x194   : > { %2143 = vmatprep.mubr.bf16.mxu1 %v7013_v2 }
 0x195   : > { %v4878_v62 = vor.u32 %v4877_v32, %v4874_v22 }
 0x196   : > { %4962 = vmatpush1.bf16.msra.mxu0 %v6950_v57  ;;  %v6994_v57 = vld [vmem:[%s7086_s16 + $0x24] sm:$0xf] }
 0x197   : > { %4963 = vmatprep.subr.bf16.mxu0 %v6958_v53  ;;  %v8445_v53 = vcombine.low %v6993_v11, %v6994_v57 }
 0x198   : > { %6039 = vmatmul.mubr.msk.bf16.gmra.mrb[4].mxu0 %vm304_vm0, %v4697_v5 }
 0x199   : > { %4811 = vmatprep.mubr.bf16.mxu0 %v7013_v2  ;;  %v2437_v32 = vshrl.u32 %v8445_v53, 16 }
 0x19a   : > { %4964 = vmatpush1.bf16.msra.mxu0 %v6956_v7  ;;  %v4883_v7 = vrot.slane %v4483_v56, 3 }
 0x19b   : > { %5734 = vmatmul.mubr.msk.bf16.gmra.mrb[12].mxu1 %vm304_vm0, %v2016_v59  ;;  %4965 = vmatprep.subr.bf16.mxu0 %v6965_v63  ;;  %v4884_v63 = vrot.slane %v4486_v18, 4  ;;  %v6980_v59 = vld [vmem:[%s8682_s1 + $0x614] ss:$8 sps:$4 sm:$0xff]   ;;  %v2439_v57 = vrot.slane %v2437_v32, 3 }
 0x19c   : > { %2153 = vmatprep.mubr.bf16.mxu1 %v7013_v2 }
 0x19d   : > { %v4885_v56 = vor.u32 %v4884_v63, %v4883_v7 }
 0x19e   : > { %4966 = vmatpush1.bf16.msra.mxu0 %v6963_v51  ;;  %v8478_v51 = vcombine.low %v6995_v19, %v6996_v55 }
 0x19f   : > { %5134 = vmatprep.subr.bf16.mxu0 %v6973_v46 }
 0x1a0   : > { %6040 = vmatmul.mubr.msk.bf16.gmra.mrb[8].mxu0 %vm304_vm0, %v4699_v35  ;;  %v2239_v18 = vrot.slane %v8478_v51, 3  ;;  %v4888_v35 = vrot.slane %v4495_v34, 4 }
 0x1a1   : > { %4821 = vmatprep.mubr.bf16.mxu0 %v7013_v2 }
 0x1a2   : > { %v4889_v6 = vor.u32 %v4888_v35, %v4887_v30 }
 0x1a3   : > { %5735 = vmatmul.mubr.msk.bf16.gmra.mrb[16].mxu1 %vm304_vm0, %v2025_v43  ;;  %v6981_v43 = vld [vmem:[%s8682_s1 + $0x620] ss:$8 sps:$4 sm:$0xff]  }
 0x1a4   : > { %2330 = vmatprep.mubr.bf16.mxu1 %v7013_v2  ;;  %v4890_v44 = vsel %vm1992_vm7, %v4885_v56, %v4889_v6 }
 0x1a8   : > { %6041 = vmatmul.mubr.msk.bf16.gmra.mrb[12].mxu0 %vm304_vm0, %v4701_v29 }
 0x1a9   : > { %4831 = vmatprep.mubr.bf16.mxu0 %v7013_v2 }
 0x1ab   : > { %5758 = vmatmul.mubr.msk.bf16.vlgmr.msra.gmra.mrb[0].mxu1 %vm304_vm0, %v8000_v9  ;;  %v4880_v9 = vrot.slane %v4477_v21, 4  ;;  %v2237_v21 = vrot.slane %v8445_v53, 3 }
 0x1ac   : > { %2519 = vmatpush1.bf16.msra.mxu1 %v6953_v0  ;;  %2340 = vmatprep.mubr.bf16.mxu1 %v7013_v2  ;;  %v8507_v0 = vld [vmem:[%s7086_s16 + $0x30] ss:$0 sps:$4 sm:$0x33]  }
 0x1ad   : > { %2520 = vmatprep.subr.bf16.mxu1 %v6962_v1  ;;  %v4881_v54 = vor.u32 %v4880_v9, %v4879_v28  ;;  %v2238_v36 = vsel %vm1813_vm6, %v2235_v17, %v2237_v21  ;;  %v6983_v17 = vld [vmem:[%s8682_s1 + $0x624] ss:$8 sps:$4 sm:$0xff]   ;;  %v2240_v29 = vsel %vm1813_vm6, %v2237_v21, %v2239_v18  ;;  %v2241_v34 = vrot.slane %v8507_v0, 3  ;;  %v6999_v9 = vld [vmem:[%s8682_s1 + $0x314] ss:$8 sps:$4 sm:$0xff]  }
 0x1ae   : > { %v4891_v1 = vrot.slane %v4501_v25, 3  ;;  %v2440_v28 = vshll.u32 %v8445_v53, 16  ;;  %v7001_v53 = vld [vmem:[%s8682_s1 + $0x324] ss:$8 sps:$4 sm:$0xff]   ;;  %v2449_v21 = vshll.u32 %v8478_v51, 16 }
 0x1af   : > { %v4882_v5 = vsel %vm1992_vm7, %v4878_v62, %v4881_v54  ;;  %v4886_v46 = vsel %vm1992_vm7, %v4881_v54, %v4885_v56  ;;  %v2242_v23 = vsel %vm1813_vm6, %v2239_v18, %v2241_v34  ;;  %v7002_v62 = vld [vmem:[%s8682_s1 + $0x320] ss:$8 sps:$4 sm:$0xff]   ;;  %v2446_v54 = vshrl.u32 %v8478_v51, 16  ;;  %vm8652_vm6 = vmor %vm5390_vm4, %vm5391_vm5 }
 0x1b0   : > { %2521 = vmatpush1.bf16.msra.mxu1 %v6960_v3  ;;  %6042 = vmatmul.mubr.msk.bf16.gmra.mrb[16].mxu0 %vm304_vm0, %v4703_v15  ;;  %v4893_v3 = vor.u32 %v4892_v13, %v4891_v1  ;;  %v4896_v15 = vshrl.u32 %v8415_v50, 16  ;;  %v2451_v63 = vrot.slane %v2449_v21, 4 }
 0x1b1   : > { %2522 = vmatprep.subr.bf16.mxu1 %v6969_v14  ;;  %4991 = vmatprep.mubr.bf16.mxu0 %v7013_v2  ;;  %v4899_v14 = vshll.u32 %v8415_v50, 16  ;;  %v6998_v50 = vld [vmem:[%s8682_s1 + $0x300] ss:$8 sps:$4 sm:$0xff]   ;;  %v2448_v7 = vrot.slane %v2446_v54, 3 }
 0x1b2   : > { %v4894_v25 = vsel %vm1992_vm7, %v4889_v6, %v4893_v3  ;;  %v4898_v60 = vrot.slane %v4896_v15, 3 }
 0x1b3   : > { %5759 = vmatmul.mubr.msk.bf16.gmra.mrb[4].mxu1 %vm304_vm0, %v8020_v58  ;;  %v6971_v58 = vld [vmem:[%s8682_s1 + $0x600] ss:$8 sps:$4 sm:$0xff]   ;;  %v4901_v61 = vrot.slane %v4899_v14, 4 }
 0x1b4   : > { %2350 = vmatprep.mubr.bf16.mxu1 %v7013_v2  ;;  %2523 = vmatpush1.bf16.msra.mxu1 %v6967_v10  ;;  %v2442_v10 = vrot.slane %v2440_v28, 4 }
 0x1b5   : > { %2524 = vmatprep.subr.bf16.mxu1 %v6976_v16  ;;  %v4902_v22 = vor.u32 %v4901_v61, %v4898_v60  ;;  %v5311_v61 = vld [vmem:[%s8617_s29] sm:$0xff] }
 0x1b6   : > { %v2443_v16 = vor.u32 %v2442_v10, %v2439_v57 }
 0x1b7   : > { %v4903_v11 = vsel %vm1992_vm7, %v4893_v3, %v4902_v22 }
 0x1b8   : > { %2525 = vmatpush1.bf16.msra.mxu1 %v6974_v41  ;;  %6059 = vmatmul.mubr.msk.bf16.vlgmr.msra.gmra.mrb[0].mxu0 %vm304_vm0, %v4882_v5  ;;  %v6072_v41 = vcombine.low %v8038_v40, %v8041_v20  ;;  %v7003_v5 = vld [vmem:[%s8682_s1 + $0x334] ss:$8 sps:$4 sm:$0xff]   ;;  %v2452_v40 = vor.u32 %v2451_v63, %v2448_v7  ;;  %v2455_v20 = vshrl.u32 %v8507_v0, 16 }
 0x1b9   : > { %6128 = vmatprep.subr.bf16.mxu1 %v6997_v42  ;;  %5001 = vmatprep.mubr.bf16.mxu0 %v7013_v2  ;;  %v6074_v42 = vcombine.low %v8083_v33, %v8121_v24 }
 0x1ba   : > { %5135 = vmatpush1.bf16.msra.mxu0 %v6971_v58  ;;  %v7004_v58 = vld [vmem:[%s8682_s1 + $0x330] ss:$8 sps:$4 sm:$0xff]   ;;  %v2457_v19 = vrot.slane %v2455_v20, 3 }
 0x1bb   : > { %5760 = vmatmul.mubr.msk.bf16.gmra.mrb[8].mxu1 %vm304_vm0, %v2238_v36  ;;  %5136 = vmatprep.subr.bf16.mxu0 %v6980_v59  ;;  %v6073_v59 = vcombine.low %v8044_v37, %v8080_v39  ;;  %v2453_v36 = vsel %vm1992_vm7, %v2443_v16, %v2452_v40  ;;  %v6075_v37 = vcombine.low %v8124_v26, %v8153_v49  ;;  %v5062_v39 = vld [vmem:[%s7086_s16 + $0x3c] sm:$0x7]  ;;  %v5239_v49 = vlaneseq }
 0x1bc   : > { %2360 = vmatprep.mubr.bf16.mxu1 %v7013_v2  ;;  %v6076_v33 = vcombine.low %v8156_v38, %v5062_v39 }
 0x1be   : > { %5137 = vmatpush1.bf16.msra.mxu0 %v6978_v52 }
 0x1bf   : > { %5138 = vmatprep.subr.bf16.mxu0 %v6983_v17  ;;  %v5240_v17 = vshrl.u32 %v5239_v49, 7 }
 0x1c0   : > { %6060 = vmatmul.mubr.msk.bf16.gmra.mrb[4].mxu0 %vm304_vm0, %v4886_v46 }
 0x1c1   : > { %5011 = vmatprep.mubr.bf16.mxu0 %v7013_v2  ;;  %v5241_v38 = vsub.s32 0, %v5240_v17  ;;  %v5245_v35 = vsub.s32 1, %v5240_v17  ;;  %v6097_v17 = vld [vmem:[%s8617_s29 + $0x10] sm:$0xff] }
 0x1c2   : > { %5139 = vmatpush1.bf16.msra.mxu0 %v6981_v43 }
 0x1c3   : > { %5761 = vmatmul.mubr.msk.bf16.gmra.mrb[12].mxu1 %vm304_vm0, %v2240_v29  ;;  %5140 = vmatprep.subr.bf16.mxu0 %v6986_v47 }
 0x1c4   : > { %2370 = vmatprep.mubr.bf16.mxu1 %v7013_v2 }
 0x1c6   : > { %5141 = vmatpush1.bf16.msra.mxu0 %v6984_v12 }
 0x1c8   : > { %6061 = vmatmul.mubr.msk.bf16.gmra.mrb[8].mxu0 %vm304_vm0, %v4890_v44 }
 0x1c9   : > { %5021 = vmatprep.mubr.bf16.mxu0 %v7013_v2 }
 0x1cb   : > { %5762 = vmatmul.mubr.msk.bf16.gmra.mrb[16].mxu1 %vm304_vm0, %v2242_v23 }
 0x1cc   : > { %2550 = vmatprep.mubr.bf16.mxu1 %v7013_v2 }
 0x1d0   : > { %6062 = vmatmul.mubr.msk.bf16.gmra.mrb[12].mxu0 %vm304_vm0, %v4894_v25 }
 0x1d1   : > { %5031 = vmatprep.mubr.bf16.mxu0 %v7013_v2 }
 0x1d3   : > { %5779 = vmatmul.mubr.msk.bf16.vlgmr.msra.gmra.mrb[0].mxu1 %vm304_vm0, %v8169_v45  ;;  %v7000_v45 = vld [vmem:[%s8682_s1 + $0x310] ss:$8 sps:$4 sm:$0xff]  }
 0x1d4   : > { %6132 = vmatpush1.bf16.msra.mxu1 %v6998_v50  ;;  %2560 = vmatprep.mubr.bf16.mxu1 %v7013_v2 }
 0x1d5   : > { %6129 = vmatprep.subr.bf16.mxu1 %v6999_v9 }
 0x1d8   : > { %6133 = vmatpush1.bf16.msra.mxu1 %v7000_v45  ;;  %6063 = vmatmul.mubr.msk.bf16.gmra.mrb[16].mxu0 %vm304_vm0, %v4903_v11 }
 0x1d9   : > { %6130 = vmatprep.subr.bf16.mxu1 %v7001_v53  ;;  %5166 = vmatprep.mubr.bf16.mxu0 %v7013_v2 }
 0x1db   : > { %5780 = vmatmul.mubr.msk.bf16.gmra.mrb[4].mxu1 %vm304_vm0, %v8206_v27  ;;  %v2444_v27 = vsel %vm1992_vm7, %v8192_v48, %v2443_v16  ;;  %v2458_v48 = vshll.u32 %v8507_v0, 16 }
 0x1dc   : > { %2570 = vmatprep.mubr.bf16.mxu1 %v7013_v2  ;;  %6134 = vmatpush1.bf16.msra.mxu1 %v7002_v62 }
 0x1dd   : > { %6131 = vmatprep.subr.bf16.mxu1 %v7003_v5  ;;  %v2460_v55 = vrot.slane %v2458_v48, 4 }
 0x1df   : > { %v2461_v51 = vor.u32 %v2460_v55, %v2457_v19 }
 0x1e0   : > { %6135 = vmatpush1.bf16.msra.mxu1 %v7004_v58  ;;  %6085 = vmatmul.mubr.msk.bf16.vlgmr.msra.gmra.mrb[0].mxu0 %vm304_vm0, %v6072_v41 }
 0x1e1   : > { %5176 = vmatprep.mubr.bf16.mxu0 %v7013_v2  ;;  %v2462_v56 = vsel %vm1992_vm7, %v2452_v40, %v2461_v51  ;;  %vm5405_vm7 = vsmask.f32 256 }
 0x1e2   : > { %vm5407_vm10 = vmor %vm5405_vm7, %vm5406_vm8 }
 0x1e3   : > { %5781 = vmatmul.mubr.msk.bf16.gmra.mrb[8].mxu1 %vm304_vm0, %v2444_v27 }
 0x1e4   : > { %2580 = vmatprep.mubr.bf16.mxu1 %v7013_v2 }
 0x1e8   : > { %6086 = vmatmul.mubr.msk.bf16.gmra.mrb[4].mxu0 %vm304_vm0, %v6073_v59 }
 0x1e9   : > { %5186 = vmatprep.mubr.bf16.mxu0 %v7013_v2 }
 0x1eb   : > { %5782 = vmatmul.mubr.msk.bf16.gmra.mrb[12].mxu1 %vm304_vm0, %v2453_v36 }
 0x1ec   : > { %2590 = vmatprep.mubr.bf16.mxu1 %v7013_v2 }
 0x1f0   : > { %6087 = vmatmul.mubr.msk.bf16.gmra.mrb[8].mxu0 %vm304_vm0, %v6074_v42 }
 0x1f1   : > { %5196 = vmatprep.mubr.bf16.mxu0 %v7013_v2 }
 0x1f3   : > { %5783 = vmatmul.mubr.msk.bf16.gmra.mrb[16].mxu1 %vm304_vm0, %v2462_v56 }
 0x1f4   : > { %2745 = vmatprep.mubr.bf16.mxu1 %v7013_v2 }
 0x1f8   : > { %6088 = vmatmul.mubr.msk.bf16.gmra.mrb[12].mxu0 %vm304_vm0, %v6075_v37 }
 0x1f9   : > { %5206 = vmatprep.mubr.bf16.mxu0 %v7013_v2 }
 0x1fb   : > { %5807 = vmatmul.mubr.msk.bf16.vlgmr.msra.gmra.mrb[8].mxu1 %vm304_vm0, %v7191_v4 }
 0x1fc   : > { %2755 = vmatprep.mubr.bf16.mxu1 %v7013_v2 }
 0x200   : > { %6089 = vmatmul.mubr.msk.bf16.gmra.mrb[16].mxu0 %vm304_vm0, %v6076_v33 }
 0x203   : > { %5808 = vmatmul.mubr.msk.bf16.gmra.mrb[12].mxu1 %vm304_vm0, %v7235_v31  ;;  %v5237_v31 = vld [vmem:[%s8683_s2] sm:$0x3] }
 0x204   : > { %2765 = vmatprep.mubr.bf16.mxu1 %v7013_v2  ;;  %v8608_v43 = vrot.slane %v5237_v31, %v5241_v38  ;;  %v8611_v47 = vrot.slane %v5237_v31, %v5245_v35  ;;  %v6093_v38 = vld [vmem:[%s8617_s29 + $0x8] sm:$0xff] }
 0x20b   : > { %5809 = vmatmul.mubr.msk.bf16.gmra.mrb[16].mxu1 %vm304_vm0, %v7287_v8  ;;  %vm5352_vm0 = vcmask 1044484  }
 0x20c   : > { %vm5353_vm2 = vmor %vm5351_vm15, %vm5352_vm0 }
 0x2a6   : > { %v2552_v24 = vpop.f32.mrb[0].mxu1 }
 0x2a7   : > { %v2554_v26 = vpop.f32.mrb[1].mxu1 }
 0x2a8   : > { %v2556_v52 = vpop.f32.mrb[2].mxu1 }
 0x2a9   : > { %v2558_v4 = vpop.f32.mrb[3].mxu1 }
 0x2ae   : > { %v2562_v18 = vpop.f32.mrb[4].mxu1 }
 0x2af   : > { %v2564_v46 = vpop.f32.mrb[5].mxu1 }
 0x2b0   : > { %v2566_v30 = vpop.f32.mrb[6].mxu1 }
 0x2b1   : > { %v2568_v2 = vpop.f32.mrb[7].mxu1 }
 0x2b3   : > { %v5168_v8 = vpop.f32.mrb[0].mxu0 }
 0x2b4   : > { %v6136_v29 = vadd.f32 %v5168_v8, %v2552_v24  ;;  %v5170_v0 = vpop.f32.mrb[1].mxu0 }
 0x2b5   : > { %v6137_v6 = vadd.f32 %v5170_v0, %v2554_v26  ;;  %v5172_v12 = vpop.f32.mrb[2].mxu0 }
 0x2b6   : > { %v5249_v34 = vadd.f32 %v6136_v29, %v8608_v43  ;;  %v6138_v44 = vadd.f32 %v5172_v12, %v2556_v52  ;;  %v5174_v1 = vpop.f32.mrb[3].mxu0 }
 0x2b7   : > { %v5250_v13 = vadd.f32 %v6137_v6, %v8611_v47  ;;  %v6139_v23 = vadd.f32 %v5174_v1, %v2558_v4 }
 0x2b8   : > { %v5269_v3 = vmax.f32 %v5249_v34, 0.0  ;;  %v5251_v15 = vadd.f32 %v6138_v44, %v8608_v43 }
 0x2b9   : > { %v5270_v14 = vmax.f32 %v5250_v13, 0.0  ;;  %v5252_v25 = vadd.f32 %v6139_v23, %v8611_v47 }
 0x2ba   : > { %v5271_v22 = vmax.f32 %v5251_v15, 0.0 }
 0x2bb   : > { %v6118_v50 = vpack.c.bf16 %v5270_v14, %v5269_v3  ;;  %v5272_v32 = vmax.f32 %v5252_v25, 0.0  ;;  %v5178_v28 = vpop.f32.mrb[4].mxu0 }
 0x2bc   : > { %v6140_v9 = vadd.f32 %v5178_v28, %v2562_v18  ;;  %v5180_v11 = vpop.f32.mrb[5].mxu0 }
 0x2bd   : > { %v5312_v45 = vsel %vm8623_vm13, %v6118_v50, %v5311_v61  ;;  %v6119_v57 = vpack.c.bf16 %v5272_v32, %v5271_v22  ;;  %v6141_v10 = vadd.f32 %v5180_v11, %v2564_v46  ;;  %v5182_v53 = vpop.f32.mrb[6].mxu0 }
 0x2be   : > { %5313 = vst [vmem:[%s8617_s29] sm:$0xff] %v5312_v45  ;;  %v5253_v16 = vadd.f32 %v6140_v9, %v8608_v43  ;;  %v6142_v62 = vadd.f32 %v5182_v53, %v2566_v30  ;;  %v5184_v54 = vpop.f32.mrb[7].mxu0 }
 0x2bf   : > { %v5326_v21 = vshrl.u32 %v6119_v57, 16  ;;  %v5329_v41 = vshll.u32 %v6119_v57, 16  ;;  %v5254_v5 = vadd.f32 %v6141_v10, %v8611_v47  ;;  %v6143_v27 = vadd.f32 %v5184_v54, %v2568_v2 }
 0x2c0   : > { %v5273_v7 = vmax.f32 %v5253_v16, 0.0  ;;  %v5255_v63 = vadd.f32 %v6142_v62, %v8608_v43 }
 0x2c1   : > { %v5328_v58 = vrot.slane %v5326_v21, 5  ;;  %v5331_v40 = vrot.slane %v5329_v41, 6  ;;  %v5274_v20 = vmax.f32 %v5254_v5, 0.0  ;;  %v5256_v48 = vadd.f32 %v6143_v27, %v8611_v47 }
 0x2c2   : > { %v5275_v59 = vmax.f32 %v5255_v63, 0.0 }
 0x2c3   : > { %v6120_v36 = vpack.c.bf16 %v5274_v20, %v5273_v7  ;;  %v5276_v19 = vmax.f32 %v5256_v48, 0.0  ;;  %v5188_v55 = vpop.f32.mrb[8].mxu0  ;;  %v5332_v42 = vor.u32 %v5331_v40, %v5328_v58 }
 0x2c4   : > { %v5190_v51 = vpop.f32.mrb[9].mxu0 }
 0x2c5   : > { %v5335_v56 = vshrl.u32 %v6120_v36, 16  ;;  %v5338_v37 = vshll.u32 %v6120_v36, 16  ;;  %v5192_v39 = vpop.f32.mrb[10].mxu0  ;;  %v6121_v33 = vpack.c.bf16 %v5276_v19, %v5275_v59  ;;  %v6096_v52 = vrot.slane %v6120_v36, 11 }
 0x2c6   : > { %v5194_v24 = vpop.f32.mrb[11].mxu0  ;;  %v5333_v18 = vrot.slane %v5332_v42, 4 }
 0x2c7   : > { %v5337_v26 = vrot.slane %v5335_v56, 5  ;;  %v5340_v49 = vrot.slane %v5338_v37, 6  ;;  %v5356_v4 = vrot.slane %v6121_v33, 7  ;;  %v6100_v56 = vld [vmem:[%s8617_s29 + $0x18] sm:$0xff] }
 0x2c9   : > { %v5341_v46 = vor.u32 %v5340_v49, %v5337_v26  ;;  %v5357_v30 = vsel %vm5353_vm2, %v6096_v52, %v5356_v4 }
 0x2ca   : > { %v5361_v35 = vsel %vm8623_vm13, %v5357_v30, %v6097_v17  ;;  %v6105_v30 = vld [vmem:[%s8617_s29 + $0x20] sm:$0xff] }
 0x2cb   : > { %v5342_v31 = vsel %vm5324_vm3, %v5333_v18, %v5341_v46  ;;  %v5198_v2 = vpop.f32.mrb[12].mxu0  ;;  %6098 = vst [vmem:[%s8617_s29 + $0x10] sm:$0xff] %v5361_v35 }
 0x2cc   : > { %v5346_v8 = vsel %vm8623_vm13, %v5342_v31, %v6093_v38  ;;  %v5200_v29 = vpop.f32.mrb[13].mxu0 }
 0x2cd   : > { %6094 = vst [vmem:[%s8617_s29 + $0x8] sm:$0xff] %v5346_v8  ;;  %v5202_v6 = vpop.f32.mrb[14].mxu0 }
 0x2ce   : > { %v2747_v0 = vpop.f32.mrb[8].mxu1  ;;  %v5204_v44 = vpop.f32.mrb[15].mxu0 }
 0x2cf   : > { %v6144_v12 = vadd.f32 %v5188_v55, %v2747_v0  ;;  %v2749_v34 = vpop.f32.mrb[9].mxu1 }
 0x2d0   : > { %v6145_v1 = vadd.f32 %v5190_v51, %v2749_v34  ;;  %v2751_v13 = vpop.f32.mrb[10].mxu1 }
 0x2d1   : > { %v5257_v23 = vadd.f32 %v6144_v12, %v8608_v43  ;;  %v6146_v3 = vadd.f32 %v5192_v39, %v2751_v13  ;;  %v2753_v15 = vpop.f32.mrb[11].mxu1 }
 0x2d2   : > { %v5258_v14 = vadd.f32 %v6145_v1, %v8611_v47  ;;  %v6147_v25 = vadd.f32 %v5194_v24, %v2753_v15 }
 0x2d3   : > { %v5277_v61 = vmax.f32 %v5257_v23, 0.0  ;;  %v5259_v22 = vadd.f32 %v6146_v3, %v8608_v43  ;;  %v5208_v28 = vpop.f32.mrb[16].mxu0 }
 0x2d4   : > { %v5278_v50 = vmax.f32 %v5258_v14, 0.0  ;;  %v5260_v32 = vadd.f32 %v6147_v25, %v8611_v47  ;;  %v5210_v11 = vpop.f32.mrb[17].mxu0 }
 0x2d5   : > { %v5279_v9 = vmax.f32 %v5259_v22, 0.0  ;;  %v5212_v53 = vpop.f32.mrb[18].mxu0 }
 0x2d6   : > { %v6122_v45 = vpack.c.bf16 %v5278_v50, %v5277_v61  ;;  %v5280_v57 = vmax.f32 %v5260_v32, 0.0  ;;  %v2757_v10 = vpop.f32.mrb[12].mxu1  ;;  %v5214_v54 = vpop.f32.mrb[19].mxu0 }
 0x2d7   : > { %v6148_v16 = vadd.f32 %v5198_v2, %v2757_v10  ;;  %v2759_v62 = vpop.f32.mrb[13].mxu1 }
 0x2d8   : > { %v5369_v21 = vshrl.u32 %v6122_v45, 16  ;;  %v5372_v41 = vshll.u32 %v6122_v45, 16  ;;  %v6123_v5 = vpack.c.bf16 %v5280_v57, %v5279_v9  ;;  %v6149_v27 = vadd.f32 %v5200_v29, %v2759_v62  ;;  %v2761_v7 = vpop.f32.mrb[14].mxu1 }
 0x2d9   : > { %v5261_v63 = vadd.f32 %v6148_v16, %v8608_v43  ;;  %v6150_v58 = vadd.f32 %v5202_v6, %v2761_v7  ;;  %v2763_v40 = vpop.f32.mrb[15].mxu1 }
 0x2da   : > { %v5371_v20 = vrot.slane %v5369_v21, 4  ;;  %v5374_v48 = vrot.slane %v5372_v41, 5  ;;  %v5262_v59 = vadd.f32 %v6149_v27, %v8611_v47  ;;  %v6151_v55 = vadd.f32 %v5204_v44, %v2763_v40 }
 0x2db   : > { %v5281_v36 = vmax.f32 %v5261_v63, 0.0  ;;  %v5263_v19 = vadd.f32 %v6150_v58, %v8608_v43  ;;  %v6104_v46 = vrot.slane %v6123_v5, 10 }
 0x2dc   : > { %v5375_v51 = vor.u32 %v5374_v48, %v5371_v20  ;;  %v5282_v42 = vmax.f32 %v5262_v59, 0.0  ;;  %v5264_v39 = vadd.f32 %v6151_v55, %v8611_v47 }
 0x2dd   : > { %v5283_v37 = vmax.f32 %v5263_v19, 0.0 }
 0x2de   : > { %v5376_v33 = vrot.slane %v5375_v51, 4  ;;  %v6124_v24 = vpack.c.bf16 %v5282_v42, %v5281_v36  ;;  %v2767_v26 = vpop.f32.mrb[16].mxu1  ;;  %v5284_v52 = vmax.f32 %v5264_v39, 0.0 }
 0x2df   : > { %v6152_v4 = vadd.f32 %v5208_v28, %v2767_v26  ;;  %v2769_v17 = vpop.f32.mrb[17].mxu1 }
 0x2e0   : > { %v5380_v18 = vsel %vm8623_vm13, %v5376_v33, %v6100_v56  ;;  %v5395_v38 = vrot.slane %v6124_v24, 6  ;;  %v6153_v31 = vadd.f32 %v5210_v11, %v2769_v17  ;;  %v2771_v35 = vpop.f32.mrb[18].mxu1  ;;  %v6125_v2 = vpack.c.bf16 %v5284_v52, %v5283_v37  ;;  %v6109_v11 = vld [vmem:[%s8617_s29 + $0x28] sm:$0xff] }
 0x2e1   : > { %6101 = vst [vmem:[%s8617_s29 + $0x18] sm:$0xff] %v5380_v18  ;;  %v5265_v8 = vadd.f32 %v6152_v4, %v8608_v43  ;;  %v6154_v29 = vadd.f32 %v5212_v53, %v2771_v35  ;;  %v2773_v0 = vpop.f32.mrb[19].mxu1  ;;  %v5409_v1 = vshrl.u32 %v6124_v24, 16  ;;  %v6114_v53 = vld [vmem:[%s8617_s29 + $0x30] sm:$0xff] }
 0x2e2   : > { %v5396_v6 = vsel %vm8652_vm6, %v6104_v46, %v5395_v38  ;;  %v5266_v12 = vadd.f32 %v6153_v31, %v8611_v47  ;;  %v6155_v34 = vadd.f32 %v5214_v54, %v2773_v0  ;;  %v5414_v13 = vshrl.u32 %v6125_v2, 16 }
 0x2e3   : > { %v5400_v44 = vsel %vm8623_vm13, %v5396_v6, %v6105_v30  ;;  %v5285_v23 = vmax.f32 %v5265_v8, 0.0  ;;  %v5267_v15 = vadd.f32 %v6154_v29, %v8608_v43  ;;  %v5417_v61 = vshll.u32 %v6125_v2, 16 }
 0x2e4   : > { %6106 = vst [vmem:[%s8617_s29 + $0x20] sm:$0xff] %v5400_v44  ;;  %v5286_v3 = vmax.f32 %v5266_v12, 0.0  ;;  %v5268_v14 = vadd.f32 %v6155_v34, %v8611_v47  ;;  %v5416_v25 = vrot.slane %v5414_v13, 7  ;;  %v6108_v28 = vrot.slane %v5409_v1, 11 }
 0x2e5   : > { %v5287_v50 = vmax.f32 %v5267_v15, 0.0 }
 0x2e6   : > { %v6126_v22 = vpack.c.bf16 %v5286_v3, %v5285_v23  ;;  %v5288_v32 = vmax.f32 %v5268_v14, 0.0  ;;  %v5419_v9 = vor.u32 %v5417_v61, %v5416_v25 }
 0x2e8   : > { %v6127_v45 = vpack.c.bf16 %v5288_v32, %v5287_v50  ;;  %v5420_v57 = vsel %vm5407_vm10, %v6108_v28, %v5419_v9  ;;  %v6113_v47 = vrot.slane %v6126_v22, 9 }
 0x2e9   : > { %v5424_v43 = vsel %vm8623_vm13, %v5420_v57, %v6109_v11 }
 0x2ea   : > { %v5439_v10 = vrot.slane %v6127_v45, 5  ;;  %6110 = vst [vmem:[%s8617_s29 + $0x28] sm:$0xff] %v5424_v43 }
 0x2ec   : > { %v5440_v16 = vsel %vm5436_vm12, %v6113_v47, %v5439_v10 }
 0x2ed   : > { %v5444_v62 = vsel %vm8623_vm13, %v5440_v16, %v6114_v53 }
 0x2ee   : > { %6115 = vst [vmem:[%s8617_s29 + $0x30] sm:$0xff] %v5444_v62 }
 0x2ef PF: > { %s13_s12 = sadd.s32 1, %s7011_s12  }
 0x2f0   : > { %p10_p4 = scmp.ge.s32.totalorder %s13_s12, 6  }
 0x2f2   :  { %12 = sbr.rel (!%p10_p4) target bundleno = 1 (0x1), region = 92 }

// kernel: mrnet_forward.8
= control target key start
LH: loop header
LB: loop body
LE: loop exit
PB: predicated region body
PF: predicated region fallthrough
CT: control target
= control target key end

     0   :  { %s4862_s12 = smov 0   ;;  %s6182_s0 = inlined_call_operand.vmem [shape: bf16[4,30,192], index: 0, kind: input, shape index: {}]   ;;  %s6183_s1 = inlined_call_operand.vmem [shape: bf16[9,192,384], index: 1, kind: input, shape index: {}]   ;;  %s6184_s2 = inlined_call_operand.vmem [shape: f32[1,384], index: 2, kind: input, shape index: {}]   ;;  %s6185_s3 = inlined_call_operand.vmem [shape: bf16[4,3,3,384], index: 3, kind: output, shape index: {}]  }
   0x1 LB: > { %s3567_s13 = sadd.s32 4294967295, %s4838_s12   ;;  %p3571_p0 = scmp.ge.s32.totalorder %s4838_s12, 1  ;;  %s4838_s12 = sphi %s4862_s12, %s13_s12  }
   0x2   : > { %p137_p1 = scmp.lt.s32.totalorder %s4838_s12, 5 }
   0x4   : > { %p138_p2 = pnand %p3571_p0, %p137_p1 }
   0x5   : > { %v4377_v0 = vld [vmem:[%s6183_s1 + $0x124] ss:$12 sps:$4 sm:$0xff] (!%p138_p2)   ;;  %v4840_v1 = vmov (!%p138_p2), 0   ;;  %v4379_v2 = vld [vmem:[%s6183_s1 + $0x128] ss:$12 sps:$4 sm:$0xff] (!%p138_p2)   ;;  %p161_p3 = scmp.lt.s32.totalorder (!%p138_p2), %s3567_s13, 3 }
   0x6   : > { %141 = sbr.rel (%p138_p2) target bundleno = 674 (0x2a2), region = 32  ;;  %533 = vmatprep.subr.bf16.mxu1 (!%p138_p2), %v4840_v1  ;;  %490 = vmatprep.subr.bf16.mxu0 (!%p138_p2), %v4377_v0  ;;  %v4380_v3 = vld [vmem:[%s6183_s1 + $0x120] ss:$12 sps:$4 sm:$0xff] (!%p138_p2)   ;;  %v4381_v4 = vld [vmem:[%s6183_s1 + $0x13c] ss:$12 sps:$4 sm:$0xff] (!%p138_p2)   ;;  %vm486_vm0 = vcmask (!%p138_p2), 523264  }
   0x7   : > { %534 = vmatpush1.bf16.msra.mxu1 (!%p138_p2), %v4379_v2  ;;  %491 = vmatpush1.bf16.msra.mxu0 (!%p138_p2), %v4380_v3  ;;  %v4383_v5 = vld [vmem:[%s6183_s1 + $0x140] ss:$12 sps:$4 sm:$0xff] (!%p138_p2)   ;;  %v4384_v6 = vld [vmem:[%s6183_s1 + $0x138] ss:$12 sps:$4 sm:$0xff] (!%p138_p2)   ;;  %v4388_v9 = vld [vmem:[%s6183_s1 + $0x150] ss:$12 sps:$4 sm:$0xff] (!%p138_p2)  }
   0x8   : > { %535 = vmatprep.subr.bf16.mxu1 (!%p138_p2), %v4840_v1  ;;  %492 = vmatprep.subr.bf16.mxu0 (!%p138_p2), %v4381_v4  ;;  %v4385_v7 = vld [vmem:[%s6183_s1 + $0x154] ss:$12 sps:$4 sm:$0xff] (!%p138_p2)   ;;  %v4387_v8 = vld [vmem:[%s6183_s1 + $0x158] ss:$12 sps:$4 sm:$0xff] (!%p138_p2)   ;;  %v4391_v11 = vld [vmem:[%s6183_s1 + $0x170] ss:$12 sps:$4 sm:$0xff] (!%p138_p2)  }
   0x9   : > { %v4389_v10 = vld [vmem:[%s6183_s1 + $0x16c] ss:$12 sps:$4 sm:$0xff] (!%p138_p2)   ;;  %v4392_v12 = vld [vmem:[%s6183_s1 + $0x168] ss:$12 sps:$4 sm:$0xff] (!%p138_p2)   ;;  %v4393_v13 = vld [vmem:[%s6183_s1 + $0x184] ss:$12 sps:$4 sm:$0xff] (!%p138_p2)  }
   0xa   : > { %v4395_v14 = vld [vmem:[%s6183_s1 + $0x188] ss:$12 sps:$4 sm:$0xff] (!%p138_p2)   ;;  %v4396_v15 = vld [vmem:[%s6183_s1 + $0x180] ss:$12 sps:$4 sm:$0xff] (!%p138_p2)   ;;  %v4400_v18 = vld [vmem:[%s6183_s1 + $0x198] ss:$12 sps:$4 sm:$0xff] (!%p138_p2)  }
   0xb   : > { %536 = vmatpush1.bf16.msra.mxu1 (!%p138_p2), %v4383_v5  ;;  %493 = vmatpush1.bf16.msra.mxu0 (!%p138_p2), %v4384_v6  ;;  %v4397_v16 = vld [vmem:[%s6183_s1 + $0x19c] ss:$12 sps:$4 sm:$0xff] (!%p138_p2)   ;;  %v4399_v17 = vld [vmem:[%s6183_s1 + $0x1a0] ss:$12 sps:$4 sm:$0xff] (!%p138_p2)   ;;  %v4403_v20 = vld [vmem:[%s6183_s1 + $0x1b8] ss:$12 sps:$4 sm:$0xff] (!%p138_p2)  }
   0xc   : > { %537 = vmatprep.subr.bf16.mxu1 (!%p138_p2), %v4840_v1  ;;  %494 = vmatprep.subr.bf16.mxu0 (!%p138_p2), %v4385_v7  ;;  %v4401_v19 = vld [vmem:[%s6183_s1 + $0x1b4] ss:$12 sps:$4 sm:$0xff] (!%p138_p2)   ;;  %v4404_v21 = vld [vmem:[%s6183_s1 + $0x1b0] ss:$12 sps:$4 sm:$0xff] (!%p138_p2)   ;;  %v4405_v22 = vld [vmem:[%s6183_s1 + $0x1cc] ss:$12 sps:$4 sm:$0xff] (!%p138_p2)  }
   0xd   : > { %s6193_s13 = smov (!%p161_p3, %s3567_s13), 3  ;;  %v4407_v23 = vld [vmem:[%s6183_s1 + $0x1d0] ss:$12 sps:$4 sm:$0xff]   ;;  %v4408_v24 = vld [vmem:[%s6183_s1 + $0x1c8] ss:$12 sps:$4 sm:$0xff]   ;;  %vm918_vm1 = vcmask 1046528  }
   0xe   : > { %s4333_s27 = sshll.u32 %s6193_s13, 5  ;;  %v4409_v27 = vld [vmem:[%s6183_s1 + $0x1e4] ss:$12 sps:$4 sm:$0xff]   ;;  %v4411_v29 = vld [vmem:[%s6183_s1 + $0x1e8] ss:$12 sps:$4 sm:$0xff]   ;;  %vm1654_vm3 = vcmask 1044480  }
   0xf   : > { %538 = vmatpush1.bf16.msra.mxu1 %v4387_v8  ;;  %495 = vmatpush1.bf16.msra.mxu0 %v4388_v9  ;;  %s4953_s9 = scalar_lea.vmem %s6182_s0, %s4333_s27  ;;  %v4412_v32 = vld [vmem:[%s6183_s1 + $0x1e0] ss:$12 sps:$4 sm:$0xff]   ;;  %v4413_v33 = vld [vmem:[%s6183_s1 + $0x1fc] ss:$12 sps:$4 sm:$0xff]   ;;  %v4416_v38 = vld [vmem:[%s6183_s1 + $0x1f8] ss:$12 sps:$4 sm:$0xff]  }
  0x10   : > { %539 = vmatprep.subr.bf16.mxu1 %v4840_v1  ;;  %496 = vmatprep.subr.bf16.mxu0 %v4389_v10  ;;  %v172_v25 = vld [vmem:[%s4953_s9] sm:$0xff]  ;;  %v4964_v26 = vld [vmem:[%s4953_s9 + $0x8] sm:$0xff]  ;;  %v4420_v42 = vld [vmem:[%s6183_s1 + $0x210] ss:$12 sps:$4 sm:$0xff]   ;;  %vm1272_vm2 = vsmask.f32 5376 }
  0x11   : > { %v3624_v28 = vcombine.high %v172_v25, %v4964_v26  ;;  %v4981_v35 = vcombine.low %v172_v25, %v4964_v26  ;;  %v4415_v36 = vld [vmem:[%s6183_s1 + $0x200] ss:$12 sps:$4 sm:$0xff]   ;;  %v4419_v41 = vld [vmem:[%s6183_s1 + $0x218] ss:$12 sps:$4 sm:$0xff]   ;;  %v4423_v46 = vld [vmem:[%s6183_s1 + $0x230] ss:$12 sps:$4 sm:$0xff]  }
  0x12   : > { %v4417_v39 = vld [vmem:[%s6183_s1 + $0x214] ss:$12 sps:$4 sm:$0xff]   ;;  %v4421_v43 = vld [vmem:[%s6183_s1 + $0x22c] ss:$12 sps:$4 sm:$0xff]   ;;  %v4429_v48 = vld [vmem:[%s6183_s1 + $0x4] ss:$12 sps:$4 sm:$0xff]  }
  0x13   : > { %540 = vmatpush1.bf16.msra.mxu1 %v4391_v11  ;;  %497 = vmatpush1.bf16.msra.mxu0 %v4392_v12  ;;  %v287_v30 = vshrl.u32 %v3624_v28, 16  ;;  %v289_v31 = vshll.u32 %v3624_v28, 16  ;;  %v282_v40 = vshll.u32 %v4981_v35, 16  ;;  %v280_v44 = vshrl.u32 %v4981_v35, 16  ;;  %v4424_v47 = vld [vmem:[%s6183_s1 + $0x228] ss:$12 sps:$4 sm:$0xff]  }
  0x14   : > { %541 = vmatprep.subr.bf16.mxu1 %v4840_v1  ;;  %498 = vmatprep.subr.bf16.mxu0 %v4393_v13  ;;  %v4430_v50 = vld [vmem:[%s6183_s1 + $0x8] ss:$12 sps:$4 sm:$0xff]   ;;  %v4427_v51 = vld [vmem:[%s6183_s1] ss:$12 sps:$4 sm:$0xff]   ;;  %v4431_v54 = vld [vmem:[%s6183_s1 + $0x18] ss:$12 sps:$4 sm:$0xff]  }
  0x15   : > { %v291_v34 = vrot.slane %v289_v31, 1  ;;  %v284_v45 = vrot.slane %v282_v40, 1  ;;  %v4433_v52 = vld [vmem:[%s6183_s1 + $0x1c] ss:$12 sps:$4 sm:$0xff]   ;;  %v4434_v53 = vld [vmem:[%s6183_s1 + $0x20] ss:$12 sps:$4 sm:$0xff]  }
  0x16   : > { %v4437_v55 = vld [vmem:[%s6183_s1 + $0x34] ss:$12 sps:$4 sm:$0xff]   ;;  %v4438_v56 = vld [vmem:[%s6183_s1 + $0x38] ss:$12 sps:$4 sm:$0xff]   ;;  %v4435_v57 = vld [vmem:[%s6183_s1 + $0x30] ss:$12 sps:$4 sm:$0xff]  }
  0x17   : > { %542 = vmatpush1.bf16.msra.mxu1 %v4395_v14  ;;  %499 = vmatpush1.bf16.msra.mxu0 %v4396_v15  ;;  %v292_v37 = vor.u32 %v291_v34, %v287_v30  ;;  %v285_v49 = vor.u32 %v284_v45, %v280_v44  ;;  %v4441_v58 = vld [vmem:[%s6183_s1 + $0x4c] ss:$12 sps:$4 sm:$0xff]   ;;  %v4442_v59 = vld [vmem:[%s6183_s1 + $0x50] ss:$12 sps:$4 sm:$0xff]   ;;  %v4439_v60 = vld [vmem:[%s6183_s1 + $0x48] ss:$12 sps:$4 sm:$0xff]  }
  0x18   : > { %543 = vmatprep.subr.bf16.mxu1 %v4840_v1  ;;  %500 = vmatprep.subr.bf16.mxu0 %v4397_v16  ;;  %v4445_v61 = vld [vmem:[%s6183_s1 + $0x64] ss:$12 sps:$4 sm:$0xff]   ;;  %v4446_v62 = vld [vmem:[%s6183_s1 + $0x68] ss:$12 sps:$4 sm:$0xff]   ;;  %v4443_v63 = vld [vmem:[%s6183_s1 + $0x60] ss:$12 sps:$4 sm:$0xff]  }
  0x19   : > { %3662 = vmatprep.mubr.msk.bf16.mxu1 %vm486_vm0, %v292_v37  ;;  %3661 = vmatprep.mubr.msk.bf16.mxu0 %vm486_vm0, %v292_v37  ;;  %v4449_v0 = vld [vmem:[%s6183_s1 + $0x7c] ss:$12 sps:$4 sm:$0xff]   ;;  %v4450_v2 = vld [vmem:[%s6183_s1 + $0x80] ss:$12 sps:$4 sm:$0xff]   ;;  %v4447_v3 = vld [vmem:[%s6183_s1 + $0x78] ss:$12 sps:$4 sm:$0xff]  }
  0x1a   : > { %v4453_v4 = vld [vmem:[%s6183_s1 + $0x94] ss:$12 sps:$4 sm:$0xff]   ;;  %v4454_v5 = vld [vmem:[%s6183_s1 + $0x98] ss:$12 sps:$4 sm:$0xff]   ;;  %v4451_v6 = vld [vmem:[%s6183_s1 + $0x90] ss:$12 sps:$4 sm:$0xff]  }
  0x1b   : > { %544 = vmatpush1.bf16.msra.mxu1 %v4399_v17  ;;  %501 = vmatpush1.bf16.msra.mxu0 %v4400_v18  ;;  %v4457_v7 = vld [vmem:[%s6183_s1 + $0xac] ss:$12 sps:$4 sm:$0xff]   ;;  %v4458_v8 = vld [vmem:[%s6183_s1 + $0xb0] ss:$12 sps:$4 sm:$0xff]   ;;  %v4455_v9 = vld [vmem:[%s6183_s1 + $0xa8] ss:$12 sps:$4 sm:$0xff]  }
  0x1c   : > { %545 = vmatprep.subr.bf16.mxu1 %v4840_v1  ;;  %502 = vmatprep.subr.bf16.mxu0 %v4401_v19  ;;  %v4461_v10 = vld [vmem:[%s6183_s1 + $0xc4] ss:$12 sps:$4 sm:$0xff]   ;;  %v4462_v11 = vld [vmem:[%s6183_s1 + $0xc8] ss:$12 sps:$4 sm:$0xff]   ;;  %v4459_v12 = vld [vmem:[%s6183_s1 + $0xc0] ss:$12 sps:$4 sm:$0xff]  }
  0x1d   : > { %v4465_v13 = vld [vmem:[%s6183_s1 + $0xdc] ss:$12 sps:$4 sm:$0xff]   ;;  %v4466_v14 = vld [vmem:[%s6183_s1 + $0xe0] ss:$12 sps:$4 sm:$0xff]   ;;  %v4463_v15 = vld [vmem:[%s6183_s1 + $0xd8] ss:$12 sps:$4 sm:$0xff]  }
  0x1e   : > { %v4469_v16 = vld [vmem:[%s6183_s1 + $0xf4] ss:$12 sps:$4 sm:$0xff]   ;;  %v4470_v17 = vld [vmem:[%s6183_s1 + $0xf8] ss:$12 sps:$4 sm:$0xff]   ;;  %v4490_v40 = vld [vmem:[%s6183_s1 + $0x290] ss:$12 sps:$4 sm:$0xff]  }
  0x1f   : > { %546 = vmatpush1.bf16.msra.mxu1 %v4403_v20  ;;  %503 = vmatpush1.bf16.msra.mxu0 %v4404_v21  ;;  %v5123_v18 = vld [vmem:[%s4953_s9] sm:$0xee]  ;;  %v5126_v19 = vld [vmem:[%s4953_s9 + $0x10] sm:$0x11]  ;;  %v4473_v21 = vld [vmem:[%s6183_s1 + $0x10c] ss:$12 sps:$4 sm:$0xff]  }
  0x20   : > { %547 = vmatprep.subr.bf16.mxu1 %v4840_v1  ;;  %504 = vmatprep.subr.bf16.mxu0 %v4405_v22  ;;  %v4467_v20 = vld [vmem:[%s6183_s1 + $0xf0] ss:$12 sps:$4 sm:$0xff]   ;;  %v3750_v22 = vcombine.high %v5123_v18, %v4964_v26  ;;  %v4471_v25 = vld [vmem:[%s6183_s1 + $0x108] ss:$12 sps:$4 sm:$0xff]   ;;  %v4475_v31 = vld [vmem:[%s6183_s1 + $0x240] ss:$12 sps:$4 sm:$0xff]  }
  0x21   : > { %v4478_v30 = vld [vmem:[%s6183_s1 + $0x248] ss:$12 sps:$4 sm:$0xff]   ;;  %v4482_v34 = vld [vmem:[%s6183_s1 + $0x260] ss:$12 sps:$4 sm:$0xff]   ;;  %vm1996_vm4 = vsmask.f32 4352 }
  0x22   : > { %v4485_v37 = vld [vmem:[%s6183_s1 + $0x274] ss:$12 sps:$4 sm:$0xff]   ;;  %v4497_v45 = vld [vmem:[%s6183_s1 + $0x2bc] ss:$12 sps:$4 sm:$0xff]   ;;  %vm2723_vm5 = vsmask.f32 6400 }
  0x23   : > { %548 = vmatpush1.bf16.msra.mxu1 %v4407_v23  ;;  %505 = vmatpush1.bf16.msra.mxu0 %v4408_v24  ;;  %v3752_v23 = vcombine.high %v5126_v19, %v5126_v19  ;;  %v4474_v24 = vld [vmem:[%s6183_s1 + $0x110] ss:$12 sps:$4 sm:$0xff]   ;;  %v4491_v44 = vld [vmem:[%s6183_s1 + $0x2a0] ss:$12 sps:$4 sm:$0xff]   ;;  %vm3105_vm6 = vcmask 1045504   ;;  %vm3450_vm7 = vcmask 1041408  }
  0x24   : > { %549 = vmatprep.subr.bf16.mxu1 %v4840_v1  ;;  %506 = vmatprep.subr.bf16.mxu0 %v4409_v27  ;;  %v4477_v27 = vld [vmem:[%s6183_s1 + $0x244] ss:$12 sps:$4 sm:$0xff]   ;;  %vm3451_vm8 = vsmask.f32 1280  ;;  %vm3453_vm9 = vcmask 1043458   ;;  %vm3457_vm13 = vcmask 1045508  }
  0x25   : > { %vm3454_vm10 = vsmask.f32 3328  ;;  %vm6143_vm11 = vmand %vm3450_vm7, %vm3451_vm8  ;;  %s4366_s14 = smul.u32 18, %s6193_s13  ;;  %vm3496_vm14 = vcmask 1040384   ;;  %vm3497_vm15 = vcmask 1042434  }
  0x26   : > { %vm6148_vm12 = vmand %vm3453_vm9, %vm3454_vm10 }
  0x27   : > { %550 = vmatpush1.bf16.msra.mxu1 %v4411_v29  ;;  %507 = vmatpush1.bf16.msra.mxu0 %v4412_v32  ;;  %v923_v29 = vrot.slane %v3752_v23, 1  ;;  %v4481_v32 = vld [vmem:[%s6183_s1 + $0x25c] ss:$12 sps:$4 sm:$0xff]   ;;  %v4527_v23 = vld [vmem:[%s6183_s1 + $0x360] ss:$12 sps:$4 sm:$0xff]   ;;  %s6161_s13 = scalar_lea.vmem %s6185_s3, %s4366_s14 }
  0x28   : > { %551 = vmatprep.subr.bf16.mxu1 %v4840_v1  ;;  %508 = vmatprep.subr.bf16.mxu0 %v4413_v33 }
  0x2b   : > { %552 = vmatpush1.bf16.msra.mxu1 %v4415_v36  ;;  %509 = vmatpush1.bf16.msra.mxu0 %v4416_v38  ;;  %v4479_v36 = vld [vmem:[%s6183_s1 + $0x258] ss:$12 sps:$4 sm:$0xff]   ;;  %v4483_v38 = vld [vmem:[%s6183_s1 + $0x270] ss:$12 sps:$4 sm:$0xff]  }
  0x2c   : > { %553 = vmatprep.subr.bf16.mxu1 %v4840_v1  ;;  %510 = vmatprep.subr.bf16.mxu0 %v4417_v39  ;;  %v4489_v39 = vld [vmem:[%s6183_s1 + $0x28c] ss:$12 sps:$4 sm:$0xff]  }
  0x2f   : > { %554 = vmatpush1.bf16.msra.mxu1 %v4419_v41  ;;  %511 = vmatpush1.bf16.msra.mxu0 %v4420_v42  ;;  %v4487_v41 = vld [vmem:[%s6183_s1 + $0x288] ss:$12 sps:$4 sm:$0xff]   ;;  %v4493_v42 = vld [vmem:[%s6183_s1 + $0x2a4] ss:$12 sps:$4 sm:$0xff]  }
  0x30   : > { %555 = vmatprep.subr.bf16.mxu1 %v4840_v1  ;;  %512 = vmatprep.subr.bf16.mxu0 %v4421_v43  ;;  %v4494_v43 = vld [vmem:[%s6183_s1 + $0x2a8] ss:$12 sps:$4 sm:$0xff]  }
  0x33   : > { %556 = vmatpush1.bf16.msra.mxu1 %v4423_v46  ;;  %513 = vmatpush1.bf16.msra.mxu0 %v4424_v47  ;;  %v4498_v46 = vld [vmem:[%s6183_s1 + $0x2c0] ss:$12 sps:$4 sm:$0xff]   ;;  %v4495_v47 = vld [vmem:[%s6183_s1 + $0x2b8] ss:$12 sps:$4 sm:$0xff]  }
  0x34   : > { %812 = vmatprep.subr.bf16.mxu1 %v4840_v1  ;;  %769 = vmatprep.subr.bf16.mxu0 %v4429_v48  ;;  %v4501_v48 = vld [vmem:[%s6183_s1 + $0x2d4] ss:$12 sps:$4 sm:$0xff]  }
  0x36   : > { %566 = vmatmul.mubr.bf16.vlgmr.msra.gmra.mrb[0].mxu1 %v285_v49  ;;  %523 = vmatmul.mubr.bf16.vlgmr.msra.gmra.mrb[0].mxu0 %v285_v49  ;;  %v4502_v49 = vld [vmem:[%s6183_s1 + $0x2d8] ss:$12 sps:$4 sm:$0xff]  }
  0x37   : > { %813 = vmatpush1.bf16.msra.mxu1 %v4430_v50  ;;  %770 = vmatpush1.bf16.msra.mxu0 %v4427_v51  ;;  %v4499_v50 = vld [vmem:[%s6183_s1 + $0x2d0] ss:$12 sps:$4 sm:$0xff]   ;;  %v4505_v51 = vld [vmem:[%s6183_s1 + $0x2ec] ss:$12 sps:$4 sm:$0xff]  }
  0x38   : > { %814 = vmatprep.subr.bf16.mxu1 %v4840_v1  ;;  %771 = vmatprep.subr.bf16.mxu0 %v4433_v52  ;;  %v4506_v52 = vld [vmem:[%s6183_s1 + $0x2f0] ss:$12 sps:$4 sm:$0xff]  }
  0x39   : > { %3700 = vmatprep.mubr.msk.bf16.mxu1 %vm486_vm0, %v3624_v28  ;;  %3699 = vmatprep.mubr.msk.bf16.mxu0 %vm486_vm0, %v3624_v28  ;;  %v922_v28 = vrot.slane %v3750_v22, 1  ;;  %v4530_v22 = vld [vmem:[%s6183_s1 + $0x368] ss:$12 sps:$4 sm:$0xff]  }
  0x3b   : > { %815 = vmatpush1.bf16.msra.mxu1 %v4434_v53  ;;  %772 = vmatpush1.bf16.msra.mxu0 %v4431_v54  ;;  %v924_v33 = vsel %vm918_vm1, %v922_v28, %v923_v29  ;;  %v4503_v53 = vld [vmem:[%s6183_s1 + $0x2e8] ss:$12 sps:$4 sm:$0xff]   ;;  %v4509_v54 = vld [vmem:[%s6183_s1 + $0x304] ss:$12 sps:$4 sm:$0xff]  }
  0x3c   : > { %816 = vmatprep.subr.bf16.mxu1 %v4840_v1  ;;  %773 = vmatprep.subr.bf16.mxu0 %v4437_v55  ;;  %v4510_v55 = vld [vmem:[%s6183_s1 + $0x308] ss:$12 sps:$4 sm:$0xff]   ;;  %v4531_v28 = vld [vmem:[%s6183_s1 + $0x378] ss:$12 sps:$4 sm:$0xff]  }
  0x3d   : > { %v4537_v29 = vld [vmem:[%s6183_s1 + $0x394] ss:$12 sps:$4 sm:$0xff]  }
  0x3f   : > { %817 = vmatpush1.bf16.msra.mxu1 %v4438_v56  ;;  %774 = vmatpush1.bf16.msra.mxu0 %v4435_v57  ;;  %v5238_v56 = vld [vmem:[%s4953_s9] sm:$0xcc]  ;;  %v5241_v57 = vld [vmem:[%s4953_s9 + $0x10] sm:$0x33] }
  0x40   : > { %818 = vmatprep.subr.bf16.mxu1 %v4840_v1  ;;  %775 = vmatprep.subr.bf16.mxu0 %v4441_v58  ;;  %v4507_v58 = vld [vmem:[%s6183_s1 + $0x300] ss:$12 sps:$4 sm:$0xff]  }
  0x43   : > { %819 = vmatpush1.bf16.msra.mxu1 %v4442_v59  ;;  %776 = vmatpush1.bf16.msra.mxu0 %v4439_v60  ;;  %v4513_v59 = vld [vmem:[%s6183_s1 + $0x31c] ss:$12 sps:$4 sm:$0xff]   ;;  %v3840_v60 = vcombine.high %v5238_v56, %v4964_v26 }
  0x44   : > { %820 = vmatprep.subr.bf16.mxu1 %v4840_v1  ;;  %777 = vmatprep.subr.bf16.mxu0 %v4445_v61  ;;  %v3842_v61 = vcombine.high %v5241_v57, %v5241_v57 }
  0x47   : > { %821 = vmatpush1.bf16.msra.mxu1 %v4446_v62  ;;  %778 = vmatpush1.bf16.msra.mxu0 %v4443_v63  ;;  %v4514_v62 = vld [vmem:[%s6183_s1 + $0x320] ss:$12 sps:$4 sm:$0xff]   ;;  %v4511_v63 = vld [vmem:[%s6183_s1 + $0x318] ss:$12 sps:$4 sm:$0xff]  }
  0x48   : > { %822 = vmatprep.subr.bf16.mxu1 %v4840_v1  ;;  %779 = vmatprep.subr.bf16.mxu0 %v4449_v0  ;;  %v4517_v0 = vld [vmem:[%s6183_s1 + $0x334] ss:$12 sps:$4 sm:$0xff]  }
  0x4b   : > { %823 = vmatpush1.bf16.msra.mxu1 %v4450_v2  ;;  %780 = vmatpush1.bf16.msra.mxu0 %v4447_v3  ;;  %v1291_v2 = vshrl.u32 %v3840_v60, 16  ;;  %v1294_v3 = vshll.u32 %v3840_v60, 16  ;;  %v4569_v60 = vld [vmem:[%s6183_s1 + $0x454] ss:$12 sps:$4 sm:$0xff]  }
  0x4c   : > { %824 = vmatprep.subr.bf16.mxu1 %v4840_v1  ;;  %781 = vmatprep.subr.bf16.mxu0 %v4453_v4  ;;  %v4515_v4 = vld [vmem:[%s6183_s1 + $0x330] ss:$12 sps:$4 sm:$0xff]  }
  0x4f   : > { %825 = vmatpush1.bf16.msra.mxu1 %v4454_v5  ;;  %782 = vmatpush1.bf16.msra.mxu0 %v4451_v6  ;;  %v1299_v5 = vshrl.u32 %v3842_v61, 16  ;;  %v1302_v6 = vshll.u32 %v3842_v61, 16  ;;  %v4570_v61 = vld [vmem:[%s6183_s1 + $0x458] ss:$12 sps:$4 sm:$0xff]  }
  0x50   : > { %826 = vmatprep.subr.bf16.mxu1 %v4840_v1  ;;  %783 = vmatprep.subr.bf16.mxu0 %v4457_v7  ;;  %v4518_v7 = vld [vmem:[%s6183_s1 + $0x338] ss:$12 sps:$4 sm:$0xff]  }
  0x53   : > { %827 = vmatpush1.bf16.msra.mxu1 %v4458_v8  ;;  %784 = vmatpush1.bf16.msra.mxu0 %v4455_v9  ;;  %v3749_v8 = vcombine.low %v5123_v18, %v4964_v26  ;;  %v3751_v9 = vcombine.low %v5126_v19, %v5126_v19  ;;  %v4529_v18 = vld [vmem:[%s6183_s1 + $0x364] ss:$12 sps:$4 sm:$0xff]  }
  0x54   : > { %828 = vmatprep.subr.bf16.mxu1 %v4840_v1  ;;  %785 = vmatprep.subr.bf16.mxu0 %v4461_v10  ;;  %v4521_v10 = vld [vmem:[%s6183_s1 + $0x34c] ss:$12 sps:$4 sm:$0xff]  }
  0x55   : > { %v919_v26 = vrot.slane %v3749_v8, 1 }
  0x57   : > { %829 = vmatpush1.bf16.msra.mxu1 %v4462_v11  ;;  %786 = vmatpush1.bf16.msra.mxu0 %v4459_v12  ;;  %v4522_v11 = vld [vmem:[%s6183_s1 + $0x350] ss:$12 sps:$4 sm:$0xff]   ;;  %v1293_v12 = vrot.slane %v1291_v2, 2 }
  0x58   : > { %830 = vmatprep.subr.bf16.mxu1 %v4840_v1  ;;  %787 = vmatprep.subr.bf16.mxu0 %v4465_v13  ;;  %v1296_v13 = vrot.slane %v1294_v3, 3  ;;  %v5403_v3 = vld [vmem:[%s4953_s9] sm:$0x88] }
  0x5a   : > { %v1297_v19 = vor.u32 %v1296_v13, %v1293_v12  ;;  %v4571_v12 = vld [vmem:[%s6183_s1 + $0x468] ss:$12 sps:$4 sm:$0xff]   ;;  %v4581_v13 = vld [vmem:[%s6183_s1 + $0x484] ss:$12 sps:$4 sm:$0xff]  }
  0x5b   : > { %831 = vmatpush1.bf16.msra.mxu1 %v4466_v14  ;;  %788 = vmatpush1.bf16.msra.mxu0 %v4463_v15  ;;  %v1301_v14 = vrot.slane %v1299_v5, 2  ;;  %v1304_v15 = vrot.slane %v1302_v6, 3  ;;  %v4567_v5 = vld [vmem:[%s6183_s1 + $0x450] ss:$12 sps:$4 sm:$0xff]   ;;  %v4573_v6 = vld [vmem:[%s6183_s1 + $0x46c] ss:$12 sps:$4 sm:$0xff]  }
  0x5c   : > { %832 = vmatprep.subr.bf16.mxu1 %v4840_v1  ;;  %789 = vmatprep.subr.bf16.mxu0 %v4469_v16  ;;  %v920_v16 = vrot.slane %v3751_v9, 1  ;;  %v4574_v9 = vld [vmem:[%s6183_s1 + $0x470] ss:$12 sps:$4 sm:$0xff]  }
  0x5f   : > { %833 = vmatpush1.bf16.msra.mxu1 %v4470_v17  ;;  %790 = vmatpush1.bf16.msra.mxu0 %v4467_v20  ;;  %v4519_v17 = vld [vmem:[%s6183_s1 + $0x348] ss:$12 sps:$4 sm:$0xff]   ;;  %v1305_v20 = vor.u32 %v1304_v15, %v1301_v14 }
  0x60   : > { %834 = vmatprep.subr.bf16.mxu1 %v4840_v1  ;;  %791 = vmatprep.subr.bf16.mxu0 %v4473_v21  ;;  %v921_v21 = vsel %vm918_vm1, %v919_v26, %v920_v16  ;;  %v4582_v16 = vld [vmem:[%s6183_s1 + $0x488] ss:$12 sps:$4 sm:$0xff]  }
  0x63   : > { %835 = vmatpush1.bf16.msra.mxu1 %v4474_v24  ;;  %792 = vmatpush1.bf16.msra.mxu0 %v4471_v25  ;;  %v4533_v24 = vld [vmem:[%s6183_s1 + $0x37c] ss:$12 sps:$4 sm:$0xff]   ;;  %v1306_v25 = vsel %vm1272_vm2, %v1297_v19, %v1305_v20  ;;  %v4586_v20 = vld [vmem:[%s6183_s1 + $0x4a0] ss:$12 sps:$4 sm:$0xff]  }
  0x64   : > { %1164 = vmatprep.subr.bf16.mxu1 %v4840_v1  ;;  %1121 = vmatprep.subr.bf16.mxu0 %v4477_v27  ;;  %v4534_v27 = vld [vmem:[%s6183_s1 + $0x380] ss:$12 sps:$4 sm:$0xff]  }
  0x66   : > { %845 = vmatmul.mubr.bf16.vlgmr.msra.gmra.mrb[4].mxu1 %v4981_v35  ;;  %802 = vmatmul.mubr.bf16.vlgmr.msra.gmra.mrb[0].mxu0 %v4981_v35  ;;  %v4486_v35 = vld [vmem:[%s6183_s1 + $0x278] ss:$12 sps:$4 sm:$0xff]  }
  0x67   : > { %1165 = vmatpush1.bf16.msra.mxu1 %v4478_v30  ;;  %1122 = vmatpush1.bf16.msra.mxu0 %v4475_v31  ;;  %v4538_v30 = vld [vmem:[%s6183_s1 + $0x398] ss:$12 sps:$4 sm:$0xff]   ;;  %v4535_v31 = vld [vmem:[%s6183_s1 + $0x390] ss:$12 sps:$4 sm:$0xff]  }
  0x68   : > { %1166 = vmatprep.subr.bf16.mxu1 %v4840_v1  ;;  %1123 = vmatprep.subr.bf16.mxu0 %v4481_v32  ;;  %v4541_v32 = vld [vmem:[%s6183_s1 + $0x3ac] ss:$12 sps:$4 sm:$0xff]  }
  0x69   : > { %3790 = vmatprep.mubr.msk.bf16.mxu1 %vm486_vm0, %v924_v33  ;;  %3789 = vmatprep.mubr.msk.bf16.mxu0 %vm486_vm0, %v924_v33  ;;  %v4542_v33 = vld [vmem:[%s6183_s1 + $0x3b0] ss:$12 sps:$4 sm:$0xff]  }
  0x6b   : > { %1167 = vmatpush1.bf16.msra.mxu1 %v4482_v34  ;;  %1124 = vmatpush1.bf16.msra.mxu0 %v4479_v36  ;;  %v4539_v34 = vld [vmem:[%s6183_s1 + $0x3a8] ss:$12 sps:$4 sm:$0xff]   ;;  %v4545_v36 = vld [vmem:[%s6183_s1 + $0x3c4] ss:$12 sps:$4 sm:$0xff]  }
  0x6c   : > { %1168 = vmatprep.subr.bf16.mxu1 %v4840_v1  ;;  %1125 = vmatprep.subr.bf16.mxu0 %v4485_v37  ;;  %v4546_v37 = vld [vmem:[%s6183_s1 + $0x3c8] ss:$12 sps:$4 sm:$0xff]  }
  0x6f   : > { %1169 = vmatpush1.bf16.msra.mxu1 %v4486_v35  ;;  %1126 = vmatpush1.bf16.msra.mxu0 %v4483_v38  ;;  %v4543_v35 = vld [vmem:[%s6183_s1 + $0x3c0] ss:$12 sps:$4 sm:$0xff]   ;;  %v4549_v38 = vld [vmem:[%s6183_s1 + $0x3dc] ss:$12 sps:$4 sm:$0xff]  }
  0x70   : > { %1170 = vmatprep.subr.bf16.mxu1 %v4840_v1  ;;  %1127 = vmatprep.subr.bf16.mxu0 %v4489_v39  ;;  %v4550_v39 = vld [vmem:[%s6183_s1 + $0x3e0] ss:$12 sps:$4 sm:$0xff]  }
  0x73   : > { %1171 = vmatpush1.bf16.msra.mxu1 %v4490_v40  ;;  %1128 = vmatpush1.bf16.msra.mxu0 %v4487_v41  ;;  %v4547_v40 = vld [vmem:[%s6183_s1 + $0x3d8] ss:$12 sps:$4 sm:$0xff]   ;;  %v4553_v41 = vld [vmem:[%s6183_s1 + $0x3f4] ss:$12 sps:$4 sm:$0xff]  }
  0x74   : > { %1172 = vmatprep.subr.bf16.mxu1 %v4840_v1  ;;  %1129 = vmatprep.subr.bf16.mxu0 %v4493_v42  ;;  %v4554_v42 = vld [vmem:[%s6183_s1 + $0x3f8] ss:$12 sps:$4 sm:$0xff]  }
  0x77   : > { %1173 = vmatpush1.bf16.msra.mxu1 %v4494_v43  ;;  %1130 = vmatpush1.bf16.msra.mxu0 %v4491_v44  ;;  %v4551_v43 = vld [vmem:[%s6183_s1 + $0x3f0] ss:$12 sps:$4 sm:$0xff]   ;;  %v4557_v44 = vld [vmem:[%s6183_s1 + $0x40c] ss:$12 sps:$4 sm:$0xff]  }
  0x78   : > { %1174 = vmatprep.subr.bf16.mxu1 %v4840_v1  ;;  %1131 = vmatprep.subr.bf16.mxu0 %v4497_v45  ;;  %v4558_v45 = vld [vmem:[%s6183_s1 + $0x410] ss:$12 sps:$4 sm:$0xff]  }
  0x7b   : > { %1175 = vmatpush1.bf16.msra.mxu1 %v4498_v46  ;;  %1132 = vmatpush1.bf16.msra.mxu0 %v4495_v47  ;;  %v4555_v46 = vld [vmem:[%s6183_s1 + $0x408] ss:$12 sps:$4 sm:$0xff]   ;;  %v4561_v47 = vld [vmem:[%s6183_s1 + $0x424] ss:$12 sps:$4 sm:$0xff]  }
  0x7c   : > { %1176 = vmatprep.subr.bf16.mxu1 %v4840_v1  ;;  %1133 = vmatprep.subr.bf16.mxu0 %v4501_v48  ;;  %v5373_v48 = vld [vmem:[%s4953_s9 + $0x8] sm:$0xff] }
  0x7f   : > { %1177 = vmatpush1.bf16.msra.mxu1 %v4502_v49  ;;  %1134 = vmatpush1.bf16.msra.mxu0 %v4499_v50  ;;  %v3839_v49 = vcombine.low %v5238_v56, %v5373_v48  ;;  %v3841_v50 = vcombine.low %v5241_v57, %v5241_v57 }
  0x80   : > { %1178 = vmatprep.subr.bf16.mxu1 %v4840_v1  ;;  %1135 = vmatprep.subr.bf16.mxu0 %v4505_v51  ;;  %v4562_v51 = vld [vmem:[%s6183_s1 + $0x428] ss:$12 sps:$4 sm:$0xff]  }
  0x81   : > { %v1277_v56 = vshll.u32 %v3839_v49, 16  ;;  %v1282_v57 = vshrl.u32 %v3841_v50, 16 }
  0x83   : > { %1179 = vmatpush1.bf16.msra.mxu1 %v4506_v52  ;;  %1136 = vmatpush1.bf16.msra.mxu0 %v4503_v53  ;;  %v4559_v52 = vld [vmem:[%s6183_s1 + $0x420] ss:$12 sps:$4 sm:$0xff]   ;;  %v4565_v53 = vld [vmem:[%s6183_s1 + $0x43c] ss:$12 sps:$4 sm:$0xff]  }
  0x84   : > { %1180 = vmatprep.subr.bf16.mxu1 %v4840_v1  ;;  %1137 = vmatprep.subr.bf16.mxu0 %v4509_v54  ;;  %v4566_v54 = vld [vmem:[%s6183_s1 + $0x440] ss:$12 sps:$4 sm:$0xff]  }
  0x87   : > { %1181 = vmatpush1.bf16.msra.mxu1 %v4510_v55  ;;  %1138 = vmatpush1.bf16.msra.mxu0 %v4507_v58  ;;  %v1274_v55 = vshrl.u32 %v3839_v49, 16  ;;  %v1285_v58 = vshll.u32 %v3841_v50, 16  ;;  %v4622_v49 = vld [vmem:[%s6183_s1 + $0x578] ss:$12 sps:$4 sm:$0xff]   ;;  %v5544_v50 = vcombine.low %v5403_v3, %v5373_v48 }
  0x88   : > { %1182 = vmatprep.subr.bf16.mxu1 %v4840_v1  ;;  %1139 = vmatprep.subr.bf16.mxu0 %v4513_v59  ;;  %v4563_v59 = vld [vmem:[%s6183_s1 + $0x438] ss:$12 sps:$4 sm:$0xff]  }
  0x89   : > { %v1287_v2 = vrot.slane %v1285_v58, 3  ;;  %v1655_v58 = vrot.slane %v5544_v50, 3 }
  0x8b   : > { %1183 = vmatpush1.bf16.msra.mxu1 %v4514_v62  ;;  %1140 = vmatpush1.bf16.msra.mxu0 %v4511_v63  ;;  %v1276_v62 = vrot.slane %v1274_v55, 2  ;;  %v1279_v63 = vrot.slane %v1277_v56, 3  ;;  %v4625_v56 = vld [vmem:[%s6183_s1 + $0x58c] ss:$12 sps:$4 sm:$0xff]  }
  0x8c   : > { %1184 = vmatprep.subr.bf16.mxu1 %v4840_v1  ;;  %1141 = vmatprep.subr.bf16.mxu0 %v4517_v0  ;;  %v1284_v0 = vrot.slane %v1282_v57, 2  ;;  %v4626_v57 = vld [vmem:[%s6183_s1 + $0x590] ss:$12 sps:$4 sm:$0xff]  }
  0x8f   : > { %1185 = vmatpush1.bf16.msra.mxu1 %v4518_v7  ;;  %1142 = vmatpush1.bf16.msra.mxu0 %v4515_v4  ;;  %v5406_v4 = vld [vmem:[%s4953_s9 + $0x10] sm:$0x77]  ;;  %v5417_v7 = vcombine.high %v5403_v3, %v5373_v48 }
  0x90   : > { %1186 = vmatprep.subr.bf16.mxu1 %v4840_v1  ;;  %1143 = vmatprep.subr.bf16.mxu0 %v4521_v10  ;;  %v5421_v8 = vcombine.high %v5406_v4, %v5406_v4  ;;  %v1280_v10 = vor.u32 %v1279_v63, %v1276_v62  ;;  %v5552_v55 = vcombine.low %v5406_v4, %v5406_v4  ;;  %v4619_v48 = vld [vmem:[%s6183_s1 + $0x570] ss:$12 sps:$4 sm:$0xff]   ;;  %v4634_v3 = vld [vmem:[%s6183_s1 + $0x5a8] ss:$12 sps:$4 sm:$0xff]  }
  0x91   : > { %v1658_v14 = vrot.slane %v5417_v7, 3 }
  0x92   : > { %v1659_v15 = vrot.slane %v5421_v8, 3  ;;  %v1656_v63 = vrot.slane %v5552_v55, 3 }
  0x93   : > { %1187 = vmatpush1.bf16.msra.mxu1 %v4522_v11  ;;  %1144 = vmatpush1.bf16.msra.mxu0 %v4519_v17  ;;  %v1288_v11 = vor.u32 %v1287_v2, %v1284_v0  ;;  %v4579_v17 = vld [vmem:[%s6183_s1 + $0x480] ss:$12 sps:$4 sm:$0xff]   ;;  %v4623_v0 = vld [vmem:[%s6183_s1 + $0x588] ss:$12 sps:$4 sm:$0xff]   ;;  %v4633_v2 = vld [vmem:[%s6183_s1 + $0x5a4] ss:$12 sps:$4 sm:$0xff]  }
  0x94   : > { %1546 = vmatprep.subr.bf16.mxu1 %v4840_v1  ;;  %1503 = vmatprep.subr.bf16.mxu0 %v4529_v18  ;;  %v4585_v18 = vld [vmem:[%s6183_s1 + $0x49c] ss:$12 sps:$4 sm:$0xff]   ;;  %v1660_v19 = vsel %vm1654_vm3, %v1658_v14, %v1659_v15  ;;  %v4645_v15 = vld [vmem:[%s6183_s1 + $0x5ec] ss:$12 sps:$4 sm:$0xff]  }
  0x95   : > { %v1289_v26 = vsel %vm1272_vm2, %v1280_v10, %v1288_v11  ;;  %v4635_v11 = vld [vmem:[%s6183_s1 + $0x5b8] ss:$12 sps:$4 sm:$0xff]   ;;  %v4639_v14 = vld [vmem:[%s6183_s1 + $0x5d0] ss:$12 sps:$4 sm:$0xff]  }
  0x96   : > { %1197 = vmatmul.mubr.bf16.vlgmr.msra.gmra.mrb[8].mxu1 %v921_v21  ;;  %1154 = vmatmul.mubr.bf16.vlgmr.msra.gmra.mrb[0].mxu0 %v921_v21  ;;  %v4583_v21 = vld [vmem:[%s6183_s1 + $0x498] ss:$12 sps:$4 sm:$0xff]  }
  0x97   : > { %1547 = vmatpush1.bf16.msra.mxu1 %v4530_v22  ;;  %1504 = vmatpush1.bf16.msra.mxu0 %v4527_v23  ;;  %v4589_v22 = vld [vmem:[%s6183_s1 + $0x4b4] ss:$12 sps:$4 sm:$0xff]   ;;  %v4590_v23 = vld [vmem:[%s6183_s1 + $0x4b8] ss:$12 sps:$4 sm:$0xff]  }
  0x98   : > { %1548 = vmatprep.subr.bf16.mxu1 %v4840_v1  ;;  %1505 = vmatprep.subr.bf16.mxu0 %v4533_v24  ;;  %v4587_v24 = vld [vmem:[%s6183_s1 + $0x4b0] ss:$12 sps:$4 sm:$0xff]  }
  0x99   : > { %3880 = vmatprep.mubr.msk.bf16.mxu1 %vm486_vm0, %v1306_v25  ;;  %3879 = vmatprep.mubr.msk.bf16.mxu0 %vm486_vm0, %v1306_v25  ;;  %v4593_v25 = vld [vmem:[%s6183_s1 + $0x4cc] ss:$12 sps:$4 sm:$0xff]  }
  0x9b   : > { %1549 = vmatpush1.bf16.msra.mxu1 %v4534_v27  ;;  %1506 = vmatpush1.bf16.msra.mxu0 %v4531_v28  ;;  %v4594_v27 = vld [vmem:[%s6183_s1 + $0x4d0] ss:$12 sps:$4 sm:$0xff]   ;;  %v4591_v28 = vld [vmem:[%s6183_s1 + $0x4c8] ss:$12 sps:$4 sm:$0xff]  }
  0x9c   : > { %1550 = vmatprep.subr.bf16.mxu1 %v4840_v1  ;;  %1507 = vmatprep.subr.bf16.mxu0 %v4537_v29  ;;  %v4597_v29 = vld [vmem:[%s6183_s1 + $0x4e4] ss:$12 sps:$4 sm:$0xff]  }
  0x9f   : > { %1551 = vmatpush1.bf16.msra.mxu1 %v4538_v30  ;;  %1508 = vmatpush1.bf16.msra.mxu0 %v4535_v31  ;;  %v4598_v30 = vld [vmem:[%s6183_s1 + $0x4e8] ss:$12 sps:$4 sm:$0xff]   ;;  %v4595_v31 = vld [vmem:[%s6183_s1 + $0x4e0] ss:$12 sps:$4 sm:$0xff]  }
  0xa0   : > { %1552 = vmatprep.subr.bf16.mxu1 %v4840_v1  ;;  %1509 = vmatprep.subr.bf16.mxu0 %v4541_v32  ;;  %v4601_v32 = vld [vmem:[%s6183_s1 + $0x4fc] ss:$12 sps:$4 sm:$0xff]  }
  0xa3   : > { %1553 = vmatpush1.bf16.msra.mxu1 %v4542_v33  ;;  %1510 = vmatpush1.bf16.msra.mxu0 %v4539_v34  ;;  %v4602_v33 = vld [vmem:[%s6183_s1 + $0x500] ss:$12 sps:$4 sm:$0xff]   ;;  %v4599_v34 = vld [vmem:[%s6183_s1 + $0x4f8] ss:$12 sps:$4 sm:$0xff]  }
  0xa4   : > { %1554 = vmatprep.subr.bf16.mxu1 %v4840_v1  ;;  %1511 = vmatprep.subr.bf16.mxu0 %v4545_v36  ;;  %v4605_v36 = vld [vmem:[%s6183_s1 + $0x514] ss:$12 sps:$4 sm:$0xff]  }
  0xa7   : > { %1555 = vmatpush1.bf16.msra.mxu1 %v4546_v37  ;;  %1512 = vmatpush1.bf16.msra.mxu0 %v4543_v35  ;;  %v4606_v37 = vld [vmem:[%s6183_s1 + $0x518] ss:$12 sps:$4 sm:$0xff]   ;;  %v4603_v35 = vld [vmem:[%s6183_s1 + $0x510] ss:$12 sps:$4 sm:$0xff]  }
  0xa8   : > { %1556 = vmatprep.subr.bf16.mxu1 %v4840_v1  ;;  %1513 = vmatprep.subr.bf16.mxu0 %v4549_v38  ;;  %v4609_v38 = vld [vmem:[%s6183_s1 + $0x52c] ss:$12 sps:$4 sm:$0xff]  }
  0xab   : > { %1557 = vmatpush1.bf16.msra.mxu1 %v4550_v39  ;;  %1514 = vmatpush1.bf16.msra.mxu0 %v4547_v40  ;;  %v4610_v39 = vld [vmem:[%s6183_s1 + $0x530] ss:$12 sps:$4 sm:$0xff]   ;;  %v4607_v40 = vld [vmem:[%s6183_s1 + $0x528] ss:$12 sps:$4 sm:$0xff]  }
  0xac   : > { %1558 = vmatprep.subr.bf16.mxu1 %v4840_v1  ;;  %1515 = vmatprep.subr.bf16.mxu0 %v4553_v41  ;;  %v4613_v41 = vld [vmem:[%s6183_s1 + $0x544] ss:$12 sps:$4 sm:$0xff]  }
  0xaf   : > { %1559 = vmatpush1.bf16.msra.mxu1 %v4554_v42  ;;  %1516 = vmatpush1.bf16.msra.mxu0 %v4551_v43  ;;  %v4614_v42 = vld [vmem:[%s6183_s1 + $0x548] ss:$12 sps:$4 sm:$0xff]   ;;  %v4611_v43 = vld [vmem:[%s6183_s1 + $0x540] ss:$12 sps:$4 sm:$0xff]  }
  0xb0   : > { %1560 = vmatprep.subr.bf16.mxu1 %v4840_v1  ;;  %1517 = vmatprep.subr.bf16.mxu0 %v4557_v44  ;;  %v4617_v44 = vld [vmem:[%s6183_s1 + $0x55c] ss:$12 sps:$4 sm:$0xff]  }
  0xb3   : > { %1561 = vmatpush1.bf16.msra.mxu1 %v4558_v45  ;;  %1518 = vmatpush1.bf16.msra.mxu0 %v4555_v46  ;;  %v4618_v45 = vld [vmem:[%s6183_s1 + $0x560] ss:$12 sps:$4 sm:$0xff]   ;;  %v4615_v46 = vld [vmem:[%s6183_s1 + $0x558] ss:$12 sps:$4 sm:$0xff]  }
  0xb4   : > { %1562 = vmatprep.subr.bf16.mxu1 %v4840_v1  ;;  %1519 = vmatprep.subr.bf16.mxu0 %v4561_v47  ;;  %v4621_v47 = vld [vmem:[%s6183_s1 + $0x574] ss:$12 sps:$4 sm:$0xff]  }
  0xb7   : > { %1563 = vmatpush1.bf16.msra.mxu1 %v4562_v51  ;;  %1520 = vmatpush1.bf16.msra.mxu0 %v4559_v52  ;;  %v2015_v51 = vshrl.u32 %v5417_v7, 16  ;;  %v2018_v52 = vshll.u32 %v5417_v7, 16  ;;  %v4631_v7 = vld [vmem:[%s6183_s1 + $0x5a0] ss:$12 sps:$4 sm:$0xff]  }
  0xb8   : > { %1564 = vmatprep.subr.bf16.mxu1 %v4840_v1  ;;  %1521 = vmatprep.subr.bf16.mxu0 %v4565_v53  ;;  %v2023_v53 = vshrl.u32 %v5421_v8, 16 }
  0xbb   : > { %1565 = vmatpush1.bf16.msra.mxu1 %v4566_v54  ;;  %1522 = vmatpush1.bf16.msra.mxu0 %v4563_v59  ;;  %v2026_v54 = vshll.u32 %v5421_v8, 16  ;;  %v2017_v59 = vrot.slane %v2015_v51, 3  ;;  %v4637_v8 = vld [vmem:[%s6183_s1 + $0x5bc] ss:$12 sps:$4 sm:$0xff]  }
  0xbc   : > { %1566 = vmatprep.subr.bf16.mxu1 %v4840_v1  ;;  %1523 = vmatprep.subr.bf16.mxu0 %v4569_v60  ;;  %v2020_v60 = vrot.slane %v2018_v52, 4  ;;  %v5689_v51 = vld [vmem:[%s4953_s9 + $0x8] sm:$0xee]  ;;  %v5692_v52 = vld [vmem:[%s4953_s9 + $0x10] sm:$0xff] }
  0xbd   : > { %v2028_v62 = vrot.slane %v2026_v54, 4  ;;  %v4671_v54 = vld [vmem:[%s6183_s1 + $0x690] ss:$12 sps:$4 sm:$0xff]  }
  0xbe   : > { %v2021_v4 = vor.u32 %v2020_v60, %v2017_v59  ;;  %v4675_v60 = vld [vmem:[%s6183_s1 + $0x6a8] ss:$12 sps:$4 sm:$0xff]  }
  0xbf   : > { %1567 = vmatpush1.bf16.msra.mxu1 %v4570_v61  ;;  %1524 = vmatpush1.bf16.msra.mxu0 %v4567_v5  ;;  %v2025_v61 = vrot.slane %v2023_v53, 3  ;;  %v5695_v53 = vld [vmem:[%s4953_s9 + $0x18] sm:$0x11] }
  0xc0   : > { %1568 = vmatprep.subr.bf16.mxu1 %v4840_v1  ;;  %1525 = vmatprep.subr.bf16.mxu0 %v4573_v6  ;;  %v1657_v6 = vsel %vm1654_vm3, %v1655_v58, %v1656_v63  ;;  %vm3498_vm3 = vmor %vm3496_vm14, %vm3497_vm15 }
  0xc1   : > { %v2029_v5 = vor.u32 %v2028_v62, %v2025_v61  ;;  %v4681_v61 = vld [vmem:[%s6183_s1 + $0x6c4] ss:$12 sps:$4 sm:$0xff]  }
  0xc3   : > { %1569 = vmatpush1.bf16.msra.mxu1 %v4574_v9  ;;  %1526 = vmatpush1.bf16.msra.mxu0 %v4571_v12  ;;  %v4638_v9 = vld [vmem:[%s6183_s1 + $0x5c0] ss:$12 sps:$4 sm:$0xff]   ;;  %v2030_v10 = vsel %vm1996_vm4, %v2021_v4, %v2029_v5  ;;  %v4685_v4 = vld [vmem:[%s6183_s1 + $0x6dc] ss:$12 sps:$4 sm:$0xff]  }
  0xc4   : > { %1900 = vmatprep.subr.bf16.mxu1 %v4840_v1  ;;  %1857 = vmatprep.subr.bf16.mxu0 %v4581_v13  ;;  %v4641_v12 = vld [vmem:[%s6183_s1 + $0x5d4] ss:$12 sps:$4 sm:$0xff]   ;;  %v4642_v13 = vld [vmem:[%s6183_s1 + $0x5d8] ss:$12 sps:$4 sm:$0xff]  }
  0xc6   : > { %1579 = vmatmul.mubr.bf16.vlgmr.msra.gmra.mrb[12].mxu1 %v1289_v26  ;;  %1536 = vmatmul.mubr.bf16.vlgmr.msra.gmra.mrb[0].mxu0 %v1289_v26  ;;  %v4646_v26 = vld [vmem:[%s6183_s1 + $0x5f0] ss:$12 sps:$4 sm:$0xff]  }
  0xc7   : > { %1901 = vmatpush1.bf16.msra.mxu1 %v4582_v16  ;;  %1858 = vmatpush1.bf16.msra.mxu0 %v4579_v17  ;;  %v4643_v16 = vld [vmem:[%s6183_s1 + $0x5e8] ss:$12 sps:$4 sm:$0xff]   ;;  %v4649_v17 = vld [vmem:[%s6183_s1 + $0x604] ss:$12 sps:$4 sm:$0xff]  }
  0xc8   : > { %1902 = vmatprep.subr.bf16.mxu1 %v4840_v1  ;;  %1859 = vmatprep.subr.bf16.mxu0 %v4585_v18  ;;  %v4650_v18 = vld [vmem:[%s6183_s1 + $0x608] ss:$12 sps:$4 sm:$0xff]  }
  0xc9   : > { %3970 = vmatprep.mubr.msk.bf16.mxu1 %vm486_vm0, %v1660_v19  ;;  %3969 = vmatprep.mubr.msk.bf16.mxu0 %vm486_vm0, %v1660_v19  ;;  %v4647_v19 = vld [vmem:[%s6183_s1 + $0x600] ss:$12 sps:$4 sm:$0xff]  }
  0xcb   : > { %1903 = vmatpush1.bf16.msra.mxu1 %v4586_v20  ;;  %1860 = vmatpush1.bf16.msra.mxu0 %v4583_v21  ;;  %v4653_v20 = vld [vmem:[%s6183_s1 + $0x61c] ss:$12 sps:$4 sm:$0xff]   ;;  %v4654_v21 = vld [vmem:[%s6183_s1 + $0x620] ss:$12 sps:$4 sm:$0xff]  }
  0xcc   : > { %1904 = vmatprep.subr.bf16.mxu1 %v4840_v1  ;;  %1861 = vmatprep.subr.bf16.mxu0 %v4589_v22  ;;  %v4651_v22 = vld [vmem:[%s6183_s1 + $0x618] ss:$12 sps:$4 sm:$0xff]  }
  0xcf   : > { %1905 = vmatpush1.bf16.msra.mxu1 %v4590_v23  ;;  %1862 = vmatpush1.bf16.msra.mxu0 %v4587_v24  ;;  %v4657_v24 = vld [vmem:[%s6183_s1 + $0x634] ss:$12 sps:$4 sm:$0xff]  }
  0xd0   : > { %1906 = vmatprep.subr.bf16.mxu1 %v4840_v1  ;;  %1863 = vmatprep.subr.bf16.mxu0 %v4593_v25 }
  0xd3   : > { %1907 = vmatpush1.bf16.msra.mxu1 %v4594_v27  ;;  %1864 = vmatpush1.bf16.msra.mxu0 %v4591_v28  ;;  %v4658_v28 = vld [vmem:[%s6183_s1 + $0x638] ss:$12 sps:$4 sm:$0xff]  }
  0xd4   : > { %1908 = vmatprep.subr.bf16.mxu1 %v4840_v1  ;;  %1865 = vmatprep.subr.bf16.mxu0 %v4597_v29 }
  0xd7   : > { %1909 = vmatpush1.bf16.msra.mxu1 %v4598_v30  ;;  %1866 = vmatpush1.bf16.msra.mxu0 %v4595_v31  ;;  %v4655_v30 = vld [vmem:[%s6183_s1 + $0x630] ss:$12 sps:$4 sm:$0xff]   ;;  %v4661_v31 = vld [vmem:[%s6183_s1 + $0x64c] ss:$12 sps:$4 sm:$0xff]  }
  0xd8   : > { %1910 = vmatprep.subr.bf16.mxu1 %v4840_v1  ;;  %1867 = vmatprep.subr.bf16.mxu0 %v4601_v32  ;;  %v4662_v32 = vld [vmem:[%s6183_s1 + $0x650] ss:$12 sps:$4 sm:$0xff]  }
  0xdb   : > { %1911 = vmatpush1.bf16.msra.mxu1 %v4602_v33  ;;  %1868 = vmatpush1.bf16.msra.mxu0 %v4599_v34  ;;  %v4659_v33 = vld [vmem:[%s6183_s1 + $0x648] ss:$12 sps:$4 sm:$0xff]   ;;  %v4665_v34 = vld [vmem:[%s6183_s1 + $0x664] ss:$12 sps:$4 sm:$0xff]  }
  0xdc   : > { %1912 = vmatprep.subr.bf16.mxu1 %v4840_v1  ;;  %1869 = vmatprep.subr.bf16.mxu0 %v4605_v36  ;;  %v4666_v36 = vld [vmem:[%s6183_s1 + $0x668] ss:$12 sps:$4 sm:$0xff]  }
  0xdf   : > { %1913 = vmatpush1.bf16.msra.mxu1 %v4606_v37  ;;  %1870 = vmatpush1.bf16.msra.mxu0 %v4603_v35  ;;  %v4663_v37 = vld [vmem:[%s6183_s1 + $0x660] ss:$12 sps:$4 sm:$0xff]   ;;  %v4669_v35 = vld [vmem:[%s6183_s1 + $0x67c] ss:$12 sps:$4 sm:$0xff]  }
  0xe0   : > { %1914 = vmatprep.subr.bf16.mxu1 %v4840_v1  ;;  %1871 = vmatprep.subr.bf16.mxu0 %v4609_v38  ;;  %v1998_v38 = vshrl.u32 %v5544_v50, 16 }
  0xe3   : > { %1915 = vmatpush1.bf16.msra.mxu1 %v4610_v39  ;;  %1872 = vmatpush1.bf16.msra.mxu0 %v4607_v40  ;;  %v2001_v39 = vshll.u32 %v5544_v50, 16  ;;  %v2006_v40 = vshrl.u32 %v5552_v55, 16 }
  0xe4   : > { %1916 = vmatprep.subr.bf16.mxu1 %v4840_v1  ;;  %1873 = vmatprep.subr.bf16.mxu0 %v4613_v41  ;;  %v4670_v41 = vld [vmem:[%s6183_s1 + $0x680] ss:$12 sps:$4 sm:$0xff]  }
  0xe7   : > { %1917 = vmatpush1.bf16.msra.mxu1 %v4614_v42  ;;  %1874 = vmatpush1.bf16.msra.mxu0 %v4611_v43  ;;  %v2009_v42 = vshll.u32 %v5552_v55, 16  ;;  %v4667_v43 = vld [vmem:[%s6183_s1 + $0x678] ss:$12 sps:$4 sm:$0xff]  }
  0xe8   : > { %1918 = vmatprep.subr.bf16.mxu1 %v4840_v1  ;;  %1875 = vmatprep.subr.bf16.mxu0 %v4617_v44  ;;  %v4673_v44 = vld [vmem:[%s6183_s1 + $0x694] ss:$12 sps:$4 sm:$0xff]   ;;  %v4677_v55 = vld [vmem:[%s6183_s1 + $0x6ac] ss:$12 sps:$4 sm:$0xff]  }
  0xe9   : > { %v2011_v50 = vrot.slane %v2009_v42, 4 }
  0xeb   : > { %1919 = vmatpush1.bf16.msra.mxu1 %v4618_v45  ;;  %1876 = vmatpush1.bf16.msra.mxu0 %v4615_v46  ;;  %v4674_v45 = vld [vmem:[%s6183_s1 + $0x698] ss:$12 sps:$4 sm:$0xff]   ;;  %v2000_v46 = vrot.slane %v1998_v38, 3  ;;  %v4721_v38 = vld [vmem:[%s6183_s1 + $0x7b4] ss:$12 sps:$4 sm:$0xff]  }
  0xec   : > { %1920 = vmatprep.subr.bf16.mxu1 %v4840_v1  ;;  %1877 = vmatprep.subr.bf16.mxu0 %v4621_v47  ;;  %v2003_v47 = vrot.slane %v2001_v39, 4 }
  0xee   : > { %v2004_v58 = vor.u32 %v2003_v47, %v2000_v46  ;;  %v4719_v46 = vld [vmem:[%s6183_s1 + $0x7b0] ss:$12 sps:$4 sm:$0xff]   ;;  %v4725_v47 = vld [vmem:[%s6183_s1 + $0x7cc] ss:$12 sps:$4 sm:$0xff]  }
  0xef   : > { %1921 = vmatpush1.bf16.msra.mxu1 %v4622_v49  ;;  %1878 = vmatpush1.bf16.msra.mxu0 %v4619_v48  ;;  %v2008_v49 = vrot.slane %v2006_v40, 3  ;;  %v5706_v48 = vcombine.high %v5689_v51, %v5692_v52 }
  0xf0   : > { %1922 = vmatprep.subr.bf16.mxu1 %v4840_v1  ;;  %1879 = vmatprep.subr.bf16.mxu0 %v4625_v56  ;;  %v5710_v56 = vcombine.high %v5695_v53, %v5695_v53 }
  0xf1   : > { %v2012_v59 = vor.u32 %v2011_v50, %v2008_v49  ;;  %v2385_v62 = vrot.slane %v5706_v48, 1  ;;  %v2742_v39 = vshrl.u32 %v5706_v48, 16  ;;  %v2745_v40 = vshll.u32 %v5706_v48, 16 }
  0xf2   : > { %v2386_v63 = vrot.slane %v5710_v56, 1  ;;  %v2753_v42 = vshll.u32 %v5710_v56, 16 }
  0xf3   : > { %1923 = vmatpush1.bf16.msra.mxu1 %v4626_v57  ;;  %1880 = vmatpush1.bf16.msra.mxu0 %v4623_v0  ;;  %v4678_v57 = vld [vmem:[%s6183_s1 + $0x6b0] ss:$12 sps:$4 sm:$0xff]   ;;  %v2013_v0 = vsel %vm1996_vm4, %v2004_v58, %v2012_v59  ;;  %v2744_v49 = vrot.slane %v2742_v39, 1  ;;  %v2747_v50 = vrot.slane %v2745_v40, 2  ;;  %v4774_v39 = vld [vmem:[%s6183_s1 + $0x8d8] ss:$12 sps:$4 sm:$0xff]  }
  0xf4   : > { %2270 = vmatprep.subr.bf16.mxu1 %v4840_v1  ;;  %2227 = vmatprep.subr.bf16.mxu0 %v4633_v2  ;;  %v4682_v2 = vld [vmem:[%s6183_s1 + $0x6c8] ss:$12 sps:$4 sm:$0xff]   ;;  %v2387_v5 = vsel %vm918_vm1, %v2385_v62, %v2386_v63  ;;  %v4731_v62 = vld [vmem:[%s6183_s1 + $0x7e0] ss:$12 sps:$4 sm:$0xff]   ;;  %vm3499_vm4 = vcmask 1044484  }
  0xf5   : > { %v2748_v58 = vor.u32 %v2747_v50, %v2744_v49  ;;  %v4737_v63 = vld [vmem:[%s6183_s1 + $0x7fc] ss:$12 sps:$4 sm:$0xff]  }
  0xf6   : > { %1933 = vmatmul.mubr.bf16.vlgmr.msra.gmra.mrb[16].mxu1 %v1657_v6  ;;  %1890 = vmatmul.mubr.bf16.vlgmr.msra.gmra.mrb[0].mxu0 %v1657_v6  ;;  %v4686_v6 = vld [vmem:[%s6183_s1 + $0x6e0] ss:$12 sps:$4 sm:$0xff]  }
  0xf7   : > { %2271 = vmatpush1.bf16.msra.mxu1 %v4634_v3  ;;  %2228 = vmatpush1.bf16.msra.mxu0 %v4631_v7  ;;  %v4679_v3 = vld [vmem:[%s6183_s1 + $0x6c0] ss:$12 sps:$4 sm:$0xff]   ;;  %v4683_v7 = vld [vmem:[%s6183_s1 + $0x6d8] ss:$12 sps:$4 sm:$0xff]  }
  0xf8   : > { %2272 = vmatprep.subr.bf16.mxu1 %v4840_v1  ;;  %2229 = vmatprep.subr.bf16.mxu0 %v4637_v8  ;;  %v4689_v8 = vld [vmem:[%s6183_s1 + $0x6f4] ss:$12 sps:$4 sm:$0xff]  }
  0xf9   : > { %4056 = vmatprep.mubr.msk.bf16.mxu1 %vm486_vm0, %v2030_v10  ;;  %4055 = vmatprep.mubr.msk.bf16.mxu0 %vm486_vm0, %v2030_v10  ;;  %v4687_v10 = vld [vmem:[%s6183_s1 + $0x6f0] ss:$12 sps:$4 sm:$0xff]  }
  0xfb   : > { %2273 = vmatpush1.bf16.msra.mxu1 %v4638_v9  ;;  %2230 = vmatpush1.bf16.msra.mxu0 %v4635_v11  ;;  %v4690_v9 = vld [vmem:[%s6183_s1 + $0x6f8] ss:$12 sps:$4 sm:$0xff]  }
  0xfc   : > { %2274 = vmatprep.subr.bf16.mxu1 %v4840_v1  ;;  %2231 = vmatprep.subr.bf16.mxu0 %v4641_v12  ;;  %v4693_v11 = vld [vmem:[%s6183_s1 + $0x70c] ss:$12 sps:$4 sm:$0xff]   ;;  %v4694_v12 = vld [vmem:[%s6183_s1 + $0x710] ss:$12 sps:$4 sm:$0xff]  }
  0xff   : > { %2275 = vmatpush1.bf16.msra.mxu1 %v4642_v13  ;;  %2232 = vmatpush1.bf16.msra.mxu0 %v4639_v14  ;;  %v4691_v13 = vld [vmem:[%s6183_s1 + $0x708] ss:$12 sps:$4 sm:$0xff]   ;;  %v4697_v14 = vld [vmem:[%s6183_s1 + $0x724] ss:$12 sps:$4 sm:$0xff]  }
 0x100   : > { %2276 = vmatprep.subr.bf16.mxu1 %v4840_v1  ;;  %2233 = vmatprep.subr.bf16.mxu0 %v4645_v15  ;;  %v4698_v15 = vld [vmem:[%s6183_s1 + $0x728] ss:$12 sps:$4 sm:$0xff]  }
 0x103   : > { %2277 = vmatpush1.bf16.msra.mxu1 %v4646_v26  ;;  %2234 = vmatpush1.bf16.msra.mxu0 %v4643_v16  ;;  %v4695_v26 = vld [vmem:[%s6183_s1 + $0x720] ss:$12 sps:$4 sm:$0xff]   ;;  %v4701_v16 = vld [vmem:[%s6183_s1 + $0x73c] ss:$12 sps:$4 sm:$0xff]  }
 0x104   : > { %2278 = vmatprep.subr.bf16.mxu1 %v4840_v1  ;;  %2235 = vmatprep.subr.bf16.mxu0 %v4649_v17  ;;  %v4702_v17 = vld [vmem:[%s6183_s1 + $0x740] ss:$12 sps:$4 sm:$0xff]  }
 0x107   : > { %2279 = vmatpush1.bf16.msra.mxu1 %v4650_v18  ;;  %2236 = vmatpush1.bf16.msra.mxu0 %v4647_v19  ;;  %v4699_v18 = vld [vmem:[%s6183_s1 + $0x738] ss:$12 sps:$4 sm:$0xff]  }
 0x108   : > { %2280 = vmatprep.subr.bf16.mxu1 %v4840_v1  ;;  %2237 = vmatprep.subr.bf16.mxu0 %v4653_v20  ;;  %v4705_v20 = vld [vmem:[%s6183_s1 + $0x754] ss:$12 sps:$4 sm:$0xff]  }
 0x109   : > { %v5634_v23 = vpop.f32.mrb[0].mxu1 }
 0x10a   : > { %v569_v25 = vpop.f32.mrb[1].mxu1 }
 0x10b   : > { %v5639_v27 = vpop.f32.mrb[2].mxu1  ;;  %2281 = vmatpush1.bf16.msra.mxu1 %v4654_v21  ;;  %2238 = vmatpush1.bf16.msra.mxu0 %v4651_v22  ;;  %v4706_v25 = vld [vmem:[%s6183_s1 + $0x758] ss:$12 sps:$4 sm:$0xff]  }
 0x10c   : > { %v572_v29 = vpop.f32.mrb[3].mxu1  ;;  %2282 = vmatprep.subr.bf16.mxu1 %v4840_v1  ;;  %2239 = vmatprep.subr.bf16.mxu0 %v4657_v24 }
 0x10f   : > { %2283 = vmatpush1.bf16.msra.mxu1 %v4658_v28  ;;  %2240 = vmatpush1.bf16.msra.mxu0 %v4655_v30  ;;  %v4703_v30 = vld [vmem:[%s6183_s1 + $0x750] ss:$12 sps:$4 sm:$0xff]  }
 0x110   : > { %2284 = vmatprep.subr.bf16.mxu1 %v4840_v1  ;;  %2241 = vmatprep.subr.bf16.mxu0 %v4661_v31  ;;  %v4710_v31 = vld [vmem:[%s6183_s1 + $0x770] ss:$12 sps:$4 sm:$0xff]  }
 0x113   : > { %2285 = vmatpush1.bf16.msra.mxu1 %v4662_v32  ;;  %2242 = vmatpush1.bf16.msra.mxu0 %v4659_v33  ;;  %v4713_v32 = vld [vmem:[%s6183_s1 + $0x784] ss:$12 sps:$4 sm:$0xff]   ;;  %v4714_v33 = vld [vmem:[%s6183_s1 + $0x788] ss:$12 sps:$4 sm:$0xff]  }
 0x114   : > { %2286 = vmatprep.subr.bf16.mxu1 %v4840_v1  ;;  %2243 = vmatprep.subr.bf16.mxu0 %v4665_v34  ;;  %v4711_v34 = vld [vmem:[%s6183_s1 + $0x780] ss:$12 sps:$4 sm:$0xff]  }
 0x117   : > { %2287 = vmatpush1.bf16.msra.mxu1 %v4666_v36  ;;  %2244 = vmatpush1.bf16.msra.mxu0 %v4663_v37  ;;  %v4717_v36 = vld [vmem:[%s6183_s1 + $0x79c] ss:$12 sps:$4 sm:$0xff]   ;;  %v4718_v37 = vld [vmem:[%s6183_s1 + $0x7a0] ss:$12 sps:$4 sm:$0xff]  }
 0x118   : > { %2288 = vmatprep.subr.bf16.mxu1 %v4840_v1  ;;  %2245 = vmatprep.subr.bf16.mxu0 %v4669_v35  ;;  %v4715_v35 = vld [vmem:[%s6183_s1 + $0x798] ss:$12 sps:$4 sm:$0xff]  }
 0x11b   : > { %2289 = vmatpush1.bf16.msra.mxu1 %v4670_v41  ;;  %2246 = vmatpush1.bf16.msra.mxu0 %v4667_v43  ;;  %v2750_v41 = vshrl.u32 %v5710_v56, 16  ;;  %v4722_v43 = vld [vmem:[%s6183_s1 + $0x7b8] ss:$12 sps:$4 sm:$0xff]   ;;  %v4723_v56 = vld [vmem:[%s6183_s1 + $0x7c8] ss:$12 sps:$4 sm:$0xff]  }
 0x11c   : > { %2290 = vmatprep.subr.bf16.mxu1 %v4840_v1  ;;  %2247 = vmatprep.subr.bf16.mxu0 %v4673_v44  ;;  %v5843_v44 = vcombine.low %v5689_v51, %v5692_v52 }
 0x11d   : > { %v2752_v51 = vrot.slane %v2750_v41, 1 }
 0x11f   : > { %2291 = vmatpush1.bf16.msra.mxu1 %v4674_v45  ;;  %2248 = vmatpush1.bf16.msra.mxu0 %v4671_v54  ;;  %v5847_v45 = vcombine.low %v5695_v53, %v5695_v53  ;;  %v2755_v54 = vrot.slane %v2753_v42, 2  ;;  %v4726_v53 = vld [vmem:[%s6183_s1 + $0x7d0] ss:$12 sps:$4 sm:$0xff]  }
 0x120   : > { %2292 = vmatprep.subr.bf16.mxu1 %v4840_v1  ;;  %2249 = vmatprep.subr.bf16.mxu0 %v4677_v55  ;;  %v2382_v55 = vrot.slane %v5843_v44, 1 }
 0x121   : > { %v2383_v48 = vrot.slane %v5847_v45, 1  ;;  %v2756_v59 = vor.u32 %v2755_v54, %v2752_v51  ;;  %v4778_v51 = vld [vmem:[%s6183_s1 + $0x8f0] ss:$12 sps:$4 sm:$0xff]  }
 0x123   : > { %2293 = vmatpush1.bf16.msra.mxu1 %v4678_v57  ;;  %2250 = vmatpush1.bf16.msra.mxu0 %v4675_v60  ;;  %v4733_v57 = vld [vmem:[%s6183_s1 + $0x7e4] ss:$12 sps:$4 sm:$0xff]   ;;  %v2384_v60 = vsel %vm918_vm1, %v2382_v55, %v2383_v48  ;;  %v4775_v55 = vld [vmem:[%s6183_s1 + $0x8e8] ss:$12 sps:$4 sm:$0xff]   ;;  %vm3458_vm1 = vmand %vm3457_vm13, %vm1272_vm2 }
 0x124   : > { %2627 = vmatprep.subr.bf16.mxu1 %v4840_v1  ;;  %2584 = vmatprep.subr.bf16.mxu0 %v4681_v61  ;;  %v4734_v61 = vld [vmem:[%s6183_s1 + $0x7e8] ss:$12 sps:$4 sm:$0xff]   ;;  %v4781_v48 = vld [vmem:[%s6183_s1 + $0x904] ss:$12 sps:$4 sm:$0xff]   ;;  %vm3500_vm2 = vmor %vm3498_vm3, %vm3499_vm4 }
 0x126   : > { %2303 = vmatmul.mubr.bf16.vlgmr.msra.gmra.mrb[20].mxu1 %v2013_v0  ;;  %2260 = vmatmul.mubr.bf16.vlgmr.msra.gmra.mrb[0].mxu0 %v2013_v0  ;;  %v2757_v0 = vsel %vm2723_vm5, %v2748_v58, %v2756_v59  ;;  %v4782_v59 = vld [vmem:[%s6183_s1 + $0x908] ss:$12 sps:$4 sm:$0xff]  }
 0x127   : > { %2628 = vmatpush1.bf16.msra.mxu1 %v4682_v2  ;;  %2585 = vmatpush1.bf16.msra.mxu0 %v4679_v3  ;;  %v4738_v2 = vld [vmem:[%s6183_s1 + $0x800] ss:$12 sps:$4 sm:$0xff]   ;;  %v4735_v3 = vld [vmem:[%s6183_s1 + $0x7f8] ss:$12 sps:$4 sm:$0xff]  }
 0x128   : > { %2629 = vmatprep.subr.bf16.mxu1 %v4840_v1  ;;  %2586 = vmatprep.subr.bf16.mxu0 %v4685_v4  ;;  %v4741_v4 = vld [vmem:[%s6183_s1 + $0x814] ss:$12 sps:$4 sm:$0xff]  }
 0x129   : > { %4146 = vmatprep.mubr.msk.bf16.mxu1 %vm486_vm0, %v2387_v5  ;;  %4145 = vmatprep.mubr.msk.bf16.mxu0 %vm486_vm0, %v2387_v5  ;;  %v4742_v5 = vld [vmem:[%s6183_s1 + $0x818] ss:$12 sps:$4 sm:$0xff]  }
 0x12b   : > { %2630 = vmatpush1.bf16.msra.mxu1 %v4686_v6  ;;  %2587 = vmatpush1.bf16.msra.mxu0 %v4683_v7  ;;  %v4739_v6 = vld [vmem:[%s6183_s1 + $0x810] ss:$12 sps:$4 sm:$0xff]   ;;  %v4745_v7 = vld [vmem:[%s6183_s1 + $0x82c] ss:$12 sps:$4 sm:$0xff]  }
 0x12c   : > { %2631 = vmatprep.subr.bf16.mxu1 %v4840_v1  ;;  %2588 = vmatprep.subr.bf16.mxu0 %v4689_v8  ;;  %v4746_v8 = vld [vmem:[%s6183_s1 + $0x830] ss:$12 sps:$4 sm:$0xff]  }
 0x12f   : > { %2632 = vmatpush1.bf16.msra.mxu1 %v4690_v9  ;;  %2589 = vmatpush1.bf16.msra.mxu0 %v4687_v10  ;;  %v4743_v9 = vld [vmem:[%s6183_s1 + $0x828] ss:$12 sps:$4 sm:$0xff]   ;;  %v4749_v10 = vld [vmem:[%s6183_s1 + $0x844] ss:$12 sps:$4 sm:$0xff]  }
 0x130   : > { %2633 = vmatprep.subr.bf16.mxu1 %v4840_v1  ;;  %2590 = vmatprep.subr.bf16.mxu0 %v4693_v11  ;;  %v4750_v11 = vld [vmem:[%s6183_s1 + $0x848] ss:$12 sps:$4 sm:$0xff]  }
 0x133   : > { %2634 = vmatpush1.bf16.msra.mxu1 %v4694_v12  ;;  %2591 = vmatpush1.bf16.msra.mxu0 %v4691_v13  ;;  %v4747_v12 = vld [vmem:[%s6183_s1 + $0x840] ss:$12 sps:$4 sm:$0xff]   ;;  %v4753_v13 = vld [vmem:[%s6183_s1 + $0x85c] ss:$12 sps:$4 sm:$0xff]  }
 0x134   : > { %2635 = vmatprep.subr.bf16.mxu1 %v4840_v1  ;;  %2592 = vmatprep.subr.bf16.mxu0 %v4697_v14  ;;  %v4754_v14 = vld [vmem:[%s6183_s1 + $0x860] ss:$12 sps:$4 sm:$0xff]  }
 0x137   : > { %2636 = vmatpush1.bf16.msra.mxu1 %v4698_v15  ;;  %2593 = vmatpush1.bf16.msra.mxu0 %v4695_v26  ;;  %v4751_v15 = vld [vmem:[%s6183_s1 + $0x858] ss:$12 sps:$4 sm:$0xff]  }
 0x138   : > { %2637 = vmatprep.subr.bf16.mxu1 %v4840_v1  ;;  %2594 = vmatprep.subr.bf16.mxu0 %v4701_v16  ;;  %v4757_v16 = vld [vmem:[%s6183_s1 + $0x874] ss:$12 sps:$4 sm:$0xff]  }
 0x139   : > { %v846_v19 = vpop.f32.mrb[4].mxu1 }
 0x13a   : > { %v5789_v21 = vadd.f32 %v846_v19, %v5634_v23  ;;  %v848_v22 = vpop.f32.mrb[5].mxu1  ;;  %v4709_v23 = vld [vmem:[%s6183_s1 + $0x76c] ss:$12 sps:$4 sm:$0xff]  }
 0x13b   : > { %v849_v24 = vpop.f32.mrb[6].mxu1  ;;  %2638 = vmatpush1.bf16.msra.mxu1 %v4702_v17  ;;  %2595 = vmatpush1.bf16.msra.mxu0 %v4699_v18 }
 0x13c   : > { %v5795_v28 = vadd.f32 %v849_v24, %v5639_v27  ;;  %v851_v29 = vpop.f32.mrb[7].mxu1  ;;  %2639 = vmatprep.subr.bf16.mxu1 %v4840_v1  ;;  %2596 = vmatprep.subr.bf16.mxu0 %v4705_v20  ;;  %v4707_v27 = vld [vmem:[%s6183_s1 + $0x768] ss:$12 sps:$4 sm:$0xff]   ;;  %v4758_v20 = vld [vmem:[%s6183_s1 + $0x878] ss:$12 sps:$4 sm:$0xff]  }
 0x13d   : > { %v4762_v29 = vld [vmem:[%s6183_s1 + $0x890] ss:$12 sps:$4 sm:$0xff]  }
 0x13f   : > { %2640 = vmatpush1.bf16.msra.mxu1 %v4706_v25  ;;  %2597 = vmatpush1.bf16.msra.mxu0 %v4703_v30  ;;  %v4755_v25 = vld [vmem:[%s6183_s1 + $0x870] ss:$12 sps:$4 sm:$0xff]  }
 0x140   : > { %2641 = vmatprep.subr.bf16.mxu1 %v4840_v1  ;;  %2598 = vmatprep.subr.bf16.mxu0 %v4709_v23  ;;  %v4765_v30 = vld [vmem:[%s6183_s1 + $0x8a4] ss:$12 sps:$4 sm:$0xff]   ;;  %v4766_v23 = vld [vmem:[%s6183_s1 + $0x8a8] ss:$12 sps:$4 sm:$0xff]  }
 0x143   : > { %2642 = vmatpush1.bf16.msra.mxu1 %v4710_v31  ;;  %2599 = vmatpush1.bf16.msra.mxu0 %v4707_v27  ;;  %v4763_v31 = vld [vmem:[%s6183_s1 + $0x8a0] ss:$12 sps:$4 sm:$0xff]   ;;  %v4769_v27 = vld [vmem:[%s6183_s1 + $0x8bc] ss:$12 sps:$4 sm:$0xff]  }
 0x144   : > { %2643 = vmatprep.subr.bf16.mxu1 %v4840_v1  ;;  %2600 = vmatprep.subr.bf16.mxu0 %v4713_v32  ;;  %v2725_v32 = vshrl.u32 %v5843_v44, 16 }
 0x146   : > { %v2727_v40 = vrot.slane %v2725_v32, 1  ;;  %v4821_v32 = vld [vmem:[%s6183_s1 + $0x9f4] ss:$12 sps:$4 sm:$0xff]  }
 0x147   : > { %2644 = vmatpush1.bf16.msra.mxu1 %v4714_v33  ;;  %2601 = vmatpush1.bf16.msra.mxu0 %v4711_v34  ;;  %v2728_v33 = vshll.u32 %v5843_v44, 16  ;;  %v4770_v34 = vld [vmem:[%s6183_s1 + $0x8c0] ss:$12 sps:$4 sm:$0xff]  }
 0x148   : > { %2645 = vmatprep.subr.bf16.mxu1 %v4840_v1  ;;  %2602 = vmatprep.subr.bf16.mxu0 %v4717_v36  ;;  %v2733_v36 = vshrl.u32 %v5847_v45, 16  ;;  %v5986_v44 = vld [vmem:[%s4953_s9 + $0x8] sm:$0xcc] }
 0x149   : > { %v2730_v41 = vrot.slane %v2728_v33, 2  ;;  %v4282_v49 = vcombine.high %v5986_v44, %v5692_v52  ;;  %v4822_v33 = vld [vmem:[%s6183_s1 + $0x9f8] ss:$12 sps:$4 sm:$0xff]  }
 0x14a   : > { %v2735_v42 = vrot.slane %v2733_v36, 1 }
 0x14b   : > { %2646 = vmatpush1.bf16.msra.mxu1 %v4718_v37  ;;  %2603 = vmatpush1.bf16.msra.mxu0 %v4715_v35  ;;  %v2736_v37 = vshll.u32 %v5847_v45, 16  ;;  %v4767_v35 = vld [vmem:[%s6183_s1 + $0x8b8] ss:$12 sps:$4 sm:$0xff]   ;;  %v2731_v54 = vor.u32 %v2730_v41, %v2727_v40  ;;  %v4823_v40 = vld [vmem:[%s6183_s1 + $0xa08] ss:$12 sps:$4 sm:$0xff]  }
 0x14c   : > { %2647 = vmatprep.subr.bf16.mxu1 %v4840_v1  ;;  %2604 = vmatprep.subr.bf16.mxu0 %v4721_v38  ;;  %v4773_v38 = vld [vmem:[%s6183_s1 + $0x8d4] ss:$12 sps:$4 sm:$0xff]   ;;  %v5989_v45 = vld [vmem:[%s4953_s9 + $0x18] sm:$0x33] }
 0x14d   : > { %v4284_v50 = vcombine.high %v5989_v45, %v5989_v45  ;;  %v4283_v36 = vcombine.low %v5989_v45, %v5989_v45 }
 0x14f   : > { %2648 = vmatpush1.bf16.msra.mxu1 %v4722_v43  ;;  %2605 = vmatpush1.bf16.msra.mxu0 %v4719_v46  ;;  %v2738_v43 = vrot.slane %v2736_v37, 2  ;;  %v4771_v46 = vld [vmem:[%s6183_s1 + $0x8d0] ss:$12 sps:$4 sm:$0xff]  }
 0x150   : > { %2649 = vmatprep.subr.bf16.mxu1 %v4840_v1  ;;  %2606 = vmatprep.subr.bf16.mxu0 %v4725_v47  ;;  %v4777_v47 = vld [vmem:[%s6183_s1 + $0x8ec] ss:$12 sps:$4 sm:$0xff]   ;;  %v4819_v37 = vld [vmem:[%s6183_s1 + $0x9f0] ss:$12 sps:$4 sm:$0xff]  }
 0x153   : > { %2650 = vmatpush1.bf16.msra.mxu1 %v4726_v53  ;;  %2607 = vmatpush1.bf16.msra.mxu0 %v4723_v56  ;;  %v2739_v53 = vor.u32 %v2738_v43, %v2735_v42  ;;  %v3109_v56 = vrot.slane %v4282_v49, 2 }
 0x154   : > { %2997 = vmatprep.subr.bf16.mxu1 %v4840_v1  ;;  %2954 = vmatprep.subr.bf16.mxu0 %v4733_v57  ;;  %v3110_v57 = vrot.slane %v4284_v50, 2 }
 0x155   : > { %v2740_v58 = vsel %vm2723_vm5, %v2731_v54, %v2739_v53 }
 0x156   : > { %2660 = vmatmul.mubr.bf16.vlgmr.msra.gmra.mrb[24].mxu1 %v2384_v60  ;;  %2617 = vmatmul.mubr.bf16.vlgmr.msra.gmra.mrb[0].mxu0 %v2384_v60  ;;  %v4779_v60 = vld [vmem:[%s6183_s1 + $0x900] ss:$12 sps:$4 sm:$0xff]  }
 0x157   : > { %2998 = vmatpush1.bf16.msra.mxu1 %v4734_v61  ;;  %2955 = vmatpush1.bf16.msra.mxu0 %v4731_v62  ;;  %v4785_v61 = vld [vmem:[%s6183_s1 + $0x91c] ss:$12 sps:$4 sm:$0xff]   ;;  %v3111_v62 = vsel %vm3105_vm6, %v3109_v56, %v3110_v57 }
 0x158   : > { %2999 = vmatprep.subr.bf16.mxu1 %v4840_v1  ;;  %2956 = vmatprep.subr.bf16.mxu0 %v4737_v63  ;;  %v4786_v63 = vld [vmem:[%s6183_s1 + $0x920] ss:$12 sps:$4 sm:$0xff]  }
 0x159   : > { %4232 = vmatprep.mubr.msk.bf16.mxu1 %vm486_vm0, %v2757_v0  ;;  %4231 = vmatprep.mubr.msk.bf16.mxu0 %vm486_vm0, %v2757_v0  ;;  %v4783_v0 = vld [vmem:[%s6183_s1 + $0x918] ss:$12 sps:$4 sm:$0xff]  }
 0x15b   : > { %3000 = vmatpush1.bf16.msra.mxu1 %v4738_v2  ;;  %2957 = vmatpush1.bf16.msra.mxu0 %v4735_v3  ;;  %v4789_v2 = vld [vmem:[%s6183_s1 + $0x934] ss:$12 sps:$4 sm:$0xff]   ;;  %v4790_v3 = vld [vmem:[%s6183_s1 + $0x938] ss:$12 sps:$4 sm:$0xff]  }
 0x15c   : > { %3001 = vmatprep.subr.bf16.mxu1 %v4840_v1  ;;  %2958 = vmatprep.subr.bf16.mxu0 %v4741_v4  ;;  %v4787_v4 = vld [vmem:[%s6183_s1 + $0x930] ss:$12 sps:$4 sm:$0xff]  }
 0x15f   : > { %3002 = vmatpush1.bf16.msra.mxu1 %v4742_v5  ;;  %2959 = vmatpush1.bf16.msra.mxu0 %v4739_v6  ;;  %v4793_v5 = vld [vmem:[%s6183_s1 + $0x94c] ss:$12 sps:$4 sm:$0xff]   ;;  %v4794_v6 = vld [vmem:[%s6183_s1 + $0x950] ss:$12 sps:$4 sm:$0xff]  }
 0x160   : > { %3003 = vmatprep.subr.bf16.mxu1 %v4840_v1  ;;  %2960 = vmatprep.subr.bf16.mxu0 %v4745_v7  ;;  %v4791_v7 = vld [vmem:[%s6183_s1 + $0x948] ss:$12 sps:$4 sm:$0xff]  }
 0x163   : > { %3004 = vmatpush1.bf16.msra.mxu1 %v4746_v8  ;;  %2961 = vmatpush1.bf16.msra.mxu0 %v4743_v9  ;;  %v4797_v8 = vld [vmem:[%s6183_s1 + $0x964] ss:$12 sps:$4 sm:$0xff]   ;;  %v4798_v9 = vld [vmem:[%s6183_s1 + $0x968] ss:$12 sps:$4 sm:$0xff]  }
 0x164   : > { %3005 = vmatprep.subr.bf16.mxu1 %v4840_v1  ;;  %2962 = vmatprep.subr.bf16.mxu0 %v4749_v10  ;;  %v4795_v10 = vld [vmem:[%s6183_s1 + $0x960] ss:$12 sps:$4 sm:$0xff]  }
 0x167   : > { %3006 = vmatpush1.bf16.msra.mxu1 %v4750_v11  ;;  %2963 = vmatpush1.bf16.msra.mxu0 %v4747_v12  ;;  %v4801_v11 = vld [vmem:[%s6183_s1 + $0x97c] ss:$12 sps:$4 sm:$0xff]   ;;  %v4802_v12 = vld [vmem:[%s6183_s1 + $0x980] ss:$12 sps:$4 sm:$0xff]  }
 0x168   : > { %3007 = vmatprep.subr.bf16.mxu1 %v4840_v1  ;;  %2964 = vmatprep.subr.bf16.mxu0 %v4753_v13  ;;  %v4799_v13 = vld [vmem:[%s6183_s1 + $0x978] ss:$12 sps:$4 sm:$0xff]  }
 0x169   : > { %v1198_v26 = vpop.f32.mrb[8].mxu1 }
 0x16a   : > { %v5933_v17 = vadd.f32 %v1198_v26, %v5789_v21  ;;  %v1200_v18 = vpop.f32.mrb[9].mxu1  ;;  %v4761_v21 = vld [vmem:[%s6183_s1 + $0x88c] ss:$12 sps:$4 sm:$0xff]  }
 0x16b   : > { %v1201_v19 = vpop.f32.mrb[10].mxu1  ;;  %3008 = vmatpush1.bf16.msra.mxu1 %v4754_v14  ;;  %2965 = vmatpush1.bf16.msra.mxu0 %v4751_v15  ;;  %v4805_v15 = vld [vmem:[%s6183_s1 + $0x994] ss:$12 sps:$4 sm:$0xff]  }
 0x16c   : > { %v5939_v22 = vadd.f32 %v1201_v19, %v5795_v28  ;;  %v1203_v24 = vpop.f32.mrb[11].mxu1  ;;  %3009 = vmatprep.subr.bf16.mxu1 %v4840_v1  ;;  %2966 = vmatprep.subr.bf16.mxu0 %v4757_v16  ;;  %v4759_v28 = vld [vmem:[%s6183_s1 + $0x888] ss:$12 sps:$4 sm:$0xff]   ;;  %v4806_v19 = vld [vmem:[%s6183_s1 + $0x998] ss:$12 sps:$4 sm:$0xff]  }
 0x16f   : > { %3010 = vmatpush1.bf16.msra.mxu1 %v4758_v20  ;;  %2967 = vmatpush1.bf16.msra.mxu0 %v4755_v25  ;;  %v4803_v25 = vld [vmem:[%s6183_s1 + $0x990] ss:$12 sps:$4 sm:$0xff]  }
 0x170   : > { %3011 = vmatprep.subr.bf16.mxu1 %v4840_v1  ;;  %2968 = vmatprep.subr.bf16.mxu0 %v4761_v21  ;;  %v4810_v21 = vld [vmem:[%s6183_s1 + $0x9b0] ss:$12 sps:$4 sm:$0xff]  }
 0x173   : > { %3012 = vmatpush1.bf16.msra.mxu1 %v4762_v29  ;;  %2969 = vmatpush1.bf16.msra.mxu0 %v4759_v28  ;;  %v4813_v29 = vld [vmem:[%s6183_s1 + $0x9c4] ss:$12 sps:$4 sm:$0xff]   ;;  %v4814_v28 = vld [vmem:[%s6183_s1 + $0x9c8] ss:$12 sps:$4 sm:$0xff]  }
 0x174   : > { %3013 = vmatprep.subr.bf16.mxu1 %v4840_v1  ;;  %2970 = vmatprep.subr.bf16.mxu0 %v4765_v30  ;;  %v4811_v30 = vld [vmem:[%s6183_s1 + $0x9c0] ss:$12 sps:$4 sm:$0xff]  }
 0x177   : > { %3014 = vmatpush1.bf16.msra.mxu1 %v4766_v23  ;;  %2971 = vmatpush1.bf16.msra.mxu0 %v4763_v31  ;;  %v4817_v23 = vld [vmem:[%s6183_s1 + $0x9dc] ss:$12 sps:$4 sm:$0xff]   ;;  %v4818_v31 = vld [vmem:[%s6183_s1 + $0x9e0] ss:$12 sps:$4 sm:$0xff]  }
 0x178   : > { %3015 = vmatprep.subr.bf16.mxu1 %v4840_v1  ;;  %2972 = vmatprep.subr.bf16.mxu0 %v4769_v27  ;;  %v4815_v27 = vld [vmem:[%s6183_s1 + $0x9d8] ss:$12 sps:$4 sm:$0xff]  }
 0x17b   : > { %3016 = vmatpush1.bf16.msra.mxu1 %v4770_v34  ;;  %2973 = vmatpush1.bf16.msra.mxu0 %v4767_v35  ;;  %v4281_v34 = vcombine.low %v5986_v44, %v5692_v52  ;;  %v4825_v35 = vld [vmem:[%s6183_s1 + $0xa0c] ss:$12 sps:$4 sm:$0xff]   ;;  %v4826_v52 = vld [vmem:[%s6183_s1 + $0xa10] ss:$12 sps:$4 sm:$0xff]  }
 0x17c   : > { %3017 = vmatprep.subr.bf16.mxu1 %v4840_v1  ;;  %2974 = vmatprep.subr.bf16.mxu0 %v4773_v38 }
 0x17d   : > { %v3106_v38 = vrot.slane %v4281_v34, 2 }
 0x17f   : > { %3018 = vmatpush1.bf16.msra.mxu1 %v4774_v39  ;;  %2975 = vmatpush1.bf16.msra.mxu0 %v4771_v46  ;;  %v3107_v39 = vrot.slane %v4283_v36, 2 }
 0x180   : > { %3019 = vmatprep.subr.bf16.mxu1 %v4840_v1  ;;  %2976 = vmatprep.subr.bf16.mxu0 %v4777_v47 }
 0x181   : > { %v3108_v41 = vsel %vm3105_vm6, %v3106_v38, %v3107_v39  ;;  %vm3501_vm6 = vcmask 1046534  }
 0x182   : > { %vm3502_vm7 = vmor %vm3500_vm2, %vm3501_vm6 }
 0x183   : > { %3020 = vmatpush1.bf16.msra.mxu1 %v4778_v51  ;;  %2977 = vmatpush1.bf16.msra.mxu0 %v4775_v55 }
 0x184   : > { %3351 = vmatprep.subr.bf16.mxu1 %v4840_v1  ;;  %3308 = vmatprep.subr.bf16.mxu0 %v4781_v48 }
 0x186   : > { %3030 = vmatmul.mubr.bf16.vlgmr.msra.gmra.mrb[28].mxu1 %v2740_v58  ;;  %2987 = vmatmul.mubr.bf16.vlgmr.msra.gmra.mrb[0].mxu0 %v2740_v58 }
 0x187   : > { %3352 = vmatpush1.bf16.msra.mxu1 %v4782_v59  ;;  %3309 = vmatpush1.bf16.msra.mxu0 %v4779_v60 }
 0x188   : > { %3353 = vmatprep.subr.bf16.mxu1 %v4840_v1  ;;  %3310 = vmatprep.subr.bf16.mxu0 %v4785_v61 }
 0x189   : > { %4322 = vmatprep.mubr.msk.bf16.mxu1 %vm486_vm0, %v3111_v62  ;;  %4321 = vmatprep.mubr.msk.bf16.mxu0 %vm486_vm0, %v3111_v62  ;;  %vm3456_vm0 = vmor %vm6148_vm12, %vm6143_vm11 }
 0x18a   : > { %vm6163_vm5 = vmor %vm3458_vm1, %vm3456_vm0 }
 0x18b   : > { %3354 = vmatpush1.bf16.msra.mxu1 %v4786_v63  ;;  %3311 = vmatpush1.bf16.msra.mxu0 %v4783_v0 }
 0x18c   : > { %3355 = vmatprep.subr.bf16.mxu1 %v4840_v1  ;;  %3312 = vmatprep.subr.bf16.mxu0 %v4789_v2 }
 0x18f   : > { %3356 = vmatpush1.bf16.msra.mxu1 %v4790_v3  ;;  %3313 = vmatpush1.bf16.msra.mxu0 %v4787_v4  ;;  %v3400_v3 = vlaneseq }
 0x190   : > { %3357 = vmatprep.subr.bf16.mxu1 %v4840_v1  ;;  %3314 = vmatprep.subr.bf16.mxu0 %v4793_v5 }
 0x191   : > { %v3401_v4 = vshrl.u32 %v3400_v3, 7 }
 0x193   : > { %3358 = vmatpush1.bf16.msra.mxu1 %v4794_v6  ;;  %3315 = vmatpush1.bf16.msra.mxu0 %v4791_v7  ;;  %v3402_v5 = vsub.s32 0, %v3401_v4  ;;  %v3398_v6 = vld [vmem:[%s6184_s2] sm:$0x7]  ;;  %v3410_v7 = vsub.s32 2, %v3401_v4 }
 0x194   : > { %3359 = vmatprep.subr.bf16.mxu1 %v4840_v1  ;;  %3316 = vmatprep.subr.bf16.mxu0 %v4797_v8  ;;  %v3406_v8 = vsub.s32 1, %v3401_v4 }
 0x197   : > { %3360 = vmatpush1.bf16.msra.mxu1 %v4798_v9  ;;  %3317 = vmatpush1.bf16.msra.mxu0 %v4795_v10  ;;  %v3403_v9 = vrot.slane %v3398_v6, %v3402_v5  ;;  %v4841_v10 = vmov 1983009808  }
 0x198   : > { %3361 = vmatprep.subr.bf16.mxu1 %v4840_v1  ;;  %3318 = vmatprep.subr.bf16.mxu0 %v4801_v11  ;;  %v3435_v11 = vunpack.c.l.s4 %v4841_v10 }
 0x199   : > { %v1580_v14 = vpop.f32.mrb[12].mxu1 }
 0x19a   : > { %v1589_v26 = vadd.f32 %v1580_v14, %v5933_v17  ;;  %v1582_v16 = vpop.f32.mrb[13].mxu1  ;;  %v4809_v17 = vld [vmem:[%s6183_s1 + $0x9ac] ss:$12 sps:$4 sm:$0xff]  }
 0x19b   : > { %v1583_v18 = vpop.f32.mrb[14].mxu1  ;;  %3362 = vmatpush1.bf16.msra.mxu1 %v4802_v12  ;;  %3319 = vmatpush1.bf16.msra.mxu0 %v4799_v13  ;;  %v3411_v12 = vrot.slane %v3398_v6, %v3410_v7  ;;  %v3407_v13 = vrot.slane %v3398_v6, %v3406_v8 }
 0x19c   : > { %v1592_v20 = vadd.f32 %v1583_v18, %v5939_v22  ;;  %v1585_v24 = vpop.f32.mrb[15].mxu1  ;;  %3363 = vmatprep.subr.bf16.mxu1 %v4840_v1  ;;  %3320 = vmatprep.subr.bf16.mxu0 %v4805_v15  ;;  %v4807_v22 = vld [vmem:[%s6183_s1 + $0x9a8] ss:$12 sps:$4 sm:$0xff]  }
 0x19f   : > { %3364 = vmatpush1.bf16.msra.mxu1 %v4806_v19  ;;  %3321 = vmatpush1.bf16.msra.mxu0 %v4803_v25 }
 0x1a0   : > { %3365 = vmatprep.subr.bf16.mxu1 %v4840_v1  ;;  %3322 = vmatprep.subr.bf16.mxu0 %v4809_v17 }
 0x1a3   : > { %3366 = vmatpush1.bf16.msra.mxu1 %v4810_v21  ;;  %3323 = vmatpush1.bf16.msra.mxu0 %v4807_v22 }
 0x1a4   : > { %3367 = vmatprep.subr.bf16.mxu1 %v4840_v1  ;;  %3324 = vmatprep.subr.bf16.mxu0 %v4813_v29 }
 0x1a7   : > { %3368 = vmatpush1.bf16.msra.mxu1 %v4814_v28  ;;  %3325 = vmatpush1.bf16.msra.mxu0 %v4811_v30 }
 0x1a8   : > { %3369 = vmatprep.subr.bf16.mxu1 %v4840_v1  ;;  %3326 = vmatprep.subr.bf16.mxu0 %v4817_v23 }
 0x1ab   : > { %3370 = vmatpush1.bf16.msra.mxu1 %v4818_v31  ;;  %3327 = vmatpush1.bf16.msra.mxu0 %v4815_v27 }
 0x1ac   : > { %3371 = vmatprep.subr.bf16.mxu1 %v4840_v1  ;;  %3328 = vmatprep.subr.bf16.mxu0 %v4821_v32 }
 0x1af   : > { %3372 = vmatpush1.bf16.msra.mxu1 %v4822_v33  ;;  %3329 = vmatpush1.bf16.msra.mxu0 %v4819_v37 }
 0x1b0   : > { %3373 = vmatprep.subr.bf16.mxu1 %v4840_v1  ;;  %3330 = vmatprep.subr.bf16.mxu0 %v4825_v35 }
 0x1b3   : > { %3374 = vmatpush1.bf16.msra.mxu1 %v4826_v52  ;;  %3331 = vmatpush1.bf16.msra.mxu0 %v4823_v40 }
 0x1b6   : > { %3384 = vmatmul.mubr.bf16.vlgmr.msra.gmra.mrb[32].mxu1 %v3108_v41  ;;  %3341 = vmatmul.mubr.bf16.vlgmr.msra.gmra.mrb[0].mxu0 %v3108_v41 }
 0x1c9   : > { %v1934_v42 = vpop.f32.mrb[16].mxu1 }
 0x1ca   : > { %v1943_v43 = vadd.f32 %v1934_v42, %v1589_v26  ;;  %v1936_v44 = vpop.f32.mrb[17].mxu1 }
 0x1cb   : > { %v1937_v45 = vpop.f32.mrb[18].mxu1 }
 0x1cc   : > { %v1946_v46 = vadd.f32 %v1937_v45, %v1592_v20  ;;  %v1939_v47 = vpop.f32.mrb[19].mxu1  ;;  %v3436_v20 = vunpack.c.0.s8 %v3435_v11 }
 0x1ce   : > { %v3439_v36 = vsub.s32 %v3436_v20, %v3401_v4 }
 0x1f9   : > { %v2304_v49 = vpop.f32.mrb[20].mxu1 }
 0x1fa   : > { %v2313_v50 = vadd.f32 %v2304_v49, %v1943_v43  ;;  %v2306_v1 = vpop.f32.mrb[21].mxu1  ;;  %v3460_v49 = vld [vmem:[%s6161_s13] sm:$0x3f] }
 0x1fb   : > { %v2307_v51 = vpop.f32.mrb[22].mxu1 }
 0x1fc   : > { %v2316_v54 = vadd.f32 %v2307_v51, %v1946_v46  ;;  %v2309_v53 = vpop.f32.mrb[23].mxu1 }
 0x229   : > { %v2661_v55 = vpop.f32.mrb[24].mxu1 }
 0x22a   : > { %v2670_v48 = vadd.f32 %v2661_v55, %v2313_v50  ;;  %v2663_v56 = vpop.f32.mrb[25].mxu1 }
 0x22b   : > { %v2664_v57 = vpop.f32.mrb[26].mxu1 }
 0x22c   : > { %v2673_v58 = vadd.f32 %v2664_v57, %v2316_v54  ;;  %v2666_v59 = vpop.f32.mrb[27].mxu1 }
 0x259   : > { %v3031_v60 = vpop.f32.mrb[28].mxu1 }
 0x25a   : > { %v3040_v61 = vadd.f32 %v3031_v60, %v2670_v48  ;;  %v3033_v62 = vpop.f32.mrb[29].mxu1 }
 0x25b   : > { %v3034_v63 = vpop.f32.mrb[30].mxu1 }
 0x25c   : > { %v3043_v0 = vadd.f32 %v3034_v63, %v2673_v58  ;;  %v3036_v2 = vpop.f32.mrb[31].mxu1  ;;  %v4329_v58 = vld [vmem:[%s6161_s13 + $0xc] sm:$0x3f] }
 0x289   : > { %v3385_v14 = vpop.f32.mrb[32].mxu1  ;;  %v3342_v26 = vpop.f32.mrb[0].mxu0 }
 0x28a   : > { %v3394_v15 = vadd.f32 %v3385_v14, %v3040_v61  ;;  %v3387_v16 = vpop.f32.mrb[33].mxu1  ;;  %v3415_v18 = vadd.f32 %v3403_v9, %v3342_v26  ;;  %v3344_v19 = vpop.f32.mrb[1].mxu0 }
 0x28b   : > { %v3388_v24 = vpop.f32.mrb[34].mxu1  ;;  %v3416_v21 = vadd.f32 %v3407_v13, %v3344_v19  ;;  %v3346_v29 = vpop.f32.mrb[2].mxu0 }
 0x28c   : > { %v3417_v17 = vadd.f32 %v3411_v12, %v3394_v15  ;;  %v3397_v22 = vadd.f32 %v3388_v24, %v3043_v0  ;;  %v3390_v28 = vpop.f32.mrb[35].mxu1  ;;  %v3421_v23 = vmax.f32 %v3415_v18, 0.0  ;;  %v3418_v31 = vadd.f32 %v3403_v9, %v3346_v29  ;;  %v3348_v27 = vpop.f32.mrb[3].mxu0  ;;  %v4324_v0 = vld [vmem:[%s6161_s13 + $0x6] sm:$0x3f] }
 0x28d   : > { %v3422_v32 = vmax.f32 %v3416_v21, 0.0  ;;  %v3419_v34 = vadd.f32 %v3407_v13, %v3348_v27 }
 0x28e   : > { %v3420_v33 = vadd.f32 %v3411_v12, %v3397_v22  ;;  %v3424_v37 = vmax.f32 %v3418_v31, 0.0  ;;  %v3423_v35 = vmax.f32 %v3417_v17, 0.0 }
 0x28f   : > { %v4323_v52 = vpack.c.bf16 %v3422_v32, %v3421_v23  ;;  %v3425_v39 = vmax.f32 %v3419_v34, 0.0 }
 0x290   : > { %v3426_v38 = vmax.f32 %v3420_v33, 0.0 }
 0x291   : > { %v4326_v42 = vpack.c.bf16 %v3425_v39, %v3424_v37  ;;  %v3440_v44 = vrot.slane %v4323_v52, %v3439_v36 }
 0x292   : > { %v3429_v40 = vpack.c.bf16 %v3426_v38, %v3423_v35  ;;  %v4327_v41 = vpack.c.bf16 %v3426_v38, %v3426_v38 }
 0x293   : > { %v3486_v47 = vrot.slane %v4326_v42, %v3439_v36 }
 0x294   : > { %v3447_v45 = vrot.slane %v3429_v40, %v3439_v36  ;;  %v3493_v46 = vrot.slane %v4327_v41, %v3439_v36 }
 0x296   : > { %v3448_v50 = vcombine.low %v3440_v44, %v3447_v45  ;;  %v3463_v1 = vcombine.high %v3440_v44, %v3447_v45  ;;  %v3494_v51 = vcombine.low %v3486_v47, %v3493_v46  ;;  %v3495_v54 = vcombine.high %v3486_v47, %v3493_v46 }
 0x298   : > { %v3461_v53 = vsel %vm6163_vm5, %v3448_v50, %v3460_v49  ;;  %v3465_v55 = vshrl.u32 %v3463_v1, 16  ;;  %v3468_v48 = vshll.u32 %v3463_v1, 16  ;;  %v4328_v56 = vrot.slane %v3494_v51, 9 }
 0x299   : > { %3462 = vst [vmem:[%s6161_s13] sm:$0x3f] %v3461_v53  ;;  %v3505_v57 = vrot.slane %v3495_v54, 7 }
 0x29a   : > { %v3467_v59 = vrot.slane %v3465_v55, 6  ;;  %v3470_v60 = vrot.slane %v3468_v48, 7 }
 0x29b   : > { %v3506_v61 = vsel %vm3502_vm7, %v4328_v56, %v3505_v57 }
 0x29c   : > { %v3471_v62 = vor.u32 %v3470_v60, %v3467_v59  ;;  %v3510_v63 = vsel %vm6163_vm5, %v3506_v61, %v4329_v58 }
 0x29d   : > { %4330 = vst [vmem:[%s6161_s13 + $0xc] sm:$0x3f] %v3510_v63 }
 0x29e   : > { %v3472_v2 = vrot.slane %v3471_v62, 2 }
 0x2a0   : > { %v3476_v3 = vsel %vm6163_vm5, %v3472_v2, %v4324_v0 }
 0x2a1   : > { %4325 = vst [vmem:[%s6161_s13 + $0x6] sm:$0x3f] %v3476_v3 }
 0x2a2 PF: > { %s13_s12 = sadd.s32 1, %s4838_s12  }
 0x2a3   : > { %p10_p4 = scmp.ge.s32.totalorder %s13_s12, 6  }
 0x2a5   :  { %12 = sbr.rel (!%p10_p4) target bundleno = 1 (0x1), region = 72 }

// kernel: mrnet_forward.9
= control target key start
LH: loop header
LB: loop body
LE: loop exit
PB: predicated region body
PF: predicated region fallthrough
CT: control target
= control target key end

     0   :  { %s5746_s12 = smov 0   ;;  %s7367_s0 = inlined_call_operand.vmem [shape: bf16[4,30,384], index: 0, kind: input, shape index: {}]   ;;  %s7368_s1 = inlined_call_operand.vmem [shape: bf16[9,384,256], index: 1, kind: input, shape index: {}]   ;;  %s7369_s2 = inlined_call_operand.vmem [shape: f32[1,256], index: 2, kind: input, shape index: {}]   ;;  %s7370_s3 = inlined_call_operand.vmem [shape: bf16[4,3,3,256], index: 3, kind: output, shape index: {}]  }
   0x1 LB: > { %s4086_s13 = sadd.s32 4294967295, %s5722_s12   ;;  %p4090_p0 = scmp.ge.s32.totalorder %s5722_s12, 1  ;;  %s5722_s12 = sphi %s5746_s12, %s13_s12  }
   0x2   : > { %p137_p1 = scmp.lt.s32.totalorder %s5722_s12, 5 }
   0x4   : > { %p138_p2 = pnand %p4090_p0, %p137_p1 }
   0x5   : > { %v5031_v0 = vld [vmem:[%s7368_s1 + $0x184] ss:$8 sps:$4 sm:$0xff] (!%p138_p2)   ;;  %v5724_v2 = vmov (!%p138_p2), 0   ;;  %v5035_v3 = vld [vmem:[%s7368_s1 + $0x180] ss:$8 sps:$4 sm:$0xff] (!%p138_p2)   ;;  %p161_p3 = scmp.lt.s32.totalorder (!%p138_p2), %s4086_s13, 3 }
   0x6   : > { %141 = sbr.rel (%p138_p2) target bundleno = 690 (0x2b2), region = 32  ;;  %v5033_v1 = vld [vmem:[%s7368_s1 + $0x104] ss:$8 sps:$4 sm:$0xff] (!%p138_p2)   ;;  %954 = vmatprep.mubr.bf16.mxu0 (!%p138_p2), %v5724_v2  ;;  %550 = vmatprep.subr.bf16.mxu1 (!%p138_p2), %v5031_v0  ;;  %v5036_v4 = vld [vmem:[%s7368_s1 + $0x100] ss:$8 sps:$4 sm:$0xff] (!%p138_p2)   ;;  %vm1041_vm0 = vcmask (!%p138_p2), 1046528  }
   0x7   : > { %922 = vmatprep.subr.bf16.mxu0 (!%p138_p2), %v5033_v1  ;;  %v5037_v5 = vld [vmem:[%s7368_s1 + $0x194] ss:$8 sps:$4 sm:$0xff] (!%p138_p2)   ;;  %551 = vmatpush1.bf16.msra.mxu1 (!%p138_p2), %v5035_v3  ;;  %v5041_v7 = vld [vmem:[%s7368_s1 + $0x190] ss:$8 sps:$4 sm:$0xff] (!%p138_p2)   ;;  %v5043_v9 = vld [vmem:[%s7368_s1 + $0x1a4] ss:$8 sps:$4 sm:$0xff] (!%p138_p2)  }
   0x8   : > { %923 = vmatpush1.bf16.msra.mxu0 (!%p138_p2), %v5036_v4  ;;  %v5039_v6 = vld [vmem:[%s7368_s1 + $0x114] ss:$8 sps:$4 sm:$0xff] (!%p138_p2)   ;;  %552 = vmatprep.subr.bf16.mxu1 (!%p138_p2), %v5037_v5  ;;  %v5042_v8 = vld [vmem:[%s7368_s1 + $0x110] ss:$8 sps:$4 sm:$0xff] (!%p138_p2)   ;;  %v5045_v10 = vld [vmem:[%s7368_s1 + $0x124] ss:$8 sps:$4 sm:$0xff] (!%p138_p2)  }
   0x9   : > { %924 = vmatprep.subr.bf16.mxu0 (!%p138_p2), %v5039_v6  ;;  %v5047_v11 = vld [vmem:[%s7368_s1 + $0x1a0] ss:$8 sps:$4 sm:$0xff] (!%p138_p2)   ;;  %v5049_v13 = vld [vmem:[%s7368_s1 + $0x1b4] ss:$8 sps:$4 sm:$0xff] (!%p138_p2)   ;;  %v5053_v15 = vld [vmem:[%s7368_s1 + $0x1b0] ss:$8 sps:$4 sm:$0xff] (!%p138_p2)  }
   0xa   : > { %v5048_v12 = vld [vmem:[%s7368_s1 + $0x120] ss:$8 sps:$4 sm:$0xff] (!%p138_p2)   ;;  %v5051_v14 = vld [vmem:[%s7368_s1 + $0x134] ss:$8 sps:$4 sm:$0xff] (!%p138_p2)   ;;  %v5054_v16 = vld [vmem:[%s7368_s1 + $0x130] ss:$8 sps:$4 sm:$0xff] (!%p138_p2)  }
   0xb   : > { %553 = vmatpush1.bf16.msra.mxu1 (!%p138_p2), %v5041_v7  ;;  %v5055_v17 = vld [vmem:[%s7368_s1 + $0x1c4] ss:$8 sps:$4 sm:$0xff] (!%p138_p2)   ;;  %v5059_v19 = vld [vmem:[%s7368_s1 + $0x1c0] ss:$8 sps:$4 sm:$0xff] (!%p138_p2)   ;;  %v5061_v21 = vld [vmem:[%s7368_s1 + $0x1d4] ss:$8 sps:$4 sm:$0xff] (!%p138_p2)  }
   0xc   : > { %925 = vmatpush1.bf16.msra.mxu0 (!%p138_p2), %v5042_v8  ;;  %554 = vmatprep.subr.bf16.mxu1 (!%p138_p2), %v5043_v9  ;;  %v5057_v18 = vld [vmem:[%s7368_s1 + $0x144] ss:$8 sps:$4 sm:$0xff] (!%p138_p2)   ;;  %v5060_v20 = vld [vmem:[%s7368_s1 + $0x140] ss:$8 sps:$4 sm:$0xff] (!%p138_p2)   ;;  %v5063_v22 = vld [vmem:[%s7368_s1 + $0x154] ss:$8 sps:$4 sm:$0xff] (!%p138_p2)  }
   0xd   : > { %926 = vmatprep.subr.bf16.mxu0 %v5045_v10  ;;  %s7374_s13 = smov (!%p161_p3, %s4086_s13), 3  ;;  %v5065_v23 = vld [vmem:[%s7368_s1 + $0x1d0] ss:$8 sps:$4 sm:$0xff]   ;;  %v5067_v25 = vld [vmem:[%s7368_s1 + $0x1e4] ss:$8 sps:$4 sm:$0xff]   ;;  %vm1907_vm2 = vcmask 1044480  }
   0xe   : > { %s5019_s6 = smul.u32 48, %s7374_s13  ;;  %v5066_v24 = vld [vmem:[%s7368_s1 + $0x150] ss:$8 sps:$4 sm:$0xff]   ;;  %v5069_v26 = vld [vmem:[%s7368_s1 + $0x164] ss:$8 sps:$4 sm:$0xff]   ;;  %vm3605_vm5 = vcmask 1045504  }
   0xf   : > { %555 = vmatpush1.bf16.msra.mxu1 %v5047_v11  ;;  %v5071_v27 = vld [vmem:[%s7368_s1 + $0x1e0] ss:$8 sps:$4 sm:$0xff]   ;;  %v5073_v29 = vld [vmem:[%s7368_s1 + $0x1f4] ss:$8 sps:$4 sm:$0xff]   ;;  %v5077_v31 = vld [vmem:[%s7368_s1 + $0x1f0] ss:$8 sps:$4 sm:$0xff]  }
  0x10   : > { %927 = vmatpush1.bf16.msra.mxu0 %v5048_v12  ;;  %556 = vmatprep.subr.bf16.mxu1 %v5049_v13  ;;  %s5843_s19 = scalar_lea.vmem %s7367_s0, %s5019_s6  ;;  %v5072_v28 = vld [vmem:[%s7368_s1 + $0x160] ss:$8 sps:$4 sm:$0xff]   ;;  %v5075_v30 = vld [vmem:[%s7368_s1 + $0x174] ss:$8 sps:$4 sm:$0xff]   ;;  %v5078_v32 = vld [vmem:[%s7368_s1 + $0x170] ss:$8 sps:$4 sm:$0xff]  }
  0x11   : > { %928 = vmatprep.subr.bf16.mxu0 %v5051_v14  ;;  %v5079_v33 = vld [vmem:[%s7368_s1 + $0x204] ss:$8 sps:$4 sm:$0xff]   ;;  %v5870_v35 = vld [vmem:[%s5843_s19 + $0x8] ss:$12 sps:$4 sm:$0xff]   ;;  %v5088_v40 = vld [vmem:[%s7368_s1 + $0x410] ss:$8 sps:$4 sm:$0xff]  }
  0x12   : > { %v5084_v34 = vld [vmem:[%s7368_s1 + $0x404] ss:$8 sps:$4 sm:$0xff]   ;;  %v5082_v36 = vld [vmem:[%s7368_s1 + $0x400] ss:$8 sps:$4 sm:$0xff]   ;;  %v5086_v38 = vld [vmem:[%s7368_s1 + $0x214] ss:$8 sps:$4 sm:$0xff]  }
  0x13   : > { %557 = vmatpush1.bf16.msra.mxu1 %v5053_v15  ;;  %v5085_v37 = vld [vmem:[%s7368_s1 + $0x200] ss:$8 sps:$4 sm:$0xff]   ;;  %v5090_v39 = vld [vmem:[%s7368_s1 + $0x414] ss:$8 sps:$4 sm:$0xff]   ;;  %v5091_v41 = vld [vmem:[%s7368_s1 + $0x210] ss:$8 sps:$4 sm:$0xff]  }
  0x14   : > { %929 = vmatpush1.bf16.msra.mxu0 %v5054_v16  ;;  %558 = vmatprep.subr.bf16.mxu1 %v5055_v17  ;;  %v5092_v42 = vld [vmem:[%s7368_s1 + $0x224] ss:$8 sps:$4 sm:$0xff]   ;;  %v5094_v44 = vld [vmem:[%s7368_s1 + $0x420] ss:$8 sps:$4 sm:$0xff]   ;;  %v5098_v46 = vld [vmem:[%s7368_s1 + $0x234] ss:$8 sps:$4 sm:$0xff]  }
  0x15   : > { %930 = vmatprep.subr.bf16.mxu0 %v5057_v18  ;;  %v5096_v43 = vld [vmem:[%s7368_s1 + $0x424] ss:$8 sps:$4 sm:$0xff]   ;;  %v5097_v45 = vld [vmem:[%s7368_s1 + $0x220] ss:$8 sps:$4 sm:$0xff]   ;;  %v5102_v47 = vld [vmem:[%s7368_s1 + $0x434] ss:$8 sps:$4 sm:$0xff]  }
  0x16   : > { %v5100_v48 = vld [vmem:[%s7368_s1 + $0x430] ss:$8 sps:$4 sm:$0xff]   ;;  %v5104_v50 = vld [vmem:[%s7368_s1 + $0x244] ss:$8 sps:$4 sm:$0xff]   ;;  %v5106_v55 = vld [vmem:[%s7368_s1 + $0x440] ss:$8 sps:$4 sm:$0xff]  }
  0x17   : > { %559 = vmatpush1.bf16.msra.mxu1 %v5059_v19  ;;  %v5103_v49 = vld [vmem:[%s7368_s1 + $0x230] ss:$8 sps:$4 sm:$0xff]   ;;  %v5108_v52 = vld [vmem:[%s7368_s1 + $0x444] ss:$8 sps:$4 sm:$0xff]   ;;  %v5109_v56 = vld [vmem:[%s7368_s1 + $0x240] ss:$8 sps:$4 sm:$0xff]  }
  0x18   : > { %931 = vmatpush1.bf16.msra.mxu0 %v5060_v20  ;;  %560 = vmatprep.subr.bf16.mxu1 %v5061_v21  ;;  %v5920_v51 = vld [vmem:[%s5843_s19 + $0x4] ss:$12 sps:$4 sm:$0xff]   ;;  %v5110_v58 = vld [vmem:[%s7368_s1 + $0x254] ss:$8 sps:$4 sm:$0xff]   ;;  %v5946_v63 = vld [vmem:[%s5843_s19] ss:$12 sps:$4 sm:$0xff]  }
  0x19   : > { %932 = vmatprep.subr.bf16.mxu0 %v5063_v22  ;;  %v294_v53 = vshrl.u32 %v5920_v51, 16  ;;  %v296_v54 = vshll.u32 %v5920_v51, 16  ;;  %v5114_v59 = vld [vmem:[%s7368_s1 + $0x454] ss:$8 sps:$4 sm:$0xff]   ;;  %v5112_v60 = vld [vmem:[%s7368_s1 + $0x450] ss:$8 sps:$4 sm:$0xff]  }
  0x1a   : > { %v5115_v61 = vld [vmem:[%s7368_s1 + $0x250] ss:$8 sps:$4 sm:$0xff]   ;;  %v5116_v0 = vld [vmem:[%s7368_s1 + $0x264] ss:$8 sps:$4 sm:$0xff]   ;;  %v966_v3 = vld [vmem:[%s5843_s19 + $0x8] sm:$0xe] }
  0x1b   : > { %561 = vmatpush1.bf16.msra.mxu1 %v5065_v23  ;;  %v298_v57 = vrot.slane %v296_v54, 1  ;;  %v5120_v1 = vld [vmem:[%s7368_s1 + $0x464] ss:$8 sps:$4 sm:$0xff]   ;;  %v5956_v4 = vld [vmem:[%s5843_s19 + $0x14] sm:$0xf]  ;;  %v289_v6 = vshll.u32 %v5946_v63, 16 }
  0x1c   : > { %933 = vmatpush1.bf16.msra.mxu0 %v5066_v24  ;;  %562 = vmatprep.subr.bf16.mxu1 %v5067_v25  ;;  %v5118_v5 = vld [vmem:[%s7368_s1 + $0x460] ss:$8 sps:$4 sm:$0xff]   ;;  %v4290_v8 = vcombine.low %v966_v3, %v5956_v4  ;;  %v5122_v10 = vld [vmem:[%s7368_s1 + $0x274] ss:$8 sps:$4 sm:$0xff]   ;;  %v5124_v12 = vld [vmem:[%s7368_s1 + $0x470] ss:$8 sps:$4 sm:$0xff]  }
  0x1d   : > { %934 = vmatprep.subr.bf16.mxu0 %v5069_v26  ;;  %v299_v62 = vor.u32 %v298_v57, %v294_v53  ;;  %v5121_v7 = vld [vmem:[%s7368_s1 + $0x260] ss:$8 sps:$4 sm:$0xff]   ;;  %v5126_v11 = vld [vmem:[%s7368_s1 + $0x474] ss:$8 sps:$4 sm:$0xff]   ;;  %v287_v13 = vshrl.u32 %v5946_v63, 16  ;;  %v291_v14 = vrot.slane %v289_v6, 1 }
  0x1e   : > { %v5135_v9 = vld [vmem:[%s5843_s19 + $0x20] ss:$0 sps:$4 sm:$0x11]   ;;  %v5127_v15 = vld [vmem:[%s7368_s1 + $0x270] ss:$8 sps:$4 sm:$0xff]   ;;  %v1048_v16 = vrot.slane %v4290_v8, 1 }
  0x1f   : > { %563 = vmatpush1.bf16.msra.mxu1 %v5071_v27  ;;  %582 = vmatprep.mubr.bf16.mxu1 %v299_v62  ;;  %v1049_v17 = vrot.slane %v5135_v9, 1  ;;  %v5133_v18 = vld [vmem:[%s7368_s1 + $0x284] ss:$8 sps:$4 sm:$0xff]   ;;  %v292_v20 = vor.u32 %v291_v14, %v287_v13  ;;  %v5131_v21 = vld [vmem:[%s7368_s1 + $0x280] ss:$8 sps:$4 sm:$0xff]   ;;  %vm3981_vm6 = vcmask 1041408  }
  0x20   : > { %935 = vmatpush1.bf16.msra.mxu0 %v5072_v28  ;;  %564 = vmatprep.subr.bf16.mxu1 %v5073_v29  ;;  %v5138_v19 = vld [vmem:[%s7368_s1 + $0x584] ss:$8 sps:$4 sm:$0xff]   ;;  %v5136_v23 = vld [vmem:[%s7368_s1 + $0x580] ss:$8 sps:$4 sm:$0xff]   ;;  %v5141_v24 = vld [vmem:[%s7368_s1 + $0x294] ss:$8 sps:$4 sm:$0xff]  }
  0x21   : > { %936 = vmatprep.subr.bf16.mxu0 %v5075_v30  ;;  %v1050_v22 = vsel %vm1041_vm0, %v1048_v16, %v1049_v17  ;;  %v5144_v25 = vld [vmem:[%s7368_s1 + $0x594] ss:$8 sps:$4 sm:$0xff]   ;;  %v5139_v26 = vld [vmem:[%s7368_s1 + $0x290] ss:$8 sps:$4 sm:$0xff]   ;;  %v5147_v28 = vld [vmem:[%s7368_s1 + $0x2a4] ss:$8 sps:$4 sm:$0xff]  }
  0x22   : > { %v5142_v27 = vld [vmem:[%s7368_s1 + $0x590] ss:$8 sps:$4 sm:$0xff]   ;;  %v5150_v29 = vld [vmem:[%s7368_s1 + $0x5a4] ss:$8 sps:$4 sm:$0xff]   ;;  %v5145_v30 = vld [vmem:[%s7368_s1 + $0x2a0] ss:$8 sps:$4 sm:$0xff]  }
  0x23   : > { %565 = vmatpush1.bf16.msra.mxu1 %v5077_v31  ;;  %v5148_v31 = vld [vmem:[%s7368_s1 + $0x5a0] ss:$8 sps:$4 sm:$0xff]   ;;  %v5171_v53 = vld [vmem:[%s7368_s1 + $0x2e4] ss:$8 sps:$4 sm:$0xff]   ;;  %v5177_v62 = vld [vmem:[%s7368_s1 + $0x2f4] ss:$8 sps:$4 sm:$0xff]  }
  0x24   : > { %937 = vmatpush1.bf16.msra.mxu0 %v5078_v32  ;;  %566 = vmatprep.subr.bf16.mxu1 %v5079_v33  ;;  %v5153_v32 = vld [vmem:[%s7368_s1 + $0x2b4] ss:$8 sps:$4 sm:$0xff]   ;;  %v5174_v54 = vld [vmem:[%s7368_s1 + $0x5e4] ss:$8 sps:$4 sm:$0xff]   ;;  %v5172_v57 = vld [vmem:[%s7368_s1 + $0x5e0] ss:$8 sps:$4 sm:$0xff]  }
  0x25   : > { %1337 = vmatprep.subr.bf16.mxu0 %v5084_v34  ;;  %v5156_v33 = vld [vmem:[%s7368_s1 + $0x5b4] ss:$8 sps:$4 sm:$0xff]   ;;  %v5151_v34 = vld [vmem:[%s7368_s1 + $0x2b0] ss:$8 sps:$4 sm:$0xff]   ;;  %v5183_v9 = vld [vmem:[%s7368_s1 + $0x4] ss:$8 sps:$4 sm:$0xff]  }
  0x26   : > { %v5178_v6 = vld [vmem:[%s7368_s1 + $0x5f0] ss:$8 sps:$4 sm:$0xff]   ;;  %vm1453_vm1 = vsmask.f32 5376  ;;  %v5191_v14 = vld [vmem:[%s7368_s1 + $0x14] ss:$8 sps:$4 sm:$0xff]  }
  0x27   : > { %955 = vmatmul.mubr.bf16.vlgmr.msra.gmra.mrb[0].mxu0 %v5870_v35  ;;  %567 = vmatpush1.bf16.msra.mxu1 %v5085_v37  ;;  %v5159_v37 = vld [vmem:[%s7368_s1 + $0x2c4] ss:$8 sps:$4 sm:$0xff]   ;;  %v5189_v16 = vld [vmem:[%s7368_s1 + $0x10] ss:$8 sps:$4 sm:$0xff]   ;;  %vm2299_vm3 = vsmask.f32 4352 }
  0x28   : > { %1338 = vmatpush1.bf16.msra.mxu0 %v5082_v36  ;;  %568 = vmatprep.subr.bf16.mxu1 %v5086_v38  ;;  %v5154_v36 = vld [vmem:[%s7368_s1 + $0x5b0] ss:$8 sps:$4 sm:$0xff]   ;;  %v5162_v38 = vld [vmem:[%s7368_s1 + $0x5c4] ss:$8 sps:$4 sm:$0xff]   ;;  %vm3151_vm4 = vsmask.f32 6400 }
  0x29   : > { %1339 = vmatprep.subr.bf16.mxu0 %v5090_v39  ;;  %1369 = vmatprep.mubr.bf16.mxu0 %v5724_v2  ;;  %v1385_v39 = vld [vmem:[%s5843_s19 + $0x8] sm:$0xc]  ;;  %v5192_v17 = vld [vmem:[%s7368_s1 + $0x710] ss:$8 sps:$4 sm:$0xff]   ;;  %vm3982_vm7 = vsmask.f32 1280 }
  0x2a   : > { %s5020_s16 = smul.u32 12, %s7374_s13  ;;  %vm3984_vm8 = vcmask 1043458   ;;  %vm3985_vm9 = vsmask.f32 3328  ;;  %vm3983_vm10 = vmand %vm3981_vm6, %vm3982_vm7  ;;  %vm4015_vm12 = vcmask 1040384   ;;  %vm4016_vm13 = vcmask 1042434  }
  0x2b   : > { %569 = vmatpush1.bf16.msra.mxu1 %v5091_v41  ;;  %v5160_v41 = vld [vmem:[%s7368_s1 + $0x5c0] ss:$8 sps:$4 sm:$0xff]   ;;  %vm3986_vm11 = vmand %vm3984_vm8, %vm3985_vm9 }
  0x2c   : > { %1340 = vmatpush1.bf16.msra.mxu0 %v5088_v40  ;;  %570 = vmatprep.subr.bf16.mxu1 %v5092_v42  ;;  %v5157_v40 = vld [vmem:[%s7368_s1 + $0x2c0] ss:$8 sps:$4 sm:$0xff]   ;;  %v4392_v42 = vcombine.low %v1385_v39, %v5956_v4  ;;  %v5227_v39 = vld [vmem:[%s7368_s1 + $0x74] ss:$8 sps:$4 sm:$0xff]   ;;  %s7346_s20 = scalar_lea.vmem %s7370_s3, %s5020_s16  ;;  %vm7348_vm14 = vmor %vm3986_vm11, %vm3983_vm10 }
  0x2d   : > { %1341 = vmatprep.subr.bf16.mxu0 %v5096_v43  ;;  %v5185_v43 = vld [vmem:[%s5843_s19 + $0x20] ss:$0 sps:$4 sm:$0x33]   ;;  %vm4017_vm15 = vmor %vm4015_vm12, %vm4016_vm13 }
  0x2f   : > { %571 = vmatpush1.bf16.msra.mxu1 %v5097_v45  ;;  %v5168_v45 = vld [vmem:[%s7368_s1 + $0x5d4] ss:$8 sps:$4 sm:$0xff]  }
  0x30   : > { %1342 = vmatpush1.bf16.msra.mxu0 %v5094_v44  ;;  %572 = vmatprep.subr.bf16.mxu1 %v5098_v46  ;;  %v5165_v44 = vld [vmem:[%s7368_s1 + $0x2d4] ss:$8 sps:$4 sm:$0xff]   ;;  %v5163_v46 = vld [vmem:[%s7368_s1 + $0x2d0] ss:$8 sps:$4 sm:$0xff]  }
  0x31   : > { %1343 = vmatprep.subr.bf16.mxu0 %v5102_v47  ;;  %v5166_v47 = vld [vmem:[%s7368_s1 + $0x5d0] ss:$8 sps:$4 sm:$0xff]  }
  0x33   : > { %573 = vmatpush1.bf16.msra.mxu1 %v5103_v49  ;;  %v1492_v49 = vshll.u32 %v4392_v42, 16 }
  0x34   : > { %1344 = vmatpush1.bf16.msra.mxu0 %v5100_v48  ;;  %574 = vmatprep.subr.bf16.mxu1 %v5104_v50  ;;  %v1489_v48 = vshrl.u32 %v4392_v42, 16  ;;  %v1497_v50 = vshrl.u32 %v5185_v43, 16  ;;  %v5230_v42 = vld [vmem:[%s7368_s1 + $0x774] ss:$8 sps:$4 sm:$0xff]  }
  0x35   : > { %1345 = vmatprep.subr.bf16.mxu0 %v5108_v52  ;;  %v1500_v52 = vshll.u32 %v5185_v43, 16  ;;  %v5225_v43 = vld [vmem:[%s7368_s1 + $0x70] ss:$8 sps:$4 sm:$0xff]  }
  0x37   : > { %575 = vmatpush1.bf16.msra.mxu1 %v5109_v56  ;;  %v303_v56 = vshll.u32 %v5870_v35, 16 }
  0x38   : > { %1346 = vmatpush1.bf16.msra.mxu0 %v5106_v55  ;;  %576 = vmatprep.subr.bf16.mxu1 %v5110_v58  ;;  %v5169_v55 = vld [vmem:[%s7368_s1 + $0x2e0] ss:$8 sps:$4 sm:$0xff]   ;;  %v1491_v58 = vrot.slane %v1489_v48, 2 }
  0x39   : > { %1347 = vmatprep.subr.bf16.mxu0 %v5114_v59  ;;  %v1494_v59 = vrot.slane %v1492_v49, 3  ;;  %v305_v3 = vrot.slane %v303_v56, 1  ;;  %v5231_v48 = vld [vmem:[%s7368_s1 + $0x80] ss:$8 sps:$4 sm:$0xff]   ;;  %v5247_v56 = vld [vmem:[%s7368_s1 + $0xa4] ss:$8 sps:$4 sm:$0xff]  }
  0x3a   : > { %v5236_v49 = vld [vmem:[%s7368_s1 + $0x880] ss:$8 sps:$4 sm:$0xff]  }
  0x3b   : > { %577 = vmatpush1.bf16.msra.mxu1 %v5115_v61  ;;  %v1502_v61 = vrot.slane %v1500_v52, 3  ;;  %v5241_v52 = vld [vmem:[%s7368_s1 + $0x94] ss:$8 sps:$4 sm:$0xff]  }
  0x3c   : > { %1348 = vmatpush1.bf16.msra.mxu0 %v5112_v60  ;;  %578 = vmatprep.subr.bf16.mxu1 %v5116_v0  ;;  %v1499_v60 = vrot.slane %v1497_v50, 2  ;;  %v5180_v0 = vld [vmem:[%s7368_s1 + $0x5f4] ss:$8 sps:$4 sm:$0xff]  }
  0x3d   : > { %1349 = vmatprep.subr.bf16.mxu0 %v5120_v1  ;;  %v301_v1 = vshrl.u32 %v5870_v35, 16  ;;  %v5188_v35 = vld [vmem:[%s7368_s1 + $0x704] ss:$8 sps:$4 sm:$0xff]  }
  0x3e   : > { %v1503_v8 = vor.u32 %v1502_v61, %v1499_v60  ;;  %v5253_v60 = vld [vmem:[%s7368_s1 + $0xb4] ss:$8 sps:$4 sm:$0xff]  }
  0x3f   : > { %579 = vmatpush1.bf16.msra.mxu1 %v5121_v7  ;;  %v1495_v7 = vor.u32 %v1494_v59, %v1491_v58  ;;  %v5245_v58 = vld [vmem:[%s7368_s1 + $0xa0] ss:$8 sps:$4 sm:$0xff]   ;;  %v5256_v61 = vld [vmem:[%s7368_s1 + $0x8b4] ss:$8 sps:$4 sm:$0xff]  }
  0x40   : > { %1350 = vmatpush1.bf16.msra.mxu0 %v5118_v5  ;;  %580 = vmatprep.subr.bf16.mxu1 %v5122_v10  ;;  %v5175_v5 = vld [vmem:[%s7368_s1 + $0x2f0] ss:$8 sps:$4 sm:$0xff]   ;;  %v5181_v10 = vld [vmem:[%s7368_s1] ss:$8 sps:$4 sm:$0xff]  }
  0x41   : > { %1351 = vmatprep.subr.bf16.mxu0 %v5126_v11  ;;  %v5186_v11 = vld [vmem:[%s7368_s1 + $0x700] ss:$8 sps:$4 sm:$0xff]   ;;  %v1504_v13 = vsel %vm1453_vm1, %v1495_v7, %v1503_v8  ;;  %v5265_v7 = vld [vmem:[%s7368_s1 + $0xd4] ss:$8 sps:$4 sm:$0xff]  }
  0x42   : > { %v5248_v59 = vld [vmem:[%s7368_s1 + $0x8a0] ss:$8 sps:$4 sm:$0xff]   ;;  %v5268_v8 = vld [vmem:[%s7368_s1 + $0x8d4] ss:$8 sps:$4 sm:$0xff]  }
  0x43   : > { %581 = vmatpush1.bf16.msra.mxu1 %v5127_v15  ;;  %v5194_v15 = vld [vmem:[%s7368_s1 + $0x714] ss:$8 sps:$4 sm:$0xff]  }
  0x44   : > { %1352 = vmatpush1.bf16.msra.mxu0 %v5124_v12  ;;  %593 = vmatprep.subr.bf16.mxu1 %v5133_v18  ;;  %v306_v12 = vor.u32 %v305_v3, %v301_v1  ;;  %v5197_v18 = vld [vmem:[%s7368_s1 + $0x24] ss:$8 sps:$4 sm:$0xff]  }
  0x45   : > { %1791 = vmatprep.subr.bf16.mxu0 %v5138_v19  ;;  %v5200_v19 = vld [vmem:[%s7368_s1 + $0x724] ss:$8 sps:$4 sm:$0xff]  }
  0x46   : > { %583 = vmatmul.mubr.bf16.vlgmr.msra.gmra.mrb[0].mxu1 %v292_v20  ;;  %v5195_v20 = vld [vmem:[%s7368_s1 + $0x20] ss:$8 sps:$4 sm:$0xff]   ;;  %v5259_v1 = vld [vmem:[%s7368_s1 + $0xc4] ss:$8 sps:$4 sm:$0xff]  }
  0x47   : > { %1370 = vmatmul.mubr.bf16.vlgmr.msra.gmra.mrb[4].mxu0 %v1050_v22  ;;  %594 = vmatpush1.bf16.msra.mxu1 %v5131_v21  ;;  %v5198_v21 = vld [vmem:[%s7368_s1 + $0x720] ss:$8 sps:$4 sm:$0xff]   ;;  %v5203_v22 = vld [vmem:[%s7368_s1 + $0x34] ss:$8 sps:$4 sm:$0xff]   ;;  %v5262_v3 = vld [vmem:[%s7368_s1 + $0x8c4] ss:$8 sps:$4 sm:$0xff]  }
  0x48   : > { %1792 = vmatpush1.bf16.msra.mxu0 %v5136_v23  ;;  %595 = vmatprep.subr.bf16.mxu1 %v5141_v24  ;;  %v5201_v23 = vld [vmem:[%s7368_s1 + $0x30] ss:$8 sps:$4 sm:$0xff]  }
  0x49   : > { %1793 = vmatprep.subr.bf16.mxu0 %v5144_v25  ;;  %1823 = vmatprep.mubr.bf16.mxu0 %v5724_v2  ;;  %v5204_v24 = vld [vmem:[%s7368_s1 + $0x730] ss:$8 sps:$4 sm:$0xff]   ;;  %v5209_v25 = vld [vmem:[%s7368_s1 + $0x44] ss:$8 sps:$4 sm:$0xff]  }
  0x4a   : > { %625 = vmatprep.mubr.bf16.mxu1 %v5724_v2 }
  0x4b   : > { %596 = vmatpush1.bf16.msra.mxu1 %v5139_v26  ;;  %v5212_v26 = vld [vmem:[%s7368_s1 + $0x744] ss:$8 sps:$4 sm:$0xff]  }
  0x4c   : > { %1794 = vmatpush1.bf16.msra.mxu0 %v5142_v27  ;;  %597 = vmatprep.subr.bf16.mxu1 %v5147_v28  ;;  %v5207_v27 = vld [vmem:[%s7368_s1 + $0x40] ss:$8 sps:$4 sm:$0xff]  }
  0x4d   : > { %1795 = vmatprep.subr.bf16.mxu0 %v5150_v29  ;;  %v5210_v28 = vld [vmem:[%s7368_s1 + $0x740] ss:$8 sps:$4 sm:$0xff]   ;;  %v5215_v29 = vld [vmem:[%s7368_s1 + $0x54] ss:$8 sps:$4 sm:$0xff]  }
  0x4f   : > { %598 = vmatpush1.bf16.msra.mxu1 %v5145_v30  ;;  %v5218_v30 = vld [vmem:[%s7368_s1 + $0x754] ss:$8 sps:$4 sm:$0xff]  }
  0x50   : > { %1796 = vmatpush1.bf16.msra.mxu0 %v5148_v31  ;;  %599 = vmatprep.subr.bf16.mxu1 %v5153_v32  ;;  %v5213_v31 = vld [vmem:[%s7368_s1 + $0x50] ss:$8 sps:$4 sm:$0xff]  }
  0x51   : > { %1797 = vmatprep.subr.bf16.mxu0 %v5156_v33  ;;  %v5216_v32 = vld [vmem:[%s7368_s1 + $0x750] ss:$8 sps:$4 sm:$0xff]   ;;  %v5221_v33 = vld [vmem:[%s7368_s1 + $0x64] ss:$8 sps:$4 sm:$0xff]  }
  0x53   : > { %600 = vmatpush1.bf16.msra.mxu1 %v5151_v34  ;;  %v5224_v34 = vld [vmem:[%s7368_s1 + $0x764] ss:$8 sps:$4 sm:$0xff]  }
  0x54   : > { %1798 = vmatpush1.bf16.msra.mxu0 %v5154_v36  ;;  %601 = vmatprep.subr.bf16.mxu1 %v5159_v37  ;;  %v1839_v36 = vld [vmem:[%s5843_s19 + $0x8] sm:$0x8] }
  0x55   : > { %1799 = vmatprep.subr.bf16.mxu0 %v5162_v38  ;;  %v5219_v37 = vld [vmem:[%s7368_s1 + $0x60] ss:$8 sps:$4 sm:$0xff]  }
  0x56   : > { %v5222_v38 = vld [vmem:[%s7368_s1 + $0x760] ss:$8 sps:$4 sm:$0xff]  }
  0x57   : > { %602 = vmatpush1.bf16.msra.mxu1 %v5157_v40  ;;  %v6176_v40 = vcombine.low %v1839_v36, %v5956_v4  ;;  %v5233_v4 = vld [vmem:[%s7368_s1 + $0x84] ss:$8 sps:$4 sm:$0xff]   ;;  %v5289_v36 = vld [vmem:[%s7368_s1 + $0x314] ss:$8 sps:$4 sm:$0xff]  }
  0x58   : > { %1800 = vmatpush1.bf16.msra.mxu0 %v5160_v41  ;;  %603 = vmatprep.subr.bf16.mxu1 %v5165_v44  ;;  %v6179_v41 = vld [vmem:[%s5843_s19 + $0x20] ss:$0 sps:$4 sm:$0x77]   ;;  %v5228_v44 = vld [vmem:[%s7368_s1 + $0x770] ss:$8 sps:$4 sm:$0xff]  }
  0x59   : > { %1801 = vmatprep.subr.bf16.mxu0 %v5168_v45  ;;  %v1914_v45 = vrot.slane %v6176_v40, 3 }
  0x5b   : > { %604 = vmatpush1.bf16.msra.mxu1 %v5163_v46  ;;  %v1915_v46 = vrot.slane %v6179_v41, 3 }
  0x5c   : > { %1802 = vmatpush1.bf16.msra.mxu0 %v5166_v47  ;;  %605 = vmatprep.subr.bf16.mxu1 %v5171_v53  ;;  %v5238_v47 = vld [vmem:[%s7368_s1 + $0x884] ss:$8 sps:$4 sm:$0xff]   ;;  %v5244_v53 = vld [vmem:[%s7368_s1 + $0x894] ss:$8 sps:$4 sm:$0xff]  }
  0x5d   : > { %1803 = vmatprep.subr.bf16.mxu0 %v5174_v54  ;;  %v1916_v50 = vsel %vm1907_vm2, %v1914_v45, %v1915_v46  ;;  %v5239_v54 = vld [vmem:[%s7368_s1 + $0x90] ss:$8 sps:$4 sm:$0xff]  }
  0x5f   : > { %606 = vmatpush1.bf16.msra.mxu1 %v5169_v55  ;;  %v5242_v55 = vld [vmem:[%s7368_s1 + $0x890] ss:$8 sps:$4 sm:$0xff]  }
  0x60   : > { %1804 = vmatpush1.bf16.msra.mxu0 %v5172_v57  ;;  %607 = vmatprep.subr.bf16.mxu1 %v5177_v62  ;;  %v5250_v57 = vld [vmem:[%s7368_s1 + $0x8a4] ss:$8 sps:$4 sm:$0xff]   ;;  %v5251_v62 = vld [vmem:[%s7368_s1 + $0xb0] ss:$8 sps:$4 sm:$0xff]  }
  0x61   : > { %1805 = vmatprep.subr.bf16.mxu0 %v5180_v0  ;;  %v5254_v0 = vld [vmem:[%s7368_s1 + $0x8b0] ss:$8 sps:$4 sm:$0xff]  }
  0x63   : > { %608 = vmatpush1.bf16.msra.mxu1 %v5175_v5  ;;  %v5257_v5 = vld [vmem:[%s7368_s1 + $0xc0] ss:$8 sps:$4 sm:$0xff]  }
  0x64   : > { %1806 = vmatpush1.bf16.msra.mxu0 %v5178_v6  ;;  %879 = vmatprep.subr.bf16.mxu1 %v5183_v9  ;;  %v5260_v6 = vld [vmem:[%s7368_s1 + $0x8c0] ss:$8 sps:$4 sm:$0xff]   ;;  %v2335_v9 = vshrl.u32 %v6176_v40, 16 }
  0x65   : > { %2203 = vmatprep.subr.bf16.mxu0 %v5188_v35  ;;  %v5263_v35 = vld [vmem:[%s7368_s1 + $0xd0] ss:$8 sps:$4 sm:$0xff]  }
  0x66   : > { %626 = vmatmul.mubr.bf16.vlgmr.msra.gmra.mrb[0].mxu1 %v306_v12  ;;  %v5271_v12 = vld [vmem:[%s7368_s1 + $0xe4] ss:$8 sps:$4 sm:$0xff]  }
  0x67   : > { %1824 = vmatmul.mubr.bf16.vlgmr.msra.gmra.mrb[8].mxu0 %v1504_v13  ;;  %880 = vmatpush1.bf16.msra.mxu1 %v5181_v10  ;;  %v5266_v10 = vld [vmem:[%s7368_s1 + $0x8d0] ss:$8 sps:$4 sm:$0xff]   ;;  %v2343_v13 = vshrl.u32 %v6179_v41, 16 }
  0x68   : > { %2204 = vmatpush1.bf16.msra.mxu0 %v5186_v11  ;;  %881 = vmatprep.subr.bf16.mxu1 %v5191_v14  ;;  %v2338_v11 = vshll.u32 %v6176_v40, 16  ;;  %v2346_v14 = vshll.u32 %v6179_v41, 16  ;;  %v6327_v41 = vld [vmem:[%s5843_s19 + $0x18] sm:$0xff] }
  0x69   : > { %2205 = vmatprep.subr.bf16.mxu0 %v5194_v15  ;;  %2235 = vmatprep.mubr.bf16.mxu0 %v5724_v2  ;;  %v5274_v15 = vld [vmem:[%s7368_s1 + $0x8e4] ss:$8 sps:$4 sm:$0xff]  }
  0x6a   : > { %911 = vmatprep.mubr.bf16.mxu1 %v5920_v51  ;;  %v5206_v51 = vld [vmem:[%s7368_s1 + $0x734] ss:$8 sps:$4 sm:$0xff]  }
  0x6b   : > { %882 = vmatpush1.bf16.msra.mxu1 %v5189_v16  ;;  %v2337_v16 = vrot.slane %v2335_v9, 3  ;;  %v5317_v9 = vld [vmem:[%s7368_s1 + $0x360] ss:$8 sps:$4 sm:$0xff]  }
  0x6c   : > { %2206 = vmatpush1.bf16.msra.mxu0 %v5192_v17  ;;  %883 = vmatprep.subr.bf16.mxu1 %v5197_v18  ;;  %v5269_v17 = vld [vmem:[%s7368_s1 + $0xe0] ss:$8 sps:$4 sm:$0xff]  }
  0x6d   : > { %2207 = vmatprep.subr.bf16.mxu0 %v5200_v19  ;;  %v5272_v18 = vld [vmem:[%s7368_s1 + $0x8e0] ss:$8 sps:$4 sm:$0xff]   ;;  %v2340_v19 = vrot.slane %v2338_v11, 4  ;;  %v5328_v11 = vld [vmem:[%s7368_s1 + $0x974] ss:$8 sps:$4 sm:$0xff]  }
  0x6f   : > { %884 = vmatpush1.bf16.msra.mxu1 %v5195_v20  ;;  %v5277_v20 = vld [vmem:[%s7368_s1 + $0xf4] ss:$8 sps:$4 sm:$0xff]  }
  0x70   : > { %2208 = vmatpush1.bf16.msra.mxu0 %v5198_v21  ;;  %885 = vmatprep.subr.bf16.mxu1 %v5203_v22  ;;  %v2345_v21 = vrot.slane %v2343_v13, 3  ;;  %v2348_v22 = vrot.slane %v2346_v14, 4  ;;  %v5326_v13 = vld [vmem:[%s7368_s1 + $0x970] ss:$8 sps:$4 sm:$0xff]   ;;  %v5331_v14 = vld [vmem:[%s7368_s1 + $0x384] ss:$8 sps:$4 sm:$0xff]  }
  0x71   : > { %2209 = vmatprep.subr.bf16.mxu0 %v5206_v51  ;;  %v5280_v51 = vld [vmem:[%s7368_s1 + $0x8f4] ss:$8 sps:$4 sm:$0xff]  }
  0x73   : > { %886 = vmatpush1.bf16.msra.mxu1 %v5201_v23  ;;  %v5275_v23 = vld [vmem:[%s7368_s1 + $0xf0] ss:$8 sps:$4 sm:$0xff]  }
  0x74   : > { %2210 = vmatpush1.bf16.msra.mxu0 %v5204_v24  ;;  %887 = vmatprep.subr.bf16.mxu1 %v5209_v25  ;;  %v5278_v24 = vld [vmem:[%s7368_s1 + $0x8f0] ss:$8 sps:$4 sm:$0xff]   ;;  %v5283_v25 = vld [vmem:[%s7368_s1 + $0x304] ss:$8 sps:$4 sm:$0xff]  }
  0x75   : > { %2211 = vmatprep.subr.bf16.mxu0 %v5212_v26  ;;  %v2341_v26 = vor.u32 %v2340_v19, %v2337_v16 }
  0x77   : > { %888 = vmatpush1.bf16.msra.mxu1 %v5207_v27  ;;  %v2349_v27 = vor.u32 %v2348_v22, %v2345_v21  ;;  %v5329_v21 = vld [vmem:[%s7368_s1 + $0x380] ss:$8 sps:$4 sm:$0xff]  }
  0x78   : > { %2212 = vmatpush1.bf16.msra.mxu0 %v5210_v28  ;;  %889 = vmatprep.subr.bf16.mxu1 %v5215_v29  ;;  %v5286_v28 = vld [vmem:[%s7368_s1 + $0x904] ss:$8 sps:$4 sm:$0xff]   ;;  %v5332_v22 = vld [vmem:[%s7368_s1 + $0x980] ss:$8 sps:$4 sm:$0xff]  }
  0x79   : > { %2213 = vmatprep.subr.bf16.mxu0 %v5218_v30  ;;  %v6301_v29 = vld [vmem:[%s5843_s19] sm:$0xee]  ;;  %v6304_v30 = vld [vmem:[%s5843_s19 + $0xc] sm:$0xff] }
  0x7b   : > { %890 = vmatpush1.bf16.msra.mxu1 %v5213_v31  ;;  %v5281_v31 = vld [vmem:[%s7368_s1 + $0x300] ss:$8 sps:$4 sm:$0xff]  }
  0x7c   : > { %2214 = vmatpush1.bf16.msra.mxu0 %v5216_v32  ;;  %891 = vmatprep.subr.bf16.mxu1 %v5221_v33  ;;  %v6310_v32 = vld [vmem:[%s5843_s19 + $0x18] sm:$0x11]  ;;  %v4289_v33 = vcombine.high %v6301_v29, %v6304_v30 }
  0x7d   : > { %2215 = vmatprep.subr.bf16.mxu0 %v5224_v34  ;;  %v5284_v34 = vld [vmem:[%s7368_s1 + $0x900] ss:$8 sps:$4 sm:$0xff]  }
  0x7e   : > { %v1045_v40 = vrot.slane %v4289_v33, 1 }
  0x7f   : > { %892 = vmatpush1.bf16.msra.mxu1 %v5219_v37  ;;  %v4292_v37 = vcombine.high %v6310_v32, %v6310_v32 }
  0x80   : > { %2216 = vmatpush1.bf16.msra.mxu0 %v5222_v38  ;;  %893 = vmatprep.subr.bf16.mxu1 %v5227_v39  ;;  %v6323_v38 = vld [vmem:[%s5843_s19 + $0xc] sm:$0xee]  ;;  %v2350_v39 = vsel %vm2299_vm3, %v2341_v26, %v2349_v27  ;;  %v5340_v27 = vld [vmem:[%s7368_s1 + $0x994] ss:$8 sps:$4 sm:$0xff]  }
  0x81   : > { %2217 = vmatprep.subr.bf16.mxu0 %v5230_v42  ;;  %v6330_v42 = vld [vmem:[%s5843_s19 + $0x24] sm:$0x11] }
  0x82   : > { %v6341_v45 = vcombine.high %v6330_v42, %v6330_v42 }
  0x83   : > { %894 = vmatpush1.bf16.msra.mxu1 %v5225_v43  ;;  %v5292_v43 = vld [vmem:[%s7368_s1 + $0x914] ss:$8 sps:$4 sm:$0xff]  }
  0x84   : > { %2218 = vmatpush1.bf16.msra.mxu0 %v5228_v44  ;;  %895 = vmatprep.subr.bf16.mxu1 %v5233_v4  ;;  %v1046_v44 = vrot.slane %v4292_v37, 1  ;;  %v6337_v4 = vcombine.high %v6323_v38, %v6327_v41  ;;  %v3181_v19 = vshll.u32 %v6341_v45, 16  ;;  %v5338_v37 = vld [vmem:[%s7368_s1 + $0x990] ss:$8 sps:$4 sm:$0xff]  }
  0x85   : > { %2637 = vmatprep.subr.bf16.mxu0 %v5238_v47 }
  0x86   : > { %v1047_v46 = vsel %vm1041_vm0, %v1045_v40, %v1046_v44  ;;  %v2763_v47 = vrot.slane %v6337_v4, 1  ;;  %v3173_v16 = vshll.u32 %v6337_v4, 16  ;;  %v3183_v26 = vrot.slane %v3181_v19, 2  ;;  %v5374_v19 = vld [vmem:[%s7368_s1 + $0x9f0] ss:$8 sps:$4 sm:$0xff]  }
  0x87   : > { %2236 = vmatmul.mubr.bf16.vlgmr.msra.gmra.mrb[12].mxu0 %v1916_v50  ;;  %896 = vmatpush1.bf16.msra.mxu1 %v5231_v48  ;;  %v2764_v48 = vrot.slane %v6341_v45, 1  ;;  %v5290_v50 = vld [vmem:[%s7368_s1 + $0x910] ss:$8 sps:$4 sm:$0xff]  }
  0x88   : > { %2638 = vmatpush1.bf16.msra.mxu0 %v5236_v49  ;;  %897 = vmatprep.subr.bf16.mxu1 %v5241_v52  ;;  %v5287_v49 = vld [vmem:[%s7368_s1 + $0x310] ss:$8 sps:$4 sm:$0xff]   ;;  %v5298_v52 = vld [vmem:[%s7368_s1 + $0x924] ss:$8 sps:$4 sm:$0xff]  }
  0x89   : > { %2639 = vmatprep.subr.bf16.mxu0 %v5244_v53  ;;  %2669 = vmatprep.mubr.bf16.mxu0 %v5724_v2  ;;  %v2765_v53 = vsel %vm1041_vm0, %v2763_v47, %v2764_v48  ;;  %v5344_v47 = vld [vmem:[%s7368_s1 + $0x9a0] ss:$8 sps:$4 sm:$0xff]  }
  0x8b   : > { %898 = vmatpush1.bf16.msra.mxu1 %v5239_v54  ;;  %v5293_v54 = vld [vmem:[%s7368_s1 + $0x320] ss:$8 sps:$4 sm:$0xff]  }
  0x8c   : > { %2640 = vmatpush1.bf16.msra.mxu0 %v5242_v55  ;;  %899 = vmatprep.subr.bf16.mxu1 %v5247_v56  ;;  %v5296_v55 = vld [vmem:[%s7368_s1 + $0x920] ss:$8 sps:$4 sm:$0xff]   ;;  %v5301_v56 = vld [vmem:[%s7368_s1 + $0x334] ss:$8 sps:$4 sm:$0xff]  }
  0x8d   : > { %2641 = vmatprep.subr.bf16.mxu0 %v5250_v57  ;;  %v5304_v57 = vld [vmem:[%s7368_s1 + $0x934] ss:$8 sps:$4 sm:$0xff]  }
  0x8f   : > { %900 = vmatpush1.bf16.msra.mxu1 %v5245_v58  ;;  %v5299_v58 = vld [vmem:[%s7368_s1 + $0x330] ss:$8 sps:$4 sm:$0xff]  }
  0x90   : > { %2642 = vmatpush1.bf16.msra.mxu0 %v5248_v59  ;;  %901 = vmatprep.subr.bf16.mxu1 %v5253_v60  ;;  %v5302_v59 = vld [vmem:[%s7368_s1 + $0x930] ss:$8 sps:$4 sm:$0xff]   ;;  %v5307_v60 = vld [vmem:[%s7368_s1 + $0x344] ss:$8 sps:$4 sm:$0xff]  }
  0x91   : > { %2643 = vmatprep.subr.bf16.mxu0 %v5256_v61  ;;  %v5310_v61 = vld [vmem:[%s7368_s1 + $0x944] ss:$8 sps:$4 sm:$0xff]  }
  0x93   : > { %902 = vmatpush1.bf16.msra.mxu1 %v5251_v62  ;;  %v5305_v62 = vld [vmem:[%s7368_s1 + $0x340] ss:$8 sps:$4 sm:$0xff]  }
  0x94   : > { %2644 = vmatpush1.bf16.msra.mxu0 %v5254_v0  ;;  %903 = vmatprep.subr.bf16.mxu1 %v5259_v1  ;;  %v5308_v0 = vld [vmem:[%s7368_s1 + $0x940] ss:$8 sps:$4 sm:$0xff]   ;;  %v5313_v1 = vld [vmem:[%s7368_s1 + $0x354] ss:$8 sps:$4 sm:$0xff]  }
  0x95   : > { %2645 = vmatprep.subr.bf16.mxu0 %v5262_v3  ;;  %v5316_v3 = vld [vmem:[%s7368_s1 + $0x954] ss:$8 sps:$4 sm:$0xff]  }
  0x97   : > { %904 = vmatpush1.bf16.msra.mxu1 %v5257_v5  ;;  %v5311_v5 = vld [vmem:[%s7368_s1 + $0x350] ss:$8 sps:$4 sm:$0xff]  }
  0x98   : > { %2646 = vmatpush1.bf16.msra.mxu0 %v5260_v6  ;;  %905 = vmatprep.subr.bf16.mxu1 %v5265_v7  ;;  %v5314_v6 = vld [vmem:[%s7368_s1 + $0x950] ss:$8 sps:$4 sm:$0xff]   ;;  %v5319_v7 = vld [vmem:[%s7368_s1 + $0x364] ss:$8 sps:$4 sm:$0xff]  }
  0x99   : > { %2647 = vmatprep.subr.bf16.mxu0 %v5268_v8  ;;  %v5322_v8 = vld [vmem:[%s7368_s1 + $0x964] ss:$8 sps:$4 sm:$0xff]  }
  0x9b   : > { %906 = vmatpush1.bf16.msra.mxu1 %v5263_v35  ;;  %v5320_v35 = vld [vmem:[%s7368_s1 + $0x960] ss:$8 sps:$4 sm:$0xff]  }
  0x9c   : > { %2648 = vmatpush1.bf16.msra.mxu0 %v5266_v10  ;;  %907 = vmatprep.subr.bf16.mxu1 %v5271_v12  ;;  %v5325_v10 = vld [vmem:[%s7368_s1 + $0x374] ss:$8 sps:$4 sm:$0xff]   ;;  %v5323_v12 = vld [vmem:[%s7368_s1 + $0x370] ss:$8 sps:$4 sm:$0xff]  }
  0x9d   : > { %2649 = vmatprep.subr.bf16.mxu0 %v5274_v15  ;;  %v3170_v15 = vshrl.u32 %v6337_v4, 16 }
  0x9f   : > { %908 = vmatpush1.bf16.msra.mxu1 %v5269_v17  ;;  %v5334_v17 = vld [vmem:[%s7368_s1 + $0x984] ss:$8 sps:$4 sm:$0xff]  }
  0xa0   : > { %2650 = vmatpush1.bf16.msra.mxu0 %v5272_v18  ;;  %909 = vmatprep.subr.bf16.mxu1 %v5277_v20  ;;  %v3178_v18 = vshrl.u32 %v6341_v45, 16  ;;  %v3172_v20 = vrot.slane %v3170_v15, 1 }
  0xa1   : > { %2651 = vmatprep.subr.bf16.mxu0 %v5280_v51  ;;  %v3175_v51 = vrot.slane %v3173_v16, 2 }
  0xa3   : > { %910 = vmatpush1.bf16.msra.mxu1 %v5275_v23  ;;  %v5337_v23 = vld [vmem:[%s7368_s1 + $0x394] ss:$8 sps:$4 sm:$0xff]  }
  0xa4   : > { %2652 = vmatpush1.bf16.msra.mxu0 %v5278_v24  ;;  %1294 = vmatprep.subr.bf16.mxu1 %v5283_v25  ;;  %v6447_v24 = vcombine.low %v6323_v38, %v6327_v41  ;;  %v3180_v25 = vrot.slane %v3178_v18, 1  ;;  %v5371_v18 = vld [vmem:[%s7368_s1 + $0x3f0] ss:$8 sps:$4 sm:$0xff]  }
  0xa5   : > { %3012 = vmatprep.subr.bf16.mxu0 %v5286_v28  ;;  %v3176_v28 = vor.u32 %v3175_v51, %v3172_v20  ;;  %v5383_v51 = vld [vmem:[%s7368_s1 + $0x484] ss:$8 sps:$4 sm:$0xff]  }
  0xa6   : > { %912 = vmatmul.mubr.bf16.vlgmr.msra.gmra.mrb[0].mxu1 %v5946_v63  ;;  %v5295_v63 = vld [vmem:[%s7368_s1 + $0x324] ss:$8 sps:$4 sm:$0xff]   ;;  %v3184_v33 = vor.u32 %v3183_v26, %v3180_v25  ;;  %v3156_v38 = vshll.u32 %v6447_v24, 16 }
  0xa7   : > { %2670 = vmatmul.mubr.bf16.vlgmr.msra.gmra.mrb[16].mxu0 %v2350_v39  ;;  %1295 = vmatpush1.bf16.msra.mxu1 %v5281_v31  ;;  %v6454_v31 = vcombine.low %v6330_v42, %v6330_v42  ;;  %v5343_v39 = vld [vmem:[%s7368_s1 + $0x3a4] ss:$8 sps:$4 sm:$0xff]  }
  0xa8   : > { %3013 = vmatpush1.bf16.msra.mxu0 %v5284_v34  ;;  %1296 = vmatprep.subr.bf16.mxu1 %v5289_v36  ;;  %v3153_v34 = vshrl.u32 %v6447_v24, 16  ;;  %v5335_v36 = vld [vmem:[%s7368_s1 + $0x390] ss:$8 sps:$4 sm:$0xff]   ;;  %v6468_v40 = vsel %vm3151_vm4, %v3176_v28, %v3184_v33  ;;  %v3158_v44 = vrot.slane %v3156_v38, 2  ;;  %v5388_v28 = vld [vmem:[%s7368_s1 + $0xa04] ss:$8 sps:$4 sm:$0xff]  }
  0xa9   : > { %3014 = vmatprep.subr.bf16.mxu0 %v5292_v43  ;;  %1326 = vmatprep.mubr.bf16.mxu1 %v1047_v46  ;;  %v3161_v42 = vshrl.u32 %v6454_v31, 16  ;;  %v5346_v43 = vld [vmem:[%s7368_s1 + $0x9a4] ss:$8 sps:$4 sm:$0xff]   ;;  %v3164_v4 = vshll.u32 %v6454_v31, 16  ;;  %v5341_v46 = vld [vmem:[%s7368_s1 + $0x3a0] ss:$8 sps:$4 sm:$0xff]  }
  0xaa   : > { %3044 = vmatprep.mubr.bf16.mxu0 %v2765_v53  ;;  %v3155_v41 = vrot.slane %v3153_v34, 1  ;;  %v2760_v33 = vrot.slane %v6447_v24, 1  ;;  %v2761_v34 = vrot.slane %v6454_v31, 1  ;;  %v5386_v31 = vld [vmem:[%s7368_s1 + $0xa00] ss:$8 sps:$4 sm:$0xff]  }
  0xab   : > { %1297 = vmatpush1.bf16.msra.mxu1 %v5287_v49  ;;  %v3163_v45 = vrot.slane %v3161_v42, 1  ;;  %v3166_v49 = vrot.slane %v3164_v4, 2 }
  0xac   : > { %3015 = vmatpush1.bf16.msra.mxu0 %v5290_v50  ;;  %1298 = vmatprep.subr.bf16.mxu1 %v5295_v63  ;;  %v3159_v48 = vor.u32 %v3158_v44, %v3155_v41  ;;  %v5349_v50 = vld [vmem:[%s7368_s1 + $0x3b4] ss:$8 sps:$4 sm:$0xff]   ;;  %v2762_v4 = vsel %vm1041_vm0, %v2760_v33, %v2761_v34  ;;  %v5433_v33 = vld [vmem:[%s7368_s1 + $0x500] ss:$8 sps:$4 sm:$0xff]  }
  0xad   : > { %3016 = vmatprep.subr.bf16.mxu0 %v5298_v52  ;;  %v5352_v63 = vld [vmem:[%s7368_s1 + $0x9b4] ss:$8 sps:$4 sm:$0xff]   ;;  %v3167_v52 = vor.u32 %v3166_v49, %v3163_v45  ;;  %v5436_v34 = vld [vmem:[%s7368_s1 + $0xa80] ss:$8 sps:$4 sm:$0xff]  }
  0xaf   : > { %1299 = vmatpush1.bf16.msra.mxu1 %v5293_v54  ;;  %v6488_v53 = vsel %vm3151_vm4, %v3159_v48, %v3167_v52  ;;  %v5347_v54 = vld [vmem:[%s7368_s1 + $0x3b0] ss:$8 sps:$4 sm:$0xff]   ;;  %v5396_v48 = vld [vmem:[%s7368_s1 + $0xa14] ss:$8 sps:$4 sm:$0xff]  }
  0xb0   : > { %3017 = vmatpush1.bf16.msra.mxu0 %v5296_v55  ;;  %1300 = vmatprep.subr.bf16.mxu1 %v5301_v56  ;;  %v5350_v55 = vld [vmem:[%s7368_s1 + $0x9b0] ss:$8 sps:$4 sm:$0xff]   ;;  %v5355_v56 = vld [vmem:[%s7368_s1 + $0x3c4] ss:$8 sps:$4 sm:$0xff]  }
  0xb1   : > { %3018 = vmatprep.subr.bf16.mxu0 %v5304_v57  ;;  %v5358_v57 = vld [vmem:[%s7368_s1 + $0x9c4] ss:$8 sps:$4 sm:$0xff]   ;;  %v5391_v52 = vld [vmem:[%s7368_s1 + $0x490] ss:$8 sps:$4 sm:$0xff]  }
  0xb3   : > { %1301 = vmatpush1.bf16.msra.mxu1 %v5299_v58  ;;  %v5353_v58 = vld [vmem:[%s7368_s1 + $0x3c0] ss:$8 sps:$4 sm:$0xff]  }
  0xb4   : > { %3019 = vmatpush1.bf16.msra.mxu0 %v5302_v59  ;;  %1302 = vmatprep.subr.bf16.mxu1 %v5307_v60  ;;  %v5356_v59 = vld [vmem:[%s7368_s1 + $0x9c0] ss:$8 sps:$4 sm:$0xff]  }
  0xb5   : > { %3020 = vmatprep.subr.bf16.mxu0 %v5310_v61  ;;  %v6509_v60 = vld [vmem:[%s5843_s19] sm:$0xcc]  ;;  %v6512_v61 = vld [vmem:[%s5843_s19 + $0x18] sm:$0x33] }
  0xb7   : > { %1303 = vmatpush1.bf16.msra.mxu1 %v5305_v62  ;;  %v5361_v62 = vld [vmem:[%s7368_s1 + $0x3d4] ss:$8 sps:$4 sm:$0xff]  }
  0xb8   : > { %3021 = vmatpush1.bf16.msra.mxu0 %v5308_v0  ;;  %1304 = vmatprep.subr.bf16.mxu1 %v5313_v1  ;;  %v5364_v0 = vld [vmem:[%s7368_s1 + $0x9d4] ss:$8 sps:$4 sm:$0xff]   ;;  %v5359_v1 = vld [vmem:[%s7368_s1 + $0x3d0] ss:$8 sps:$4 sm:$0xff]  }
  0xb9   : > { %3022 = vmatprep.subr.bf16.mxu0 %v5316_v3  ;;  %v4391_v3 = vcombine.high %v6509_v60, %v6304_v30 }
  0xbb   : > { %1305 = vmatpush1.bf16.msra.mxu1 %v5311_v5  ;;  %v4394_v5 = vcombine.high %v6512_v61, %v6512_v61 }
  0xbc   : > { %3023 = vmatpush1.bf16.msra.mxu0 %v5314_v6  ;;  %1306 = vmatprep.subr.bf16.mxu1 %v5319_v7  ;;  %v5362_v6 = vld [vmem:[%s7368_s1 + $0x9d0] ss:$8 sps:$4 sm:$0xff]   ;;  %v5367_v7 = vld [vmem:[%s7368_s1 + $0x3e4] ss:$8 sps:$4 sm:$0xff]  }
  0xbd   : > { %3024 = vmatprep.subr.bf16.mxu0 %v5322_v8  ;;  %v5370_v8 = vld [vmem:[%s7368_s1 + $0x9e4] ss:$8 sps:$4 sm:$0xff]   ;;  %v1480_v15 = vshrl.u32 %v4394_v5, 16  ;;  %v1483_v16 = vshll.u32 %v4394_v5, 16  ;;  %v5403_v5 = vld [vmem:[%s7368_s1 + $0x4b0] ss:$8 sps:$4 sm:$0xff]  }
  0xbf   : > { %1307 = vmatpush1.bf16.msra.mxu1 %v5317_v9  ;;  %v5365_v9 = vld [vmem:[%s7368_s1 + $0x3e0] ss:$8 sps:$4 sm:$0xff]   ;;  %v1482_v26 = vrot.slane %v1480_v15, 2  ;;  %v5426_v15 = vld [vmem:[%s7368_s1 + $0xa64] ss:$8 sps:$4 sm:$0xff]  }
  0xc0   : > { %3025 = vmatpush1.bf16.msra.mxu0 %v5320_v35  ;;  %1308 = vmatprep.subr.bf16.mxu1 %v5325_v10  ;;  %v4288_v35 = vcombine.low %v6301_v29, %v6304_v30  ;;  %v4291_v10 = vcombine.low %v6310_v32, %v6310_v32  ;;  %v5373_v29 = vld [vmem:[%s7368_s1 + $0x3f4] ss:$8 sps:$4 sm:$0xff]  }
  0xc1   : > { %3026 = vmatprep.subr.bf16.mxu0 %v5328_v11  ;;  %v2685_v11 = vld [vmem:[%s5843_s19 + $0x14] sm:$0xe] }
  0xc2   : > { %v5376_v32 = vld [vmem:[%s7368_s1 + $0x9f4] ss:$8 sps:$4 sm:$0xff]   ;;  %v1042_v20 = vrot.slane %v4288_v35, 1  ;;  %v5412_v35 = vld [vmem:[%s7368_s1 + $0xa40] ss:$8 sps:$4 sm:$0xff]  }
  0xc3   : > { %1309 = vmatpush1.bf16.msra.mxu1 %v5323_v12  ;;  %v2687_v12 = vld [vmem:[%s5843_s19 + $0x20] sm:$0xf] }
  0xc4   : > { %3027 = vmatpush1.bf16.msra.mxu0 %v5326_v13  ;;  %1310 = vmatprep.subr.bf16.mxu1 %v5331_v14  ;;  %v1472_v13 = vshrl.u32 %v4391_v3, 16  ;;  %v1475_v14 = vshll.u32 %v4391_v3, 16  ;;  %v5408_v3 = vld [vmem:[%s7368_s1 + $0xa34] ss:$8 sps:$4 sm:$0xff]  }
  0xc5   : > { %3028 = vmatprep.subr.bf16.mxu0 %v5334_v17  ;;  %v5368_v17 = vld [vmem:[%s7368_s1 + $0x9e0] ss:$8 sps:$4 sm:$0xff]  }
  0xc6   : > { %v1477_v25 = vrot.slane %v1475_v14, 3  ;;  %v5423_v14 = vld [vmem:[%s7368_s1 + $0x4e4] ss:$8 sps:$4 sm:$0xff]  }
  0xc7   : > { %1311 = vmatpush1.bf16.msra.mxu1 %v5329_v21  ;;  %v1043_v21 = vrot.slane %v4291_v10, 1  ;;  %v5417_v10 = vld [vmem:[%s7368_s1 + $0x4d4] ss:$8 sps:$4 sm:$0xff]  }
  0xc8   : > { %3029 = vmatpush1.bf16.msra.mxu0 %v5332_v22  ;;  %1312 = vmatprep.subr.bf16.mxu1 %v5337_v23  ;;  %v6560_v22 = vcombine.low %v2685_v11, %v2687_v12  ;;  %v1474_v23 = vrot.slane %v1472_v13, 2  ;;  %v5420_v11 = vld [vmem:[%s7368_s1 + $0xa54] ss:$8 sps:$4 sm:$0xff]   ;;  %v5415_v12 = vld [vmem:[%s7368_s1 + $0x4d0] ss:$8 sps:$4 sm:$0xff]  }
  0xc9   : > { %3030 = vmatprep.subr.bf16.mxu0 %v5340_v27  ;;  %v1485_v27 = vrot.slane %v1483_v16, 3  ;;  %v1044_v24 = vsel %vm1041_vm0, %v1042_v20, %v1043_v21  ;;  %v5418_v13 = vld [vmem:[%s7368_s1 + $0xa50] ss:$8 sps:$4 sm:$0xff]   ;;  %v5429_v20 = vld [vmem:[%s7368_s1 + $0x4f4] ss:$8 sps:$4 sm:$0xff]  }
  0xca   : > { %v3190_v38 = vshll.u32 %v6560_v22, 16  ;;  %v1478_v41 = vor.u32 %v1477_v25, %v1474_v23  ;;  %v5432_v21 = vld [vmem:[%s7368_s1 + $0xa74] ss:$8 sps:$4 sm:$0xff]   ;;  %v5430_v23 = vld [vmem:[%s7368_s1 + $0xa70] ss:$8 sps:$4 sm:$0xff]  }
  0xcb   : > { %1313 = vmatpush1.bf16.msra.mxu1 %v5335_v36  ;;  %v6571_v36 = vld [vmem:[%s5843_s19 + $0x2c] ss:$0 sps:$4 sm:$0x11]   ;;  %v1486_v42 = vor.u32 %v1485_v27, %v1482_v26  ;;  %v2766_v26 = vrot.slane %v6560_v22, 1 }
  0xcc   : > { %3031 = vmatpush1.bf16.msra.mxu0 %v5338_v37  ;;  %1314 = vmatprep.subr.bf16.mxu1 %v5343_v39  ;;  %v3187_v37 = vshrl.u32 %v6560_v22, 16  ;;  %v5381_v39 = vld [vmem:[%s7368_s1 + $0x480] ss:$8 sps:$4 sm:$0xff]   ;;  %v3195_v44 = vshrl.u32 %v6571_v36, 16  ;;  %v3192_v45 = vrot.slane %v3190_v38, 2  ;;  %v2767_v27 = vrot.slane %v6571_v36, 1 }
  0xcd   : > { %3032 = vmatprep.subr.bf16.mxu0 %v5346_v43  ;;  %v5435_v25 = vld [vmem:[%s7368_s1 + $0x504] ss:$8 sps:$4 sm:$0xff]   ;;  %v5441_v38 = vld [vmem:[%s7368_s1 + $0x510] ss:$8 sps:$4 sm:$0xff]  }
  0xce   : > { %v3189_v43 = vrot.slane %v3187_v37, 1  ;;  %v3197_v49 = vrot.slane %v3195_v44, 1  ;;  %v2768_v22 = vsel %vm1041_vm0, %v2766_v26, %v2767_v27  ;;  %v5446_v37 = vld [vmem:[%s7368_s1 + $0xa94] ss:$8 sps:$4 sm:$0xff]   ;;  %v5450_v44 = vld [vmem:[%s7368_s1 + $0xaa0] ss:$8 sps:$4 sm:$0xff]  }
  0xcf   : > { %1315 = vmatpush1.bf16.msra.mxu1 %v5341_v46  ;;  %v3198_v46 = vshll.u32 %v6571_v36, 16  ;;  %v5443_v36 = vld [vmem:[%s7368_s1 + $0x514] ss:$8 sps:$4 sm:$0xff]   ;;  %v5487_v26 = vld [vmem:[%s7368_s1 + $0x600] ss:$8 sps:$4 sm:$0xff]   ;;  %vm4018_vm0 = vcmask 1044484  }
  0xd0   : > { %3033 = vmatpush1.bf16.msra.mxu0 %v5344_v47  ;;  %1316 = vmatprep.subr.bf16.mxu1 %v5349_v50  ;;  %v5393_v47 = vld [vmem:[%s7368_s1 + $0x494] ss:$8 sps:$4 sm:$0xff]   ;;  %v3193_v50 = vor.u32 %v3192_v45, %v3189_v43  ;;  %v5447_v43 = vld [vmem:[%s7368_s1 + $0x520] ss:$8 sps:$4 sm:$0xff]   ;;  %v5461_v45 = vld [vmem:[%s7368_s1 + $0x544] ss:$8 sps:$4 sm:$0xff]  }
  0xd1   : > { %3034 = vmatprep.subr.bf16.mxu0 %v5352_v63  ;;  %v3200_v63 = vrot.slane %v3198_v46, 2  ;;  %v5464_v46 = vld [vmem:[%s7368_s1 + $0xac4] ss:$8 sps:$4 sm:$0xff]   ;;  %v5490_v27 = vld [vmem:[%s7368_s1 + $0xb00] ss:$8 sps:$4 sm:$0xff]  }
  0xd3   : > { %1317 = vmatpush1.bf16.msra.mxu1 %v5347_v54  ;;  %v1487_v54 = vsel %vm1453_vm1, %v1478_v41, %v1486_v42  ;;  %v5449_v41 = vld [vmem:[%s7368_s1 + $0x524] ss:$8 sps:$4 sm:$0xff]  }
  0xd4   : > { %3035 = vmatpush1.bf16.msra.mxu0 %v5350_v55  ;;  %1318 = vmatprep.subr.bf16.mxu1 %v5355_v56  ;;  %v5394_v55 = vld [vmem:[%s7368_s1 + $0xa10] ss:$8 sps:$4 sm:$0xff]   ;;  %v3201_v56 = vor.u32 %v3200_v63, %v3197_v49  ;;  %v5452_v42 = vld [vmem:[%s7368_s1 + $0xaa4] ss:$8 sps:$4 sm:$0xff]   ;;  %v5462_v49 = vld [vmem:[%s7368_s1 + $0xac0] ss:$8 sps:$4 sm:$0xff]  }
  0xd5   : > { %3036 = vmatprep.subr.bf16.mxu0 %v5358_v57  ;;  %v5399_v57 = vld [vmem:[%s7368_s1 + $0x4a4] ss:$8 sps:$4 sm:$0xff]   ;;  %v5467_v63 = vld [vmem:[%s7368_s1 + $0x554] ss:$8 sps:$4 sm:$0xff]  }
  0xd7   : > { %1319 = vmatpush1.bf16.msra.mxu1 %v5353_v58  ;;  %v5402_v58 = vld [vmem:[%s7368_s1 + $0xa24] ss:$8 sps:$4 sm:$0xff]  }
  0xd8   : > { %3037 = vmatpush1.bf16.msra.mxu0 %v5356_v59  ;;  %1320 = vmatprep.subr.bf16.mxu1 %v5361_v62  ;;  %v6606_v59 = vsel %vm3151_vm4, %v3193_v50, %v3201_v56  ;;  %v5397_v62 = vld [vmem:[%s7368_s1 + $0x4a0] ss:$8 sps:$4 sm:$0xff]   ;;  %v4393_v50 = vcombine.low %v6512_v61, %v6512_v61  ;;  %v5468_v61 = vld [vmem:[%s7368_s1 + $0xad0] ss:$8 sps:$4 sm:$0xff]   ;;  %v5473_v56 = vld [vmem:[%s7368_s1 + $0x564] ss:$8 sps:$4 sm:$0xff]  }
  0xd9   : > { %3038 = vmatprep.subr.bf16.mxu0 %v5364_v0  ;;  %v5400_v0 = vld [vmem:[%s7368_s1 + $0xa20] ss:$8 sps:$4 sm:$0xff]  }
  0xdb   : > { %1321 = vmatpush1.bf16.msra.mxu1 %v5359_v1  ;;  %v5405_v1 = vld [vmem:[%s7368_s1 + $0x4b4] ss:$8 sps:$4 sm:$0xff]  }
  0xdc   : > { %3039 = vmatpush1.bf16.msra.mxu0 %v5362_v6  ;;  %1322 = vmatprep.subr.bf16.mxu1 %v5367_v7  ;;  %v5406_v6 = vld [vmem:[%s7368_s1 + $0xa30] ss:$8 sps:$4 sm:$0xff]   ;;  %v5411_v7 = vld [vmem:[%s7368_s1 + $0x4c4] ss:$8 sps:$4 sm:$0xff]  }
  0xdd   : > { %3040 = vmatprep.subr.bf16.mxu0 %v5370_v8  ;;  %v5414_v8 = vld [vmem:[%s7368_s1 + $0xa44] ss:$8 sps:$4 sm:$0xff]  }
  0xdf   : > { %1323 = vmatpush1.bf16.msra.mxu1 %v5365_v9  ;;  %v5409_v9 = vld [vmem:[%s7368_s1 + $0x4c0] ss:$8 sps:$4 sm:$0xff]  }
  0xe0   : > { %3041 = vmatpush1.bf16.msra.mxu0 %v5368_v17  ;;  %1324 = vmatprep.subr.bf16.mxu1 %v5373_v29  ;;  %v5421_v29 = vld [vmem:[%s7368_s1 + $0x4e0] ss:$8 sps:$4 sm:$0xff]  }
  0xe1   : > { %3042 = vmatprep.subr.bf16.mxu0 %v5376_v32 }
  0xe3   : > { %1325 = vmatpush1.bf16.msra.mxu1 %v5371_v18  ;;  %v5424_v18 = vld [vmem:[%s7368_s1 + $0xa60] ss:$8 sps:$4 sm:$0xff]  }
  0xe4   : > { %3043 = vmatpush1.bf16.msra.mxu0 %v5374_v19  ;;  %1748 = vmatprep.subr.bf16.mxu1 %v5383_v51  ;;  %v5427_v51 = vld [vmem:[%s7368_s1 + $0x4f0] ss:$8 sps:$4 sm:$0xff]  }
  0xe5   : > { %3055 = vmatprep.subr.bf16.mxu0 %v5388_v28  ;;  %v5438_v28 = vld [vmem:[%s7368_s1 + $0xa84] ss:$8 sps:$4 sm:$0xff]  }
  0xe6   : > { %1327 = vmatmul.mubr.bf16.vlgmr.msra.gmra.mrb[4].mxu1 %v1044_v24  ;;  %v5455_v24 = vld [vmem:[%s7368_s1 + $0x534] ss:$8 sps:$4 sm:$0xff]  }
  0xe7   : > { %3045 = vmatmul.mubr.bf16.vlgmr.msra.gmra.mrb[16].mxu0 %v2762_v4  ;;  %1749 = vmatpush1.bf16.msra.mxu1 %v5381_v39  ;;  %v5444_v39 = vld [vmem:[%s7368_s1 + $0xa90] ss:$8 sps:$4 sm:$0xff]  }
  0xe8   : > { %3056 = vmatpush1.bf16.msra.mxu0 %v5386_v31  ;;  %1750 = vmatprep.subr.bf16.mxu1 %v5393_v47  ;;  %v5453_v31 = vld [vmem:[%s7368_s1 + $0x530] ss:$8 sps:$4 sm:$0xff]   ;;  %v4390_v47 = vcombine.low %v6509_v60, %v6304_v30  ;;  %v5470_v30 = vld [vmem:[%s7368_s1 + $0xad4] ss:$8 sps:$4 sm:$0xff]  }
  0xe9   : > { %3057 = vmatprep.subr.bf16.mxu0 %v5396_v48  ;;  %3087 = vmatprep.mubr.bf16.mxu0 %v5724_v2  ;;  %v5456_v4 = vld [vmem:[%s7368_s1 + $0xab0] ss:$8 sps:$4 sm:$0xff]   ;;  %v5459_v48 = vld [vmem:[%s7368_s1 + $0x540] ss:$8 sps:$4 sm:$0xff]  }
  0xea   : > { %1780 = vmatprep.mubr.bf16.mxu1 %v1487_v54  ;;  %v5465_v60 = vld [vmem:[%s7368_s1 + $0x550] ss:$8 sps:$4 sm:$0xff]   ;;  %v1458_v54 = vshll.u32 %v4390_v47, 16 }
  0xeb   : > { %1751 = vmatpush1.bf16.msra.mxu1 %v5391_v52  ;;  %v1455_v52 = vshrl.u32 %v4390_v47, 16  ;;  %v5511_v47 = vld [vmem:[%s7368_s1 + $0x640] ss:$8 sps:$4 sm:$0xff]  }
  0xec   : > { %3058 = vmatpush1.bf16.msra.mxu0 %v5394_v55  ;;  %1752 = vmatprep.subr.bf16.mxu1 %v5399_v57  ;;  %v1463_v55 = vshrl.u32 %v4393_v50, 16  ;;  %v1466_v57 = vshll.u32 %v4393_v50, 16  ;;  %v5522_v50 = vld [vmem:[%s7368_s1 + $0xb54] ss:$8 sps:$4 sm:$0xff]  }
  0xed   : > { %3059 = vmatprep.subr.bf16.mxu0 %v5402_v58  ;;  %v5476_v58 = vld [vmem:[%s7368_s1 + $0xae4] ss:$8 sps:$4 sm:$0xff]  }
  0xef   : > { %1753 = vmatpush1.bf16.msra.mxu1 %v5397_v62 }
  0xf0   : > { %3060 = vmatpush1.bf16.msra.mxu0 %v5400_v0  ;;  %1754 = vmatprep.subr.bf16.mxu1 %v5405_v1  ;;  %v5471_v0 = vld [vmem:[%s7368_s1 + $0x560] ss:$8 sps:$4 sm:$0xff]  }
  0xf1   : > { %3061 = vmatprep.subr.bf16.mxu0 %v5408_v3  ;;  %v5474_v1 = vld [vmem:[%s7368_s1 + $0xae0] ss:$8 sps:$4 sm:$0xff]   ;;  %v1457_v3 = vrot.slane %v1455_v52, 2  ;;  %v5528_v52 = vld [vmem:[%s7368_s1 + $0xb64] ss:$8 sps:$4 sm:$0xff]  }
  0xf3   : > { %1755 = vmatpush1.bf16.msra.mxu1 %v5403_v5 }
  0xf4   : > { %3062 = vmatpush1.bf16.msra.mxu0 %v5406_v6  ;;  %1756 = vmatprep.subr.bf16.mxu1 %v5411_v7  ;;  %v5479_v6 = vld [vmem:[%s7368_s1 + $0x574] ss:$8 sps:$4 sm:$0xff]   ;;  %v1460_v7 = vrot.slane %v1458_v54, 3 }
  0xf5   : > { %3063 = vmatprep.subr.bf16.mxu0 %v5414_v8  ;;  %v1465_v8 = vrot.slane %v1463_v55, 2 }
  0xf7   : > { %1757 = vmatpush1.bf16.msra.mxu1 %v5409_v9  ;;  %v6782_v9 = vld [vmem:[%s5843_s19] sm:$0x88] }
  0xf8   : > { %3064 = vmatpush1.bf16.msra.mxu0 %v5412_v35  ;;  %1758 = vmatprep.subr.bf16.mxu1 %v5417_v10  ;;  %v1468_v10 = vrot.slane %v1466_v57, 3  ;;  %v5526_v57 = vld [vmem:[%s7368_s1 + $0xb60] ss:$8 sps:$4 sm:$0xff]  }
  0xf9   : > { %3065 = vmatprep.subr.bf16.mxu0 %v5420_v11  ;;  %v6787_v11 = vld [vmem:[%s5843_s19 + $0x18] sm:$0x77] }
  0xfa   : > { %v6656_v16 = vpop.f32.mrb[0].mxu0 }
  0xfb   : > { %v6658_v17 = vpop.f32.mrb[1].mxu0  ;;  %1759 = vmatpush1.bf16.msra.mxu1 %v5415_v12 }
  0xfc   : > { %v6663_v32 = vpop.f32.mrb[2].mxu0  ;;  %3066 = vmatpush1.bf16.msra.mxu0 %v5418_v13  ;;  %1760 = vmatprep.subr.bf16.mxu1 %v5423_v14  ;;  %v5482_v13 = vld [vmem:[%s7368_s1 + $0xaf4] ss:$8 sps:$4 sm:$0xff]   ;;  %v5477_v14 = vld [vmem:[%s7368_s1 + $0x570] ss:$8 sps:$4 sm:$0xff]  }
  0xfd   : > { %v6668_v19 = vpop.f32.mrb[3].mxu0  ;;  %3067 = vmatprep.subr.bf16.mxu0 %v5426_v15  ;;  %v5480_v15 = vld [vmem:[%s7368_s1 + $0xaf0] ss:$8 sps:$4 sm:$0xff]  }
  0xff   : > { %1761 = vmatpush1.bf16.msra.mxu1 %v5421_v29  ;;  %v6801_v29 = vld [vmem:[%s5843_s19 + $0xc] sm:$0xff] }
 0x100   : > { %3068 = vmatpush1.bf16.msra.mxu0 %v5424_v18  ;;  %1762 = vmatprep.subr.bf16.mxu1 %v5429_v20  ;;  %v6805_v18 = vcombine.high %v6782_v9, %v6801_v29  ;;  %v6809_v20 = vcombine.high %v6787_v11, %v6787_v11 }
 0x101   : > { %3069 = vmatprep.subr.bf16.mxu0 %v5432_v21  ;;  %v1461_v21 = vor.u32 %v1460_v7, %v1457_v3  ;;  %v5529_v3 = vld [vmem:[%s7368_s1 + $0x670] ss:$8 sps:$4 sm:$0xff]   ;;  %v5537_v7 = vld [vmem:[%s7368_s1 + $0x684] ss:$8 sps:$4 sm:$0xff]  }
 0x103   : > { %1763 = vmatpush1.bf16.msra.mxu1 %v5427_v51  ;;  %v1469_v51 = vor.u32 %v1468_v10, %v1465_v8  ;;  %v5540_v8 = vld [vmem:[%s7368_s1 + $0xb84] ss:$8 sps:$4 sm:$0xff]   ;;  %v5535_v10 = vld [vmem:[%s7368_s1 + $0x680] ss:$8 sps:$4 sm:$0xff]  }
 0x104   : > { %3070 = vmatpush1.bf16.msra.mxu0 %v5430_v23  ;;  %1764 = vmatprep.subr.bf16.mxu1 %v5435_v25  ;;  %v5489_v23 = vld [vmem:[%s7368_s1 + $0x604] ss:$8 sps:$4 sm:$0xff]  }
 0x105   : > { %3446 = vmatprep.subr.bf16.mxu0 %v5438_v28  ;;  %v5492_v25 = vld [vmem:[%s7368_s1 + $0xb04] ss:$8 sps:$4 sm:$0xff]   ;;  %v1911_v28 = vrot.slane %v6805_v18, 3 }
 0x107   : > { %3088 = vmatmul.mubr.bf16.vlgmr.msra.gmra.mrb[16].mxu0 %v2768_v22  ;;  %1765 = vmatpush1.bf16.msra.mxu1 %v5433_v33  ;;  %v1912_v33 = vrot.slane %v6809_v20, 3  ;;  %v5495_v22 = vld [vmem:[%s7368_s1 + $0x614] ss:$8 sps:$4 sm:$0xff]  }
 0x108   : > { %3447 = vmatpush1.bf16.msra.mxu0 %v5436_v34  ;;  %1766 = vmatprep.subr.bf16.mxu1 %v5443_v36  ;;  %v1470_v34 = vsel %vm1453_vm1, %v1461_v21, %v1469_v51  ;;  %v5498_v36 = vld [vmem:[%s7368_s1 + $0xb14] ss:$8 sps:$4 sm:$0xff]   ;;  %v5541_v21 = vld [vmem:[%s7368_s1 + $0x690] ss:$8 sps:$4 sm:$0xff]   ;;  %vm4019_vm1 = vmor %vm4017_vm15, %vm4018_vm0 }
 0x109   : > { %3448 = vmatprep.subr.bf16.mxu0 %v5446_v37  ;;  %3478 = vmatprep.mubr.bf16.mxu0 %v6468_v40  ;;  %v5458_v40 = vld [vmem:[%s7368_s1 + $0xab4] ss:$8 sps:$4 sm:$0xff]   ;;  %v5493_v37 = vld [vmem:[%s7368_s1 + $0x610] ss:$8 sps:$4 sm:$0xff]  }
 0x10a   : > { %v5544_v51 = vld [vmem:[%s7368_s1 + $0xb90] ss:$8 sps:$4 sm:$0xff]  }
 0x10b   : > { %1767 = vmatpush1.bf16.msra.mxu1 %v5441_v38  ;;  %v1913_v38 = vsel %vm1907_vm2, %v1911_v28, %v1912_v33  ;;  %v5558_v28 = vld [vmem:[%s7368_s1 + $0xbb4] ss:$8 sps:$4 sm:$0xff]   ;;  %v5553_v33 = vld [vmem:[%s7368_s1 + $0x6b0] ss:$8 sps:$4 sm:$0xff]  }
 0x10c   : > { %3449 = vmatpush1.bf16.msra.mxu0 %v5444_v39  ;;  %1768 = vmatprep.subr.bf16.mxu1 %v5449_v41  ;;  %v5496_v39 = vld [vmem:[%s7368_s1 + $0xb10] ss:$8 sps:$4 sm:$0xff]   ;;  %v5501_v41 = vld [vmem:[%s7368_s1 + $0x624] ss:$8 sps:$4 sm:$0xff]  }
 0x10d   : > { %3450 = vmatprep.subr.bf16.mxu0 %v5452_v42  ;;  %v5504_v42 = vld [vmem:[%s7368_s1 + $0xb24] ss:$8 sps:$4 sm:$0xff]  }
 0x10f   : > { %1769 = vmatpush1.bf16.msra.mxu1 %v5447_v43  ;;  %v5499_v43 = vld [vmem:[%s7368_s1 + $0x620] ss:$8 sps:$4 sm:$0xff]  }
 0x110   : > { %3451 = vmatpush1.bf16.msra.mxu0 %v5450_v44  ;;  %1770 = vmatprep.subr.bf16.mxu1 %v5455_v24  ;;  %v5502_v44 = vld [vmem:[%s7368_s1 + $0xb20] ss:$8 sps:$4 sm:$0xff]   ;;  %v5507_v24 = vld [vmem:[%s7368_s1 + $0x634] ss:$8 sps:$4 sm:$0xff]  }
 0x111   : > { %3452 = vmatprep.subr.bf16.mxu0 %v5458_v40  ;;  %v5510_v40 = vld [vmem:[%s7368_s1 + $0xb34] ss:$8 sps:$4 sm:$0xff]  }
 0x113   : > { %1771 = vmatpush1.bf16.msra.mxu1 %v5453_v31  ;;  %v5505_v31 = vld [vmem:[%s7368_s1 + $0x630] ss:$8 sps:$4 sm:$0xff]  }
 0x114   : > { %3453 = vmatpush1.bf16.msra.mxu0 %v5456_v4  ;;  %1772 = vmatprep.subr.bf16.mxu1 %v5461_v45  ;;  %v5508_v4 = vld [vmem:[%s7368_s1 + $0xb30] ss:$8 sps:$4 sm:$0xff]   ;;  %v5513_v45 = vld [vmem:[%s7368_s1 + $0x644] ss:$8 sps:$4 sm:$0xff]  }
 0x115   : > { %3454 = vmatprep.subr.bf16.mxu0 %v5464_v46  ;;  %v5516_v46 = vld [vmem:[%s7368_s1 + $0xb44] ss:$8 sps:$4 sm:$0xff]  }
 0x117   : > { %1773 = vmatpush1.bf16.msra.mxu1 %v5459_v48  ;;  %v5514_v48 = vld [vmem:[%s7368_s1 + $0xb40] ss:$8 sps:$4 sm:$0xff]  }
 0x118   : > { %3455 = vmatpush1.bf16.msra.mxu0 %v5462_v49  ;;  %1774 = vmatprep.subr.bf16.mxu1 %v5467_v63  ;;  %v5519_v49 = vld [vmem:[%s7368_s1 + $0x654] ss:$8 sps:$4 sm:$0xff]   ;;  %v5517_v63 = vld [vmem:[%s7368_s1 + $0x650] ss:$8 sps:$4 sm:$0xff]  }
 0x119   : > { %3456 = vmatprep.subr.bf16.mxu0 %v5470_v30  ;;  %v5520_v30 = vld [vmem:[%s7368_s1 + $0xb50] ss:$8 sps:$4 sm:$0xff]  }
 0x11a   : > { %v6768_v62 = vpop.f32.mrb[4].mxu0 }
 0x11b   : > { %v6776_v5 = vpop.f32.mrb[5].mxu0  ;;  %1775 = vmatpush1.bf16.msra.mxu1 %v5465_v60  ;;  %v5525_v60 = vld [vmem:[%s7368_s1 + $0x664] ss:$8 sps:$4 sm:$0xff]  }
 0x11c   : > { %v6784_v35 = vpop.f32.mrb[6].mxu0  ;;  %3457 = vmatpush1.bf16.msra.mxu0 %v5468_v61  ;;  %1776 = vmatprep.subr.bf16.mxu1 %v5473_v56  ;;  %v5523_v56 = vld [vmem:[%s7368_s1 + $0x660] ss:$8 sps:$4 sm:$0xff]  }
 0x11d   : > { %v6789_v12 = vpop.f32.mrb[7].mxu0  ;;  %3458 = vmatprep.subr.bf16.mxu0 %v5476_v58 }
 0x11f   : > { %1777 = vmatpush1.bf16.msra.mxu1 %v5471_v0  ;;  %v5531_v0 = vld [vmem:[%s7368_s1 + $0x674] ss:$8 sps:$4 sm:$0xff]  }
 0x120   : > { %3459 = vmatpush1.bf16.msra.mxu0 %v5474_v1  ;;  %1778 = vmatprep.subr.bf16.mxu1 %v5479_v6  ;;  %v5534_v1 = vld [vmem:[%s7368_s1 + $0xb74] ss:$8 sps:$4 sm:$0xff]   ;;  %v5532_v6 = vld [vmem:[%s7368_s1 + $0xb70] ss:$8 sps:$4 sm:$0xff]  }
 0x121   : > { %3460 = vmatprep.subr.bf16.mxu0 %v5482_v13  ;;  %v5538_v13 = vld [vmem:[%s7368_s1 + $0xb80] ss:$8 sps:$4 sm:$0xff]  }
 0x123   : > { %1779 = vmatpush1.bf16.msra.mxu1 %v5477_v14  ;;  %v5543_v14 = vld [vmem:[%s7368_s1 + $0x694] ss:$8 sps:$4 sm:$0xff]  }
 0x124   : > { %3461 = vmatpush1.bf16.msra.mxu0 %v5480_v15  ;;  %2160 = vmatprep.subr.bf16.mxu1 %v5489_v23  ;;  %v5546_v15 = vld [vmem:[%s7368_s1 + $0xb94] ss:$8 sps:$4 sm:$0xff]   ;;  %v5549_v23 = vld [vmem:[%s7368_s1 + $0x6a4] ss:$8 sps:$4 sm:$0xff]  }
 0x125   : > { %3462 = vmatprep.subr.bf16.mxu0 %v5492_v25  ;;  %v5547_v25 = vld [vmem:[%s7368_s1 + $0x6a0] ss:$8 sps:$4 sm:$0xff]  }
 0x126   : > { %1781 = vmatmul.mubr.bf16.vlgmr.msra.gmra.mrb[8].mxu1 %v1470_v34  ;;  %v5556_v34 = vld [vmem:[%s7368_s1 + $0xbb0] ss:$8 sps:$4 sm:$0xff]  }
 0x127   : > { %2161 = vmatpush1.bf16.msra.mxu1 %v5487_v26  ;;  %2192 = vmatprep.mubr.bf16.mxu1 %v1913_v38  ;;  %v5550_v26 = vld [vmem:[%s7368_s1 + $0xba0] ss:$8 sps:$4 sm:$0xff]  }
 0x128   : > { %3463 = vmatpush1.bf16.msra.mxu0 %v5490_v27  ;;  %2162 = vmatprep.subr.bf16.mxu1 %v5495_v22  ;;  %v5555_v27 = vld [vmem:[%s7368_s1 + $0x6b4] ss:$8 sps:$4 sm:$0xff]   ;;  %v5561_v22 = vld [vmem:[%s7368_s1 + $0x6c4] ss:$8 sps:$4 sm:$0xff]   ;;  %v5562_v38 = vld [vmem:[%s7368_s1 + $0xbc0] ss:$8 sps:$4 sm:$0xff]  }
 0x129   : > { %3464 = vmatprep.subr.bf16.mxu0 %v5498_v36  ;;  %v5564_v36 = vld [vmem:[%s7368_s1 + $0xbc4] ss:$8 sps:$4 sm:$0xff]  }
 0x12b   : > { %2163 = vmatpush1.bf16.msra.mxu1 %v5493_v37  ;;  %v5559_v37 = vld [vmem:[%s7368_s1 + $0x6c0] ss:$8 sps:$4 sm:$0xff]  }
 0x12c   : > { %3465 = vmatpush1.bf16.msra.mxu0 %v5496_v39  ;;  %2164 = vmatprep.subr.bf16.mxu1 %v5501_v41  ;;  %v5567_v39 = vld [vmem:[%s7368_s1 + $0x6d4] ss:$8 sps:$4 sm:$0xff]  }
 0x12d   : > { %3466 = vmatprep.subr.bf16.mxu0 %v5504_v42  ;;  %v5570_v41 = vld [vmem:[%s7368_s1 + $0xbd4] ss:$8 sps:$4 sm:$0xff]   ;;  %v5565_v42 = vld [vmem:[%s7368_s1 + $0x6d0] ss:$8 sps:$4 sm:$0xff]  }
 0x12f   : > { %2165 = vmatpush1.bf16.msra.mxu1 %v5499_v43  ;;  %v5568_v43 = vld [vmem:[%s7368_s1 + $0xbd0] ss:$8 sps:$4 sm:$0xff]  }
 0x130   : > { %3467 = vmatpush1.bf16.msra.mxu0 %v5502_v44  ;;  %2166 = vmatprep.subr.bf16.mxu1 %v5507_v24  ;;  %v5573_v44 = vld [vmem:[%s7368_s1 + $0x6e4] ss:$8 sps:$4 sm:$0xff]  }
 0x131   : > { %3468 = vmatprep.subr.bf16.mxu0 %v5510_v40  ;;  %v5576_v24 = vld [vmem:[%s7368_s1 + $0xbe4] ss:$8 sps:$4 sm:$0xff]  }
 0x133   : > { %2167 = vmatpush1.bf16.msra.mxu1 %v5505_v31  ;;  %v5571_v31 = vld [vmem:[%s7368_s1 + $0x6e0] ss:$8 sps:$4 sm:$0xff]  }
 0x134   : > { %3469 = vmatpush1.bf16.msra.mxu0 %v5508_v4  ;;  %2168 = vmatprep.subr.bf16.mxu1 %v5513_v45  ;;  %v2318_v4 = vshrl.u32 %v6805_v18, 16  ;;  %v2321_v45 = vshll.u32 %v6805_v18, 16  ;;  %v7021_v18 = vcombine.low %v6787_v11, %v6787_v11 }
 0x135   : > { %3470 = vmatprep.subr.bf16.mxu0 %v5516_v46 }
 0x137   : > { %2169 = vmatpush1.bf16.msra.mxu1 %v5511_v47  ;;  %v5574_v47 = vld [vmem:[%s7368_s1 + $0xbe0] ss:$8 sps:$4 sm:$0xff]  }
 0x138   : > { %3471 = vmatpush1.bf16.msra.mxu0 %v5514_v48  ;;  %2170 = vmatprep.subr.bf16.mxu1 %v5519_v49  ;;  %v2326_v48 = vshrl.u32 %v6809_v20, 16  ;;  %v2329_v49 = vshll.u32 %v6809_v20, 16  ;;  %v5579_v20 = vld [vmem:[%s7368_s1 + $0x6f4] ss:$8 sps:$4 sm:$0xff]  }
 0x139   : > { %3472 = vmatprep.subr.bf16.mxu0 %v5522_v50 }
 0x13a   : > { %v6893_v61 = vpop.f32.mrb[8].mxu0  ;;  %v2328_v11 = vrot.slane %v2326_v48, 3  ;;  %v5622_v48 = vld [vmem:[%s7368_s1 + $0xc54] ss:$8 sps:$4 sm:$0xff]  }
 0x13b   : > { %v6895_v54 = vpop.f32.mrb[9].mxu0  ;;  %2171 = vmatpush1.bf16.msra.mxu1 %v5517_v63  ;;  %v7017_v63 = vcombine.low %v6782_v9, %v6801_v29  ;;  %v5582_v9 = vld [vmem:[%s7368_s1 + $0xbf4] ss:$8 sps:$4 sm:$0xff]   ;;  %v2320_v29 = vrot.slane %v2318_v4, 3  ;;  %v5611_v4 = vld [vmem:[%s7368_s1 + $0x7c0] ss:$8 sps:$4 sm:$0xff]  }
 0x13c   : > { %v6897_v55 = vpop.f32.mrb[10].mxu0  ;;  %3473 = vmatpush1.bf16.msra.mxu0 %v5520_v30  ;;  %2172 = vmatprep.subr.bf16.mxu1 %v5525_v60  ;;  %v7024_v30 = vld [vmem:[%s5843_s19 + $0xc] sm:$0xcc]  ;;  %v7027_v60 = vld [vmem:[%s5843_s19 + $0x24] sm:$0x33] }
 0x13d   : > { %v6905_v58 = vpop.f32.mrb[11].mxu0  ;;  %3474 = vmatprep.subr.bf16.mxu0 %v5528_v52 }
 0x13f   : > { %2173 = vmatpush1.bf16.msra.mxu1 %v5523_v56  ;;  %v2323_v56 = vrot.slane %v2321_v45, 4  ;;  %v5614_v45 = vld [vmem:[%s7368_s1 + $0xc40] ss:$8 sps:$4 sm:$0xff]  }
 0x140   : > { %3475 = vmatpush1.bf16.msra.mxu0 %v5526_v57  ;;  %2174 = vmatprep.subr.bf16.mxu1 %v5531_v0  ;;  %v2331_v57 = vrot.slane %v2329_v49, 4  ;;  %v7038_v0 = vld [vmem:[%s5843_s19 + $0x18] sm:$0xff] }
 0x141   : > { %3476 = vmatprep.subr.bf16.mxu0 %v5534_v1  ;;  %v4889_v1 = vcombine.high %v7024_v30, %v7038_v0  ;;  %v5617_v49 = vld [vmem:[%s7368_s1 + $0x7d0] ss:$8 sps:$4 sm:$0xff]  }
 0x143   : > { %2175 = vmatpush1.bf16.msra.mxu1 %v5529_v3  ;;  %v4892_v3 = vcombine.high %v7027_v60, %v7027_v60 }
 0x144   : > { %3477 = vmatpush1.bf16.msra.mxu0 %v5532_v6  ;;  %2176 = vmatprep.subr.bf16.mxu1 %v5537_v7  ;;  %v5577_v6 = vld [vmem:[%s7368_s1 + $0x6f0] ss:$8 sps:$4 sm:$0xff]  }
 0x145   : > { %3489 = vmatprep.subr.bf16.mxu0 %v5540_v8  ;;  %v5580_v7 = vld [vmem:[%s7368_s1 + $0xbf0] ss:$8 sps:$4 sm:$0xff]   ;;  %v1908_v8 = vrot.slane %v7017_v63, 3 }
 0x147   : > { %3479 = vmatmul.mubr.bf16.vlgmr.msra.gmra.mrb[16].mxu0 %v6488_v53  ;;  %2177 = vmatpush1.bf16.msra.mxu1 %v5535_v10  ;;  %v5552_v53 = vld [vmem:[%s7368_s1 + $0xba4] ss:$8 sps:$4 sm:$0xff]   ;;  %v1909_v10 = vrot.slane %v7021_v18, 3 }
 0x148   : > { %3490 = vmatpush1.bf16.msra.mxu0 %v5538_v13  ;;  %2178 = vmatprep.subr.bf16.mxu1 %v5543_v14  ;;  %v5589_v13 = vld [vmem:[%s7368_s1 + $0x784] ss:$8 sps:$4 sm:$0xff]  }
 0x149   : > { %3491 = vmatprep.subr.bf16.mxu0 %v5546_v15  ;;  %3521 = vmatprep.mubr.bf16.mxu0 %v5724_v2  ;;  %v5592_v14 = vld [vmem:[%s7368_s1 + $0xc04] ss:$8 sps:$4 sm:$0xff]   ;;  %v2324_v15 = vor.u32 %v2323_v56, %v2320_v29 }
 0x14a   : > { %v5628_v29 = vld [vmem:[%s7368_s1 + $0xc64] ss:$8 sps:$4 sm:$0xff]  }
 0x14b   : > { %2179 = vmatpush1.bf16.msra.mxu1 %v5541_v21  ;;  %v2332_v21 = vor.u32 %v2331_v57, %v2328_v11 }
 0x14c   : > { %3492 = vmatpush1.bf16.msra.mxu0 %v5544_v51  ;;  %2180 = vmatprep.subr.bf16.mxu1 %v5549_v23  ;;  %v3609_v51 = vrot.slane %v4889_v1, 2  ;;  %v3610_v23 = vrot.slane %v4892_v3, 2 }
 0x14d   : > { %3493 = vmatprep.subr.bf16.mxu0 %v5552_v53  ;;  %v1910_v53 = vsel %vm1907_vm2, %v1908_v8, %v1909_v10  ;;  %v5634_v10 = vld [vmem:[%s7368_s1 + $0xc74] ss:$8 sps:$4 sm:$0xff]   ;;  %vm4020_vm2 = vcmask 1046534  }
 0x14f   : > { %2181 = vmatpush1.bf16.msra.mxu1 %v5547_v25  ;;  %v5587_v25 = vld [vmem:[%s7368_s1 + $0x780] ss:$8 sps:$4 sm:$0xff]  }
 0x150   : > { %3494 = vmatpush1.bf16.msra.mxu0 %v5550_v26  ;;  %2182 = vmatprep.subr.bf16.mxu1 %v5555_v27  ;;  %v5590_v26 = vld [vmem:[%s7368_s1 + $0xc00] ss:$8 sps:$4 sm:$0xff]   ;;  %v5595_v27 = vld [vmem:[%s7368_s1 + $0x794] ss:$8 sps:$4 sm:$0xff]  }
 0x151   : > { %3495 = vmatprep.subr.bf16.mxu0 %v5558_v28  ;;  %v5598_v28 = vld [vmem:[%s7368_s1 + $0xc14] ss:$8 sps:$4 sm:$0xff]  }
 0x153   : > { %2183 = vmatpush1.bf16.msra.mxu1 %v5553_v33  ;;  %v2333_v33 = vsel %vm2299_vm3, %v2324_v15, %v2332_v21  ;;  %v5637_v15 = vld [vmem:[%s7368_s1 + $0x804] ss:$8 sps:$4 sm:$0xff]   ;;  %v5635_v21 = vld [vmem:[%s7368_s1 + $0x800] ss:$8 sps:$4 sm:$0xff]  }
 0x154   : > { %3496 = vmatpush1.bf16.msra.mxu0 %v5556_v34  ;;  %2184 = vmatprep.subr.bf16.mxu1 %v5561_v22  ;;  %v3611_v34 = vsel %vm3605_vm5, %v3609_v51, %v3610_v23  ;;  %v5593_v22 = vld [vmem:[%s7368_s1 + $0x790] ss:$8 sps:$4 sm:$0xff]   ;;  %v5638_v51 = vld [vmem:[%s7368_s1 + $0xc80] ss:$8 sps:$4 sm:$0xff]   ;;  %v5643_v23 = vld [vmem:[%s7368_s1 + $0x814] ss:$8 sps:$4 sm:$0xff]  }
 0x155   : > { %3497 = vmatprep.subr.bf16.mxu0 %v5564_v36  ;;  %v5596_v36 = vld [vmem:[%s7368_s1 + $0xc10] ss:$8 sps:$4 sm:$0xff]  }
 0x157   : > { %2185 = vmatpush1.bf16.msra.mxu1 %v5559_v37  ;;  %v5604_v37 = vld [vmem:[%s7368_s1 + $0xc24] ss:$8 sps:$4 sm:$0xff]  }
 0x158   : > { %3498 = vmatpush1.bf16.msra.mxu0 %v5562_v38  ;;  %2186 = vmatprep.subr.bf16.mxu1 %v5567_v39  ;;  %v5599_v38 = vld [vmem:[%s7368_s1 + $0x7a0] ss:$8 sps:$4 sm:$0xff]  }
 0x159   : > { %3499 = vmatprep.subr.bf16.mxu0 %v5570_v41  ;;  %v5602_v39 = vld [vmem:[%s7368_s1 + $0xc20] ss:$8 sps:$4 sm:$0xff]   ;;  %v5607_v41 = vld [vmem:[%s7368_s1 + $0x7b4] ss:$8 sps:$4 sm:$0xff]  }
 0x15a   : > { %v6999_v40 = vpop.f32.mrb[12].mxu0 }
 0x15b   : > { %v7006_v46 = vpop.f32.mrb[13].mxu0  ;;  %2187 = vmatpush1.bf16.msra.mxu1 %v5565_v42  ;;  %v5610_v42 = vld [vmem:[%s7368_s1 + $0xc34] ss:$8 sps:$4 sm:$0xff]  }
 0x15c   : > { %v7013_v50 = vpop.f32.mrb[14].mxu0  ;;  %3500 = vmatpush1.bf16.msra.mxu0 %v5568_v43  ;;  %2188 = vmatprep.subr.bf16.mxu1 %v5573_v44  ;;  %v5605_v43 = vld [vmem:[%s7368_s1 + $0x7b0] ss:$8 sps:$4 sm:$0xff]  }
 0x15d   : > { %v7029_v52 = vpop.f32.mrb[15].mxu0  ;;  %3501 = vmatprep.subr.bf16.mxu0 %v5576_v24  ;;  %v5608_v44 = vld [vmem:[%s7368_s1 + $0xc30] ss:$8 sps:$4 sm:$0xff]   ;;  %v5613_v24 = vld [vmem:[%s7368_s1 + $0x7c4] ss:$8 sps:$4 sm:$0xff]  }
 0x15f   : > { %2189 = vmatpush1.bf16.msra.mxu1 %v5571_v31  ;;  %v5616_v31 = vld [vmem:[%s7368_s1 + $0xc44] ss:$8 sps:$4 sm:$0xff]  }
 0x160   : > { %3502 = vmatpush1.bf16.msra.mxu0 %v5574_v47  ;;  %2190 = vmatprep.subr.bf16.mxu1 %v5579_v20  ;;  %v5619_v47 = vld [vmem:[%s7368_s1 + $0x7d4] ss:$8 sps:$4 sm:$0xff]   ;;  %v5620_v20 = vld [vmem:[%s7368_s1 + $0xc50] ss:$8 sps:$4 sm:$0xff]  }
 0x161   : > { %3503 = vmatprep.subr.bf16.mxu0 %v5582_v9  ;;  %v5625_v9 = vld [vmem:[%s7368_s1 + $0x7e4] ss:$8 sps:$4 sm:$0xff]  }
 0x163   : > { %2191 = vmatpush1.bf16.msra.mxu1 %v5577_v6  ;;  %v5623_v6 = vld [vmem:[%s7368_s1 + $0x7e0] ss:$8 sps:$4 sm:$0xff]  }
 0x164   : > { %3504 = vmatpush1.bf16.msra.mxu0 %v5580_v7  ;;  %2594 = vmatprep.subr.bf16.mxu1 %v5589_v13  ;;  %v5626_v7 = vld [vmem:[%s7368_s1 + $0xc60] ss:$8 sps:$4 sm:$0xff]  }
 0x165   : > { %3858 = vmatprep.subr.bf16.mxu0 %v5592_v14  ;;  %v5632_v14 = vld [vmem:[%s7368_s1 + $0xc70] ss:$8 sps:$4 sm:$0xff]  }
 0x166   : > { %2193 = vmatmul.mubr.bf16.vlgmr.msra.gmra.mrb[12].mxu1 %v1910_v53  ;;  %v5646_v53 = vld [vmem:[%s7368_s1 + $0xc94] ss:$8 sps:$4 sm:$0xff]  }
 0x167   : > { %3522 = vmatmul.mubr.bf16.vlgmr.msra.gmra.mrb[16].mxu0 %v6606_v59  ;;  %2595 = vmatpush1.bf16.msra.mxu1 %v5587_v25  ;;  %v5601_v59 = vld [vmem:[%s7368_s1 + $0x7a4] ss:$8 sps:$4 sm:$0xff]   ;;  %v5641_v25 = vld [vmem:[%s7368_s1 + $0x810] ss:$8 sps:$4 sm:$0xff]  }
 0x168   : > { %3859 = vmatpush1.bf16.msra.mxu0 %v5590_v26  ;;  %2596 = vmatprep.subr.bf16.mxu1 %v5595_v27  ;;  %v5644_v26 = vld [vmem:[%s7368_s1 + $0xc90] ss:$8 sps:$4 sm:$0xff]   ;;  %v5649_v27 = vld [vmem:[%s7368_s1 + $0x824] ss:$8 sps:$4 sm:$0xff]  }
 0x169   : > { %3860 = vmatprep.subr.bf16.mxu0 %v5598_v28  ;;  %2626 = vmatprep.mubr.bf16.mxu1 %v2333_v33  ;;  %v5652_v28 = vld [vmem:[%s7368_s1 + $0xca4] ss:$8 sps:$4 sm:$0xff]   ;;  %v5647_v33 = vld [vmem:[%s7368_s1 + $0x820] ss:$8 sps:$4 sm:$0xff]  }
 0x16a   : > { %3890 = vmatprep.mubr.bf16.mxu0 %v3611_v34  ;;  %v5650_v34 = vld [vmem:[%s7368_s1 + $0xca0] ss:$8 sps:$4 sm:$0xff]  }
 0x16b   : > { %2597 = vmatpush1.bf16.msra.mxu1 %v5593_v22  ;;  %v5655_v22 = vld [vmem:[%s7368_s1 + $0x834] ss:$8 sps:$4 sm:$0xff]  }
 0x16c   : > { %3861 = vmatpush1.bf16.msra.mxu0 %v5596_v36  ;;  %2598 = vmatprep.subr.bf16.mxu1 %v5601_v59  ;;  %v5658_v36 = vld [vmem:[%s7368_s1 + $0xcb4] ss:$8 sps:$4 sm:$0xff]   ;;  %v5653_v59 = vld [vmem:[%s7368_s1 + $0x830] ss:$8 sps:$4 sm:$0xff]  }
 0x16d   : > { %3862 = vmatprep.subr.bf16.mxu0 %v5604_v37  ;;  %v5656_v37 = vld [vmem:[%s7368_s1 + $0xcb0] ss:$8 sps:$4 sm:$0xff]  }
 0x16f   : > { %2599 = vmatpush1.bf16.msra.mxu1 %v5599_v38  ;;  %v5661_v38 = vld [vmem:[%s7368_s1 + $0x844] ss:$8 sps:$4 sm:$0xff]  }
 0x170   : > { %3863 = vmatpush1.bf16.msra.mxu0 %v5602_v39  ;;  %2600 = vmatprep.subr.bf16.mxu1 %v5607_v41  ;;  %v5664_v39 = vld [vmem:[%s7368_s1 + $0xcc4] ss:$8 sps:$4 sm:$0xff]   ;;  %v5659_v41 = vld [vmem:[%s7368_s1 + $0x840] ss:$8 sps:$4 sm:$0xff]  }
 0x171   : > { %3864 = vmatprep.subr.bf16.mxu0 %v5610_v42  ;;  %v5662_v42 = vld [vmem:[%s7368_s1 + $0xcc0] ss:$8 sps:$4 sm:$0xff]  }
 0x173   : > { %2601 = vmatpush1.bf16.msra.mxu1 %v5605_v43  ;;  %v5667_v43 = vld [vmem:[%s7368_s1 + $0x854] ss:$8 sps:$4 sm:$0xff]  }
 0x174   : > { %3865 = vmatpush1.bf16.msra.mxu0 %v5608_v44  ;;  %2602 = vmatprep.subr.bf16.mxu1 %v5613_v24  ;;  %v5670_v44 = vld [vmem:[%s7368_s1 + $0xcd4] ss:$8 sps:$4 sm:$0xff]   ;;  %v2301_v24 = vshrl.u32 %v7017_v63, 16 }
 0x175   : > { %3866 = vmatprep.subr.bf16.mxu0 %v5616_v31  ;;  %v2304_v31 = vshll.u32 %v7017_v63, 16  ;;  %v5673_v63 = vld [vmem:[%s7368_s1 + $0x864] ss:$8 sps:$4 sm:$0xff]  }
 0x177   : > { %2603 = vmatpush1.bf16.msra.mxu1 %v5611_v4  ;;  %v5665_v4 = vld [vmem:[%s7368_s1 + $0x850] ss:$8 sps:$4 sm:$0xff]  }
 0x178   : > { %3867 = vmatpush1.bf16.msra.mxu0 %v5614_v45  ;;  %2604 = vmatprep.subr.bf16.mxu1 %v5619_v47  ;;  %v5668_v45 = vld [vmem:[%s7368_s1 + $0xcd0] ss:$8 sps:$4 sm:$0xff]   ;;  %v2309_v47 = vshrl.u32 %v7021_v18, 16 }
 0x179   : > { %3868 = vmatprep.subr.bf16.mxu0 %v5622_v48  ;;  %v913_v56 = vpop.f32.mrb[0].mxu1  ;;  %v2312_v48 = vshll.u32 %v7021_v18, 16  ;;  %v5674_v18 = vld [vmem:[%s7368_s1 + $0xce0] ss:$8 sps:$4 sm:$0xff]  }
 0x17a   : > { %v7135_v11 = vadd.f32 %v6656_v16, %v913_v56  ;;  %v915_v57 = vpop.f32.mrb[1].mxu1  ;;  %v2311_v56 = vrot.slane %v2309_v47, 3 }
 0x17b   : > { %v7138_v1 = vadd.f32 %v6658_v17, %v915_v57  ;;  %v917_v3 = vpop.f32.mrb[2].mxu1  ;;  %2605 = vmatpush1.bf16.msra.mxu1 %v5617_v49  ;;  %v5631_v17 = vld [vmem:[%s7368_s1 + $0x7f4] ss:$8 sps:$4 sm:$0xff]   ;;  %v5676_v49 = vld [vmem:[%s7368_s1 + $0xce4] ss:$8 sps:$4 sm:$0xff]   ;;  %v2314_v57 = vrot.slane %v2312_v48, 4 }
 0x17c   : > { %3869 = vmatpush1.bf16.msra.mxu0 %v5620_v20  ;;  %v7147_v8 = vadd.f32 %v6663_v32, %v917_v3  ;;  %v919_v16 = vpop.f32.mrb[3].mxu1  ;;  %2606 = vmatprep.subr.bf16.mxu1 %v5625_v9  ;;  %v5629_v32 = vld [vmem:[%s7368_s1 + $0x7f0] ss:$8 sps:$4 sm:$0xff]   ;;  %v2303_v20 = vrot.slane %v2301_v24, 3  ;;  %v2306_v9 = vrot.slane %v2304_v31, 4  ;;  %v4888_v3 = vcombine.low %v7024_v30, %v7038_v0 }
 0x17d   : > { %3870 = vmatprep.subr.bf16.mxu0 %v5628_v29  ;;  %v7156_v13 = vadd.f32 %v6668_v19, %v919_v16  ;;  %v5640_v19 = vld [vmem:[%s7368_s1 + $0xc84] ss:$8 sps:$4 sm:$0xff]   ;;  %v5671_v29 = vld [vmem:[%s7368_s1 + $0x860] ss:$8 sps:$4 sm:$0xff]   ;;  %v5682_v16 = vld [vmem:[%s7368_s1 + $0xcf4] ss:$8 sps:$4 sm:$0xff]   ;;  %v2315_v0 = vor.u32 %v2314_v57, %v2311_v56 }
 0x17e   : > { %v5680_v30 = vld [vmem:[%s7368_s1 + $0xcf0] ss:$8 sps:$4 sm:$0xff]   ;;  %v5712_v24 = vld [vmem:[%s5843_s19 + $0x2c] ss:$0 sps:$4 sm:$0x33]  }
 0x17f   : > { %2607 = vmatpush1.bf16.msra.mxu1 %v5623_v6  ;;  %v4891_v6 = vcombine.low %v7027_v60, %v7027_v60  ;;  %v2307_v60 = vor.u32 %v2306_v9, %v2303_v20 }
 0x180   : > { %3871 = vmatpush1.bf16.msra.mxu0 %v5626_v7  ;;  %2608 = vmatprep.subr.bf16.mxu1 %v5631_v17  ;;  %v5679_v7 = vld [vmem:[%s7368_s1 + $0x874] ss:$8 sps:$4 sm:$0xff]   ;;  %v5677_v17 = vld [vmem:[%s7368_s1 + $0x870] ss:$8 sps:$4 sm:$0xff]  }
 0x181   : > { %3872 = vmatprep.subr.bf16.mxu0 %v5634_v10  ;;  %v3606_v10 = vrot.slane %v4888_v3, 2 }
 0x183   : > { %2609 = vmatpush1.bf16.msra.mxu1 %v5629_v32  ;;  %v3607_v32 = vrot.slane %v4891_v6, 2 }
 0x184   : > { %3873 = vmatpush1.bf16.msra.mxu0 %v5632_v14  ;;  %2610 = vmatprep.subr.bf16.mxu1 %v5637_v15  ;;  %v5687_v14 = vld [vmem:[%s7368_s1 + $0xd04] ss:$8 sps:$4 sm:$0xff]   ;;  %v2316_v15 = vsel %vm2299_vm3, %v2307_v60, %v2315_v0  ;;  %vm4021_vm3 = vmor %vm4019_vm1, %vm4020_vm2 }
 0x185   : > { %3874 = vmatprep.subr.bf16.mxu0 %v5640_v19  ;;  %v5685_v19 = vld [vmem:[%s7368_s1 + $0xd00] ss:$8 sps:$4 sm:$0xff]  }
 0x187   : > { %2611 = vmatpush1.bf16.msra.mxu1 %v5635_v21  ;;  %v3608_v21 = vsel %vm3605_vm5, %v3606_v10, %v3607_v32 }
 0x188   : > { %3875 = vmatpush1.bf16.msra.mxu0 %v5638_v51  ;;  %2612 = vmatprep.subr.bf16.mxu1 %v5643_v23  ;;  %v5692_v51 = vld [vmem:[%s7368_s1 + $0xd14] ss:$8 sps:$4 sm:$0xff]   ;;  %v5690_v23 = vld [vmem:[%s7368_s1 + $0xd10] ss:$8 sps:$4 sm:$0xff]  }
 0x189   : > { %3876 = vmatprep.subr.bf16.mxu0 %v5646_v53  ;;  %v5695_v53 = vld [vmem:[%s7368_s1 + $0xd24] ss:$8 sps:$4 sm:$0xff]  }
 0x18b   : > { %2613 = vmatpush1.bf16.msra.mxu1 %v5641_v25  ;;  %v5693_v25 = vld [vmem:[%s7368_s1 + $0xd20] ss:$8 sps:$4 sm:$0xff]  }
 0x18c   : > { %3877 = vmatpush1.bf16.msra.mxu0 %v5644_v26  ;;  %2614 = vmatprep.subr.bf16.mxu1 %v5649_v27  ;;  %v5698_v26 = vld [vmem:[%s7368_s1 + $0xd34] ss:$8 sps:$4 sm:$0xff]   ;;  %v5701_v27 = vld [vmem:[%s7368_s1 + $0xd44] ss:$8 sps:$4 sm:$0xff]  }
 0x18d   : > { %3878 = vmatprep.subr.bf16.mxu0 %v5652_v28  ;;  %v5699_v28 = vld [vmem:[%s7368_s1 + $0xd40] ss:$8 sps:$4 sm:$0xff]  }
 0x18f   : > { %2615 = vmatpush1.bf16.msra.mxu1 %v5647_v33  ;;  %v5704_v33 = vld [vmem:[%s7368_s1 + $0xd54] ss:$8 sps:$4 sm:$0xff]  }
 0x190   : > { %3879 = vmatpush1.bf16.msra.mxu0 %v5650_v34  ;;  %2616 = vmatprep.subr.bf16.mxu1 %v5655_v22  ;;  %v5702_v34 = vld [vmem:[%s7368_s1 + $0xd50] ss:$8 sps:$4 sm:$0xff]   ;;  %v5707_v22 = vld [vmem:[%s7368_s1 + $0xd64] ss:$8 sps:$4 sm:$0xff]  }
 0x191   : > { %3880 = vmatprep.subr.bf16.mxu0 %v5658_v36  ;;  %v3537_v36 = vld [vmem:[%s5843_s19 + $0x14] sm:$0xc] }
 0x193   : > { %2617 = vmatpush1.bf16.msra.mxu1 %v5653_v59 }
 0x194   : > { %3881 = vmatpush1.bf16.msra.mxu0 %v5656_v37  ;;  %2618 = vmatprep.subr.bf16.mxu1 %v5661_v38 }
 0x195   : > { %3882 = vmatprep.subr.bf16.mxu0 %v5664_v39 }
 0x197   : > { %2619 = vmatpush1.bf16.msra.mxu1 %v5659_v41 }
 0x198   : > { %3883 = vmatpush1.bf16.msra.mxu0 %v5662_v42  ;;  %2620 = vmatprep.subr.bf16.mxu1 %v5667_v43  ;;  %v5705_v42 = vld [vmem:[%s7368_s1 + $0xd60] ss:$8 sps:$4 sm:$0xff]  }
 0x199   : > { %3884 = vmatprep.subr.bf16.mxu0 %v5670_v44  ;;  %v5715_v43 = vld [vmem:[%s5843_s19 + $0x20] sm:$0xf] }
 0x19a   : > { %v4890_v44 = vcombine.low %v3537_v36, %v5715_v43 }
 0x19b   : > { %2621 = vmatpush1.bf16.msra.mxu1 %v5665_v4 }
 0x19c   : > { %3885 = vmatpush1.bf16.msra.mxu0 %v5668_v45  ;;  %2622 = vmatprep.subr.bf16.mxu1 %v5673_v63  ;;  %v5708_v63 = vld [vmem:[%s7368_s1 + $0xd70] ss:$8 sps:$4 sm:$0xff]  }
 0x19d   : > { %3886 = vmatprep.subr.bf16.mxu0 %v5676_v49  ;;  %v3613_v49 = vrot.slane %v5712_v24, 2 }
 0x19f   : > { %2623 = vmatpush1.bf16.msra.mxu1 %v5671_v29 }
 0x1a0   : > { %3887 = vmatpush1.bf16.msra.mxu0 %v5674_v18  ;;  %2624 = vmatprep.subr.bf16.mxu1 %v5679_v7 }
 0x1a1   : > { %3888 = vmatprep.subr.bf16.mxu0 %v5682_v16 }
 0x1a3   : > { %2625 = vmatpush1.bf16.msra.mxu1 %v5677_v17 }
 0x1a4   : > { %3889 = vmatpush1.bf16.msra.mxu0 %v5680_v30 }
 0x1a5   : > { %3901 = vmatprep.subr.bf16.mxu0 %v5687_v14 }
 0x1a6   : > { %2627 = vmatmul.mubr.bf16.vlgmr.msra.gmra.mrb[16].mxu1 %v2316_v15 }
 0x1a7   : > { %3891 = vmatmul.mubr.bf16.vlgmr.msra.gmra.mrb[16].mxu0 %v3608_v21 }
 0x1a8   : > { %3902 = vmatpush1.bf16.msra.mxu0 %v5685_v19  ;;  %3933 = vmatprep.mubr.bf16.mxu0 %v5724_v2  ;;  %v5696_v2 = vld [vmem:[%s7368_s1 + $0xd30] ss:$8 sps:$4 sm:$0xff]  }
 0x1a9   : > { %3903 = vmatprep.subr.bf16.mxu0 %v5692_v51 }
 0x1ac   : > { %3904 = vmatpush1.bf16.msra.mxu0 %v5690_v23 }
 0x1ad   : > { %3905 = vmatprep.subr.bf16.mxu0 %v5695_v53 }
 0x1b0   : > { %3906 = vmatpush1.bf16.msra.mxu0 %v5693_v25 }
 0x1b1   : > { %3907 = vmatprep.subr.bf16.mxu0 %v5698_v26 }
 0x1b4   : > { %3908 = vmatpush1.bf16.msra.mxu0 %v5696_v2  ;;  %v3950_v2 = vlaneseq }
 0x1b5   : > { %3909 = vmatprep.subr.bf16.mxu0 %v5701_v27 }
 0x1b6   : > { %v3951_v27 = vshrl.u32 %v3950_v2, 7 }
 0x1b8   : > { %3910 = vmatpush1.bf16.msra.mxu0 %v5699_v28  ;;  %v3952_v28 = vsub.s32 0, %v3951_v27 }
 0x1b9   : > { %3911 = vmatprep.subr.bf16.mxu0 %v5704_v33  ;;  %v1328_v59 = vpop.f32.mrb[4].mxu1 }
 0x1ba   : > { %v4952_v37 = vadd.f32 %v7135_v11, %v1328_v59  ;;  %v1330_v38 = vpop.f32.mrb[5].mxu1  ;;  %v5710_v11 = vld [vmem:[%s7368_s1 + $0xd74] ss:$8 sps:$4 sm:$0xff]  }
 0x1bb   : > { %v4961_v39 = vadd.f32 %v7138_v1, %v1330_v38  ;;  %v1332_v41 = vpop.f32.mrb[6].mxu1 }
 0x1bc   : > { %3912 = vmatpush1.bf16.msra.mxu0 %v5702_v34  ;;  %v4970_v31 = vadd.f32 %v7147_v8, %v1332_v41  ;;  %v1334_v4 = vpop.f32.mrb[7].mxu1  ;;  %v4953_v45 = vadd.f32 %v4952_v37, %v6768_v62  ;;  %v3612_v8 = vrot.slane %v4890_v44, 2 }
 0x1bd   : > { %3913 = vmatprep.subr.bf16.mxu0 %v5707_v22  ;;  %v4979_v1 = vadd.f32 %v7156_v13, %v1334_v4  ;;  %v4962_v47 = vadd.f32 %v4961_v39, %v6776_v5 }
 0x1be   : > { %v4971_v48 = vadd.f32 %v4970_v31, %v6784_v35  ;;  %v3614_v9 = vsel %vm3605_vm5, %v3612_v8, %v3613_v49  ;;  %v3988_v49 = vld [vmem:[%s7346_s20] sm:$0xf] }
 0x1bf   : > { %v4980_v20 = vadd.f32 %v4979_v1, %v6789_v12 }
 0x1c0   : > { %3914 = vmatpush1.bf16.msra.mxu0 %v5705_v42 }
 0x1c1   : > { %3915 = vmatprep.subr.bf16.mxu0 %v5710_v11 }
 0x1c4   : > { %3916 = vmatpush1.bf16.msra.mxu0 %v5708_v63 }
 0x1c7   : > { %3934 = vmatmul.mubr.bf16.vlgmr.msra.gmra.mrb[16].mxu0 %v3614_v9 }
 0x1f9   : > { %v1782_v62 = vpop.f32.mrb[8].mxu1 }
 0x1fa   : > { %v4954_v13 = vadd.f32 %v4953_v45, %v1782_v62  ;;  %v1784_v29 = vpop.f32.mrb[9].mxu1 }
 0x1fb   : > { %v4963_v5 = vadd.f32 %v4962_v47, %v1784_v29  ;;  %v1786_v18 = vpop.f32.mrb[10].mxu1 }
 0x1fc   : > { %v4972_v35 = vadd.f32 %v4971_v48, %v1786_v18  ;;  %v1788_v56 = vpop.f32.mrb[11].mxu1  ;;  %v4955_v57 = vadd.f32 %v4954_v13, %v6893_v61 }
 0x1fd   : > { %v4981_v3 = vadd.f32 %v4980_v20, %v1788_v56  ;;  %v4964_v6 = vadd.f32 %v4963_v5, %v6895_v54 }
 0x1fe   : > { %v4973_v7 = vadd.f32 %v4972_v35, %v6897_v55 }
 0x1ff   : > { %v4982_v12 = vadd.f32 %v4981_v3, %v6905_v58 }
 0x239   : > { %v2194_v16 = vpop.f32.mrb[12].mxu1 }
 0x23a   : > { %v4956_v17 = vadd.f32 %v4955_v57, %v2194_v16  ;;  %v2196_v30 = vpop.f32.mrb[13].mxu1 }
 0x23b   : > { %v4965_v60 = vadd.f32 %v4964_v6, %v2196_v30  ;;  %v2198_v0 = vpop.f32.mrb[14].mxu1 }
 0x23c   : > { %v4974_v10 = vadd.f32 %v4973_v7, %v2198_v0  ;;  %v2200_v32 = vpop.f32.mrb[15].mxu1  ;;  %v4957_v14 = vadd.f32 %v4956_v17, %v6999_v40  ;;  %v3948_v40 = vld [vmem:[%s7369_s2] sm:$0x3]  ;;  %v4947_v7 = vld [vmem:[%s7346_s20 + $0x8] sm:$0xf] }
 0x23d   : > { %v4983_v15 = vadd.f32 %v4982_v12, %v2200_v32  ;;  %v4966_v19 = vadd.f32 %v4965_v60, %v7006_v46  ;;  %v3956_v46 = vsub.s32 1, %v3951_v27  ;;  %v4943_v17 = vld [vmem:[%s7346_s20 + $0x4] sm:$0xf] }
 0x23e   : > { %v4975_v61 = vadd.f32 %v4974_v10, %v7013_v50  ;;  %v5725_v50 = vmov 1983009808  }
 0x23f   : > { %v4984_v54 = vadd.f32 %v4983_v15, %v7029_v52  ;;  %v3974_v33 = vunpack.c.l.s4 %v5725_v50  ;;  %v3953_v52 = vrot.slane %v3948_v40, %v3952_v28  ;;  %v3957_v22 = vrot.slane %v3948_v40, %v3956_v46 }
 0x241   : > { %v3975_v37 = vunpack.c.0.s8 %v3974_v33 }
 0x243   : > { %v3978_v4 = vsub.s32 %v3975_v37, %v3951_v27 }
 0x279   : > { %v2628_v21 = vpop.f32.mrb[16].mxu1 }
 0x27a   : > { %v4958_v55 = vadd.f32 %v4957_v14, %v2628_v21  ;;  %v2630_v51 = vpop.f32.mrb[17].mxu1 }
 0x27b   : > { %v4967_v58 = vadd.f32 %v4966_v19, %v2630_v51  ;;  %v2632_v23 = vpop.f32.mrb[18].mxu1 }
 0x27c   : > { %v4976_v53 = vadd.f32 %v4975_v61, %v2632_v23  ;;  %v2634_v25 = vpop.f32.mrb[19].mxu1 }
 0x27d   : > { %v4985_v26 = vadd.f32 %v4984_v54, %v2634_v25 }
 0x29a   : > { %v3935_v34 = vpop.f32.mrb[16].mxu0 }
 0x29b   : > { %v4959_v36 = vadd.f32 %v4958_v55, %v3935_v34  ;;  %v3937_v59 = vpop.f32.mrb[17].mxu0 }
 0x29c   : > { %v4968_v38 = vadd.f32 %v4967_v58, %v3937_v59  ;;  %v3939_v39 = vpop.f32.mrb[18].mxu0 }
 0x29d   : > { %v3960_v41 = vadd.f32 %v4959_v36, %v3953_v52  ;;  %v4977_v42 = vadd.f32 %v4976_v53, %v3939_v39  ;;  %v3941_v43 = vpop.f32.mrb[19].mxu0 }
 0x29e   : > { %v3961_v44 = vadd.f32 %v4968_v38, %v3957_v22  ;;  %v4986_v24 = vadd.f32 %v4985_v26, %v3941_v43 }
 0x29f   : > { %v3964_v31 = vmax.f32 %v3960_v41, 0.0  ;;  %v3962_v11 = vadd.f32 %v4977_v42, %v3953_v52 }
 0x2a0   : > { %v3965_v45 = vmax.f32 %v3961_v44, 0.0  ;;  %v3963_v1 = vadd.f32 %v4986_v24, %v3957_v22 }
 0x2a1   : > { %v3966_v47 = vmax.f32 %v3962_v11, 0.0 }
 0x2a2   : > { %v4942_v48 = vpack.c.bf16 %v3965_v45, %v3964_v31  ;;  %v3967_v8 = vmax.f32 %v3963_v1, 0.0 }
 0x2a4   : > { %v3979_v20 = vrot.slane %v4942_v48, %v3978_v4  ;;  %v4945_v9 = vpack.c.bf16 %v3967_v8, %v3966_v47 }
 0x2a6   : > { %v3989_v62 = vsel %vm7348_vm14, %v3979_v20, %v3988_v49  ;;  %v3991_v13 = vcombine.high %v3979_v20, %v3979_v20  ;;  %v4013_v29 = vrot.slane %v4945_v9, %v3978_v4 }
 0x2a7   : > { %3990 = vst [vmem:[%s7346_s20] sm:$0xf] %v3989_v62 }
 0x2a8   : > { %v3993_v5 = vshrl.u32 %v3991_v13, 16  ;;  %v3996_v18 = vshll.u32 %v3991_v13, 16  ;;  %v4014_v35 = vcombine.high %v4013_v29, %v4013_v29  ;;  %v4946_v3 = vrot.slane %v4013_v29, 9 }
 0x2aa   : > { %v3995_v56 = vrot.slane %v3993_v5, 6  ;;  %v3998_v57 = vrot.slane %v3996_v18, 7  ;;  %v4024_v6 = vrot.slane %v4014_v35, 7 }
 0x2ac   : > { %v3999_v12 = vor.u32 %v3998_v57, %v3995_v56  ;;  %v4025_v16 = vsel %vm4021_vm3, %v4946_v3, %v4024_v6 }
 0x2ad   : > { %v4029_v30 = vsel %vm7348_vm14, %v4025_v16, %v4947_v7 }
 0x2ae   : > { %v4000_v60 = vrot.slane %v3999_v12, 2  ;;  %4948 = vst [vmem:[%s7346_s20 + $0x8] sm:$0xf] %v4029_v30 }
 0x2b0   : > { %v4004_v0 = vsel %vm7348_vm14, %v4000_v60, %v4943_v17 }
 0x2b1   : > { %4944 = vst [vmem:[%s7346_s20 + $0x4] sm:$0xf] %v4004_v0 }
 0x2b2 PF: > { %s13_s12 = sadd.s32 1, %s5722_s12  }
 0x2b3   : > { %p10_p4 = scmp.ge.s32.totalorder %s13_s12, 6  }
 0x2b5   :  { %12 = sbr.rel (!%p10_p4) target bundleno = 1 (0x1), region = 72 }

// kernel: mrnet_forward.11
= control target key start
LH: loop header
LB: loop body
LE: loop exit
PB: predicated region body
PF: predicated region fallthrough
CT: control target
= control target key end

     0   :  { %s165_s0 = inlined_call_operand.vmem [shape: bf16[4,1,256], index: 0, kind: input, shape index: {}]   ;;  %s166_s1 = inlined_call_operand.vmem [shape: f32[1,256], index: 1, kind: input, shape index: {}]   ;;  %s167_s2 = inlined_call_operand.<no memory space> [shape: f32[1,1], index: 2, kind: input, shape index: {}]   ;;  %s168_s3 = inlined_call_operand.hbm [shape: f32[1,1], index: 3, kind: output, shape index: {}]  }
   0x1   :  { %v8_v0 = vstv %s167_s2 }
   0x2   :  { %9 = vst [vmem:[#allocation2] sm:$0x1] %v8_v0 }
   0x3   :  { %v17_v1 = vld [vmem:[%s165_s0] sm:$0x3]  ;;  %v18_v2 = vld [vmem:[%s165_s0 + $0x2] sm:$0x3]  ;;  %v19_v3 = vld [vmem:[%s165_s0 + $0x4] sm:$0x3]  ;;  %v44_v4 = vlaneseq }
   0x4   :  { %v20_v5 = vld [vmem:[%s165_s0 + $0x6] sm:$0x3]  ;;  %v21_v6 = vunpack.c.l.bf16 %v17_v1  ;;  %v22_v7 = vunpack.c.l.bf16 %v18_v2  ;;  %v23_v8 = vunpack.c.l.bf16 %v19_v3  ;;  %vm29_vm0 = vcmask 1040384  }
   0x5   :  { %v24_v9 = vunpack.c.l.bf16 %v20_v5  ;;  %vm30_vm1 = vcmask 1042434  }
   0x6   :  { %10 = vsyncpa [#allocation4], 0  ;;  %v110_v10 = vmov 857870592   ;;  %v45_v12 = vshrl.u32 %v44_v4, 7  ;;  %s111_s22 = smov [#allocation3]  }
   0x7   :  { %vm31_vm2 = vmor %vm30_vm1, %vm29_vm0  ;;  %v42_v11 = vunpack.c.l.s4 %v110_v10  ;;  %v39_v20 = vld [vmem:[%s166_s1] sm:$0x3]  ;;  %s76_s23 = sshll.u32 %s111_s22, 4  ;;  %vm68_vm3 = vcmask 0   ;;  %s77_s23 = int_to_ptr.vmem [resolvable:$true] %s76_s23 }
   0x8   :  { %v32_v13 = vsel %vm31_vm2, %v21_v6, -inf  ;;  %v33_v14 = vsel %vm31_vm2, %v22_v7, -inf  ;;  %v34_v15 = vsel %vm31_vm2, %v23_v8, -inf  ;;  %v35_v16 = vsel %vm31_vm2, %v24_v9, -inf  ;;  %s86_s1 = scalar_lea.vmem %s77_s23, 16  ;;  %s90_s24 = scalar_lea.vmem %s77_s23, 32 }
   0x9   :  { %v36_v17 = vmax.f32 %v32_v13, %v33_v14  ;;  %v37_v18 = vmax.f32 %v34_v15, %v35_v16  ;;  %v43_v19 = vunpack.c.0.s8 %v42_v11  ;;  %v53_v24 = vsub.s32 0, %v45_v12  ;;  %v66_v32 = vld [vmem:[#allocation2] sm:$0x1]  ;;  %p87_p0 = scmp.ne.s32.totalorder %s77_s23, %s86_s1  ;;  %p91_p1 = scmp.lt.s32.totalorder %s77_s23, %s77_s23 }
   0xa   :  { %v57_v25 = vsub.s32 2, %v45_v12  ;;  %p92_p2 = scmp.lt.s32.totalorder %s90_s24, %s86_s1 }
   0xb   :  { %v38_v21 = vmax.f32 %v36_v17, %v37_v18  ;;  %v46_v22 = vsub.s32 %v43_v19, %v45_v12 }
   0xc   :  { %p93_p3 = por %p92_p2, %p91_p1 }
   0xd   :  { %v47_v23 = vrot.slane %v39_v20, %v46_v22 }
   0xe   :  { %p94_p4 = pnand %p93_p3, %p87_p0 }
   0xf   :  { %v49_v26 = vmul.f32 %v47_v23, %v38_v21 }
  0x11   :  { %v54_v27 = vrot.slane %v49_v26, %v53_v24  ;;  %v58_v28 = vrot.slane %v49_v26, %v57_v25 }
  0x13   :  { %v61_v29 = vsel %vm29_vm0, %v54_v27, 0.0  ;;  %v62_v30 = vsel %vm29_vm0, %v58_v28, 0.0 }
  0x14   :  { %v63_v31 = vadd.f32 %v62_v30, %v61_v29 }
  0x16   :  { %64 = vadd.xlane.f32.xlu0 %v63_v31 }
  0xa3   :  { %v65_v33 = vpop.xlane.xlu0 %64 }
  0xa4   :  { %v67_v34 = vadd.f32 %v66_v32, %v65_v33 }
  0xa6   :  { %69 = vst.msk [vmem:[#allocation3] sm:$0x1] %vm68_vm3, %v67_v34 }
  0xa7   :  { %97 = shalt.err (!%p94_p4)
}
  0xa8   :  { %s98_s27 = scalar_lea.hbm %s168_s3, 16 }
  0xa9   :  { %p99_p5 = scmp.ne.s32.totalorder %s168_s3, %s98_s27  ;;  %p102_p6 = scmp.lt.u32.totalorder %s98_s27, %s168_s3 }
  0xab   :  { %p104_p7 = pnand %p102_p6, %p99_p5 }
  0xad   :  { %107 = shalt.err (!%p104_p7)
}
  0xae   :  { %79 = dma.vmem_to_hbm [thread:$0]  %s77_s23, 16, %s168_s3, [#allocation4]  }
  0xaf   :  { %108 = dma.done.wait [#allocation4], 16  }
  0xb0   :  { %109 = vsyncadd [#allocation4], 4294967280 }
  0xb1   :  { %83 = vsyncpa [#allocation4], 1 }

// kernel: mrnet_forward.10
= control target key start
LH: loop header
LB: loop body
LE: loop exit
PB: predicated region body
PF: predicated region fallthrough
CT: control target
= control target key end

     0   :  { %s3812_s12 = smov 0   ;;  %s4850_s0 = inlined_call_operand.vmem [shape: bf16[4,30,256], index: 0, kind: input, shape index: {}]   ;;  %s4851_s1 = inlined_call_operand.vmem [shape: bf16[9,256,256], index: 1, kind: input, shape index: {}]   ;;  %s4852_s2 = inlined_call_operand.vmem [shape: f32[1,256], index: 2, kind: input, shape index: {}]   ;;  %s4853_s3 = inlined_call_operand.vmem [shape: bf16[4,3,3,256], index: 3, kind: output, shape index: {}]  }
   0x1 LB: > { %s2702_s13 = sadd.s32 4294967295, %s3789_s12   ;;  %p2706_p0 = scmp.ge.s32.totalorder %s3789_s12, 1  ;;  %s3789_s12 = sphi %s3812_s12, %s13_s12  }
   0x2   : > { %p137_p1 = scmp.lt.s32.totalorder %s3789_s12, 5 }
   0x4   : > { %p138_p2 = pnand %p2706_p0, %p137_p1 }
   0x5   : > { %v3328_v0 = vld [vmem:[%s4851_s1 + $0x104] ss:$8 sps:$4 sm:$0xff] (!%p138_p2)   ;;  %v3332_v2 = vld [vmem:[%s4851_s1 + $0x100] ss:$8 sps:$4 sm:$0xff] (!%p138_p2)   ;;  %v3334_v4 = vld [vmem:[%s4851_s1 + $0x114] ss:$8 sps:$4 sm:$0xff] (!%p138_p2)  }
   0x6   : > { %141 = sbr.rel (%p138_p2) target bundleno = 562 (0x232), region = 32  ;;  %v3330_v1 = vld [vmem:[%s4851_s1 + $0x404] ss:$8 sps:$4 sm:$0xff] (!%p138_p2)   ;;  %422 = vmatprep.subr.bf16.mxu1 (!%p138_p2), %v3328_v0  ;;  %v3333_v3 = vld [vmem:[%s4851_s1 + $0x400] ss:$8 sps:$4 sm:$0xff] (!%p138_p2)   ;;  %p161_p3 = scmp.lt.s32.totalorder (!%p138_p2), %s2702_s13, 3 }
   0x7   : > { %1438 = vmatprep.subr.bf16.mxu0 (!%p138_p2), %v3330_v1  ;;  %423 = vmatpush1.bf16.msra.mxu1 (!%p138_p2), %v3332_v2  ;;  %v3336_v5 = vld [vmem:[%s4851_s1 + $0x414] ss:$8 sps:$4 sm:$0xff] (!%p138_p2)   ;;  %v3338_v6 = vld [vmem:[%s4851_s1 + $0x110] ss:$8 sps:$4 sm:$0xff] (!%p138_p2)   ;;  %v3340_v8 = vld [vmem:[%s4851_s1 + $0x124] ss:$8 sps:$4 sm:$0xff] (!%p138_p2)  }
   0x8   : > { %1439 = vmatpush1.bf16.msra.mxu0 (!%p138_p2), %v3333_v3  ;;  %424 = vmatprep.subr.bf16.mxu1 (!%p138_p2), %v3334_v4  ;;  %v3339_v7 = vld [vmem:[%s4851_s1 + $0x410] ss:$8 sps:$4 sm:$0xff] (!%p138_p2)   ;;  %v3342_v9 = vld [vmem:[%s4851_s1 + $0x424] ss:$8 sps:$4 sm:$0xff] (!%p138_p2)   ;;  %v3344_v10 = vld [vmem:[%s4851_s1 + $0x120] ss:$8 sps:$4 sm:$0xff] (!%p138_p2)  }
   0x9   : > { %1440 = vmatprep.subr.bf16.mxu0 (!%p138_p2), %v3336_v5  ;;  %v3345_v11 = vld [vmem:[%s4851_s1 + $0x420] ss:$8 sps:$4 sm:$0xff] (!%p138_p2)   ;;  %v3346_v12 = vld [vmem:[%s4851_s1 + $0x134] ss:$8 sps:$4 sm:$0xff] (!%p138_p2)   ;;  %v3350_v14 = vld [vmem:[%s4851_s1 + $0x130] ss:$8 sps:$4 sm:$0xff] (!%p138_p2)  }
   0xa   : > { %v3348_v13 = vld [vmem:[%s4851_s1 + $0x434] ss:$8 sps:$4 sm:$0xff] (!%p138_p2)   ;;  %v3351_v15 = vld [vmem:[%s4851_s1 + $0x430] ss:$8 sps:$4 sm:$0xff] (!%p138_p2)   ;;  %v3352_v16 = vld [vmem:[%s4851_s1 + $0x144] ss:$8 sps:$4 sm:$0xff] (!%p138_p2)  }
   0xb   : > { %425 = vmatpush1.bf16.msra.mxu1 (!%p138_p2), %v3338_v6  ;;  %v3354_v17 = vld [vmem:[%s4851_s1 + $0x444] ss:$8 sps:$4 sm:$0xff] (!%p138_p2)   ;;  %v3356_v18 = vld [vmem:[%s4851_s1 + $0x140] ss:$8 sps:$4 sm:$0xff] (!%p138_p2)   ;;  %v3358_v20 = vld [vmem:[%s4851_s1 + $0x154] ss:$8 sps:$4 sm:$0xff] (!%p138_p2)  }
   0xc   : > { %1441 = vmatpush1.bf16.msra.mxu0 (!%p138_p2), %v3339_v7  ;;  %426 = vmatprep.subr.bf16.mxu1 (!%p138_p2), %v3340_v8  ;;  %v3357_v19 = vld [vmem:[%s4851_s1 + $0x440] ss:$8 sps:$4 sm:$0xff] (!%p138_p2)   ;;  %v3360_v21 = vld [vmem:[%s4851_s1 + $0x454] ss:$8 sps:$4 sm:$0xff] (!%p138_p2)   ;;  %v3362_v22 = vld [vmem:[%s4851_s1 + $0x150] ss:$8 sps:$4 sm:$0xff] (!%p138_p2)  }
   0xd   : > { %1442 = vmatprep.subr.bf16.mxu0 %v3342_v9  ;;  %v3363_v23 = vld [vmem:[%s4851_s1 + $0x450] ss:$8 sps:$4 sm:$0xff]   ;;  %v3364_v24 = vld [vmem:[%s4851_s1 + $0x164] ss:$8 sps:$4 sm:$0xff]   ;;  %v3368_v26 = vld [vmem:[%s4851_s1 + $0x160] ss:$8 sps:$4 sm:$0xff]  }
   0xe   : > { %v3366_v25 = vld [vmem:[%s4851_s1 + $0x464] ss:$8 sps:$4 sm:$0xff]   ;;  %v3369_v27 = vld [vmem:[%s4851_s1 + $0x460] ss:$8 sps:$4 sm:$0xff]   ;;  %v3370_v28 = vld [vmem:[%s4851_s1 + $0x174] ss:$8 sps:$4 sm:$0xff]  }
   0xf   : > { %427 = vmatpush1.bf16.msra.mxu1 %v3344_v10  ;;  %v3372_v29 = vld [vmem:[%s4851_s1 + $0x474] ss:$8 sps:$4 sm:$0xff]   ;;  %v3374_v30 = vld [vmem:[%s4851_s1 + $0x170] ss:$8 sps:$4 sm:$0xff]   ;;  %v3376_v32 = vld [vmem:[%s4851_s1 + $0x184] ss:$8 sps:$4 sm:$0xff]  }
  0x10   : > { %1443 = vmatpush1.bf16.msra.mxu0 %v3345_v11  ;;  %428 = vmatprep.subr.bf16.mxu1 %v3346_v12  ;;  %v3375_v31 = vld [vmem:[%s4851_s1 + $0x470] ss:$8 sps:$4 sm:$0xff]   ;;  %v3378_v33 = vld [vmem:[%s4851_s1 + $0x484] ss:$8 sps:$4 sm:$0xff]   ;;  %v3380_v34 = vld [vmem:[%s4851_s1 + $0x180] ss:$8 sps:$4 sm:$0xff]  }
  0x11   : > { %1444 = vmatprep.subr.bf16.mxu0 %v3348_v13  ;;  %v3381_v35 = vld [vmem:[%s4851_s1 + $0x480] ss:$8 sps:$4 sm:$0xff]   ;;  %v3382_v36 = vld [vmem:[%s4851_s1 + $0x194] ss:$8 sps:$4 sm:$0xff]   ;;  %s4857_s13 = smov (!%p161_p3, %s2702_s13), 3  ;;  %vm1269_vm0 = vcmask 1044480  }
  0x12   : > { %v3384_v37 = vld [vmem:[%s4851_s1 + $0x494] ss:$8 sps:$4 sm:$0xff]   ;;  %v3386_v38 = vld [vmem:[%s4851_s1 + $0x190] ss:$8 sps:$4 sm:$0xff]   ;;  %v3388_v40 = vld [vmem:[%s4851_s1 + $0x1a4] ss:$8 sps:$4 sm:$0xff]  }
  0x13   : > { %429 = vmatpush1.bf16.msra.mxu1 %v3350_v14  ;;  %v3387_v39 = vld [vmem:[%s4851_s1 + $0x490] ss:$8 sps:$4 sm:$0xff]   ;;  %s3285_s21 = sshll.u32 %s4857_s13, 5  ;;  %v3390_v41 = vld [vmem:[%s4851_s1 + $0x4a4] ss:$8 sps:$4 sm:$0xff]   ;;  %vm719_vm2 = vcmask 1046528  }
  0x14   : > { %1445 = vmatpush1.bf16.msra.mxu0 %v3351_v15  ;;  %430 = vmatprep.subr.bf16.mxu1 %v3352_v16  ;;  %v3392_v42 = vld [vmem:[%s4851_s1 + $0x1a0] ss:$8 sps:$4 sm:$0xff]   ;;  %s3962_s30 = scalar_lea.vmem %s4850_s0, %s3285_s21  ;;  %v3394_v44 = vld [vmem:[%s4851_s1 + $0x1b4] ss:$8 sps:$4 sm:$0xff]   ;;  %v3398_v46 = vld [vmem:[%s4851_s1 + $0x1b0] ss:$8 sps:$4 sm:$0xff]  }
  0x15   : > { %1446 = vmatprep.subr.bf16.mxu0 %v3354_v17  ;;  %v3393_v43 = vld [vmem:[%s4851_s1 + $0x4a0] ss:$8 sps:$4 sm:$0xff]   ;;  %v3396_v45 = vld [vmem:[%s4851_s1 + $0x4b4] ss:$8 sps:$4 sm:$0xff]   ;;  %v3399_v47 = vld [vmem:[%s4851_s1 + $0x4b0] ss:$8 sps:$4 sm:$0xff]  }
  0x16   : > { %v171_v48 = vld [vmem:[%s3962_s30] sm:$0xff]  ;;  %v3978_v49 = vld [vmem:[%s3962_s30 + $0x8] sm:$0xff]  ;;  %v1225_v54 = vld [vmem:[%s3962_s30 + $0x10] sm:$0x77]  ;;  %vm1518_vm1 = vsmask.f32 4352 }
  0x17   : > { %431 = vmatpush1.bf16.msra.mxu1 %v3356_v18  ;;  %v3400_v50 = vld [vmem:[%s4851_s1 + $0x1c4] ss:$8 sps:$4 sm:$0xff]   ;;  %v3987_v52 = vcombine.high %v171_v48, %v3978_v49  ;;  %v2979_v58 = vcombine.high %v1225_v54, %v1225_v54  ;;  %v3404_v59 = vld [vmem:[%s4851_s1 + $0x1c0] ss:$8 sps:$4 sm:$0xff]   ;;  %v3406_v0 = vld [vmem:[%s4851_s1 + $0x1d4] ss:$8 sps:$4 sm:$0xff]   ;;  %v4007_v2 = vcombine.low %v171_v48, %v3978_v49  ;;  %v4035_v18 = vcombine.low %v1225_v54, %v1225_v54 }
  0x18   : > { %1447 = vmatpush1.bf16.msra.mxu0 %v3357_v19  ;;  %432 = vmatprep.subr.bf16.mxu1 %v3358_v20  ;;  %v3402_v51 = vld [vmem:[%s4851_s1 + $0x4c4] ss:$8 sps:$4 sm:$0xff]   ;;  %v3405_v61 = vld [vmem:[%s4851_s1 + $0x4c0] ss:$8 sps:$4 sm:$0xff]   ;;  %v3408_v1 = vld [vmem:[%s4851_s1 + $0x4d4] ss:$8 sps:$4 sm:$0xff]  }
  0x19   : > { %1448 = vmatprep.subr.bf16.mxu0 %v3360_v21  ;;  %v1224_v53 = vld [vmem:[%s3962_s30] sm:$0x88]  ;;  %v254_v56 = vshrl.u32 %v3987_v52, 16  ;;  %v256_v57 = vshll.u32 %v3987_v52, 16  ;;  %v1274_v63 = vrot.slane %v2979_v58, 3  ;;  %v249_v10 = vshll.u32 %v4007_v2, 16 }
  0x1a   : > { %v2977_v55 = vcombine.high %v1224_v53, %v3978_v49  ;;  %v3410_v5 = vld [vmem:[%s4851_s1 + $0x1d0] ss:$8 sps:$4 sm:$0xff]   ;;  %v3412_v7 = vld [vmem:[%s4851_s1 + $0x1e4] ss:$8 sps:$4 sm:$0xff]   ;;  %v3416_v9 = vld [vmem:[%s4851_s1 + $0x1e0] ss:$8 sps:$4 sm:$0xff]   ;;  %v4033_v17 = vcombine.low %v1224_v53, %v3978_v49 }
  0x1b   : > { %433 = vmatpush1.bf16.msra.mxu1 %v3362_v22  ;;  %v258_v62 = vrot.slane %v256_v57, 1  ;;  %v3411_v6 = vld [vmem:[%s4851_s1 + $0x4d0] ss:$8 sps:$4 sm:$0xff]   ;;  %v3414_v8 = vld [vmem:[%s4851_s1 + $0x4e4] ss:$8 sps:$4 sm:$0xff]   ;;  %v1545_v13 = vshrl.u32 %v2979_v58, 16 }
  0x1c   : > { %1449 = vmatpush1.bf16.msra.mxu0 %v3363_v23  ;;  %434 = vmatprep.subr.bf16.mxu1 %v3364_v24  ;;  %v1273_v60 = vrot.slane %v2977_v55, 3  ;;  %v1537_v11 = vshrl.u32 %v2977_v55, 16  ;;  %v1540_v12 = vshll.u32 %v2977_v55, 16  ;;  %v1548_v14 = vshll.u32 %v2979_v58, 16  ;;  %v3417_v15 = vld [vmem:[%s4851_s1 + $0x4e0] ss:$8 sps:$4 sm:$0xff]  }
  0x1d   : > { %1450 = vmatprep.subr.bf16.mxu0 %v3366_v25  ;;  %v259_v3 = vor.u32 %v258_v62, %v254_v56  ;;  %v3418_v16 = vld [vmem:[%s4851_s1 + $0x1f4] ss:$8 sps:$4 sm:$0xff]   ;;  %v3422_v20 = vld [vmem:[%s4851_s1 + $0x1f0] ss:$8 sps:$4 sm:$0xff]   ;;  %v247_v22 = vshrl.u32 %v4007_v2, 16  ;;  %v251_v23 = vrot.slane %v249_v10, 1 }
  0x1e   : > { %v1275_v4 = vsel %vm1269_vm0, %v1273_v60, %v1274_v63  ;;  %v3420_v19 = vld [vmem:[%s4851_s1 + $0x4f4] ss:$8 sps:$4 sm:$0xff]   ;;  %v3423_v21 = vld [vmem:[%s4851_s1 + $0x4f0] ss:$8 sps:$4 sm:$0xff]   ;;  %v1539_v24 = vrot.slane %v1537_v11, 3  ;;  %v1542_v25 = vrot.slane %v1540_v12, 4 }
  0x1f   : > { %435 = vmatpush1.bf16.msra.mxu1 %v3368_v26  ;;  %1470 = vmatprep.mubr.bf16.mxu0 %v1275_v4  ;;  %v1547_v26 = vrot.slane %v1545_v13, 3  ;;  %v3453_v48 = vld [vmem:[%s4851_s1 + $0x534] ss:$8 sps:$4 sm:$0xff]   ;;  %v3459_v53 = vld [vmem:[%s4851_s1 + $0x544] ss:$8 sps:$4 sm:$0xff]   ;;  %vm2348_vm5 = vcmask 1045504  }
  0x20   : > { %1451 = vmatpush1.bf16.msra.mxu0 %v3369_v27  ;;  %436 = vmatprep.subr.bf16.mxu1 %v3370_v28  ;;  %v1550_v27 = vrot.slane %v1548_v14, 4  ;;  %v3428_v28 = vld [vmem:[%s4851_s1 + $0x4] ss:$8 sps:$4 sm:$0xff]   ;;  %v3454_v54 = vld [vmem:[%s4851_s1 + $0x40] ss:$8 sps:$4 sm:$0xff]   ;;  %vm2597_vm6 = vcmask 1041408  }
  0x21   : > { %1452 = vmatprep.subr.bf16.mxu0 %v3372_v29  ;;  %454 = vmatprep.mubr.bf16.mxu1 %v259_v3  ;;  %v1270_v29 = vrot.slane %v4033_v17, 3  ;;  %v3457_v55 = vld [vmem:[%s4851_s1 + $0x540] ss:$8 sps:$4 sm:$0xff]   ;;  %v3462_v56 = vld [vmem:[%s4851_s1 + $0x54] ss:$8 sps:$4 sm:$0xff]   ;;  %s3318_s11 = smul.u32 12, %s4857_s13 }
  0x22   : > { %v3465_v57 = vld [vmem:[%s4851_s1 + $0x554] ss:$8 sps:$4 sm:$0xff]   ;;  %v3460_v58 = vld [vmem:[%s4851_s1 + $0x50] ss:$8 sps:$4 sm:$0xff]   ;;  %v3468_v60 = vld [vmem:[%s4851_s1 + $0x64] ss:$8 sps:$4 sm:$0xff]  }
  0x23   : > { %437 = vmatpush1.bf16.msra.mxu1 %v3374_v30  ;;  %v1271_v30 = vrot.slane %v4035_v18, 3  ;;  %v3466_v62 = vld [vmem:[%s4851_s1 + $0x60] ss:$8 sps:$4 sm:$0xff]   ;;  %v3472_v3 = vld [vmem:[%s4851_s1 + $0x70] ss:$8 sps:$4 sm:$0xff]   ;;  %vm2600_vm8 = vcmask 1043458   ;;  %s4829_s15 = scalar_lea.vmem %s4853_s3, %s3318_s11 }
  0x24   : > { %1453 = vmatpush1.bf16.msra.mxu0 %v3375_v31  ;;  %438 = vmatprep.subr.bf16.mxu1 %v3376_v32  ;;  %v3433_v31 = vld [vmem:[%s4851_s1 + $0x504] ss:$8 sps:$4 sm:$0xff]   ;;  %v3426_v32 = vld [vmem:[%s4851_s1] ss:$8 sps:$4 sm:$0xff]   ;;  %v3475_v4 = vld [vmem:[%s4851_s1 + $0x570] ss:$8 sps:$4 sm:$0xff]  }
  0x25   : > { %1454 = vmatprep.subr.bf16.mxu0 %v3378_v33  ;;  %v252_v33 = vor.u32 %v251_v23, %v247_v22  ;;  %v3469_v63 = vld [vmem:[%s4851_s1 + $0x560] ss:$8 sps:$4 sm:$0xff]   ;;  %v3489_v10 = vld [vmem:[%s4851_s1 + $0x594] ss:$8 sps:$4 sm:$0xff]   ;;  %v3484_v11 = vld [vmem:[%s4851_s1 + $0x90] ss:$8 sps:$4 sm:$0xff]  }
  0x26   : > { %v3487_v12 = vld [vmem:[%s4851_s1 + $0x590] ss:$8 sps:$4 sm:$0xff]   ;;  %v3492_v13 = vld [vmem:[%s4851_s1 + $0xa4] ss:$8 sps:$4 sm:$0xff]   ;;  %vm980_vm3 = vsmask.f32 5376 }
  0x27   : > { %439 = vmatpush1.bf16.msra.mxu1 %v3380_v34  ;;  %v1543_v34 = vor.u32 %v1542_v25, %v1539_v24  ;;  %v3495_v14 = vld [vmem:[%s4851_s1 + $0x5a4] ss:$8 sps:$4 sm:$0xff]   ;;  %v3499_v22 = vld [vmem:[%s4851_s1 + $0x5b0] ss:$8 sps:$4 sm:$0xff]   ;;  %v3502_v25 = vld [vmem:[%s4851_s1 + $0xc0] ss:$8 sps:$4 sm:$0xff]  }
  0x28   : > { %1455 = vmatpush1.bf16.msra.mxu0 %v3381_v35  ;;  %440 = vmatprep.subr.bf16.mxu1 %v3382_v36  ;;  %v1551_v35 = vor.u32 %v1550_v27, %v1547_v26  ;;  %v3431_v36 = vld [vmem:[%s4851_s1 + $0x500] ss:$8 sps:$4 sm:$0xff]   ;;  %v3504_v23 = vld [vmem:[%s4851_s1 + $0xc4] ss:$8 sps:$4 sm:$0xff]   ;;  %v3510_v27 = vld [vmem:[%s4851_s1 + $0xd4] ss:$8 sps:$4 sm:$0xff]  }
  0x29   : > { %1456 = vmatprep.subr.bf16.mxu0 %v3384_v37  ;;  %v1272_v37 = vsel %vm1269_vm0, %v1270_v29, %v1271_v30  ;;  %v3507_v24 = vld [vmem:[%s4851_s1 + $0x5c4] ss:$8 sps:$4 sm:$0xff]   ;;  %v3505_v26 = vld [vmem:[%s4851_s1 + $0x5c0] ss:$8 sps:$4 sm:$0xff]   ;;  %v3508_v29 = vld [vmem:[%s4851_s1 + $0xd0] ss:$8 sps:$4 sm:$0xff]  }
  0x2a   : > { %v1520_v30 = vshrl.u32 %v4033_v17, 16  ;;  %vm2059_vm4 = vsmask.f32 6400  ;;  %vm2598_vm7 = vsmask.f32 1280  ;;  %vm2631_vm12 = vcmask 1040384  }
  0x2b   : > { %441 = vmatpush1.bf16.msra.mxu1 %v3386_v38  ;;  %v3438_v38 = vld [vmem:[%s4851_s1 + $0x14] ss:$8 sps:$4 sm:$0xff]   ;;  %vm2601_vm9 = vsmask.f32 3328  ;;  %vm2599_vm10 = vmand %vm2597_vm6, %vm2598_vm7  ;;  %vm2632_vm13 = vcmask 1042434   ;;  %vm2634_vm0 = vcmask 1044484  }
  0x2c   : > { %1457 = vmatpush1.bf16.msra.mxu0 %v3387_v39  ;;  %442 = vmatprep.subr.bf16.mxu1 %v3388_v40  ;;  %v3441_v39 = vld [vmem:[%s4851_s1 + $0x514] ss:$8 sps:$4 sm:$0xff]   ;;  %v3436_v40 = vld [vmem:[%s4851_s1 + $0x10] ss:$8 sps:$4 sm:$0xff]   ;;  %vm2602_vm11 = vmand %vm2600_vm8, %vm2601_vm9 }
  0x2d   : > { %1458 = vmatprep.subr.bf16.mxu0 %v3390_v41  ;;  %v1552_v41 = vsel %vm1518_vm1, %v1543_v34, %v1551_v35  ;;  %v3516_v34 = vld [vmem:[%s4851_s1 + $0xe4] ss:$8 sps:$4 sm:$0xff]   ;;  %v1531_v35 = vshll.u32 %v4035_v18, 16  ;;  %vm4831_vm14 = vmor %vm2602_vm11, %vm2599_vm10 }
  0x2e   : > { %vm2633_vm15 = vmor %vm2631_vm12, %vm2632_vm13 }
  0x2f   : > { %443 = vmatpush1.bf16.msra.mxu1 %v3392_v42  ;;  %v3439_v42 = vld [vmem:[%s4851_s1 + $0x510] ss:$8 sps:$4 sm:$0xff]  }
  0x30   : > { %1459 = vmatpush1.bf16.msra.mxu0 %v3393_v43  ;;  %444 = vmatprep.subr.bf16.mxu1 %v3394_v44  ;;  %v3444_v43 = vld [vmem:[%s4851_s1 + $0x24] ss:$8 sps:$4 sm:$0xff]  }
  0x31   : > { %1460 = vmatprep.subr.bf16.mxu0 %v3396_v45  ;;  %v3447_v44 = vld [vmem:[%s4851_s1 + $0x524] ss:$8 sps:$4 sm:$0xff]   ;;  %v3442_v45 = vld [vmem:[%s4851_s1 + $0x20] ss:$8 sps:$4 sm:$0xff]  }
  0x33   : > { %445 = vmatpush1.bf16.msra.mxu1 %v3398_v46  ;;  %v3445_v46 = vld [vmem:[%s4851_s1 + $0x520] ss:$8 sps:$4 sm:$0xff]  }
  0x34   : > { %1461 = vmatpush1.bf16.msra.mxu0 %v3399_v47  ;;  %446 = vmatprep.subr.bf16.mxu1 %v3400_v50  ;;  %v3450_v47 = vld [vmem:[%s4851_s1 + $0x34] ss:$8 sps:$4 sm:$0xff]   ;;  %v3448_v50 = vld [vmem:[%s4851_s1 + $0x30] ss:$8 sps:$4 sm:$0xff]  }
  0x35   : > { %1462 = vmatprep.subr.bf16.mxu0 %v3402_v51  ;;  %v3451_v51 = vld [vmem:[%s4851_s1 + $0x530] ss:$8 sps:$4 sm:$0xff]  }
  0x37   : > { %447 = vmatpush1.bf16.msra.mxu1 %v3404_v59  ;;  %v3463_v59 = vld [vmem:[%s4851_s1 + $0x550] ss:$8 sps:$4 sm:$0xff]  }
  0x38   : > { %1463 = vmatpush1.bf16.msra.mxu0 %v3405_v61  ;;  %448 = vmatprep.subr.bf16.mxu1 %v3406_v0  ;;  %v3471_v61 = vld [vmem:[%s4851_s1 + $0x564] ss:$8 sps:$4 sm:$0xff]   ;;  %v3474_v0 = vld [vmem:[%s4851_s1 + $0x74] ss:$8 sps:$4 sm:$0xff]  }
  0x39   : > { %1464 = vmatprep.subr.bf16.mxu0 %v3408_v1  ;;  %v3477_v1 = vld [vmem:[%s4851_s1 + $0x574] ss:$8 sps:$4 sm:$0xff]  }
  0x3b   : > { %449 = vmatpush1.bf16.msra.mxu1 %v3410_v5  ;;  %v3480_v5 = vld [vmem:[%s4851_s1 + $0x84] ss:$8 sps:$4 sm:$0xff]  }
  0x3c   : > { %1465 = vmatpush1.bf16.msra.mxu0 %v3411_v6  ;;  %450 = vmatprep.subr.bf16.mxu1 %v3412_v7  ;;  %v3483_v6 = vld [vmem:[%s4851_s1 + $0x584] ss:$8 sps:$4 sm:$0xff]   ;;  %v3478_v7 = vld [vmem:[%s4851_s1 + $0x80] ss:$8 sps:$4 sm:$0xff]  }
  0x3d   : > { %1466 = vmatprep.subr.bf16.mxu0 %v3414_v8  ;;  %v3481_v8 = vld [vmem:[%s4851_s1 + $0x580] ss:$8 sps:$4 sm:$0xff]  }
  0x3f   : > { %451 = vmatpush1.bf16.msra.mxu1 %v3416_v9  ;;  %v3486_v9 = vld [vmem:[%s4851_s1 + $0x94] ss:$8 sps:$4 sm:$0xff]  }
  0x40   : > { %1467 = vmatpush1.bf16.msra.mxu0 %v3417_v15  ;;  %452 = vmatprep.subr.bf16.mxu1 %v3418_v16  ;;  %v3490_v15 = vld [vmem:[%s4851_s1 + $0xa0] ss:$8 sps:$4 sm:$0xff]  }
  0x41   : > { %1468 = vmatprep.subr.bf16.mxu0 %v3420_v19  ;;  %v3493_v16 = vld [vmem:[%s4851_s1 + $0x5a0] ss:$8 sps:$4 sm:$0xff]   ;;  %v3498_v19 = vld [vmem:[%s4851_s1 + $0xb4] ss:$8 sps:$4 sm:$0xff]  }
  0x43   : > { %453 = vmatpush1.bf16.msra.mxu1 %v3422_v20  ;;  %v3501_v20 = vld [vmem:[%s4851_s1 + $0x5b4] ss:$8 sps:$4 sm:$0xff]  }
  0x44   : > { %1469 = vmatpush1.bf16.msra.mxu0 %v3423_v21  ;;  %627 = vmatprep.subr.bf16.mxu1 %v3428_v28  ;;  %v3496_v21 = vld [vmem:[%s4851_s1 + $0xb0] ss:$8 sps:$4 sm:$0xff]   ;;  %v3513_v28 = vld [vmem:[%s4851_s1 + $0x5d4] ss:$8 sps:$4 sm:$0xff]  }
  0x45   : > { %1715 = vmatprep.subr.bf16.mxu0 %v3433_v31  ;;  %v1523_v31 = vshll.u32 %v4033_v17, 16  ;;  %v3519_v17 = vld [vmem:[%s4851_s1 + $0x5e4] ss:$8 sps:$4 sm:$0xff]  }
  0x46   : > { %455 = vmatmul.mubr.bf16.vlgmr.msra.gmra.mrb[0].mxu1 %v252_v33  ;;  %v3511_v33 = vld [vmem:[%s4851_s1 + $0x5d0] ss:$8 sps:$4 sm:$0xff]  }
  0x47   : > { %1471 = vmatmul.mubr.bf16.vlgmr.msra.gmra.mrb[0].mxu0 %v1272_v37  ;;  %628 = vmatpush1.bf16.msra.mxu1 %v3426_v32  ;;  %v1528_v32 = vshrl.u32 %v4035_v18, 16  ;;  %v1522_v37 = vrot.slane %v1520_v30, 3  ;;  %v3522_v18 = vld [vmem:[%s4851_s1 + $0xf4] ss:$8 sps:$4 sm:$0xff]  }
  0x48   : > { %1716 = vmatpush1.bf16.msra.mxu0 %v3431_v36  ;;  %629 = vmatprep.subr.bf16.mxu1 %v3438_v38  ;;  %v3514_v36 = vld [vmem:[%s4851_s1 + $0xe0] ss:$8 sps:$4 sm:$0xff]   ;;  %v1525_v38 = vrot.slane %v1523_v31, 4  ;;  %v3573_v30 = vld [vmem:[%s4851_s1 + $0x674] ss:$8 sps:$4 sm:$0xff]  }
  0x49   : > { %1717 = vmatprep.subr.bf16.mxu0 %v3441_v39  ;;  %659 = vmatprep.mubr.bf16.mxu1 %v3987_v52  ;;  %v3456_v52 = vld [vmem:[%s4851_s1 + $0x44] ss:$8 sps:$4 sm:$0xff]   ;;  %v1530_v39 = vrot.slane %v1528_v32, 3  ;;  %v3568_v31 = vld [vmem:[%s4851_s1 + $0x270] ss:$8 sps:$4 sm:$0xff]  }
  0x4a   : > { %1747 = vmatprep.mubr.bf16.mxu0 %v1552_v41  ;;  %v1533_v41 = vrot.slane %v1531_v35, 4  ;;  %v3571_v32 = vld [vmem:[%s4851_s1 + $0x670] ss:$8 sps:$4 sm:$0xff]   ;;  %v3574_v35 = vld [vmem:[%s4851_s1 + $0x280] ss:$8 sps:$4 sm:$0xff]  }
  0x4b   : > { %630 = vmatpush1.bf16.msra.mxu1 %v3436_v40  ;;  %v3517_v40 = vld [vmem:[%s4851_s1 + $0x5e0] ss:$8 sps:$4 sm:$0xff]  }
  0x4c   : > { %1718 = vmatpush1.bf16.msra.mxu0 %v3439_v42  ;;  %631 = vmatprep.subr.bf16.mxu1 %v3444_v43  ;;  %v3525_v42 = vld [vmem:[%s4851_s1 + $0x5f4] ss:$8 sps:$4 sm:$0xff]   ;;  %v3520_v43 = vld [vmem:[%s4851_s1 + $0xf0] ss:$8 sps:$4 sm:$0xff]  }
  0x4d   : > { %1719 = vmatprep.subr.bf16.mxu0 %v3447_v44  ;;  %v3523_v44 = vld [vmem:[%s4851_s1 + $0x5f0] ss:$8 sps:$4 sm:$0xff]  }
  0x4f   : > { %632 = vmatpush1.bf16.msra.mxu1 %v3442_v45  ;;  %v3528_v45 = vld [vmem:[%s4851_s1 + $0x204] ss:$8 sps:$4 sm:$0xff]  }
  0x50   : > { %1720 = vmatpush1.bf16.msra.mxu0 %v3445_v46  ;;  %633 = vmatprep.subr.bf16.mxu1 %v3450_v47  ;;  %v1526_v46 = vor.u32 %v1525_v38, %v1522_v37  ;;  %v1534_v47 = vor.u32 %v1533_v41, %v1530_v39  ;;  %v3585_v37 = vld [vmem:[%s4851_s1 + $0x694] ss:$8 sps:$4 sm:$0xff]   ;;  %v3580_v38 = vld [vmem:[%s4851_s1 + $0x290] ss:$8 sps:$4 sm:$0xff]   ;;  %v3586_v41 = vld [vmem:[%s4851_s1 + $0x2a0] ss:$8 sps:$4 sm:$0xff]  }
  0x51   : > { %1721 = vmatprep.subr.bf16.mxu0 %v3453_v48  ;;  %v3531_v48 = vld [vmem:[%s4851_s1 + $0x604] ss:$8 sps:$4 sm:$0xff]   ;;  %v3583_v39 = vld [vmem:[%s4851_s1 + $0x690] ss:$8 sps:$4 sm:$0xff]  }
  0x53   : > { %634 = vmatpush1.bf16.msra.mxu1 %v3448_v50  ;;  %v3526_v50 = vld [vmem:[%s4851_s1 + $0x200] ss:$8 sps:$4 sm:$0xff]  }
  0x54   : > { %1722 = vmatpush1.bf16.msra.mxu0 %v3451_v51  ;;  %635 = vmatprep.subr.bf16.mxu1 %v3456_v52  ;;  %v3529_v51 = vld [vmem:[%s4851_s1 + $0x600] ss:$8 sps:$4 sm:$0xff]   ;;  %v1535_v52 = vsel %vm1518_vm1, %v1526_v46, %v1534_v47  ;;  %v3595_v46 = vld [vmem:[%s4851_s1 + $0x6b0] ss:$8 sps:$4 sm:$0xff]   ;;  %v3600_v47 = vld [vmem:[%s4851_s1 + $0x2c4] ss:$8 sps:$4 sm:$0xff]  }
  0x55   : > { %1723 = vmatprep.subr.bf16.mxu0 %v3459_v53  ;;  %v3534_v53 = vld [vmem:[%s4851_s1 + $0x214] ss:$8 sps:$4 sm:$0xff]   ;;  %vm2635_vm1 = vmor %vm2633_vm15, %vm2634_vm0 }
  0x57   : > { %636 = vmatpush1.bf16.msra.mxu1 %v3454_v54  ;;  %v3537_v54 = vld [vmem:[%s4851_s1 + $0x614] ss:$8 sps:$4 sm:$0xff]  }
  0x58   : > { %1724 = vmatpush1.bf16.msra.mxu0 %v3457_v55  ;;  %637 = vmatprep.subr.bf16.mxu1 %v3462_v56  ;;  %v3532_v55 = vld [vmem:[%s4851_s1 + $0x210] ss:$8 sps:$4 sm:$0xff]  }
  0x59   : > { %1725 = vmatprep.subr.bf16.mxu0 %v3465_v57  ;;  %v3535_v56 = vld [vmem:[%s4851_s1 + $0x610] ss:$8 sps:$4 sm:$0xff]   ;;  %v4274_v57 = vld [vmem:[%s3962_s30] sm:$0xee] }
  0x5b   : > { %638 = vmatpush1.bf16.msra.mxu1 %v3460_v58  ;;  %v4277_v58 = vld [vmem:[%s3962_s30 + $0x10] sm:$0x11] }
  0x5c   : > { %1726 = vmatpush1.bf16.msra.mxu0 %v3463_v59  ;;  %639 = vmatprep.subr.bf16.mxu1 %v3468_v60  ;;  %v3540_v59 = vld [vmem:[%s4851_s1 + $0x224] ss:$8 sps:$4 sm:$0xff]   ;;  %v2841_v60 = vcombine.high %v4274_v57, %v3978_v49 }
  0x5d   : > { %1727 = vmatprep.subr.bf16.mxu0 %v3471_v61  ;;  %v2843_v61 = vcombine.high %v4277_v58, %v4277_v58 }
  0x5f   : > { %640 = vmatpush1.bf16.msra.mxu1 %v3466_v62  ;;  %v3543_v62 = vld [vmem:[%s4851_s1 + $0x624] ss:$8 sps:$4 sm:$0xff]  }
  0x60   : > { %1728 = vmatpush1.bf16.msra.mxu0 %v3469_v63  ;;  %641 = vmatprep.subr.bf16.mxu1 %v3474_v0  ;;  %v4291_v63 = vld [vmem:[%s3962_s30 + $0x8] sm:$0xee]  ;;  %v723_v0 = vrot.slane %v2841_v60, 1 }
  0x61   : > { %1729 = vmatprep.subr.bf16.mxu0 %v3477_v1  ;;  %v724_v1 = vrot.slane %v2843_v61, 1  ;;  %v3604_v61 = vld [vmem:[%s4851_s1 + $0x2d0] ss:$8 sps:$4 sm:$0xff]  }
  0x63   : > { %642 = vmatpush1.bf16.msra.mxu1 %v3472_v3  ;;  %v4297_v3 = vld [vmem:[%s3962_s30 + $0x18] sm:$0x11] }
  0x64   : > { %1730 = vmatpush1.bf16.msra.mxu0 %v3475_v4  ;;  %643 = vmatprep.subr.bf16.mxu1 %v3480_v5  ;;  %v4305_v4 = vcombine.high %v4297_v3, %v4297_v3  ;;  %v3538_v5 = vld [vmem:[%s4851_s1 + $0x220] ss:$8 sps:$4 sm:$0xff]  }
  0x65   : > { %1731 = vmatprep.subr.bf16.mxu0 %v3483_v6  ;;  %v725_v6 = vsel %vm719_vm2, %v723_v0, %v724_v1  ;;  %v3612_v0 = vld [vmem:[%s4851_s1 + $0x2e4] ss:$8 sps:$4 sm:$0xff]  }
  0x66   : > { %v3615_v1 = vld [vmem:[%s4851_s1 + $0x6e4] ss:$8 sps:$4 sm:$0xff]  }
  0x67   : > { %644 = vmatpush1.bf16.msra.mxu1 %v3478_v7 }
  0x68   : > { %1732 = vmatpush1.bf16.msra.mxu0 %v3481_v8  ;;  %645 = vmatprep.subr.bf16.mxu1 %v3486_v9  ;;  %v3541_v8 = vld [vmem:[%s4851_s1 + $0x620] ss:$8 sps:$4 sm:$0xff]   ;;  %v1815_v9 = vrot.slane %v4305_v4, 1 }
  0x69   : > { %1733 = vmatprep.subr.bf16.mxu0 %v3489_v10  ;;  %v3546_v10 = vld [vmem:[%s4851_s1 + $0x234] ss:$8 sps:$4 sm:$0xff]  }
  0x6b   : > { %646 = vmatpush1.bf16.msra.mxu1 %v3484_v11  ;;  %v3549_v11 = vld [vmem:[%s4851_s1 + $0x634] ss:$8 sps:$4 sm:$0xff]  }
  0x6c   : > { %1734 = vmatpush1.bf16.msra.mxu0 %v3487_v12  ;;  %647 = vmatprep.subr.bf16.mxu1 %v3492_v13  ;;  %v3544_v13 = vld [vmem:[%s4851_s1 + $0x230] ss:$8 sps:$4 sm:$0xff]  }
  0x6d   : > { %1735 = vmatprep.subr.bf16.mxu0 %v3495_v14  ;;  %v3547_v14 = vld [vmem:[%s4851_s1 + $0x630] ss:$8 sps:$4 sm:$0xff]  }
  0x6f   : > { %648 = vmatpush1.bf16.msra.mxu1 %v3490_v15  ;;  %v3552_v15 = vld [vmem:[%s4851_s1 + $0x244] ss:$8 sps:$4 sm:$0xff]  }
  0x70   : > { %1736 = vmatpush1.bf16.msra.mxu0 %v3493_v16  ;;  %649 = vmatprep.subr.bf16.mxu1 %v3498_v19  ;;  %v3555_v16 = vld [vmem:[%s4851_s1 + $0x644] ss:$8 sps:$4 sm:$0xff]   ;;  %v3550_v19 = vld [vmem:[%s4851_s1 + $0x240] ss:$8 sps:$4 sm:$0xff]  }
  0x71   : > { %1737 = vmatprep.subr.bf16.mxu0 %v3501_v20  ;;  %v3553_v20 = vld [vmem:[%s4851_s1 + $0x640] ss:$8 sps:$4 sm:$0xff]  }
  0x73   : > { %650 = vmatpush1.bf16.msra.mxu1 %v3496_v21  ;;  %v3558_v21 = vld [vmem:[%s4851_s1 + $0x254] ss:$8 sps:$4 sm:$0xff]  }
  0x74   : > { %1738 = vmatpush1.bf16.msra.mxu0 %v3499_v22  ;;  %651 = vmatprep.subr.bf16.mxu1 %v3504_v23  ;;  %v3561_v22 = vld [vmem:[%s4851_s1 + $0x654] ss:$8 sps:$4 sm:$0xff]   ;;  %v3556_v23 = vld [vmem:[%s4851_s1 + $0x250] ss:$8 sps:$4 sm:$0xff]  }
  0x75   : > { %1739 = vmatprep.subr.bf16.mxu0 %v3507_v24  ;;  %v3559_v24 = vld [vmem:[%s4851_s1 + $0x650] ss:$8 sps:$4 sm:$0xff]  }
  0x77   : > { %652 = vmatpush1.bf16.msra.mxu1 %v3502_v25  ;;  %v3564_v25 = vld [vmem:[%s4851_s1 + $0x264] ss:$8 sps:$4 sm:$0xff]  }
  0x78   : > { %1740 = vmatpush1.bf16.msra.mxu0 %v3505_v26  ;;  %653 = vmatprep.subr.bf16.mxu1 %v3510_v27  ;;  %v3567_v26 = vld [vmem:[%s4851_s1 + $0x664] ss:$8 sps:$4 sm:$0xff]   ;;  %v3562_v27 = vld [vmem:[%s4851_s1 + $0x260] ss:$8 sps:$4 sm:$0xff]  }
  0x79   : > { %1741 = vmatprep.subr.bf16.mxu0 %v3513_v28  ;;  %v3565_v28 = vld [vmem:[%s4851_s1 + $0x660] ss:$8 sps:$4 sm:$0xff]  }
  0x7b   : > { %654 = vmatpush1.bf16.msra.mxu1 %v3508_v29  ;;  %v3570_v29 = vld [vmem:[%s4851_s1 + $0x274] ss:$8 sps:$4 sm:$0xff]  }
  0x7c   : > { %1742 = vmatpush1.bf16.msra.mxu0 %v3511_v33  ;;  %655 = vmatprep.subr.bf16.mxu1 %v3516_v34  ;;  %v3576_v33 = vld [vmem:[%s4851_s1 + $0x284] ss:$8 sps:$4 sm:$0xff]  }
  0x7d   : > { %1743 = vmatprep.subr.bf16.mxu0 %v3519_v17  ;;  %v3579_v34 = vld [vmem:[%s4851_s1 + $0x684] ss:$8 sps:$4 sm:$0xff]   ;;  %v3577_v17 = vld [vmem:[%s4851_s1 + $0x680] ss:$8 sps:$4 sm:$0xff]  }
  0x7f   : > { %656 = vmatpush1.bf16.msra.mxu1 %v3514_v36  ;;  %v3582_v36 = vld [vmem:[%s4851_s1 + $0x294] ss:$8 sps:$4 sm:$0xff]  }
  0x80   : > { %1744 = vmatpush1.bf16.msra.mxu0 %v3517_v40  ;;  %657 = vmatprep.subr.bf16.mxu1 %v3522_v18  ;;  %v3588_v40 = vld [vmem:[%s4851_s1 + $0x2a4] ss:$8 sps:$4 sm:$0xff]  }
  0x81   : > { %1745 = vmatprep.subr.bf16.mxu0 %v3525_v42  ;;  %v3591_v18 = vld [vmem:[%s4851_s1 + $0x6a4] ss:$8 sps:$4 sm:$0xff]   ;;  %v3589_v42 = vld [vmem:[%s4851_s1 + $0x6a0] ss:$8 sps:$4 sm:$0xff]  }
  0x83   : > { %658 = vmatpush1.bf16.msra.mxu1 %v3520_v43  ;;  %v3594_v43 = vld [vmem:[%s4851_s1 + $0x2b4] ss:$8 sps:$4 sm:$0xff]  }
  0x84   : > { %1746 = vmatpush1.bf16.msra.mxu0 %v3523_v44  ;;  %888 = vmatprep.subr.bf16.mxu1 %v3528_v45  ;;  %v3597_v44 = vld [vmem:[%s4851_s1 + $0x6b4] ss:$8 sps:$4 sm:$0xff]   ;;  %v3592_v45 = vld [vmem:[%s4851_s1 + $0x2b0] ss:$8 sps:$4 sm:$0xff]  }
  0x85   : > { %1979 = vmatprep.subr.bf16.mxu0 %v3531_v48  ;;  %v3603_v48 = vld [vmem:[%s4851_s1 + $0x6c4] ss:$8 sps:$4 sm:$0xff]  }
  0x86   : > { %660 = vmatmul.mubr.bf16.vlgmr.msra.gmra.mrb[0].mxu1 %v4007_v2  ;;  %v4294_v2 = vld [vmem:[%s3962_s30 + $0x10] sm:$0xff] }
  0x87   : > { %1748 = vmatmul.mubr.bf16.vlgmr.msra.gmra.mrb[0].mxu0 %v1535_v52  ;;  %889 = vmatpush1.bf16.msra.mxu1 %v3526_v50  ;;  %v4301_v49 = vcombine.high %v4291_v63, %v4294_v2  ;;  %v3598_v50 = vld [vmem:[%s4851_s1 + $0x2c0] ss:$8 sps:$4 sm:$0xff]   ;;  %v3606_v52 = vld [vmem:[%s4851_s1 + $0x2d4] ss:$8 sps:$4 sm:$0xff]  }
  0x88   : > { %1980 = vmatpush1.bf16.msra.mxu0 %v3529_v51  ;;  %890 = vmatprep.subr.bf16.mxu1 %v3534_v53  ;;  %v3601_v51 = vld [vmem:[%s4851_s1 + $0x6c0] ss:$8 sps:$4 sm:$0xff]  }
  0x89   : > { %1981 = vmatprep.subr.bf16.mxu0 %v3537_v54  ;;  %v1814_v7 = vrot.slane %v4301_v49, 1  ;;  %920 = vmatprep.mubr.bf16.mxu1 %v725_v6  ;;  %v4441_v53 = vld [vmem:[%s3962_s30] sm:$0xcc]  ;;  %v4444_v54 = vld [vmem:[%s3962_s30 + $0x10] sm:$0x33]  ;;  %v2078_v6 = vshrl.u32 %v4301_v49, 16 }
  0x8a   : > { %v2911_v60 = vcombine.high %v4444_v54, %v4444_v54 }
  0x8b   : > { %891 = vmatpush1.bf16.msra.mxu1 %v3532_v55  ;;  %v1816_v12 = vsel %vm719_vm2, %v1814_v7, %v1815_v9  ;;  %v3609_v55 = vld [vmem:[%s4851_s1 + $0x6d4] ss:$8 sps:$4 sm:$0xff]   ;;  %v2081_v7 = vshll.u32 %v4301_v49, 16  ;;  %v2089_v9 = vshll.u32 %v4305_v4, 16  ;;  %v2842_v49 = vcombine.low %v4277_v58, %v4277_v58  ;;  %v3616_v58 = vld [vmem:[%s4851_s1 + $0x2f0] ss:$8 sps:$4 sm:$0xff]  }
  0x8c   : > { %1982 = vmatpush1.bf16.msra.mxu0 %v3535_v56  ;;  %892 = vmatprep.subr.bf16.mxu1 %v3540_v59  ;;  %v4450_v56 = vld [vmem:[%s3962_s30 + $0x8] sm:$0xff] }
  0x8d   : > { %1983 = vmatprep.subr.bf16.mxu0 %v3543_v62  ;;  %2011 = vmatprep.mubr.bf16.mxu0 %v1816_v12  ;;  %v2909_v59 = vcombine.high %v4441_v53, %v4450_v56  ;;  %v3607_v62 = vld [vmem:[%s4851_s1 + $0x6d0] ss:$8 sps:$4 sm:$0xff]   ;;  %v1007_v12 = vshrl.u32 %v2911_v60, 16 }
  0x8f   : > { %893 = vmatpush1.bf16.msra.mxu1 %v3538_v5  ;;  %v2840_v5 = vcombine.low %v4274_v57, %v4450_v56  ;;  %v3613_v57 = vld [vmem:[%s4851_s1 + $0x6e0] ss:$8 sps:$4 sm:$0xff]  }
  0x90   : > { %1984 = vmatpush1.bf16.msra.mxu0 %v3541_v8  ;;  %894 = vmatprep.subr.bf16.mxu1 %v3546_v10  ;;  %v2086_v8 = vshrl.u32 %v4305_v4, 16  ;;  %v999_v10 = vshrl.u32 %v2909_v59, 16  ;;  %v4484_v4 = vcombine.low %v4291_v63, %v4294_v2  ;;  %v3619_v63 = vld [vmem:[%s4851_s1 + $0x6f0] ss:$8 sps:$4 sm:$0xff]  }
  0x91   : > { %1985 = vmatprep.subr.bf16.mxu0 %v3549_v11  ;;  %v1002_v11 = vshll.u32 %v2909_v59, 16  ;;  %v3656_v59 = vld [vmem:[%s4851_s1 + $0x344] ss:$8 sps:$4 sm:$0xff]  }
  0x93   : > { %895 = vmatpush1.bf16.msra.mxu1 %v3544_v13  ;;  %v1010_v13 = vshll.u32 %v2911_v60, 16  ;;  %v3659_v60 = vld [vmem:[%s4851_s1 + $0x744] ss:$8 sps:$4 sm:$0xff]  }
  0x94   : > { %1986 = vmatpush1.bf16.msra.mxu0 %v3547_v14  ;;  %896 = vmatprep.subr.bf16.mxu1 %v3552_v15  ;;  %v3610_v14 = vld [vmem:[%s4851_s1 + $0x2e0] ss:$8 sps:$4 sm:$0xff]   ;;  %v4488_v15 = vcombine.low %v4297_v3, %v4297_v3  ;;  %v2080_v3 = vrot.slane %v2078_v6, 1  ;;  %v3663_v6 = vld [vmem:[%s4851_s1 + $0x750] ss:$8 sps:$4 sm:$0xff]  }
  0x95   : > { %1987 = vmatprep.subr.bf16.mxu0 %v3555_v16  ;;  %v3618_v16 = vld [vmem:[%s4851_s1 + $0x2f4] ss:$8 sps:$4 sm:$0xff]  }
  0x97   : > { %897 = vmatpush1.bf16.msra.mxu1 %v3550_v19  ;;  %v3621_v19 = vld [vmem:[%s4851_s1 + $0x6f4] ss:$8 sps:$4 sm:$0xff]  }
  0x98   : > { %1988 = vmatpush1.bf16.msra.mxu0 %v3553_v20  ;;  %898 = vmatprep.subr.bf16.mxu1 %v3558_v21  ;;  %v2083_v20 = vrot.slane %v2081_v7, 2  ;;  %v2088_v21 = vrot.slane %v2086_v8, 1  ;;  %v3668_v7 = vld [vmem:[%s4851_s1 + $0x364] ss:$8 sps:$4 sm:$0xff]  }
  0x99   : > { %1989 = vmatprep.subr.bf16.mxu0 %v3561_v22  ;;  %v2091_v22 = vrot.slane %v2089_v9, 2  ;;  %v3671_v8 = vld [vmem:[%s4851_s1 + $0x764] ss:$8 sps:$4 sm:$0xff]   ;;  %v3666_v9 = vld [vmem:[%s4851_s1 + $0x360] ss:$8 sps:$4 sm:$0xff]  }
  0x9b   : > { %899 = vmatpush1.bf16.msra.mxu1 %v3556_v23  ;;  %v1001_v23 = vrot.slane %v999_v10, 2  ;;  %v3669_v10 = vld [vmem:[%s4851_s1 + $0x760] ss:$8 sps:$4 sm:$0xff]  }
  0x9c   : > { %1990 = vmatpush1.bf16.msra.mxu0 %v3559_v24  ;;  %900 = vmatprep.subr.bf16.mxu1 %v3564_v25  ;;  %v1004_v24 = vrot.slane %v1002_v11, 3  ;;  %v1009_v25 = vrot.slane %v1007_v12, 2  ;;  %v3674_v11 = vld [vmem:[%s4851_s1 + $0x374] ss:$8 sps:$4 sm:$0xff]  }
  0x9d   : > { %1991 = vmatprep.subr.bf16.mxu0 %v3567_v26  ;;  %v1012_v26 = vrot.slane %v1010_v13, 3  ;;  %v3677_v12 = vld [vmem:[%s4851_s1 + $0x774] ss:$8 sps:$4 sm:$0xff]   ;;  %v3672_v13 = vld [vmem:[%s4851_s1 + $0x370] ss:$8 sps:$4 sm:$0xff]  }
  0x9f   : > { %901 = vmatpush1.bf16.msra.mxu1 %v3562_v27  ;;  %v720_v27 = vrot.slane %v2840_v5, 1  ;;  %v3660_v5 = vld [vmem:[%s4851_s1 + $0x350] ss:$8 sps:$4 sm:$0xff]  }
  0xa0   : > { %1992 = vmatpush1.bf16.msra.mxu0 %v3565_v28  ;;  %902 = vmatprep.subr.bf16.mxu1 %v3570_v29  ;;  %v721_v28 = vrot.slane %v2842_v49, 1  ;;  %v1811_v29 = vrot.slane %v4484_v4, 1  ;;  %v3683_v49 = vld [vmem:[%s4851_s1 + $0x784] ss:$8 sps:$4 sm:$0xff]  }
  0xa1   : > { %1993 = vmatprep.subr.bf16.mxu0 %v3573_v30  ;;  %v1812_v30 = vrot.slane %v4488_v15, 1 }
  0xa3   : > { %903 = vmatpush1.bf16.msra.mxu1 %v3568_v31  ;;  %v3626_v31 = vld [vmem:[%s4851_s1 + $0x304] ss:$8 sps:$4 sm:$0xff]  }
  0xa4   : > { %1994 = vmatpush1.bf16.msra.mxu0 %v3571_v32  ;;  %904 = vmatprep.subr.bf16.mxu1 %v3576_v33  ;;  %v3631_v32 = vld [vmem:[%s4851_s1 + $0x704] ss:$8 sps:$4 sm:$0xff]   ;;  %v3624_v33 = vld [vmem:[%s4851_s1 + $0x300] ss:$8 sps:$4 sm:$0xff]  }
  0xa5   : > { %1995 = vmatprep.subr.bf16.mxu0 %v3579_v34  ;;  %v1005_v34 = vor.u32 %v1004_v24, %v1001_v23  ;;  %v3690_v23 = vld [vmem:[%s4851_s1 + $0x3a0] ss:$8 sps:$4 sm:$0xff]  }
  0xa6   : > { %v3693_v24 = vld [vmem:[%s4851_s1 + $0x7a0] ss:$8 sps:$4 sm:$0xff]  }
  0xa7   : > { %905 = vmatpush1.bf16.msra.mxu1 %v3574_v35  ;;  %v1013_v35 = vor.u32 %v1012_v26, %v1009_v25  ;;  %v3698_v25 = vld [vmem:[%s4851_s1 + $0x3b4] ss:$8 sps:$4 sm:$0xff]  }
  0xa8   : > { %1996 = vmatpush1.bf16.msra.mxu0 %v3577_v17  ;;  %906 = vmatprep.subr.bf16.mxu1 %v3582_v36  ;;  %v2084_v17 = vor.u32 %v2083_v20, %v2080_v3  ;;  %v2092_v36 = vor.u32 %v2091_v22, %v2088_v21  ;;  %v3684_v3 = vld [vmem:[%s4851_s1 + $0x390] ss:$8 sps:$4 sm:$0xff]   ;;  %v3692_v21 = vld [vmem:[%s4851_s1 + $0x3a4] ss:$8 sps:$4 sm:$0xff]   ;;  %v3701_v26 = vld [vmem:[%s4851_s1 + $0x7b4] ss:$8 sps:$4 sm:$0xff]  }
  0xa9   : > { %1997 = vmatprep.subr.bf16.mxu0 %v3585_v37  ;;  %v3629_v37 = vld [vmem:[%s4851_s1 + $0x700] ss:$8 sps:$4 sm:$0xff]   ;;  %v3687_v20 = vld [vmem:[%s4851_s1 + $0x790] ss:$8 sps:$4 sm:$0xff]   ;;  %v3695_v22 = vld [vmem:[%s4851_s1 + $0x7a4] ss:$8 sps:$4 sm:$0xff]  }
  0xab   : > { %907 = vmatpush1.bf16.msra.mxu1 %v3580_v38  ;;  %v722_v38 = vsel %vm719_vm2, %v720_v27, %v721_v28  ;;  %v3696_v27 = vld [vmem:[%s4851_s1 + $0x3b0] ss:$8 sps:$4 sm:$0xff]  }
  0xac   : > { %1998 = vmatpush1.bf16.msra.mxu0 %v3583_v39  ;;  %908 = vmatprep.subr.bf16.mxu1 %v3588_v40  ;;  %v1813_v39 = vsel %vm719_vm2, %v1811_v29, %v1812_v30  ;;  %v3638_v40 = vld [vmem:[%s4851_s1 + $0x314] ss:$8 sps:$4 sm:$0xff]   ;;  %v3699_v28 = vld [vmem:[%s4851_s1 + $0x7b0] ss:$8 sps:$4 sm:$0xff]   ;;  %v3704_v29 = vld [vmem:[%s4851_s1 + $0x3c4] ss:$8 sps:$4 sm:$0xff]  }
  0xad   : > { %1999 = vmatprep.subr.bf16.mxu0 %v3591_v18  ;;  %v3641_v18 = vld [vmem:[%s4851_s1 + $0x714] ss:$8 sps:$4 sm:$0xff]   ;;  %v3707_v30 = vld [vmem:[%s4851_s1 + $0x7c4] ss:$8 sps:$4 sm:$0xff]   ;;  %vm2636_vm2 = vcmask 1046534  }
  0xaf   : > { %909 = vmatpush1.bf16.msra.mxu1 %v3586_v41  ;;  %v1014_v41 = vsel %vm980_vm3, %v1005_v34, %v1013_v35  ;;  %v2910_v34 = vcombine.low %v4444_v54, %v4444_v54  ;;  %v3710_v35 = vld [vmem:[%s4851_s1 + $0x3d4] ss:$8 sps:$4 sm:$0xff]   ;;  %v2064_v54 = vshll.u32 %v4484_v4, 16 }
  0xb0   : > { %2000 = vmatpush1.bf16.msra.mxu0 %v3589_v42  ;;  %910 = vmatprep.subr.bf16.mxu1 %v3594_v43  ;;  %v2093_v42 = vsel %vm2059_vm4, %v2084_v17, %v2092_v36  ;;  %v3636_v43 = vld [vmem:[%s4851_s1 + $0x310] ss:$8 sps:$4 sm:$0xff]   ;;  %v3713_v17 = vld [vmem:[%s4851_s1 + $0x7d4] ss:$8 sps:$4 sm:$0xff]  }
  0xb1   : > { %2001 = vmatprep.subr.bf16.mxu0 %v3597_v44  ;;  %v3639_v44 = vld [vmem:[%s4851_s1 + $0x710] ss:$8 sps:$4 sm:$0xff]  }
  0xb2   : > { %v3708_v36 = vld [vmem:[%s4851_s1 + $0x3d0] ss:$8 sps:$4 sm:$0xff]  }
  0xb3   : > { %911 = vmatpush1.bf16.msra.mxu1 %v3592_v45  ;;  %v3644_v45 = vld [vmem:[%s4851_s1 + $0x324] ss:$8 sps:$4 sm:$0xff]  }
  0xb4   : > { %2002 = vmatpush1.bf16.msra.mxu0 %v3595_v46  ;;  %912 = vmatprep.subr.bf16.mxu1 %v3600_v47  ;;  %v3647_v46 = vld [vmem:[%s4851_s1 + $0x724] ss:$8 sps:$4 sm:$0xff]   ;;  %v3642_v47 = vld [vmem:[%s4851_s1 + $0x320] ss:$8 sps:$4 sm:$0xff]  }
  0xb5   : > { %2003 = vmatprep.subr.bf16.mxu0 %v3603_v48  ;;  %v3645_v48 = vld [vmem:[%s4851_s1 + $0x720] ss:$8 sps:$4 sm:$0xff]  }
  0xb7   : > { %913 = vmatpush1.bf16.msra.mxu1 %v3598_v50  ;;  %v3650_v50 = vld [vmem:[%s4851_s1 + $0x334] ss:$8 sps:$4 sm:$0xff]  }
  0xb8   : > { %2004 = vmatpush1.bf16.msra.mxu0 %v3601_v51  ;;  %914 = vmatprep.subr.bf16.mxu1 %v3606_v52  ;;  %v3653_v51 = vld [vmem:[%s4851_s1 + $0x734] ss:$8 sps:$4 sm:$0xff]   ;;  %v3648_v52 = vld [vmem:[%s4851_s1 + $0x330] ss:$8 sps:$4 sm:$0xff]  }
  0xb9   : > { %2005 = vmatprep.subr.bf16.mxu0 %v3609_v55  ;;  %v3651_v55 = vld [vmem:[%s4851_s1 + $0x730] ss:$8 sps:$4 sm:$0xff]  }
  0xbb   : > { %915 = vmatpush1.bf16.msra.mxu1 %v3604_v61  ;;  %v3654_v61 = vld [vmem:[%s4851_s1 + $0x340] ss:$8 sps:$4 sm:$0xff]  }
  0xbc   : > { %2006 = vmatpush1.bf16.msra.mxu0 %v3607_v62  ;;  %916 = vmatprep.subr.bf16.mxu1 %v3612_v0  ;;  %v3657_v62 = vld [vmem:[%s4851_s1 + $0x740] ss:$8 sps:$4 sm:$0xff]   ;;  %v3662_v0 = vld [vmem:[%s4851_s1 + $0x354] ss:$8 sps:$4 sm:$0xff]  }
  0xbd   : > { %2007 = vmatprep.subr.bf16.mxu0 %v3615_v1  ;;  %v3665_v1 = vld [vmem:[%s4851_s1 + $0x754] ss:$8 sps:$4 sm:$0xff]  }
  0xbf   : > { %917 = vmatpush1.bf16.msra.mxu1 %v3610_v14  ;;  %v3675_v14 = vld [vmem:[%s4851_s1 + $0x770] ss:$8 sps:$4 sm:$0xff]  }
  0xc0   : > { %2008 = vmatpush1.bf16.msra.mxu0 %v3613_v57  ;;  %918 = vmatprep.subr.bf16.mxu1 %v3618_v16  ;;  %v3680_v57 = vld [vmem:[%s4851_s1 + $0x384] ss:$8 sps:$4 sm:$0xff]   ;;  %v3678_v16 = vld [vmem:[%s4851_s1 + $0x380] ss:$8 sps:$4 sm:$0xff]  }
  0xc1   : > { %2009 = vmatprep.subr.bf16.mxu0 %v3621_v19  ;;  %v3681_v19 = vld [vmem:[%s4851_s1 + $0x780] ss:$8 sps:$4 sm:$0xff]  }
  0xc3   : > { %919 = vmatpush1.bf16.msra.mxu1 %v3616_v58  ;;  %v3686_v58 = vld [vmem:[%s4851_s1 + $0x394] ss:$8 sps:$4 sm:$0xff]  }
  0xc4   : > { %2010 = vmatpush1.bf16.msra.mxu0 %v3619_v63  ;;  %1177 = vmatprep.subr.bf16.mxu1 %v3626_v31  ;;  %v3689_v63 = vld [vmem:[%s4851_s1 + $0x794] ss:$8 sps:$4 sm:$0xff]   ;;  %v3702_v31 = vld [vmem:[%s4851_s1 + $0x3c0] ss:$8 sps:$4 sm:$0xff]  }
  0xc5   : > { %2256 = vmatprep.subr.bf16.mxu0 %v3631_v32  ;;  %v3705_v32 = vld [vmem:[%s4851_s1 + $0x7c0] ss:$8 sps:$4 sm:$0xff]  }
  0xc6   : > { %921 = vmatmul.mubr.bf16.vlgmr.msra.gmra.mrb[0].mxu1 %v722_v38  ;;  %v3711_v38 = vld [vmem:[%s4851_s1 + $0x7d0] ss:$8 sps:$4 sm:$0xff]  }
  0xc7   : > { %2012 = vmatmul.mubr.bf16.vlgmr.msra.gmra.mrb[0].mxu0 %v1813_v39  ;;  %1178 = vmatpush1.bf16.msra.mxu1 %v3624_v33  ;;  %v2908_v33 = vcombine.low %v4441_v53, %v4450_v56  ;;  %v2061_v53 = vshrl.u32 %v4484_v4, 16  ;;  %v2069_v56 = vshrl.u32 %v4488_v15, 16  ;;  %v3716_v4 = vld [vmem:[%s4851_s1 + $0x3e4] ss:$8 sps:$4 sm:$0xff]  }
  0xc8   : > { %2257 = vmatpush1.bf16.msra.mxu0 %v3629_v37  ;;  %1179 = vmatprep.subr.bf16.mxu1 %v3638_v40  ;;  %v2072_v37 = vshll.u32 %v4488_v15, 16  ;;  %v3719_v15 = vld [vmem:[%s4851_s1 + $0x7e4] ss:$8 sps:$4 sm:$0xff]  }
  0xc9   : > { %2258 = vmatprep.subr.bf16.mxu0 %v3641_v18  ;;  %1209 = vmatprep.mubr.bf16.mxu1 %v1014_v41  ;;  %v982_v39 = vshrl.u32 %v2908_v33, 16  ;;  %v985_v40 = vshll.u32 %v2908_v33, 16  ;;  %v990_v18 = vshrl.u32 %v2910_v34, 16  ;;  %v993_v41 = vshll.u32 %v2910_v34, 16  ;;  %v3762_v33 = vld [vmem:[%s4851_s1 + $0x8a4] ss:$8 sps:$4 sm:$0xff]  }
  0xca   : > { %2288 = vmatprep.mubr.bf16.mxu0 %v2093_v42  ;;  %v4691_v42 = vld [vmem:[%s3962_s30 + $0x8] sm:$0xcc] }
  0xcb   : > { %1180 = vmatpush1.bf16.msra.mxu1 %v3636_v43  ;;  %v4694_v43 = vld [vmem:[%s3962_s30 + $0x18] sm:$0x33]  ;;  %v3760_v34 = vld [vmem:[%s4851_s1 + $0x8a0] ss:$8 sps:$4 sm:$0xff]  }
  0xcc   : > { %2259 = vmatpush1.bf16.msra.mxu0 %v3639_v44  ;;  %1181 = vmatprep.subr.bf16.mxu1 %v3644_v45  ;;  %v3714_v44 = vld [vmem:[%s4851_s1 + $0x3e0] ss:$8 sps:$4 sm:$0xff]   ;;  %v2063_v45 = vrot.slane %v2061_v53, 1 }
  0xcd   : > { %2260 = vmatprep.subr.bf16.mxu0 %v3647_v46  ;;  %v2066_v46 = vrot.slane %v2064_v54, 2  ;;  %v3766_v53 = vld [vmem:[%s4851_s1 + $0x8c0] ss:$8 sps:$4 sm:$0xff]   ;;  %v3771_v54 = vld [vmem:[%s4851_s1 + $0x8d4] ss:$8 sps:$4 sm:$0xff]  }
  0xcf   : > { %1182 = vmatpush1.bf16.msra.mxu1 %v3642_v47  ;;  %v2071_v47 = vrot.slane %v2069_v56, 1  ;;  %v3769_v56 = vld [vmem:[%s4851_s1 + $0x8d0] ss:$8 sps:$4 sm:$0xff]  }
  0xd0   : > { %2261 = vmatpush1.bf16.msra.mxu0 %v3645_v48  ;;  %1183 = vmatprep.subr.bf16.mxu1 %v3650_v50  ;;  %v2074_v48 = vrot.slane %v2072_v37, 2  ;;  %v3717_v50 = vld [vmem:[%s4851_s1 + $0x7e0] ss:$8 sps:$4 sm:$0xff]   ;;  %v3774_v37 = vld [vmem:[%s4851_s1 + $0x8e4] ss:$8 sps:$4 sm:$0xff]  }
  0xd1   : > { %2262 = vmatprep.subr.bf16.mxu0 %v3653_v51  ;;  %v984_v51 = vrot.slane %v982_v39, 2  ;;  %v3240_v39 = vcombine.low %v4691_v42, %v4294_v2 }
  0xd3   : > { %1184 = vmatpush1.bf16.msra.mxu1 %v3648_v52  ;;  %v987_v52 = vrot.slane %v985_v40, 3  ;;  %v3242_v40 = vcombine.low %v4694_v43, %v4694_v43 }
  0xd4   : > { %2263 = vmatpush1.bf16.msra.mxu0 %v3651_v55  ;;  %1185 = vmatprep.subr.bf16.mxu1 %v3656_v59  ;;  %v992_v55 = vrot.slane %v990_v18, 2  ;;  %v995_v59 = vrot.slane %v993_v41, 3  ;;  %v3777_v18 = vld [vmem:[%s4851_s1 + $0x8f4] ss:$8 sps:$4 sm:$0xff]   ;;  %v3775_v41 = vld [vmem:[%s4851_s1 + $0x8f0] ss:$8 sps:$4 sm:$0xff]  }
  0xd5   : > { %2264 = vmatprep.subr.bf16.mxu0 %v3659_v60  ;;  %v3722_v60 = vld [vmem:[%s4851_s1 + $0x3f4] ss:$8 sps:$4 sm:$0xff]  }
  0xd7   : > { %1186 = vmatpush1.bf16.msra.mxu1 %v3654_v61  ;;  %v3725_v61 = vld [vmem:[%s4851_s1 + $0x7f4] ss:$8 sps:$4 sm:$0xff]  }
  0xd8   : > { %2265 = vmatpush1.bf16.msra.mxu0 %v3657_v62  ;;  %1187 = vmatprep.subr.bf16.mxu1 %v3662_v0  ;;  %v3241_v62 = vcombine.high %v4691_v42, %v4294_v2  ;;  %v3243_v0 = vcombine.high %v4694_v43, %v4694_v43 }
  0xd9   : > { %2266 = vmatprep.subr.bf16.mxu0 %v3665_v1  ;;  %v2067_v1 = vor.u32 %v2066_v46, %v2063_v45  ;;  %v2566_v46 = vlaneseq }
  0xdb   : > { %1188 = vmatpush1.bf16.msra.mxu1 %v3660_v5  ;;  %v3720_v5 = vld [vmem:[%s4851_s1 + $0x3f0] ss:$8 sps:$4 sm:$0xff]  }
  0xdc   : > { %2267 = vmatpush1.bf16.msra.mxu0 %v3663_v6  ;;  %1189 = vmatprep.subr.bf16.mxu1 %v3668_v7  ;;  %v3723_v6 = vld [vmem:[%s4851_s1 + $0x7f0] ss:$8 sps:$4 sm:$0xff]   ;;  %v988_v7 = vor.u32 %v987_v52, %v984_v51  ;;  %v3791_v52 = vmov 1983009808  }
  0xdd   : > { %2268 = vmatprep.subr.bf16.mxu0 %v3671_v8  ;;  %v996_v8 = vor.u32 %v995_v59, %v992_v55  ;;  %v2590_v55 = vunpack.c.l.s4 %v3791_v52 }
  0xdf   : > { %1190 = vmatpush1.bf16.msra.mxu1 %v3666_v9  ;;  %v2075_v9 = vor.u32 %v2074_v48, %v2071_v47  ;;  %v2567_v47 = vshrl.u32 %v2566_v46, 7 }
  0xe0   : > { %2269 = vmatpush1.bf16.msra.mxu0 %v3669_v10  ;;  %1191 = vmatprep.subr.bf16.mxu1 %v3674_v11  ;;  %v3732_v10 = vld [vmem:[%s4851_s1 + $0x804] ss:$8 sps:$4 sm:$0xff]   ;;  %v2352_v11 = vrot.slane %v3241_v62, 2 }
  0xe1   : > { %2270 = vmatprep.subr.bf16.mxu0 %v3677_v12  ;;  %v2353_v12 = vrot.slane %v3243_v0, 2  ;;  %v2568_v48 = vsub.s32 0, %v2567_v47  ;;  %v2572_v51 = vsub.s32 1, %v2567_v47 }
  0xe3   : > { %1192 = vmatpush1.bf16.msra.mxu1 %v3672_v13  ;;  %v997_v13 = vsel %vm980_vm3, %v988_v7, %v996_v8  ;;  %vm2637_vm3 = vmor %vm2635_vm1, %vm2636_vm2 }
  0xe4   : > { %2271 = vmatpush1.bf16.msra.mxu0 %v3675_v14  ;;  %1193 = vmatprep.subr.bf16.mxu1 %v3680_v57  ;;  %v3730_v14 = vld [vmem:[%s4851_s1 + $0x800] ss:$8 sps:$4 sm:$0xff]   ;;  %v2076_v57 = vsel %vm2059_vm4, %v2067_v1, %v2075_v9  ;;  %v2591_v1 = vunpack.c.0.s8 %v2590_v55 }
  0xe5   : > { %2272 = vmatprep.subr.bf16.mxu0 %v3683_v49  ;;  %v3735_v49 = vld [vmem:[%s4851_s1 + $0x814] ss:$8 sps:$4 sm:$0xff]  }
  0xe7   : > { %1194 = vmatpush1.bf16.msra.mxu1 %v3678_v16  ;;  %v2354_v16 = vsel %vm2348_vm5, %v2352_v11, %v2353_v12 }
  0xe8   : > { %2273 = vmatpush1.bf16.msra.mxu0 %v3681_v19  ;;  %1195 = vmatprep.subr.bf16.mxu1 %v3686_v58  ;;  %v3733_v19 = vld [vmem:[%s4851_s1 + $0x810] ss:$8 sps:$4 sm:$0xff]   ;;  %v3738_v58 = vld [vmem:[%s4851_s1 + $0x824] ss:$8 sps:$4 sm:$0xff]  }
  0xe9   : > { %2274 = vmatprep.subr.bf16.mxu0 %v3689_v63  ;;  %v3736_v63 = vld [vmem:[%s4851_s1 + $0x820] ss:$8 sps:$4 sm:$0xff]  }
  0xeb   : > { %1196 = vmatpush1.bf16.msra.mxu1 %v3684_v3  ;;  %v3741_v3 = vld [vmem:[%s4851_s1 + $0x834] ss:$8 sps:$4 sm:$0xff]  }
  0xec   : > { %2275 = vmatpush1.bf16.msra.mxu0 %v3687_v20  ;;  %1197 = vmatprep.subr.bf16.mxu1 %v3692_v21  ;;  %v3739_v20 = vld [vmem:[%s4851_s1 + $0x830] ss:$8 sps:$4 sm:$0xff]   ;;  %v3744_v21 = vld [vmem:[%s4851_s1 + $0x844] ss:$8 sps:$4 sm:$0xff]  }
  0xed   : > { %2276 = vmatprep.subr.bf16.mxu0 %v3695_v22  ;;  %v3742_v22 = vld [vmem:[%s4851_s1 + $0x840] ss:$8 sps:$4 sm:$0xff]  }
  0xef   : > { %1198 = vmatpush1.bf16.msra.mxu1 %v3690_v23  ;;  %v3747_v23 = vld [vmem:[%s4851_s1 + $0x854] ss:$8 sps:$4 sm:$0xff]  }
  0xf0   : > { %2277 = vmatpush1.bf16.msra.mxu0 %v3693_v24  ;;  %1199 = vmatprep.subr.bf16.mxu1 %v3698_v25  ;;  %v3745_v24 = vld [vmem:[%s4851_s1 + $0x850] ss:$8 sps:$4 sm:$0xff]   ;;  %v3750_v25 = vld [vmem:[%s4851_s1 + $0x864] ss:$8 sps:$4 sm:$0xff]  }
  0xf1   : > { %2278 = vmatprep.subr.bf16.mxu0 %v3701_v26  ;;  %v3748_v26 = vld [vmem:[%s4851_s1 + $0x860] ss:$8 sps:$4 sm:$0xff]  }
  0xf3   : > { %1200 = vmatpush1.bf16.msra.mxu1 %v3696_v27  ;;  %v3753_v27 = vld [vmem:[%s4851_s1 + $0x874] ss:$8 sps:$4 sm:$0xff]  }
  0xf4   : > { %2279 = vmatpush1.bf16.msra.mxu0 %v3699_v28  ;;  %1201 = vmatprep.subr.bf16.mxu1 %v3704_v29  ;;  %v3751_v28 = vld [vmem:[%s4851_s1 + $0x870] ss:$8 sps:$4 sm:$0xff]   ;;  %v3756_v29 = vld [vmem:[%s4851_s1 + $0x884] ss:$8 sps:$4 sm:$0xff]  }
  0xf5   : > { %2280 = vmatprep.subr.bf16.mxu0 %v3707_v30  ;;  %v3754_v30 = vld [vmem:[%s4851_s1 + $0x880] ss:$8 sps:$4 sm:$0xff]  }
  0xf7   : > { %1202 = vmatpush1.bf16.msra.mxu1 %v3702_v31  ;;  %v3759_v31 = vld [vmem:[%s4851_s1 + $0x894] ss:$8 sps:$4 sm:$0xff]  }
  0xf8   : > { %2281 = vmatpush1.bf16.msra.mxu0 %v3705_v32  ;;  %1203 = vmatprep.subr.bf16.mxu1 %v3710_v35  ;;  %v3757_v32 = vld [vmem:[%s4851_s1 + $0x890] ss:$8 sps:$4 sm:$0xff]   ;;  %v3765_v35 = vld [vmem:[%s4851_s1 + $0x8b4] ss:$8 sps:$4 sm:$0xff]  }
  0xf9   : > { %2282 = vmatprep.subr.bf16.mxu0 %v3713_v17  ;;  %v3763_v17 = vld [vmem:[%s4851_s1 + $0x8b0] ss:$8 sps:$4 sm:$0xff]  }
  0xfb   : > { %1204 = vmatpush1.bf16.msra.mxu1 %v3708_v36  ;;  %v3768_v36 = vld [vmem:[%s4851_s1 + $0x8c4] ss:$8 sps:$4 sm:$0xff]  }
  0xfc   : > { %2283 = vmatpush1.bf16.msra.mxu0 %v3711_v38  ;;  %1205 = vmatprep.subr.bf16.mxu1 %v3716_v4  ;;  %v3772_v38 = vld [vmem:[%s4851_s1 + $0x8e0] ss:$8 sps:$4 sm:$0xff]   ;;  %v2349_v4 = vrot.slane %v3240_v39, 2 }
  0xfd   : > { %2284 = vmatprep.subr.bf16.mxu0 %v3719_v15  ;;  %v2350_v15 = vrot.slane %v3242_v40, 2 }
  0xff   : > { %1206 = vmatpush1.bf16.msra.mxu1 %v3714_v44  ;;  %v2351_v44 = vsel %vm2348_vm5, %v2349_v4, %v2350_v15 }
 0x100   : > { %2285 = vmatpush1.bf16.msra.mxu0 %v3717_v50  ;;  %1207 = vmatprep.subr.bf16.mxu1 %v3722_v60  ;;  %v2564_v50 = vld [vmem:[%s4852_s2] sm:$0x3] }
 0x101   : > { %2286 = vmatprep.subr.bf16.mxu0 %v3725_v61  ;;  %v2569_v59 = vrot.slane %v2564_v50, %v2568_v48  ;;  %v2573_v61 = vrot.slane %v2564_v50, %v2572_v51 }
 0x103   : > { %1208 = vmatpush1.bf16.msra.mxu1 %v3720_v5 }
 0x104   : > { %2287 = vmatpush1.bf16.msra.mxu0 %v3723_v6 }
 0x105   : > { %2517 = vmatprep.subr.bf16.mxu0 %v3732_v10 }
 0x106   : > { %1210 = vmatmul.mubr.bf16.vlgmr.msra.gmra.mrb[0].mxu1 %v997_v13  ;;  %v2594_v13 = vsub.s32 %v2591_v1, %v2567_v47 }
 0x107   : > { %2289 = vmatmul.mubr.bf16.vlgmr.msra.gmra.mrb[0].mxu0 %v2076_v57 }
 0x108   : > { %2518 = vmatpush1.bf16.msra.mxu0 %v3730_v14  ;;  %2549 = vmatprep.mubr.bf16.mxu0 %v2354_v16 }
 0x109   : > { %2519 = vmatprep.subr.bf16.mxu0 %v3735_v49 }
 0x10c   : > { %2520 = vmatpush1.bf16.msra.mxu0 %v3733_v19 }
 0x10d   : > { %2521 = vmatprep.subr.bf16.mxu0 %v3738_v58 }
 0x110   : > { %2522 = vmatpush1.bf16.msra.mxu0 %v3736_v63 }
 0x111   : > { %2523 = vmatprep.subr.bf16.mxu0 %v3741_v3  ;;  %v2604_v3 = vld [vmem:[%s4829_s15] sm:$0xf] }
 0x114   : > { %2524 = vmatpush1.bf16.msra.mxu0 %v3739_v20 }
 0x115   : > { %2525 = vmatprep.subr.bf16.mxu0 %v3744_v21 }
 0x118   : > { %2526 = vmatpush1.bf16.msra.mxu0 %v3742_v22 }
 0x119   : > { %2527 = vmatprep.subr.bf16.mxu0 %v3747_v23 }
 0x11c   : > { %2528 = vmatpush1.bf16.msra.mxu0 %v3745_v24 }
 0x11d   : > { %2529 = vmatprep.subr.bf16.mxu0 %v3750_v25 }
 0x120   : > { %2530 = vmatpush1.bf16.msra.mxu0 %v3748_v26 }
 0x121   : > { %2531 = vmatprep.subr.bf16.mxu0 %v3753_v27 }
 0x124   : > { %2532 = vmatpush1.bf16.msra.mxu0 %v3751_v28 }
 0x125   : > { %2533 = vmatprep.subr.bf16.mxu0 %v3756_v29 }
 0x128   : > { %2534 = vmatpush1.bf16.msra.mxu0 %v3754_v30 }
 0x129   : > { %2535 = vmatprep.subr.bf16.mxu0 %v3759_v31 }
 0x12c   : > { %2536 = vmatpush1.bf16.msra.mxu0 %v3757_v32  ;;  %v3281_v32 = vld [vmem:[%s4829_s15 + $0x8] sm:$0xf] }
 0x12d   : > { %2537 = vmatprep.subr.bf16.mxu0 %v3762_v33 }
 0x130   : > { %2538 = vmatpush1.bf16.msra.mxu0 %v3760_v34 }
 0x131   : > { %2539 = vmatprep.subr.bf16.mxu0 %v3765_v35  ;;  %v3277_v35 = vld [vmem:[%s4829_s15 + $0x4] sm:$0xf] }
 0x134   : > { %2540 = vmatpush1.bf16.msra.mxu0 %v3763_v17 }
 0x135   : > { %2541 = vmatprep.subr.bf16.mxu0 %v3768_v36 }
 0x138   : > { %2542 = vmatpush1.bf16.msra.mxu0 %v3766_v53 }
 0x139   : > { %2543 = vmatprep.subr.bf16.mxu0 %v3771_v54 }
 0x13c   : > { %2544 = vmatpush1.bf16.msra.mxu0 %v3769_v56 }
 0x13d   : > { %2545 = vmatprep.subr.bf16.mxu0 %v3774_v37 }
 0x140   : > { %2546 = vmatpush1.bf16.msra.mxu0 %v3772_v38 }
 0x141   : > { %2547 = vmatprep.subr.bf16.mxu0 %v3777_v18 }
 0x144   : > { %2548 = vmatpush1.bf16.msra.mxu0 %v3775_v41 }
 0x147   : > { %2550 = vmatmul.mubr.bf16.vlgmr.msra.gmra.mrb[0].mxu0 %v2351_v44 }
 0x1d9   : > { %v1211_v2 = vpop.f32.mrb[0].mxu1 }
 0x1da   : > { %v1213_v42 = vpop.f32.mrb[1].mxu1 }
 0x1db   : > { %v1215_v43 = vpop.f32.mrb[2].mxu1 }
 0x1dc   : > { %v1217_v45 = vpop.f32.mrb[3].mxu1 }
 0x21a   : > { %v2551_v60 = vpop.f32.mrb[0].mxu0 }
 0x21b   : > { %v3286_v62 = vadd.f32 %v2551_v60, %v1211_v2  ;;  %v2553_v0 = vpop.f32.mrb[1].mxu0 }
 0x21c   : > { %v3287_v5 = vadd.f32 %v2553_v0, %v1213_v42  ;;  %v2555_v6 = vpop.f32.mrb[2].mxu0 }
 0x21d   : > { %v2576_v7 = vadd.f32 %v3286_v62, %v2569_v59  ;;  %v3288_v8 = vadd.f32 %v2555_v6, %v1215_v43  ;;  %v2557_v9 = vpop.f32.mrb[3].mxu0 }
 0x21e   : > { %v2577_v10 = vadd.f32 %v3287_v5, %v2573_v61  ;;  %v3289_v11 = vadd.f32 %v2557_v9, %v1217_v45 }
 0x21f   : > { %v2580_v12 = vmax.f32 %v2576_v7, 0.0  ;;  %v2578_v14 = vadd.f32 %v3288_v8, %v2569_v59 }
 0x220   : > { %v2581_v57 = vmax.f32 %v2577_v10, 0.0  ;;  %v2579_v49 = vadd.f32 %v3289_v11, %v2573_v61 }
 0x221   : > { %v2582_v16 = vmax.f32 %v2578_v14, 0.0 }
 0x222   : > { %v3276_v19 = vpack.c.bf16 %v2581_v57, %v2580_v12  ;;  %v2583_v63 = vmax.f32 %v2579_v49, 0.0 }
 0x224   : > { %v2595_v20 = vrot.slane %v3276_v19, %v2594_v13  ;;  %v3279_v21 = vpack.c.bf16 %v2583_v63, %v2582_v16 }
 0x226   : > { %v2605_v22 = vsel %vm4831_vm14, %v2595_v20, %v2604_v3  ;;  %v2607_v23 = vcombine.high %v2595_v20, %v2595_v20  ;;  %v2629_v24 = vrot.slane %v3279_v21, %v2594_v13 }
 0x227   : > { %2606 = vst [vmem:[%s4829_s15] sm:$0xf] %v2605_v22 }
 0x228   : > { %v2609_v25 = vshrl.u32 %v2607_v23, 16  ;;  %v2612_v26 = vshll.u32 %v2607_v23, 16  ;;  %v2630_v27 = vcombine.high %v2629_v24, %v2629_v24  ;;  %v3280_v30 = vrot.slane %v2629_v24, 9 }
 0x22a   : > { %v2611_v28 = vrot.slane %v2609_v25, 6  ;;  %v2614_v29 = vrot.slane %v2612_v26, 7  ;;  %v2640_v31 = vrot.slane %v2630_v27, 7 }
 0x22c   : > { %v2615_v33 = vor.u32 %v2614_v29, %v2611_v28  ;;  %v2641_v34 = vsel %vm2637_vm3, %v3280_v30, %v2640_v31 }
 0x22d   : > { %v2645_v17 = vsel %vm4831_vm14, %v2641_v34, %v3281_v32 }
 0x22e   : > { %v2616_v36 = vrot.slane %v2615_v33, 2  ;;  %3282 = vst [vmem:[%s4829_s15 + $0x8] sm:$0xf] %v2645_v17 }
 0x230   : > { %v2620_v53 = vsel %vm4831_vm14, %v2616_v36, %v3277_v35 }
 0x231   : > { %3278 = vst [vmem:[%s4829_s15 + $0x4] sm:$0xf] %v2620_v53 }
 0x232 PF: > { %s13_s12 = sadd.s32 1, %s3789_s12  }
 0x233   : > { %p10_p4 = scmp.ge.s32.totalorder %s13_s12, 6  }
 0x235   :  { %12 = sbr.rel (!%p10_p4) target bundleno = 1 (0x1), region = 72 }

</bundles_post_ra>
